<compile_context>
chip_gen: v5e
topology: v5e:2x2
jax: 0.10.0
libtpu: 0.0.40
codegen_flags: <defaults>
</compile_context>

<pallas_src>
import math
from functools import partial

import jax
import jax.numpy as jnp
from jax.experimental import pallas as pl
from jax.experimental.pallas import tpu as pltpu

# ----------------------------- config (small, deterministic) -----------------
D_MODEL = 32
N_HEADS = 4
D_HEAD = D_MODEL // N_HEADS
FFN_DIM = 64
ENC_LAYERS = 2
DEC_LAYERS = 2
SRC_VOCAB = 50
TGT_VOCAB = 50
VOCAB_PAD = 128            # lane-padded output-projection width (multiple of 128)
PAD = 0
BATCH = 2
SRC_LEN = 8
TGT_LEN = 8
NEG_INF = -1e9

_VMEM = pl.BlockSpec(memory_space=pltpu.MemorySpace.VMEM)


# ----------------------------- fused Pallas kernel ---------------------------
def _fused_forward_kernel(*refs, treedef, batch, src_len, tgt_len):
    out_ref = refs[-1]
    tree = jax.tree_util.tree_unflatten(treedef, refs[:-1])

    # Parameters are tiny -> load them all (they stay VMEM/vreg resident).
    p = jax.tree_util.tree_map(lambda r: r[...], tree["p"])
    x_tok_ref = tree["x_tok"]        # [B, Ts, 1] int32
    xd_tok_ref = tree["xd_tok"]      # [B, Tt, 1] int32
    enc_add_ref = tree["enc_add"]    # [B, 1, Ts] f32 additive key-pad mask
    dec_add_ref = tree["dec_add"]    # [B, Tt, Tt] f32 additive causal+pad mask

    D, H, Dh = D_MODEL, N_HEADS, D_HEAD
    scale = 1.0 / math.sqrt(Dh)
    sqrt_d = math.sqrt(D)

    def linear(x, w, b):
        return jnp.dot(x, w, preferred_element_type=jnp.float32) + b

    def layer_norm(x, ln):
        mu = jnp.mean(x, axis=-1, keepdims=True)
        var = jnp.mean((x - mu) ** 2, axis=-1, keepdims=True)
        return (x - mu) * jax.lax.rsqrt(var + 1e-5) * ln["g"] + ln["b"]

    def softmax(s):
        s = s - jnp.max(s, axis=-1, keepdims=True)
        e = jnp.exp(s)
        return e * pl.reciprocal(jnp.sum(e, axis=-1, keepdims=True), approx=True)

    def ffn(x, fp):
        h = jnp.maximum(linear(x, fp["w1"], fp["b1"]), 0.0)
        return linear(h, fp["w2"], fp["b2"])

    def attend(q, k, v, wo, bo, add_mask):
        # q: [Tq, D]; k, v: [Tk, D]; heads split along lanes.
        # Output projection folded into the head sum:
        #   concat_h(o_h) @ Wo == sum_h o_h @ Wo[h*Dh:(h+1)*Dh, :]
        acc = jnp.zeros((q.shape[0], D), jnp.float32)
        for h in range(H):
            sl = slice(h * Dh, (h + 1) * Dh)
            s = jax.lax.dot_general(q[:, sl], k[:, sl], (((1,), (1,)), ((), ())),
                                    preferred_element_type=jnp.float32)
            o_h = jnp.dot(softmax(s * scale + add_mask), v[:, sl],
                          preferred_element_type=jnp.float32)
            acc = acc + jnp.dot(o_h, wo[sl, :], preferred_element_type=jnp.float32)
        return acc + bo

    def embed(tok_col, table, pe_rows):
        # Embedding gather as a one-hot matmul on the MXU (table is VMEM resident).
        V = table.shape[0]
        iota_v = jax.lax.broadcasted_iota(jnp.int32, (tok_col.shape[0], V), 1)
        onehot = (iota_v == tok_col).astype(jnp.float32)
        return jnp.dot(onehot, table, preferred_element_type=jnp.float32) * sqrt_d + pe_rows

    pe_src = p["pe"][:src_len, :]
    pe_tgt = p["pe"][:tgt_len, :]

    for b in range(batch):  # tiny batch -> fully unrolled, no grid, no HBM round-trips
        enc_add_b = enc_add_ref[b]   # [1, Ts]  (broadcast over query rows)
        dec_add_b = dec_add_ref[b]   # [Tt, Tt]

        # ------------------------------ encoder ------------------------------
        h = embed(x_tok_ref[b], p["src_emb"], pe_src)
        for lp in p["enc_layers"]:
            ap = lp["attn"]
            qkv = linear(h, ap["wqkv"], ap["bqkv"])                       # fused QKV
            a = attend(qkv[:, 0:D], qkv[:, D:2 * D], qkv[:, 2 * D:3 * D],
                       ap["wo"], ap["bo"], enc_add_b)
            h = layer_norm(h + a, lp["ln1"])
            h = layer_norm(h + ffn(h, lp["ffn"]), lp["ln2"])
        h_enc = h

        # ------------------------------ decoder ------------------------------
        g = embed(xd_tok_ref[b], p["tgt_emb"], pe_tgt)
        for lp in p["dec_layers"]:
            ap = lp["self_attn"]
            qkv = linear(g, ap["wqkv"], ap["bqkv"])                       # fused QKV
            a = attend(qkv[:, 0:D], qkv[:, D:2 * D], qkv[:, 2 * D:3 * D],
                       ap["wo"], ap["bo"], dec_add_b)
            g = layer_norm(g + a, lp["ln1"])

            cp = lp["cross_attn"]
            qc = linear(g, cp["wq"], cp["bq"])
            kv = linear(h_enc, cp["wkv"], cp["bkv"])                      # fused KV
            c = attend(qc, kv[:, 0:D], kv[:, D:2 * D], cp["wo"], cp["bo"], enc_add_b)
            g = layer_norm(g + c, lp["ln2"])

            g = layer_norm(g + ffn(g, lp["ffn"]), lp["ln3"])

        # ---- lane-padded (128-wide) output projection -> unmasked full-lane stores
        logits_b = linear(g, p["out_w"], p["out_b"])                      # [Tt, 128]
        out_ref[b * tgt_len:(b + 1) * tgt_len, :] = logits_b.astype(out_ref.dtype)


# ----------------------------- wrapper ----------------------------------------
def translation_forward(params, x, x_dec, enc_mask, dec_mask):
    """x, x_dec: int token ids [B, T]; enc_mask/dec_mask: bool [B, T], True = valid.
    Returns raw logits [B, TGT_LEN, TGT_VOCAB]."""
    B, Ts = x.shape
    Tt = x_dec.shape[1]

    # Additive float masks, built once in plain JAX glue (no per-head duplication).
    enc_add = jnp.where(enc_mask[:, None, :], 0.0, NEG_INF).astype(jnp.float32)            # [B,1,Ts]
    causal = jnp.tril(jnp.ones((Tt, Tt), dtype=bool))
    dec_add = jnp.where(causal[None] & dec_mask[:, None, :], 0.0, NEG_INF).astype(jnp.float32)  # [B,Tt,Tt]

    bundle = {
        "p": params,
        "x_tok": x.astype(jnp.int32)[:, :, None],    # [B, Ts, 1]
        "xd_tok": x_dec.astype(jnp.int32)[:, :, None],
        "enc_add": enc_add,
        "dec_add": dec_add,
    }
    leaves, treedef = jax.tree_util.tree_flatten(bundle)

    out = pl.pallas_call(
        partial(_fused_forward_kernel, treedef=treedef, batch=B, src_len=Ts, tgt_len=Tt),
        out_shape=jax.ShapeDtypeStruct((B * Tt, VOCAB_PAD), jnp.float32),
        in_specs=[_VMEM] * len(leaves),
        out_specs=_VMEM,
    )(*leaves)
    return out.reshape(B, Tt, VOCAB_PAD)[:, :, :TGT_VOCAB]


# ----------------------------- pure-JAX reference (for correctness) ----------
def reference_forward(params, x, x_dec, enc_mask, dec_mask):
    D, H, Dh = D_MODEL, N_HEADS, D_HEAD

    def embed(tok, table, pe):
        return jnp.take(table, tok, axis=0) * math.sqrt(D) + pe[None, : tok.shape[1], :]

    def layer_norm(h, ln):
        mu = h.mean(-1, keepdims=True)
        var = ((h - mu) ** 2).mean(-1, keepdims=True)
        return (h - mu) / jnp.sqrt(var + 1e-5) * ln["g"] + ln["b"]

    def split_heads(z):
        B, T, _ = z.shape
        return z.reshape(B, T, H, Dh).transpose(0, 2, 1, 3)

    def attn(q, k, v, wo, bo, add_mask):
        qh, kh, vh = split_heads(q), split_heads(k), split_heads(v)
        s = jnp.einsum("bhqd,bhkd->bhqk", qh, kh) / math.sqrt(Dh) + add_mask[:, None]
        pr = jax.nn.softmax(s, axis=-1)
        o = jnp.einsum("bhqk,bhkd->bhqd", pr, vh).transpose(0, 2, 1, 3).reshape(q.shape)
        return o @ wo + bo

    def mha_self(h, ap, add_mask):
        qkv = h @ ap["wqkv"] + ap["bqkv"]
        return attn(qkv[..., 0:D], qkv[..., D:2 * D], qkv[..., 2 * D:3 * D],
                    ap["wo"], ap["bo"], add_mask)

    def mha_cross(hq, hkv, cp, add_mask):
        q = hq @ cp["wq"] + cp["bq"]
        kv = hkv @ cp["wkv"] + cp["bkv"]
        return attn(q, kv[..., 0:D], kv[..., D:2 * D], cp["wo"], cp["bo"], add_mask)

    def ffn(h, fp):
        return jnp.maximum(h @ fp["w1"] + fp["b1"], 0.0) @ fp["w2"] + fp["b2"]

    Tt = x_dec.shape[1]
    enc_add = jnp.where(enc_mask[:, None, :], 0.0, NEG_INF).astype(jnp.float32)
    causal = jnp.tril(jnp.ones((Tt, Tt), dtype=bool))
    dec_add = jnp.where(causal[None] & dec_mask[:, None, :], 0.0, NEG_INF).astype(jnp.float32)

    h = embed(x, params["src_emb"], params["pe"])
    for lp in params["enc_layers"]:
        h = layer_norm(h + mha_self(h, lp["attn"], enc_add), lp["ln1"])
        h = layer_norm(h + ffn(h, lp["ffn"]), lp["ln2"])
    h_enc = h

    g = embed(x_dec, params["tgt_emb"], params["pe"])
    for lp in params["dec_layers"]:
        g = layer_norm(g + mha_self(g, lp["self_attn"], dec_add), lp["ln1"])
        g = layer_norm(g + mha_cross(g, h_enc, lp["cross_attn"], enc_add), lp["ln2"])
        g = layer_norm(g + ffn(g, lp["ffn"]), lp["ln3"])

    logits = g @ params["out_w"] + params["out_b"]
    return logits[:, :, :TGT_VOCAB]


# ----------------------------- deterministic parameter init ------------------
def sinusoidal_pe(max_len, d_model):
    pos = jnp.arange(max_len, dtype=jnp.float32)[:, None]
    div = jnp.exp(jnp.arange(0, d_model, 2, dtype=jnp.float32) * (-math.log(10000.0) / d_model))
    pe = jnp.zeros((max_len, d_model), jnp.float32)
    pe = pe.at[:, 0::2].set(jnp.sin(pos * div))
    pe = pe.at[:, 1::2].set(jnp.cos(pos * div))
    return pe


def init_params(key):
    keys = iter(jax.random.split(key, 256))

    def nk():
        return next(keys)

    def w(shape):
        return 0.02 * jax.random.normal(nk(), shape, jnp.float32)

    def zeros(shape):
        return jnp.zeros(shape, jnp.float32)

    def ln():
        return {"g": jnp.ones((1, D_MODEL), jnp.float32), "b": zeros((1, D_MODEL))}

    def self_attn_p():   # fused QKV projection
        return {"wqkv": w((D_MODEL, 3 * D_MODEL)), "bqkv": zeros((1, 3 * D_MODEL)),
                "wo": w((D_MODEL, D_MODEL)), "bo": zeros((1, D_MODEL))}

    def cross_attn_p():  # separate Q, fused KV projection
        return {"wq": w((D_MODEL, D_MODEL)), "bq": zeros((1, D_MODEL)),
                "wkv": w((D_MODEL, 2 * D_MODEL)), "bkv": zeros((1, 2 * D_MODEL)),
                "wo": w((D_MODEL, D_MODEL)), "bo": zeros((1, D_MODEL))}

    def ffn_p():
        return {"w1": w((D_MODEL, FFN_DIM)), "b1": zeros((1, FFN_DIM)),
                "w2": w((FFN_DIM, D_MODEL)), "b2": zeros((1, D_MODEL))}

    src_emb = w((SRC_VOCAB, D_MODEL)).at[PAD].set(0.0)   # padding_idx row = 0
    tgt_emb = w((TGT_VOCAB, D_MODEL)).at[PAD].set(0.0)

    # Output projection lane-padded to 128 columns; padded columns are zero.
    out_w = zeros((D_MODEL, VOCAB_PAD)).at[:, :TGT_VOCAB].set(w((D_MODEL, TGT_VOCAB)))
    out_b = zeros((1, VOCAB_PAD))

    enc_layers = [{"attn": self_attn_p(), "ln1": ln(), "ffn": ffn_p(), "ln2": ln()}
                  for _ in range(ENC_LAYERS)]
    dec_layers = [{"self_attn": self_attn_p(), "ln1": ln(), "cross_attn": cross_attn_p(),
                   "ln2": ln(), "ffn": ffn_p(), "ln3": ln()}
                  for _ in range(DEC_LAYERS)]
    return {"src_emb": src_emb, "tgt_emb": tgt_emb,
            "pe": sinusoidal_pe(max(SRC_LEN, TGT_LEN), D_MODEL),
            "enc_layers": enc_layers, "dec_layers": dec_layers,
            "out_w": out_w, "out_b": out_b}


# ----------------------------- main -------------------------------------------
if __name__ == "__main__":
    root = jax.random.PRNGKey(0)
    k_param, k_src, k_tgt = jax.random.split(root, 3)

    params = init_params(k_param)

    # token ids (avoid PAD except explicit trailing pads)
    x = jax.random.randint(k_src, (BATCH, SRC_LEN), 1, SRC_VOCAB).astype(jnp.int32)
    x_dec = jax.random.randint(k_tgt, (BATCH, TGT_LEN), 1, TGT_VOCAB).astype(jnp.int32)
    x = x.at[1, SRC_LEN - 2:].set(PAD)
    x_dec = x_dec.at[1, TGT_LEN - 1:].set(PAD)
    enc_mask = x != PAD
    dec_mask = x_dec != PAD

    fwd = jax.jit(translation_forward)
    logits = jax.block_until_ready(fwd(params, x, x_dec, enc_mask, dec_mask))

    assert logits.shape == (BATCH, TGT_LEN, TGT_VOCAB), logits.shape
    assert bool(jnp.all(jnp.isfinite(logits)))

    # correctness vs. plain-JAX reference (loose tol: approx reciprocal in softmax)
    ref = jax.jit(reference_forward)(params, x, x_dec, enc_mask, dec_mask)
    assert bool(jnp.allclose(logits, ref, atol=2e-2, rtol=2e-2))

    print("KERNEL_OK")
</pallas_src>

<mosaic_0001>
module attributes {stable_mosaic.version = 11 : i64} {
  func.func @_fused_forward_kernel(%arg0: memref<2x8x8xf32, #tpu.memory_space<vmem>>, %arg1: memref<2x1x8xf32, #tpu.memory_space<vmem>>, %arg2: memref<1x64xf32, #tpu.memory_space<vmem>>, %arg3: memref<1x32xf32, #tpu.memory_space<vmem>>, %arg4: memref<1x32xf32, #tpu.memory_space<vmem>>, %arg5: memref<32x64xf32, #tpu.memory_space<vmem>>, %arg6: memref<32x32xf32, #tpu.memory_space<vmem>>, %arg7: memref<32x32xf32, #tpu.memory_space<vmem>>, %arg8: memref<1x64xf32, #tpu.memory_space<vmem>>, %arg9: memref<1x32xf32, #tpu.memory_space<vmem>>, %arg10: memref<32x64xf32, #tpu.memory_space<vmem>>, %arg11: memref<64x32xf32, #tpu.memory_space<vmem>>, %arg12: memref<1x32xf32, #tpu.memory_space<vmem>>, %arg13: memref<1x32xf32, #tpu.memory_space<vmem>>, %arg14: memref<1x32xf32, #tpu.memory_space<vmem>>, %arg15: memref<1x32xf32, #tpu.memory_space<vmem>>, %arg16: memref<1x32xf32, #tpu.memory_space<vmem>>, %arg17: memref<1x32xf32, #tpu.memory_space<vmem>>, %arg18: memref<1x32xf32, #tpu.memory_space<vmem>>, %arg19: memref<1x96xf32, #tpu.memory_space<vmem>>, %arg20: memref<32x32xf32, #tpu.memory_space<vmem>>, %arg21: memref<32x96xf32, #tpu.memory_space<vmem>>, %arg22: memref<1x64xf32, #tpu.memory_space<vmem>>, %arg23: memref<1x32xf32, #tpu.memory_space<vmem>>, %arg24: memref<1x32xf32, #tpu.memory_space<vmem>>, %arg25: memref<32x64xf32, #tpu.memory_space<vmem>>, %arg26: memref<32x32xf32, #tpu.memory_space<vmem>>, %arg27: memref<32x32xf32, #tpu.memory_space<vmem>>, %arg28: memref<1x64xf32, #tpu.memory_space<vmem>>, %arg29: memref<1x32xf32, #tpu.memory_space<vmem>>, %arg30: memref<32x64xf32, #tpu.memory_space<vmem>>, %arg31: memref<64x32xf32, #tpu.memory_space<vmem>>, %arg32: memref<1x32xf32, #tpu.memory_space<vmem>>, %arg33: memref<1x32xf32, #tpu.memory_space<vmem>>, %arg34: memref<1x32xf32, #tpu.memory_space<vmem>>, %arg35: memref<1x32xf32, #tpu.memory_space<vmem>>, %arg36: memref<1x32xf32, #tpu.memory_space<vmem>>, %arg37: memref<1x32xf32, #tpu.memory_space<vmem>>, %arg38: memref<1x32xf32, #tpu.memory_space<vmem>>, %arg39: memref<1x96xf32, #tpu.memory_space<vmem>>, %arg40: memref<32x32xf32, #tpu.memory_space<vmem>>, %arg41: memref<32x96xf32, #tpu.memory_space<vmem>>, %arg42: memref<1x32xf32, #tpu.memory_space<vmem>>, %arg43: memref<1x96xf32, #tpu.memory_space<vmem>>, %arg44: memref<32x32xf32, #tpu.memory_space<vmem>>, %arg45: memref<32x96xf32, #tpu.memory_space<vmem>>, %arg46: memref<1x64xf32, #tpu.memory_space<vmem>>, %arg47: memref<1x32xf32, #tpu.memory_space<vmem>>, %arg48: memref<32x64xf32, #tpu.memory_space<vmem>>, %arg49: memref<64x32xf32, #tpu.memory_space<vmem>>, %arg50: memref<1x32xf32, #tpu.memory_space<vmem>>, %arg51: memref<1x32xf32, #tpu.memory_space<vmem>>, %arg52: memref<1x32xf32, #tpu.memory_space<vmem>>, %arg53: memref<1x32xf32, #tpu.memory_space<vmem>>, %arg54: memref<1x32xf32, #tpu.memory_space<vmem>>, %arg55: memref<1x96xf32, #tpu.memory_space<vmem>>, %arg56: memref<32x32xf32, #tpu.memory_space<vmem>>, %arg57: memref<32x96xf32, #tpu.memory_space<vmem>>, %arg58: memref<1x64xf32, #tpu.memory_space<vmem>>, %arg59: memref<1x32xf32, #tpu.memory_space<vmem>>, %arg60: memref<32x64xf32, #tpu.memory_space<vmem>>, %arg61: memref<64x32xf32, #tpu.memory_space<vmem>>, %arg62: memref<1x32xf32, #tpu.memory_space<vmem>>, %arg63: memref<1x32xf32, #tpu.memory_space<vmem>>, %arg64: memref<1x32xf32, #tpu.memory_space<vmem>>, %arg65: memref<1x32xf32, #tpu.memory_space<vmem>>, %arg66: memref<1x128xf32, #tpu.memory_space<vmem>>, %arg67: memref<32x128xf32, #tpu.memory_space<vmem>>, %arg68: memref<8x32xf32, #tpu.memory_space<vmem>>, %arg69: memref<50x32xf32, #tpu.memory_space<vmem>>, %arg70: memref<50x32xf32, #tpu.memory_space<vmem>>, %arg71: memref<2x8x1xi32, #tpu.memory_space<vmem>>, %arg72: memref<2x8x1xi32, #tpu.memory_space<vmem>>, %arg73: memref<16x128xf32, #tpu.memory_space<vmem>>) attributes {dimension_semantics = [], scalar_prefetch = 0 : i64, scratch_operands = 0 : i64, tpu.core_type = #tpu.core_type<tc>} {
    %c0 = arith.constant 0 : index
    %c0_0 = arith.constant 0 : index
    %0 = vector.load %arg2[%c0, %c0_0] : memref<1x64xf32, #tpu.memory_space<vmem>>, vector<1x64xf32>
    %c0_1 = arith.constant 0 : index
    %c0_2 = arith.constant 0 : index
    %1 = vector.load %arg3[%c0_1, %c0_2] : memref<1x32xf32, #tpu.memory_space<vmem>>, vector<1x32xf32>
    %c0_3 = arith.constant 0 : index
    %c0_4 = arith.constant 0 : index
    %2 = vector.load %arg4[%c0_3, %c0_4] : memref<1x32xf32, #tpu.memory_space<vmem>>, vector<1x32xf32>
    %c0_5 = arith.constant 0 : index
    %c0_6 = arith.constant 0 : index
    %3 = vector.load %arg5[%c0_5, %c0_6] : memref<32x64xf32, #tpu.memory_space<vmem>>, vector<32x64xf32>
    %c0_7 = arith.constant 0 : index
    %c0_8 = arith.constant 0 : index
    %4 = vector.load %arg6[%c0_7, %c0_8] : memref<32x32xf32, #tpu.memory_space<vmem>>, vector<32x32xf32>
    %c0_9 = arith.constant 0 : index
    %c0_10 = arith.constant 0 : index
    %5 = vector.load %arg7[%c0_9, %c0_10] : memref<32x32xf32, #tpu.memory_space<vmem>>, vector<32x32xf32>
    %c0_11 = arith.constant 0 : index
    %c0_12 = arith.constant 0 : index
    %6 = vector.load %arg8[%c0_11, %c0_12] : memref<1x64xf32, #tpu.memory_space<vmem>>, vector<1x64xf32>
    %c0_13 = arith.constant 0 : index
    %c0_14 = arith.constant 0 : index
    %7 = vector.load %arg9[%c0_13, %c0_14] : memref<1x32xf32, #tpu.memory_space<vmem>>, vector<1x32xf32>
    %c0_15 = arith.constant 0 : index
    %c0_16 = arith.constant 0 : index
    %8 = vector.load %arg10[%c0_15, %c0_16] : memref<32x64xf32, #tpu.memory_space<vmem>>, vector<32x64xf32>
    %c0_17 = arith.constant 0 : index
    %c0_18 = arith.constant 0 : index
    %9 = vector.load %arg11[%c0_17, %c0_18] : memref<64x32xf32, #tpu.memory_space<vmem>>, vector<64x32xf32>
    %c0_19 = arith.constant 0 : index
    %c0_20 = arith.constant 0 : index
    %10 = vector.load %arg12[%c0_19, %c0_20] : memref<1x32xf32, #tpu.memory_space<vmem>>, vector<1x32xf32>
    %c0_21 = arith.constant 0 : index
    %c0_22 = arith.constant 0 : index
    %11 = vector.load %arg13[%c0_21, %c0_22] : memref<1x32xf32, #tpu.memory_space<vmem>>, vector<1x32xf32>
    %c0_23 = arith.constant 0 : index
    %c0_24 = arith.constant 0 : index
    %12 = vector.load %arg14[%c0_23, %c0_24] : memref<1x32xf32, #tpu.memory_space<vmem>>, vector<1x32xf32>
    %c0_25 = arith.constant 0 : index
    %c0_26 = arith.constant 0 : index
    %13 = vector.load %arg15[%c0_25, %c0_26] : memref<1x32xf32, #tpu.memory_space<vmem>>, vector<1x32xf32>
    %c0_27 = arith.constant 0 : index
    %c0_28 = arith.constant 0 : index
    %14 = vector.load %arg16[%c0_27, %c0_28] : memref<1x32xf32, #tpu.memory_space<vmem>>, vector<1x32xf32>
    %c0_29 = arith.constant 0 : index
    %c0_30 = arith.constant 0 : index
    %15 = vector.load %arg17[%c0_29, %c0_30] : memref<1x32xf32, #tpu.memory_space<vmem>>, vector<1x32xf32>
    %c0_31 = arith.constant 0 : index
    %c0_32 = arith.constant 0 : index
    %16 = vector.load %arg18[%c0_31, %c0_32] : memref<1x32xf32, #tpu.memory_space<vmem>>, vector<1x32xf32>
    %c0_33 = arith.constant 0 : index
    %c0_34 = arith.constant 0 : index
    %17 = vector.load %arg19[%c0_33, %c0_34] : memref<1x96xf32, #tpu.memory_space<vmem>>, vector<1x96xf32>
    %c0_35 = arith.constant 0 : index
    %c0_36 = arith.constant 0 : index
    %18 = vector.load %arg20[%c0_35, %c0_36] : memref<32x32xf32, #tpu.memory_space<vmem>>, vector<32x32xf32>
    %c0_37 = arith.constant 0 : index
    %c0_38 = arith.constant 0 : index
    %19 = vector.load %arg21[%c0_37, %c0_38] : memref<32x96xf32, #tpu.memory_space<vmem>>, vector<32x96xf32>
    %c0_39 = arith.constant 0 : index
    %c0_40 = arith.constant 0 : index
    %20 = vector.load %arg22[%c0_39, %c0_40] : memref<1x64xf32, #tpu.memory_space<vmem>>, vector<1x64xf32>
    %c0_41 = arith.constant 0 : index
    %c0_42 = arith.constant 0 : index
    %21 = vector.load %arg23[%c0_41, %c0_42] : memref<1x32xf32, #tpu.memory_space<vmem>>, vector<1x32xf32>
    %c0_43 = arith.constant 0 : index
    %c0_44 = arith.constant 0 : index
    %22 = vector.load %arg24[%c0_43, %c0_44] : memref<1x32xf32, #tpu.memory_space<vmem>>, vector<1x32xf32>
    %c0_45 = arith.constant 0 : index
    %c0_46 = arith.constant 0 : index
    %23 = vector.load %arg25[%c0_45, %c0_46] : memref<32x64xf32, #tpu.memory_space<vmem>>, vector<32x64xf32>
    %c0_47 = arith.constant 0 : index
    %c0_48 = arith.constant 0 : index
    %24 = vector.load %arg26[%c0_47, %c0_48] : memref<32x32xf32, #tpu.memory_space<vmem>>, vector<32x32xf32>
    %c0_49 = arith.constant 0 : index
    %c0_50 = arith.constant 0 : index
    %25 = vector.load %arg27[%c0_49, %c0_50] : memref<32x32xf32, #tpu.memory_space<vmem>>, vector<32x32xf32>
    %c0_51 = arith.constant 0 : index
    %c0_52 = arith.constant 0 : index
    %26 = vector.load %arg28[%c0_51, %c0_52] : memref<1x64xf32, #tpu.memory_space<vmem>>, vector<1x64xf32>
    %c0_53 = arith.constant 0 : index
    %c0_54 = arith.constant 0 : index
    %27 = vector.load %arg29[%c0_53, %c0_54] : memref<1x32xf32, #tpu.memory_space<vmem>>, vector<1x32xf32>
    %c0_55 = arith.constant 0 : index
    %c0_56 = arith.constant 0 : index
    %28 = vector.load %arg30[%c0_55, %c0_56] : memref<32x64xf32, #tpu.memory_space<vmem>>, vector<32x64xf32>
    %c0_57 = arith.constant 0 : index
    %c0_58 = arith.constant 0 : index
    %29 = vector.load %arg31[%c0_57, %c0_58] : memref<64x32xf32, #tpu.memory_space<vmem>>, vector<64x32xf32>
    %c0_59 = arith.constant 0 : index
    %c0_60 = arith.constant 0 : index
    %30 = vector.load %arg32[%c0_59, %c0_60] : memref<1x32xf32, #tpu.memory_space<vmem>>, vector<1x32xf32>
    %c0_61 = arith.constant 0 : index
    %c0_62 = arith.constant 0 : index
    %31 = vector.load %arg33[%c0_61, %c0_62] : memref<1x32xf32, #tpu.memory_space<vmem>>, vector<1x32xf32>
    %c0_63 = arith.constant 0 : index
    %c0_64 = arith.constant 0 : index
    %32 = vector.load %arg34[%c0_63, %c0_64] : memref<1x32xf32, #tpu.memory_space<vmem>>, vector<1x32xf32>
    %c0_65 = arith.constant 0 : index
    %c0_66 = arith.constant 0 : index
    %33 = vector.load %arg35[%c0_65, %c0_66] : memref<1x32xf32, #tpu.memory_space<vmem>>, vector<1x32xf32>
    %c0_67 = arith.constant 0 : index
    %c0_68 = arith.constant 0 : index
    %34 = vector.load %arg36[%c0_67, %c0_68] : memref<1x32xf32, #tpu.memory_space<vmem>>, vector<1x32xf32>
    %c0_69 = arith.constant 0 : index
    %c0_70 = arith.constant 0 : index
    %35 = vector.load %arg37[%c0_69, %c0_70] : memref<1x32xf32, #tpu.memory_space<vmem>>, vector<1x32xf32>
    %c0_71 = arith.constant 0 : index
    %c0_72 = arith.constant 0 : index
    %36 = vector.load %arg38[%c0_71, %c0_72] : memref<1x32xf32, #tpu.memory_space<vmem>>, vector<1x32xf32>
    %c0_73 = arith.constant 0 : index
    %c0_74 = arith.constant 0 : index
    %37 = vector.load %arg39[%c0_73, %c0_74] : memref<1x96xf32, #tpu.memory_space<vmem>>, vector<1x96xf32>
    %c0_75 = arith.constant 0 : index
    %c0_76 = arith.constant 0 : index
    %38 = vector.load %arg40[%c0_75, %c0_76] : memref<32x32xf32, #tpu.memory_space<vmem>>, vector<32x32xf32>
    %c0_77 = arith.constant 0 : index
    %c0_78 = arith.constant 0 : index
    %39 = vector.load %arg41[%c0_77, %c0_78] : memref<32x96xf32, #tpu.memory_space<vmem>>, vector<32x96xf32>
    %c0_79 = arith.constant 0 : index
    %c0_80 = arith.constant 0 : index
    %40 = vector.load %arg42[%c0_79, %c0_80] : memref<1x32xf32, #tpu.memory_space<vmem>>, vector<1x32xf32>
    %c0_81 = arith.constant 0 : index
    %c0_82 = arith.constant 0 : index
    %41 = vector.load %arg43[%c0_81, %c0_82] : memref<1x96xf32, #tpu.memory_space<vmem>>, vector<1x96xf32>
    %c0_83 = arith.constant 0 : index
    %c0_84 = arith.constant 0 : index
    %42 = vector.load %arg44[%c0_83, %c0_84] : memref<32x32xf32, #tpu.memory_space<vmem>>, vector<32x32xf32>
    %c0_85 = arith.constant 0 : index
    %c0_86 = arith.constant 0 : index
    %43 = vector.load %arg45[%c0_85, %c0_86] : memref<32x96xf32, #tpu.memory_space<vmem>>, vector<32x96xf32>
    %c0_87 = arith.constant 0 : index
    %c0_88 = arith.constant 0 : index
    %44 = vector.load %arg46[%c0_87, %c0_88] : memref<1x64xf32, #tpu.memory_space<vmem>>, vector<1x64xf32>
    %c0_89 = arith.constant 0 : index
    %c0_90 = arith.constant 0 : index
    %45 = vector.load %arg47[%c0_89, %c0_90] : memref<1x32xf32, #tpu.memory_space<vmem>>, vector<1x32xf32>
    %c0_91 = arith.constant 0 : index
    %c0_92 = arith.constant 0 : index
    %46 = vector.load %arg48[%c0_91, %c0_92] : memref<32x64xf32, #tpu.memory_space<vmem>>, vector<32x64xf32>
    %c0_93 = arith.constant 0 : index
    %c0_94 = arith.constant 0 : index
    %47 = vector.load %arg49[%c0_93, %c0_94] : memref<64x32xf32, #tpu.memory_space<vmem>>, vector<64x32xf32>
    %c0_95 = arith.constant 0 : index
    %c0_96 = arith.constant 0 : index
    %48 = vector.load %arg50[%c0_95, %c0_96] : memref<1x32xf32, #tpu.memory_space<vmem>>, vector<1x32xf32>
    %c0_97 = arith.constant 0 : index
    %c0_98 = arith.constant 0 : index
    %49 = vector.load %arg51[%c0_97, %c0_98] : memref<1x32xf32, #tpu.memory_space<vmem>>, vector<1x32xf32>
    %c0_99 = arith.constant 0 : index
    %c0_100 = arith.constant 0 : index
    %50 = vector.load %arg52[%c0_99, %c0_100] : memref<1x32xf32, #tpu.memory_space<vmem>>, vector<1x32xf32>
    %c0_101 = arith.constant 0 : index
    %c0_102 = arith.constant 0 : index
    %51 = vector.load %arg53[%c0_101, %c0_102] : memref<1x32xf32, #tpu.memory_space<vmem>>, vector<1x32xf32>
    %c0_103 = arith.constant 0 : index
    %c0_104 = arith.constant 0 : index
    %52 = vector.load %arg54[%c0_103, %c0_104] : memref<1x32xf32, #tpu.memory_space<vmem>>, vector<1x32xf32>
    %c0_105 = arith.constant 0 : index
    %c0_106 = arith.constant 0 : index
    %53 = vector.load %arg55[%c0_105, %c0_106] : memref<1x96xf32, #tpu.memory_space<vmem>>, vector<1x96xf32>
    %c0_107 = arith.constant 0 : index
    %c0_108 = arith.constant 0 : index
    %54 = vector.load %arg56[%c0_107, %c0_108] : memref<32x32xf32, #tpu.memory_space<vmem>>, vector<32x32xf32>
    %c0_109 = arith.constant 0 : index
    %c0_110 = arith.constant 0 : index
    %55 = vector.load %arg57[%c0_109, %c0_110] : memref<32x96xf32, #tpu.memory_space<vmem>>, vector<32x96xf32>
    %c0_111 = arith.constant 0 : index
    %c0_112 = arith.constant 0 : index
    %56 = vector.load %arg58[%c0_111, %c0_112] : memref<1x64xf32, #tpu.memory_space<vmem>>, vector<1x64xf32>
    %c0_113 = arith.constant 0 : index
    %c0_114 = arith.constant 0 : index
    %57 = vector.load %arg59[%c0_113, %c0_114] : memref<1x32xf32, #tpu.memory_space<vmem>>, vector<1x32xf32>
    %c0_115 = arith.constant 0 : index
    %c0_116 = arith.constant 0 : index
    %58 = vector.load %arg60[%c0_115, %c0_116] : memref<32x64xf32, #tpu.memory_space<vmem>>, vector<32x64xf32>
    %c0_117 = arith.constant 0 : index
    %c0_118 = arith.constant 0 : index
    %59 = vector.load %arg61[%c0_117, %c0_118] : memref<64x32xf32, #tpu.memory_space<vmem>>, vector<64x32xf32>
    %c0_119 = arith.constant 0 : index
    %c0_120 = arith.constant 0 : index
    %60 = vector.load %arg62[%c0_119, %c0_120] : memref<1x32xf32, #tpu.memory_space<vmem>>, vector<1x32xf32>
    %c0_121 = arith.constant 0 : index
    %c0_122 = arith.constant 0 : index
    %61 = vector.load %arg63[%c0_121, %c0_122] : memref<1x32xf32, #tpu.memory_space<vmem>>, vector<1x32xf32>
    %c0_123 = arith.constant 0 : index
    %c0_124 = arith.constant 0 : index
    %62 = vector.load %arg64[%c0_123, %c0_124] : memref<1x32xf32, #tpu.memory_space<vmem>>, vector<1x32xf32>
    %c0_125 = arith.constant 0 : index
    %c0_126 = arith.constant 0 : index
    %63 = vector.load %arg65[%c0_125, %c0_126] : memref<1x32xf32, #tpu.memory_space<vmem>>, vector<1x32xf32>
    %c0_127 = arith.constant 0 : index
    %c0_128 = arith.constant 0 : index
    %64 = vector.load %arg66[%c0_127, %c0_128] : memref<1x128xf32, #tpu.memory_space<vmem>>, vector<1x128xf32>
    %c0_129 = arith.constant 0 : index
    %c0_130 = arith.constant 0 : index
    %65 = vector.load %arg67[%c0_129, %c0_130] : memref<32x128xf32, #tpu.memory_space<vmem>>, vector<32x128xf32>
    %c0_131 = arith.constant 0 : index
    %c0_132 = arith.constant 0 : index
    %66 = vector.load %arg68[%c0_131, %c0_132] : memref<8x32xf32, #tpu.memory_space<vmem>>, vector<8x32xf32>
    %c0_133 = arith.constant 0 : index
    %c0_134 = arith.constant 0 : index
    %67 = vector.load %arg69[%c0_133, %c0_134] : memref<50x32xf32, #tpu.memory_space<vmem>>, vector<50x32xf32>
    %c0_135 = arith.constant 0 : index
    %c0_136 = arith.constant 0 : index
    %68 = vector.load %arg70[%c0_135, %c0_136] : memref<50x32xf32, #tpu.memory_space<vmem>>, vector<50x32xf32>
    %c0_137 = arith.constant 0 : index
    %c0_138 = arith.constant 0 : index
    %c0_139 = arith.constant 0 : index
    %69 = vector.load %arg1[%c0_137, %c0_138, %c0_139] : memref<2x1x8xf32, #tpu.memory_space<vmem>>, vector<1x1x8xf32>
    %70 = vector.shape_cast %69 : vector<1x1x8xf32> to vector<1x8xf32>
    %c0_140 = arith.constant 0 : index
    %c0_141 = arith.constant 0 : index
    %c0_142 = arith.constant 0 : index
    %71 = vector.load %arg0[%c0_140, %c0_141, %c0_142] : memref<2x8x8xf32, #tpu.memory_space<vmem>>, vector<1x8x8xf32>
    %72 = vector.shape_cast %71 : vector<1x8x8xf32> to vector<8x8xf32>
    %c0_143 = arith.constant 0 : index
    %c0_144 = arith.constant 0 : index
    %c0_145 = arith.constant 0 : index
    %73 = vector.load %arg71[%c0_143, %c0_144, %c0_145] : memref<2x8x1xi32, #tpu.memory_space<vmem>>, vector<1x8x1xi32>
    %74 = vector.shape_cast %73 : vector<1x8x1xi32> to vector<8x1xi32>
    %75 = tpu.iota {dimensions = array<i32: 1>} : vector<8x50xi32>
    %76 = vector.broadcast %74 : vector<8x1xi32> to vector<8x50xi32>
    %77 = arith.cmpi eq, %75, %76 : vector<8x50xi32>
    %78 = arith.extui %77 : vector<8x50xi1> to vector<8x50xi32>
    %79 = arith.sitofp %78 : vector<8x50xi32> to vector<8x50xf32>
    %cst = arith.constant dense<0.000000e+00> : vector<8x32xf32>
    %80 = tpu.matmul %79, %67, %cst {dimension_numbers = #tpu.dot_dimension_numbers<[1], [0], [0], [1], [0, 0, 1, 1], [], []>} : vector<8x50xf32>, vector<50x32xf32>, vector<8x32xf32> -> vector<8x32xf32>
    %cst_146 = arith.constant 5.65685415 : f32
    %81 = vector.broadcast %cst_146 : f32 to vector<8x32xf32>
    %82 = arith.mulf %80, %81 : vector<8x32xf32>
    %83 = arith.addf %82, %66 : vector<8x32xf32>
    %cst_147 = arith.constant dense<0.000000e+00> : vector<8x96xf32>
    %84 = tpu.matmul %83, %43, %cst_147 {dimension_numbers = #tpu.dot_dimension_numbers<[1], [0], [0], [1], [0, 0, 1, 1], [], []>} : vector<8x32xf32>, vector<32x96xf32>, vector<8x96xf32> -> vector<8x96xf32>
    %85 = vector.broadcast %41 : vector<1x96xf32> to vector<8x96xf32>
    %86 = arith.addf %84, %85 : vector<8x96xf32>
    %87 = vector.extract_strided_slice %86 {offsets = [0, 0], sizes = [8, 32], strides = [1, 1]} : vector<8x96xf32> to vector<8x32xf32>
    %88 = vector.extract_strided_slice %86 {offsets = [0, 32], sizes = [8, 32], strides = [1, 1]} : vector<8x96xf32> to vector<8x32xf32>
    %89 = vector.extract_strided_slice %86 {offsets = [0, 64], sizes = [8, 32], strides = [1, 1]} : vector<8x96xf32> to vector<8x32xf32>
    %cst_148 = arith.constant 0.000000e+00 : f32
    %90 = vector.broadcast %cst_148 : f32 to vector<8x32xf32>
    %91 = vector.extract_strided_slice %87 {offsets = [0, 0], sizes = [8, 8], strides = [1, 1]} : vector<8x32xf32> to vector<8x8xf32>
    %92 = vector.extract_strided_slice %88 {offsets = [0, 0], sizes = [8, 8], strides = [1, 1]} : vector<8x32xf32> to vector<8x8xf32>
    %cst_149 = arith.constant dense<0.000000e+00> : vector<8x8xf32>
    %93 = tpu.matmul %91, %92, %cst_149 {dimension_numbers = #tpu.dot_dimension_numbers<[1], [1], [0], [0], [0, 0, 1, 0], [], []>} : vector<8x8xf32>, vector<8x8xf32>, vector<8x8xf32> -> vector<8x8xf32>
    %cst_150 = arith.constant 0.353553385 : f32
    %94 = vector.broadcast %cst_150 : f32 to vector<8x8xf32>
    %95 = arith.mulf %93, %94 : vector<8x8xf32>
    %96 = vector.broadcast %70 : vector<1x8xf32> to vector<8x8xf32>
    %97 = arith.addf %95, %96 : vector<8x8xf32>
    %cst_151 = arith.constant dense<0xFF800000> : vector<8xf32>
    %98 = vector.multi_reduction <maximumf>, %97, %cst_151 [1] : vector<8x8xf32> to vector<8xf32>
    %99 = vector.shape_cast %98 : vector<8xf32> to vector<8x1xf32>
    %100 = vector.broadcast %99 : vector<8x1xf32> to vector<8x8xf32>
    %101 = arith.subf %97, %100 : vector<8x8xf32>
    %102 = math.exp %101 : vector<8x8xf32>
    %cst_152 = arith.constant dense<0.000000e+00> : vector<8xf32>
    %103 = vector.multi_reduction <add>, %102, %cst_152 [1] : vector<8x8xf32> to vector<8xf32>
    %104 = vector.shape_cast %103 : vector<8xf32> to vector<8x1xf32>
    %105 = tpu.reciprocal %104 {approx = true} : vector<8x1xf32> -> vector<8x1xf32>
    %106 = vector.broadcast %105 : vector<8x1xf32> to vector<8x8xf32>
    %107 = arith.mulf %102, %106 : vector<8x8xf32>
    %108 = vector.extract_strided_slice %89 {offsets = [0, 0], sizes = [8, 8], strides = [1, 1]} : vector<8x32xf32> to vector<8x8xf32>
    %cst_153 = arith.constant dense<0.000000e+00> : vector<8x8xf32>
    %109 = tpu.matmul %107, %108, %cst_153 {dimension_numbers = #tpu.dot_dimension_numbers<[1], [0], [0], [1], [0, 0, 1, 1], [], []>} : vector<8x8xf32>, vector<8x8xf32>, vector<8x8xf32> -> vector<8x8xf32>
    %110 = vector.extract_strided_slice %42 {offsets = [0, 0], sizes = [8, 32], strides = [1, 1]} : vector<32x32xf32> to vector<8x32xf32>
    %cst_154 = arith.constant dense<0.000000e+00> : vector<8x32xf32>
    %111 = tpu.matmul %109, %110, %cst_154 {dimension_numbers = #tpu.dot_dimension_numbers<[1], [0], [0], [1], [0, 0, 1, 1], [], []>} : vector<8x8xf32>, vector<8x32xf32>, vector<8x32xf32> -> vector<8x32xf32>
    %112 = arith.addf %90, %111 : vector<8x32xf32>
    %113 = vector.extract_strided_slice %87 {offsets = [0, 8], sizes = [8, 8], strides = [1, 1]} : vector<8x32xf32> to vector<8x8xf32>
    %114 = vector.extract_strided_slice %88 {offsets = [0, 8], sizes = [8, 8], strides = [1, 1]} : vector<8x32xf32> to vector<8x8xf32>
    %cst_155 = arith.constant dense<0.000000e+00> : vector<8x8xf32>
    %115 = tpu.matmul %113, %114, %cst_155 {dimension_numbers = #tpu.dot_dimension_numbers<[1], [1], [0], [0], [0, 0, 1, 0], [], []>} : vector<8x8xf32>, vector<8x8xf32>, vector<8x8xf32> -> vector<8x8xf32>
    %cst_156 = arith.constant 0.353553385 : f32
    %116 = vector.broadcast %cst_156 : f32 to vector<8x8xf32>
    %117 = arith.mulf %115, %116 : vector<8x8xf32>
    %118 = vector.broadcast %70 : vector<1x8xf32> to vector<8x8xf32>
    %119 = arith.addf %117, %118 : vector<8x8xf32>
    %cst_157 = arith.constant dense<0xFF800000> : vector<8xf32>
    %120 = vector.multi_reduction <maximumf>, %119, %cst_157 [1] : vector<8x8xf32> to vector<8xf32>
    %121 = vector.shape_cast %120 : vector<8xf32> to vector<8x1xf32>
    %122 = vector.broadcast %121 : vector<8x1xf32> to vector<8x8xf32>
    %123 = arith.subf %119, %122 : vector<8x8xf32>
    %124 = math.exp %123 : vector<8x8xf32>
    %cst_158 = arith.constant dense<0.000000e+00> : vector<8xf32>
    %125 = vector.multi_reduction <add>, %124, %cst_158 [1] : vector<8x8xf32> to vector<8xf32>
    %126 = vector.shape_cast %125 : vector<8xf32> to vector<8x1xf32>
    %127 = tpu.reciprocal %126 {approx = true} : vector<8x1xf32> -> vector<8x1xf32>
    %128 = vector.broadcast %127 : vector<8x1xf32> to vector<8x8xf32>
    %129 = arith.mulf %124, %128 : vector<8x8xf32>
    %130 = vector.extract_strided_slice %89 {offsets = [0, 8], sizes = [8, 8], strides = [1, 1]} : vector<8x32xf32> to vector<8x8xf32>
    %cst_159 = arith.constant dense<0.000000e+00> : vector<8x8xf32>
    %131 = tpu.matmul %129, %130, %cst_159 {dimension_numbers = #tpu.dot_dimension_numbers<[1], [0], [0], [1], [0, 0, 1, 1], [], []>} : vector<8x8xf32>, vector<8x8xf32>, vector<8x8xf32> -> vector<8x8xf32>
    %132 = vector.extract_strided_slice %42 {offsets = [8, 0], sizes = [8, 32], strides = [1, 1]} : vector<32x32xf32> to vector<8x32xf32>
    %cst_160 = arith.constant dense<0.000000e+00> : vector<8x32xf32>
    %133 = tpu.matmul %131, %132, %cst_160 {dimension_numbers = #tpu.dot_dimension_numbers<[1], [0], [0], [1], [0, 0, 1, 1], [], []>} : vector<8x8xf32>, vector<8x32xf32>, vector<8x32xf32> -> vector<8x32xf32>
    %134 = arith.addf %112, %133 : vector<8x32xf32>
    %135 = vector.extract_strided_slice %87 {offsets = [0, 16], sizes = [8, 8], strides = [1, 1]} : vector<8x32xf32> to vector<8x8xf32>
    %136 = vector.extract_strided_slice %88 {offsets = [0, 16], sizes = [8, 8], strides = [1, 1]} : vector<8x32xf32> to vector<8x8xf32>
    %cst_161 = arith.constant dense<0.000000e+00> : vector<8x8xf32>
    %137 = tpu.matmul %135, %136, %cst_161 {dimension_numbers = #tpu.dot_dimension_numbers<[1], [1], [0], [0], [0, 0, 1, 0], [], []>} : vector<8x8xf32>, vector<8x8xf32>, vector<8x8xf32> -> vector<8x8xf32>
    %cst_162 = arith.constant 0.353553385 : f32
    %138 = vector.broadcast %cst_162 : f32 to vector<8x8xf32>
    %139 = arith.mulf %137, %138 : vector<8x8xf32>
    %140 = vector.broadcast %70 : vector<1x8xf32> to vector<8x8xf32>
    %141 = arith.addf %139, %140 : vector<8x8xf32>
    %cst_163 = arith.constant dense<0xFF800000> : vector<8xf32>
    %142 = vector.multi_reduction <maximumf>, %141, %cst_163 [1] : vector<8x8xf32> to vector<8xf32>
    %143 = vector.shape_cast %142 : vector<8xf32> to vector<8x1xf32>
    %144 = vector.broadcast %143 : vector<8x1xf32> to vector<8x8xf32>
    %145 = arith.subf %141, %144 : vector<8x8xf32>
    %146 = math.exp %145 : vector<8x8xf32>
    %cst_164 = arith.constant dense<0.000000e+00> : vector<8xf32>
    %147 = vector.multi_reduction <add>, %146, %cst_164 [1] : vector<8x8xf32> to vector<8xf32>
    %148 = vector.shape_cast %147 : vector<8xf32> to vector<8x1xf32>
    %149 = tpu.reciprocal %148 {approx = true} : vector<8x1xf32> -> vector<8x1xf32>
    %150 = vector.broadcast %149 : vector<8x1xf32> to vector<8x8xf32>
    %151 = arith.mulf %146, %150 : vector<8x8xf32>
    %152 = vector.extract_strided_slice %89 {offsets = [0, 16], sizes = [8, 8], strides = [1, 1]} : vector<8x32xf32> to vector<8x8xf32>
    %cst_165 = arith.constant dense<0.000000e+00> : vector<8x8xf32>
    %153 = tpu.matmul %151, %152, %cst_165 {dimension_numbers = #tpu.dot_dimension_numbers<[1], [0], [0], [1], [0, 0, 1, 1], [], []>} : vector<8x8xf32>, vector<8x8xf32>, vector<8x8xf32> -> vector<8x8xf32>
    %154 = vector.extract_strided_slice %42 {offsets = [16, 0], sizes = [8, 32], strides = [1, 1]} : vector<32x32xf32> to vector<8x32xf32>
    %cst_166 = arith.constant dense<0.000000e+00> : vector<8x32xf32>
    %155 = tpu.matmul %153, %154, %cst_166 {dimension_numbers = #tpu.dot_dimension_numbers<[1], [0], [0], [1], [0, 0, 1, 1], [], []>} : vector<8x8xf32>, vector<8x32xf32>, vector<8x32xf32> -> vector<8x32xf32>
    %156 = arith.addf %134, %155 : vector<8x32xf32>
    %157 = vector.extract_strided_slice %87 {offsets = [0, 24], sizes = [8, 8], strides = [1, 1]} : vector<8x32xf32> to vector<8x8xf32>
    %158 = vector.extract_strided_slice %88 {offsets = [0, 24], sizes = [8, 8], strides = [1, 1]} : vector<8x32xf32> to vector<8x8xf32>
    %cst_167 = arith.constant dense<0.000000e+00> : vector<8x8xf32>
    %159 = tpu.matmul %157, %158, %cst_167 {dimension_numbers = #tpu.dot_dimension_numbers<[1], [1], [0], [0], [0, 0, 1, 0], [], []>} : vector<8x8xf32>, vector<8x8xf32>, vector<8x8xf32> -> vector<8x8xf32>
    %cst_168 = arith.constant 0.353553385 : f32
    %160 = vector.broadcast %cst_168 : f32 to vector<8x8xf32>
    %161 = arith.mulf %159, %160 : vector<8x8xf32>
    %162 = vector.broadcast %70 : vector<1x8xf32> to vector<8x8xf32>
    %163 = arith.addf %161, %162 : vector<8x8xf32>
    %cst_169 = arith.constant dense<0xFF800000> : vector<8xf32>
    %164 = vector.multi_reduction <maximumf>, %163, %cst_169 [1] : vector<8x8xf32> to vector<8xf32>
    %165 = vector.shape_cast %164 : vector<8xf32> to vector<8x1xf32>
    %166 = vector.broadcast %165 : vector<8x1xf32> to vector<8x8xf32>
    %167 = arith.subf %163, %166 : vector<8x8xf32>
    %168 = math.exp %167 : vector<8x8xf32>
    %cst_170 = arith.constant dense<0.000000e+00> : vector<8xf32>
    %169 = vector.multi_reduction <add>, %168, %cst_170 [1] : vector<8x8xf32> to vector<8xf32>
    %170 = vector.shape_cast %169 : vector<8xf32> to vector<8x1xf32>
    %171 = tpu.reciprocal %170 {approx = true} : vector<8x1xf32> -> vector<8x1xf32>
    %172 = vector.broadcast %171 : vector<8x1xf32> to vector<8x8xf32>
    %173 = arith.mulf %168, %172 : vector<8x8xf32>
    %174 = vector.extract_strided_slice %89 {offsets = [0, 24], sizes = [8, 8], strides = [1, 1]} : vector<8x32xf32> to vector<8x8xf32>
    %cst_171 = arith.constant dense<0.000000e+00> : vector<8x8xf32>
    %175 = tpu.matmul %173, %174, %cst_171 {dimension_numbers = #tpu.dot_dimension_numbers<[1], [0], [0], [1], [0, 0, 1, 1], [], []>} : vector<8x8xf32>, vector<8x8xf32>, vector<8x8xf32> -> vector<8x8xf32>
    %176 = vector.extract_strided_slice %42 {offsets = [24, 0], sizes = [8, 32], strides = [1, 1]} : vector<32x32xf32> to vector<8x32xf32>
    %cst_172 = arith.constant dense<0.000000e+00> : vector<8x32xf32>
    %177 = tpu.matmul %175, %176, %cst_172 {dimension_numbers = #tpu.dot_dimension_numbers<[1], [0], [0], [1], [0, 0, 1, 1], [], []>} : vector<8x8xf32>, vector<8x32xf32>, vector<8x32xf32> -> vector<8x32xf32>
    %178 = arith.addf %156, %177 : vector<8x32xf32>
    %179 = vector.broadcast %40 : vector<1x32xf32> to vector<8x32xf32>
    %180 = arith.addf %178, %179 : vector<8x32xf32>
    %181 = arith.addf %83, %180 : vector<8x32xf32>
    %cst_173 = arith.constant dense<0.000000e+00> : vector<8xf32>
    %182 = vector.multi_reduction <add>, %181, %cst_173 [1] : vector<8x32xf32> to vector<8xf32>
    %183 = vector.shape_cast %182 : vector<8xf32> to vector<8x1xf32>
    %cst_174 = arith.constant 3.200000e+01 : f32
    %184 = vector.broadcast %cst_174 : f32 to vector<8x1xf32>
    %185 = arith.divf %183, %184 : vector<8x1xf32>
    %186 = vector.broadcast %185 : vector<8x1xf32> to vector<8x32xf32>
    %187 = arith.subf %181, %186 : vector<8x32xf32>
    %188 = arith.mulf %187, %187 : vector<8x32xf32>
    %cst_175 = arith.constant dense<0.000000e+00> : vector<8xf32>
    %189 = vector.multi_reduction <add>, %188, %cst_175 [1] : vector<8x32xf32> to vector<8xf32>
    %190 = vector.shape_cast %189 : vector<8xf32> to vector<8x1xf32>
    %cst_176 = arith.constant 3.200000e+01 : f32
    %191 = vector.broadcast %cst_176 : f32 to vector<8x1xf32>
    %192 = arith.divf %190, %191 : vector<8x1xf32>
    %193 = vector.broadcast %185 : vector<8x1xf32> to vector<8x32xf32>
    %194 = arith.subf %181, %193 : vector<8x32xf32>
    %cst_177 = arith.constant 9.99999974E-6 : f32
    %195 = vector.broadcast %cst_177 : f32 to vector<8x1xf32>
    %196 = arith.addf %192, %195 : vector<8x1xf32>
    %197 = math.rsqrt %196 : vector<8x1xf32>
    %198 = vector.broadcast %197 : vector<8x1xf32> to vector<8x32xf32>
    %199 = arith.mulf %194, %198 : vector<8x32xf32>
    %200 = vector.broadcast %49 : vector<1x32xf32> to vector<8x32xf32>
    %201 = arith.mulf %199, %200 : vector<8x32xf32>
    %202 = vector.broadcast %48 : vector<1x32xf32> to vector<8x32xf32>
    %203 = arith.addf %201, %202 : vector<8x32xf32>
    %cst_178 = arith.constant dense<0.000000e+00> : vector<8x64xf32>
    %204 = tpu.matmul %203, %46, %cst_178 {dimension_numbers = #tpu.dot_dimension_numbers<[1], [0], [0], [1], [0, 0, 1, 1], [], []>} : vector<8x32xf32>, vector<32x64xf32>, vector<8x64xf32> -> vector<8x64xf32>
    %205 = vector.broadcast %44 : vector<1x64xf32> to vector<8x64xf32>
    %206 = arith.addf %204, %205 : vector<8x64xf32>
    %cst_179 = arith.constant 0.000000e+00 : f32
    %207 = vector.broadcast %cst_179 : f32 to vector<8x64xf32>
    %208 = arith.maximumf %206, %207 : vector<8x64xf32>
    %cst_180 = arith.constant dense<0.000000e+00> : vector<8x32xf32>
    %209 = tpu.matmul %208, %47, %cst_180 {dimension_numbers = #tpu.dot_dimension_numbers<[1], [0], [0], [1], [0, 0, 1, 1], [], []>} : vector<8x64xf32>, vector<64x32xf32>, vector<8x32xf32> -> vector<8x32xf32>
    %210 = vector.broadcast %45 : vector<1x32xf32> to vector<8x32xf32>
    %211 = arith.addf %209, %210 : vector<8x32xf32>
    %212 = arith.addf %203, %211 : vector<8x32xf32>
    %cst_181 = arith.constant dense<0.000000e+00> : vector<8xf32>
    %213 = vector.multi_reduction <add>, %212, %cst_181 [1] : vector<8x32xf32> to vector<8xf32>
    %214 = vector.shape_cast %213 : vector<8xf32> to vector<8x1xf32>
    %cst_182 = arith.constant 3.200000e+01 : f32
    %215 = vector.broadcast %cst_182 : f32 to vector<8x1xf32>
    %216 = arith.divf %214, %215 : vector<8x1xf32>
    %217 = vector.broadcast %216 : vector<8x1xf32> to vector<8x32xf32>
    %218 = arith.subf %212, %217 : vector<8x32xf32>
    %219 = arith.mulf %218, %218 : vector<8x32xf32>
    %cst_183 = arith.constant dense<0.000000e+00> : vector<8xf32>
    %220 = vector.multi_reduction <add>, %219, %cst_183 [1] : vector<8x32xf32> to vector<8xf32>
    %221 = vector.shape_cast %220 : vector<8xf32> to vector<8x1xf32>
    %cst_184 = arith.constant 3.200000e+01 : f32
    %222 = vector.broadcast %cst_184 : f32 to vector<8x1xf32>
    %223 = arith.divf %221, %222 : vector<8x1xf32>
    %224 = vector.broadcast %216 : vector<8x1xf32> to vector<8x32xf32>
    %225 = arith.subf %212, %224 : vector<8x32xf32>
    %cst_185 = arith.constant 9.99999974E-6 : f32
    %226 = vector.broadcast %cst_185 : f32 to vector<8x1xf32>
    %227 = arith.addf %223, %226 : vector<8x1xf32>
    %228 = math.rsqrt %227 : vector<8x1xf32>
    %229 = vector.broadcast %228 : vector<8x1xf32> to vector<8x32xf32>
    %230 = arith.mulf %225, %229 : vector<8x32xf32>
    %231 = vector.broadcast %51 : vector<1x32xf32> to vector<8x32xf32>
    %232 = arith.mulf %230, %231 : vector<8x32xf32>
    %233 = vector.broadcast %50 : vector<1x32xf32> to vector<8x32xf32>
    %234 = arith.addf %232, %233 : vector<8x32xf32>
    %cst_186 = arith.constant dense<0.000000e+00> : vector<8x96xf32>
    %235 = tpu.matmul %234, %55, %cst_186 {dimension_numbers = #tpu.dot_dimension_numbers<[1], [0], [0], [1], [0, 0, 1, 1], [], []>} : vector<8x32xf32>, vector<32x96xf32>, vector<8x96xf32> -> vector<8x96xf32>
    %236 = vector.broadcast %53 : vector<1x96xf32> to vector<8x96xf32>
    %237 = arith.addf %235, %236 : vector<8x96xf32>
    %238 = vector.extract_strided_slice %237 {offsets = [0, 0], sizes = [8, 32], strides = [1, 1]} : vector<8x96xf32> to vector<8x32xf32>
    %239 = vector.extract_strided_slice %237 {offsets = [0, 32], sizes = [8, 32], strides = [1, 1]} : vector<8x96xf32> to vector<8x32xf32>
    %240 = vector.extract_strided_slice %237 {offsets = [0, 64], sizes = [8, 32], strides = [1, 1]} : vector<8x96xf32> to vector<8x32xf32>
    %cst_187 = arith.constant 0.000000e+00 : f32
    %241 = vector.broadcast %cst_187 : f32 to vector<8x32xf32>
    %242 = vector.extract_strided_slice %238 {offsets = [0, 0], sizes = [8, 8], strides = [1, 1]} : vector<8x32xf32> to vector<8x8xf32>
    %243 = vector.extract_strided_slice %239 {offsets = [0, 0], sizes = [8, 8], strides = [1, 1]} : vector<8x32xf32> to vector<8x8xf32>
    %cst_188 = arith.constant dense<0.000000e+00> : vector<8x8xf32>
    %244 = tpu.matmul %242, %243, %cst_188 {dimension_numbers = #tpu.dot_dimension_numbers<[1], [1], [0], [0], [0, 0, 1, 0], [], []>} : vector<8x8xf32>, vector<8x8xf32>, vector<8x8xf32> -> vector<8x8xf32>
    %cst_189 = arith.constant 0.353553385 : f32
    %245 = vector.broadcast %cst_189 : f32 to vector<8x8xf32>
    %246 = arith.mulf %244, %245 : vector<8x8xf32>
    %247 = vector.broadcast %70 : vector<1x8xf32> to vector<8x8xf32>
    %248 = arith.addf %246, %247 : vector<8x8xf32>
    %cst_190 = arith.constant dense<0xFF800000> : vector<8xf32>
    %249 = vector.multi_reduction <maximumf>, %248, %cst_190 [1] : vector<8x8xf32> to vector<8xf32>
    %250 = vector.shape_cast %249 : vector<8xf32> to vector<8x1xf32>
    %251 = vector.broadcast %250 : vector<8x1xf32> to vector<8x8xf32>
    %252 = arith.subf %248, %251 : vector<8x8xf32>
    %253 = math.exp %252 : vector<8x8xf32>
    %cst_191 = arith.constant dense<0.000000e+00> : vector<8xf32>
    %254 = vector.multi_reduction <add>, %253, %cst_191 [1] : vector<8x8xf32> to vector<8xf32>
    %255 = vector.shape_cast %254 : vector<8xf32> to vector<8x1xf32>
    %256 = tpu.reciprocal %255 {approx = true} : vector<8x1xf32> -> vector<8x1xf32>
    %257 = vector.broadcast %256 : vector<8x1xf32> to vector<8x8xf32>
    %258 = arith.mulf %253, %257 : vector<8x8xf32>
    %259 = vector.extract_strided_slice %240 {offsets = [0, 0], sizes = [8, 8], strides = [1, 1]} : vector<8x32xf32> to vector<8x8xf32>
    %cst_192 = arith.constant dense<0.000000e+00> : vector<8x8xf32>
    %260 = tpu.matmul %258, %259, %cst_192 {dimension_numbers = #tpu.dot_dimension_numbers<[1], [0], [0], [1], [0, 0, 1, 1], [], []>} : vector<8x8xf32>, vector<8x8xf32>, vector<8x8xf32> -> vector<8x8xf32>
    %261 = vector.extract_strided_slice %54 {offsets = [0, 0], sizes = [8, 32], strides = [1, 1]} : vector<32x32xf32> to vector<8x32xf32>
    %cst_193 = arith.constant dense<0.000000e+00> : vector<8x32xf32>
    %262 = tpu.matmul %260, %261, %cst_193 {dimension_numbers = #tpu.dot_dimension_numbers<[1], [0], [0], [1], [0, 0, 1, 1], [], []>} : vector<8x8xf32>, vector<8x32xf32>, vector<8x32xf32> -> vector<8x32xf32>
    %263 = arith.addf %241, %262 : vector<8x32xf32>
    %264 = vector.extract_strided_slice %238 {offsets = [0, 8], sizes = [8, 8], strides = [1, 1]} : vector<8x32xf32> to vector<8x8xf32>
    %265 = vector.extract_strided_slice %239 {offsets = [0, 8], sizes = [8, 8], strides = [1, 1]} : vector<8x32xf32> to vector<8x8xf32>
    %cst_194 = arith.constant dense<0.000000e+00> : vector<8x8xf32>
    %266 = tpu.matmul %264, %265, %cst_194 {dimension_numbers = #tpu.dot_dimension_numbers<[1], [1], [0], [0], [0, 0, 1, 0], [], []>} : vector<8x8xf32>, vector<8x8xf32>, vector<8x8xf32> -> vector<8x8xf32>
    %cst_195 = arith.constant 0.353553385 : f32
    %267 = vector.broadcast %cst_195 : f32 to vector<8x8xf32>
    %268 = arith.mulf %266, %267 : vector<8x8xf32>
    %269 = vector.broadcast %70 : vector<1x8xf32> to vector<8x8xf32>
    %270 = arith.addf %268, %269 : vector<8x8xf32>
    %cst_196 = arith.constant dense<0xFF800000> : vector<8xf32>
    %271 = vector.multi_reduction <maximumf>, %270, %cst_196 [1] : vector<8x8xf32> to vector<8xf32>
    %272 = vector.shape_cast %271 : vector<8xf32> to vector<8x1xf32>
    %273 = vector.broadcast %272 : vector<8x1xf32> to vector<8x8xf32>
    %274 = arith.subf %270, %273 : vector<8x8xf32>
    %275 = math.exp %274 : vector<8x8xf32>
    %cst_197 = arith.constant dense<0.000000e+00> : vector<8xf32>
    %276 = vector.multi_reduction <add>, %275, %cst_197 [1] : vector<8x8xf32> to vector<8xf32>
    %277 = vector.shape_cast %276 : vector<8xf32> to vector<8x1xf32>
    %278 = tpu.reciprocal %277 {approx = true} : vector<8x1xf32> -> vector<8x1xf32>
    %279 = vector.broadcast %278 : vector<8x1xf32> to vector<8x8xf32>
    %280 = arith.mulf %275, %279 : vector<8x8xf32>
    %281 = vector.extract_strided_slice %240 {offsets = [0, 8], sizes = [8, 8], strides = [1, 1]} : vector<8x32xf32> to vector<8x8xf32>
    %cst_198 = arith.constant dense<0.000000e+00> : vector<8x8xf32>
    %282 = tpu.matmul %280, %281, %cst_198 {dimension_numbers = #tpu.dot_dimension_numbers<[1], [0], [0], [1], [0, 0, 1, 1], [], []>} : vector<8x8xf32>, vector<8x8xf32>, vector<8x8xf32> -> vector<8x8xf32>
    %283 = vector.extract_strided_slice %54 {offsets = [8, 0], sizes = [8, 32], strides = [1, 1]} : vector<32x32xf32> to vector<8x32xf32>
    %cst_199 = arith.constant dense<0.000000e+00> : vector<8x32xf32>
    %284 = tpu.matmul %282, %283, %cst_199 {dimension_numbers = #tpu.dot_dimension_numbers<[1], [0], [0], [1], [0, 0, 1, 1], [], []>} : vector<8x8xf32>, vector<8x32xf32>, vector<8x32xf32> -> vector<8x32xf32>
    %285 = arith.addf %263, %284 : vector<8x32xf32>
    %286 = vector.extract_strided_slice %238 {offsets = [0, 16], sizes = [8, 8], strides = [1, 1]} : vector<8x32xf32> to vector<8x8xf32>
    %287 = vector.extract_strided_slice %239 {offsets = [0, 16], sizes = [8, 8], strides = [1, 1]} : vector<8x32xf32> to vector<8x8xf32>
    %cst_200 = arith.constant dense<0.000000e+00> : vector<8x8xf32>
    %288 = tpu.matmul %286, %287, %cst_200 {dimension_numbers = #tpu.dot_dimension_numbers<[1], [1], [0], [0], [0, 0, 1, 0], [], []>} : vector<8x8xf32>, vector<8x8xf32>, vector<8x8xf32> -> vector<8x8xf32>
    %cst_201 = arith.constant 0.353553385 : f32
    %289 = vector.broadcast %cst_201 : f32 to vector<8x8xf32>
    %290 = arith.mulf %288, %289 : vector<8x8xf32>
    %291 = vector.broadcast %70 : vector<1x8xf32> to vector<8x8xf32>
    %292 = arith.addf %290, %291 : vector<8x8xf32>
    %cst_202 = arith.constant dense<0xFF800000> : vector<8xf32>
    %293 = vector.multi_reduction <maximumf>, %292, %cst_202 [1] : vector<8x8xf32> to vector<8xf32>
    %294 = vector.shape_cast %293 : vector<8xf32> to vector<8x1xf32>
    %295 = vector.broadcast %294 : vector<8x1xf32> to vector<8x8xf32>
    %296 = arith.subf %292, %295 : vector<8x8xf32>
    %297 = math.exp %296 : vector<8x8xf32>
    %cst_203 = arith.constant dense<0.000000e+00> : vector<8xf32>
    %298 = vector.multi_reduction <add>, %297, %cst_203 [1] : vector<8x8xf32> to vector<8xf32>
    %299 = vector.shape_cast %298 : vector<8xf32> to vector<8x1xf32>
    %300 = tpu.reciprocal %299 {approx = true} : vector<8x1xf32> -> vector<8x1xf32>
    %301 = vector.broadcast %300 : vector<8x1xf32> to vector<8x8xf32>
    %302 = arith.mulf %297, %301 : vector<8x8xf32>
    %303 = vector.extract_strided_slice %240 {offsets = [0, 16], sizes = [8, 8], strides = [1, 1]} : vector<8x32xf32> to vector<8x8xf32>
    %cst_204 = arith.constant dense<0.000000e+00> : vector<8x8xf32>
    %304 = tpu.matmul %302, %303, %cst_204 {dimension_numbers = #tpu.dot_dimension_numbers<[1], [0], [0], [1], [0, 0, 1, 1], [], []>} : vector<8x8xf32>, vector<8x8xf32>, vector<8x8xf32> -> vector<8x8xf32>
    %305 = vector.extract_strided_slice %54 {offsets = [16, 0], sizes = [8, 32], strides = [1, 1]} : vector<32x32xf32> to vector<8x32xf32>
    %cst_205 = arith.constant dense<0.000000e+00> : vector<8x32xf32>
    %306 = tpu.matmul %304, %305, %cst_205 {dimension_numbers = #tpu.dot_dimension_numbers<[1], [0], [0], [1], [0, 0, 1, 1], [], []>} : vector<8x8xf32>, vector<8x32xf32>, vector<8x32xf32> -> vector<8x32xf32>
    %307 = arith.addf %285, %306 : vector<8x32xf32>
    %308 = vector.extract_strided_slice %238 {offsets = [0, 24], sizes = [8, 8], strides = [1, 1]} : vector<8x32xf32> to vector<8x8xf32>
    %309 = vector.extract_strided_slice %239 {offsets = [0, 24], sizes = [8, 8], strides = [1, 1]} : vector<8x32xf32> to vector<8x8xf32>
    %cst_206 = arith.constant dense<0.000000e+00> : vector<8x8xf32>
    %310 = tpu.matmul %308, %309, %cst_206 {dimension_numbers = #tpu.dot_dimension_numbers<[1], [1], [0], [0], [0, 0, 1, 0], [], []>} : vector<8x8xf32>, vector<8x8xf32>, vector<8x8xf32> -> vector<8x8xf32>
    %cst_207 = arith.constant 0.353553385 : f32
    %311 = vector.broadcast %cst_207 : f32 to vector<8x8xf32>
    %312 = arith.mulf %310, %311 : vector<8x8xf32>
    %313 = vector.broadcast %70 : vector<1x8xf32> to vector<8x8xf32>
    %314 = arith.addf %312, %313 : vector<8x8xf32>
    %cst_208 = arith.constant dense<0xFF800000> : vector<8xf32>
    %315 = vector.multi_reduction <maximumf>, %314, %cst_208 [1] : vector<8x8xf32> to vector<8xf32>
    %316 = vector.shape_cast %315 : vector<8xf32> to vector<8x1xf32>
    %317 = vector.broadcast %316 : vector<8x1xf32> to vector<8x8xf32>
    %318 = arith.subf %314, %317 : vector<8x8xf32>
    %319 = math.exp %318 : vector<8x8xf32>
    %cst_209 = arith.constant dense<0.000000e+00> : vector<8xf32>
    %320 = vector.multi_reduction <add>, %319, %cst_209 [1] : vector<8x8xf32> to vector<8xf32>
    %321 = vector.shape_cast %320 : vector<8xf32> to vector<8x1xf32>
    %322 = tpu.reciprocal %321 {approx = true} : vector<8x1xf32> -> vector<8x1xf32>
    %323 = vector.broadcast %322 : vector<8x1xf32> to vector<8x8xf32>
    %324 = arith.mulf %319, %323 : vector<8x8xf32>
    %325 = vector.extract_strided_slice %240 {offsets = [0, 24], sizes = [8, 8], strides = [1, 1]} : vector<8x32xf32> to vector<8x8xf32>
    %cst_210 = arith.constant dense<0.000000e+00> : vector<8x8xf32>
    %326 = tpu.matmul %324, %325, %cst_210 {dimension_numbers = #tpu.dot_dimension_numbers<[1], [0], [0], [1], [0, 0, 1, 1], [], []>} : vector<8x8xf32>, vector<8x8xf32>, vector<8x8xf32> -> vector<8x8xf32>
    %327 = vector.extract_strided_slice %54 {offsets = [24, 0], sizes = [8, 32], strides = [1, 1]} : vector<32x32xf32> to vector<8x32xf32>
    %cst_211 = arith.constant dense<0.000000e+00> : vector<8x32xf32>
    %328 = tpu.matmul %326, %327, %cst_211 {dimension_numbers = #tpu.dot_dimension_numbers<[1], [0], [0], [1], [0, 0, 1, 1], [], []>} : vector<8x8xf32>, vector<8x32xf32>, vector<8x32xf32> -> vector<8x32xf32>
    %329 = arith.addf %307, %328 : vector<8x32xf32>
    %330 = vector.broadcast %52 : vector<1x32xf32> to vector<8x32xf32>
    %331 = arith.addf %329, %330 : vector<8x32xf32>
    %332 = arith.addf %234, %331 : vector<8x32xf32>
    %cst_212 = arith.constant dense<0.000000e+00> : vector<8xf32>
    %333 = vector.multi_reduction <add>, %332, %cst_212 [1] : vector<8x32xf32> to vector<8xf32>
    %334 = vector.shape_cast %333 : vector<8xf32> to vector<8x1xf32>
    %cst_213 = arith.constant 3.200000e+01 : f32
    %335 = vector.broadcast %cst_213 : f32 to vector<8x1xf32>
    %336 = arith.divf %334, %335 : vector<8x1xf32>
    %337 = vector.broadcast %336 : vector<8x1xf32> to vector<8x32xf32>
    %338 = arith.subf %332, %337 : vector<8x32xf32>
    %339 = arith.mulf %338, %338 : vector<8x32xf32>
    %cst_214 = arith.constant dense<0.000000e+00> : vector<8xf32>
    %340 = vector.multi_reduction <add>, %339, %cst_214 [1] : vector<8x32xf32> to vector<8xf32>
    %341 = vector.shape_cast %340 : vector<8xf32> to vector<8x1xf32>
    %cst_215 = arith.constant 3.200000e+01 : f32
    %342 = vector.broadcast %cst_215 : f32 to vector<8x1xf32>
    %343 = arith.divf %341, %342 : vector<8x1xf32>
    %344 = vector.broadcast %336 : vector<8x1xf32> to vector<8x32xf32>
    %345 = arith.subf %332, %344 : vector<8x32xf32>
    %cst_216 = arith.constant 9.99999974E-6 : f32
    %346 = vector.broadcast %cst_216 : f32 to vector<8x1xf32>
    %347 = arith.addf %343, %346 : vector<8x1xf32>
    %348 = math.rsqrt %347 : vector<8x1xf32>
    %349 = vector.broadcast %348 : vector<8x1xf32> to vector<8x32xf32>
    %350 = arith.mulf %345, %349 : vector<8x32xf32>
    %351 = vector.broadcast %61 : vector<1x32xf32> to vector<8x32xf32>
    %352 = arith.mulf %350, %351 : vector<8x32xf32>
    %353 = vector.broadcast %60 : vector<1x32xf32> to vector<8x32xf32>
    %354 = arith.addf %352, %353 : vector<8x32xf32>
    %cst_217 = arith.constant dense<0.000000e+00> : vector<8x64xf32>
    %355 = tpu.matmul %354, %58, %cst_217 {dimension_numbers = #tpu.dot_dimension_numbers<[1], [0], [0], [1], [0, 0, 1, 1], [], []>} : vector<8x32xf32>, vector<32x64xf32>, vector<8x64xf32> -> vector<8x64xf32>
    %356 = vector.broadcast %56 : vector<1x64xf32> to vector<8x64xf32>
    %357 = arith.addf %355, %356 : vector<8x64xf32>
    %cst_218 = arith.constant 0.000000e+00 : f32
    %358 = vector.broadcast %cst_218 : f32 to vector<8x64xf32>
    %359 = arith.maximumf %357, %358 : vector<8x64xf32>
    %cst_219 = arith.constant dense<0.000000e+00> : vector<8x32xf32>
    %360 = tpu.matmul %359, %59, %cst_219 {dimension_numbers = #tpu.dot_dimension_numbers<[1], [0], [0], [1], [0, 0, 1, 1], [], []>} : vector<8x64xf32>, vector<64x32xf32>, vector<8x32xf32> -> vector<8x32xf32>
    %361 = vector.broadcast %57 : vector<1x32xf32> to vector<8x32xf32>
    %362 = arith.addf %360, %361 : vector<8x32xf32>
    %363 = arith.addf %354, %362 : vector<8x32xf32>
    %cst_220 = arith.constant dense<0.000000e+00> : vector<8xf32>
    %364 = vector.multi_reduction <add>, %363, %cst_220 [1] : vector<8x32xf32> to vector<8xf32>
    %365 = vector.shape_cast %364 : vector<8xf32> to vector<8x1xf32>
    %cst_221 = arith.constant 3.200000e+01 : f32
    %366 = vector.broadcast %cst_221 : f32 to vector<8x1xf32>
    %367 = arith.divf %365, %366 : vector<8x1xf32>
    %368 = vector.broadcast %367 : vector<8x1xf32> to vector<8x32xf32>
    %369 = arith.subf %363, %368 : vector<8x32xf32>
    %370 = arith.mulf %369, %369 : vector<8x32xf32>
    %cst_222 = arith.constant dense<0.000000e+00> : vector<8xf32>
    %371 = vector.multi_reduction <add>, %370, %cst_222 [1] : vector<8x32xf32> to vector<8xf32>
    %372 = vector.shape_cast %371 : vector<8xf32> to vector<8x1xf32>
    %cst_223 = arith.constant 3.200000e+01 : f32
    %373 = vector.broadcast %cst_223 : f32 to vector<8x1xf32>
    %374 = arith.divf %372, %373 : vector<8x1xf32>
    %375 = vector.broadcast %367 : vector<8x1xf32> to vector<8x32xf32>
    %376 = arith.subf %363, %375 : vector<8x32xf32>
    %cst_224 = arith.constant 9.99999974E-6 : f32
    %377 = vector.broadcast %cst_224 : f32 to vector<8x1xf32>
    %378 = arith.addf %374, %377 : vector<8x1xf32>
    %379 = math.rsqrt %378 : vector<8x1xf32>
    %380 = vector.broadcast %379 : vector<8x1xf32> to vector<8x32xf32>
    %381 = arith.mulf %376, %380 : vector<8x32xf32>
    %382 = vector.broadcast %63 : vector<1x32xf32> to vector<8x32xf32>
    %383 = arith.mulf %381, %382 : vector<8x32xf32>
    %384 = vector.broadcast %62 : vector<1x32xf32> to vector<8x32xf32>
    %385 = arith.addf %383, %384 : vector<8x32xf32>
    %c0_225 = arith.constant 0 : index
    %c0_226 = arith.constant 0 : index
    %c0_227 = arith.constant 0 : index
    %386 = vector.load %arg72[%c0_225, %c0_226, %c0_227] : memref<2x8x1xi32, #tpu.memory_space<vmem>>, vector<1x8x1xi32>
    %387 = vector.shape_cast %386 : vector<1x8x1xi32> to vector<8x1xi32>
    %388 = tpu.iota {dimensions = array<i32: 1>} : vector<8x50xi32>
    %389 = vector.broadcast %387 : vector<8x1xi32> to vector<8x50xi32>
    %390 = arith.cmpi eq, %388, %389 : vector<8x50xi32>
    %391 = arith.extui %390 : vector<8x50xi1> to vector<8x50xi32>
    %392 = arith.sitofp %391 : vector<8x50xi32> to vector<8x50xf32>
    %cst_228 = arith.constant dense<0.000000e+00> : vector<8x32xf32>
    %393 = tpu.matmul %392, %68, %cst_228 {dimension_numbers = #tpu.dot_dimension_numbers<[1], [0], [0], [1], [0, 0, 1, 1], [], []>} : vector<8x50xf32>, vector<50x32xf32>, vector<8x32xf32> -> vector<8x32xf32>
    %cst_229 = arith.constant 5.65685415 : f32
    %394 = vector.broadcast %cst_229 : f32 to vector<8x32xf32>
    %395 = arith.mulf %393, %394 : vector<8x32xf32>
    %396 = arith.addf %395, %66 : vector<8x32xf32>
    %cst_230 = arith.constant dense<0.000000e+00> : vector<8x96xf32>
    %397 = tpu.matmul %396, %19, %cst_230 {dimension_numbers = #tpu.dot_dimension_numbers<[1], [0], [0], [1], [0, 0, 1, 1], [], []>} : vector<8x32xf32>, vector<32x96xf32>, vector<8x96xf32> -> vector<8x96xf32>
    %398 = vector.broadcast %17 : vector<1x96xf32> to vector<8x96xf32>
    %399 = arith.addf %397, %398 : vector<8x96xf32>
    %400 = vector.extract_strided_slice %399 {offsets = [0, 0], sizes = [8, 32], strides = [1, 1]} : vector<8x96xf32> to vector<8x32xf32>
    %401 = vector.extract_strided_slice %399 {offsets = [0, 32], sizes = [8, 32], strides = [1, 1]} : vector<8x96xf32> to vector<8x32xf32>
    %402 = vector.extract_strided_slice %399 {offsets = [0, 64], sizes = [8, 32], strides = [1, 1]} : vector<8x96xf32> to vector<8x32xf32>
    %cst_231 = arith.constant 0.000000e+00 : f32
    %403 = vector.broadcast %cst_231 : f32 to vector<8x32xf32>
    %404 = vector.extract_strided_slice %400 {offsets = [0, 0], sizes = [8, 8], strides = [1, 1]} : vector<8x32xf32> to vector<8x8xf32>
    %405 = vector.extract_strided_slice %401 {offsets = [0, 0], sizes = [8, 8], strides = [1, 1]} : vector<8x32xf32> to vector<8x8xf32>
    %cst_232 = arith.constant dense<0.000000e+00> : vector<8x8xf32>
    %406 = tpu.matmul %404, %405, %cst_232 {dimension_numbers = #tpu.dot_dimension_numbers<[1], [1], [0], [0], [0, 0, 1, 0], [], []>} : vector<8x8xf32>, vector<8x8xf32>, vector<8x8xf32> -> vector<8x8xf32>
    %cst_233 = arith.constant 0.353553385 : f32
    %407 = vector.broadcast %cst_233 : f32 to vector<8x8xf32>
    %408 = arith.mulf %406, %407 : vector<8x8xf32>
    %409 = arith.addf %408, %72 : vector<8x8xf32>
    %cst_234 = arith.constant dense<0xFF800000> : vector<8xf32>
    %410 = vector.multi_reduction <maximumf>, %409, %cst_234 [1] : vector<8x8xf32> to vector<8xf32>
    %411 = vector.shape_cast %410 : vector<8xf32> to vector<8x1xf32>
    %412 = vector.broadcast %411 : vector<8x1xf32> to vector<8x8xf32>
    %413 = arith.subf %409, %412 : vector<8x8xf32>
    %414 = math.exp %413 : vector<8x8xf32>
    %cst_235 = arith.constant dense<0.000000e+00> : vector<8xf32>
    %415 = vector.multi_reduction <add>, %414, %cst_235 [1] : vector<8x8xf32> to vector<8xf32>
    %416 = vector.shape_cast %415 : vector<8xf32> to vector<8x1xf32>
    %417 = tpu.reciprocal %416 {approx = true} : vector<8x1xf32> -> vector<8x1xf32>
    %418 = vector.broadcast %417 : vector<8x1xf32> to vector<8x8xf32>
    %419 = arith.mulf %414, %418 : vector<8x8xf32>
    %420 = vector.extract_strided_slice %402 {offsets = [0, 0], sizes = [8, 8], strides = [1, 1]} : vector<8x32xf32> to vector<8x8xf32>
    %cst_236 = arith.constant dense<0.000000e+00> : vector<8x8xf32>
    %421 = tpu.matmul %419, %420, %cst_236 {dimension_numbers = #tpu.dot_dimension_numbers<[1], [0], [0], [1], [0, 0, 1, 1], [], []>} : vector<8x8xf32>, vector<8x8xf32>, vector<8x8xf32> -> vector<8x8xf32>
    %422 = vector.extract_strided_slice %18 {offsets = [0, 0], sizes = [8, 32], strides = [1, 1]} : vector<32x32xf32> to vector<8x32xf32>
    %cst_237 = arith.constant dense<0.000000e+00> : vector<8x32xf32>
    %423 = tpu.matmul %421, %422, %cst_237 {dimension_numbers = #tpu.dot_dimension_numbers<[1], [0], [0], [1], [0, 0, 1, 1], [], []>} : vector<8x8xf32>, vector<8x32xf32>, vector<8x32xf32> -> vector<8x32xf32>
    %424 = arith.addf %403, %423 : vector<8x32xf32>
    %425 = vector.extract_strided_slice %400 {offsets = [0, 8], sizes = [8, 8], strides = [1, 1]} : vector<8x32xf32> to vector<8x8xf32>
    %426 = vector.extract_strided_slice %401 {offsets = [0, 8], sizes = [8, 8], strides = [1, 1]} : vector<8x32xf32> to vector<8x8xf32>
    %cst_238 = arith.constant dense<0.000000e+00> : vector<8x8xf32>
    %427 = tpu.matmul %425, %426, %cst_238 {dimension_numbers = #tpu.dot_dimension_numbers<[1], [1], [0], [0], [0, 0, 1, 0], [], []>} : vector<8x8xf32>, vector<8x8xf32>, vector<8x8xf32> -> vector<8x8xf32>
    %cst_239 = arith.constant 0.353553385 : f32
    %428 = vector.broadcast %cst_239 : f32 to vector<8x8xf32>
    %429 = arith.mulf %427, %428 : vector<8x8xf32>
    %430 = arith.addf %429, %72 : vector<8x8xf32>
    %cst_240 = arith.constant dense<0xFF800000> : vector<8xf32>
    %431 = vector.multi_reduction <maximumf>, %430, %cst_240 [1] : vector<8x8xf32> to vector<8xf32>
    %432 = vector.shape_cast %431 : vector<8xf32> to vector<8x1xf32>
    %433 = vector.broadcast %432 : vector<8x1xf32> to vector<8x8xf32>
    %434 = arith.subf %430, %433 : vector<8x8xf32>
    %435 = math.exp %434 : vector<8x8xf32>
    %cst_241 = arith.constant dense<0.000000e+00> : vector<8xf32>
    %436 = vector.multi_reduction <add>, %435, %cst_241 [1] : vector<8x8xf32> to vector<8xf32>
    %437 = vector.shape_cast %436 : vector<8xf32> to vector<8x1xf32>
    %438 = tpu.reciprocal %437 {approx = true} : vector<8x1xf32> -> vector<8x1xf32>
    %439 = vector.broadcast %438 : vector<8x1xf32> to vector<8x8xf32>
    %440 = arith.mulf %435, %439 : vector<8x8xf32>
    %441 = vector.extract_strided_slice %402 {offsets = [0, 8], sizes = [8, 8], strides = [1, 1]} : vector<8x32xf32> to vector<8x8xf32>
    %cst_242 = arith.constant dense<0.000000e+00> : vector<8x8xf32>
    %442 = tpu.matmul %440, %441, %cst_242 {dimension_numbers = #tpu.dot_dimension_numbers<[1], [0], [0], [1], [0, 0, 1, 1], [], []>} : vector<8x8xf32>, vector<8x8xf32>, vector<8x8xf32> -> vector<8x8xf32>
    %443 = vector.extract_strided_slice %18 {offsets = [8, 0], sizes = [8, 32], strides = [1, 1]} : vector<32x32xf32> to vector<8x32xf32>
    %cst_243 = arith.constant dense<0.000000e+00> : vector<8x32xf32>
    %444 = tpu.matmul %442, %443, %cst_243 {dimension_numbers = #tpu.dot_dimension_numbers<[1], [0], [0], [1], [0, 0, 1, 1], [], []>} : vector<8x8xf32>, vector<8x32xf32>, vector<8x32xf32> -> vector<8x32xf32>
    %445 = arith.addf %424, %444 : vector<8x32xf32>
    %446 = vector.extract_strided_slice %400 {offsets = [0, 16], sizes = [8, 8], strides = [1, 1]} : vector<8x32xf32> to vector<8x8xf32>
    %447 = vector.extract_strided_slice %401 {offsets = [0, 16], sizes = [8, 8], strides = [1, 1]} : vector<8x32xf32> to vector<8x8xf32>
    %cst_244 = arith.constant dense<0.000000e+00> : vector<8x8xf32>
    %448 = tpu.matmul %446, %447, %cst_244 {dimension_numbers = #tpu.dot_dimension_numbers<[1], [1], [0], [0], [0, 0, 1, 0], [], []>} : vector<8x8xf32>, vector<8x8xf32>, vector<8x8xf32> -> vector<8x8xf32>
    %cst_245 = arith.constant 0.353553385 : f32
    %449 = vector.broadcast %cst_245 : f32 to vector<8x8xf32>
    %450 = arith.mulf %448, %449 : vector<8x8xf32>
    %451 = arith.addf %450, %72 : vector<8x8xf32>
    %cst_246 = arith.constant dense<0xFF800000> : vector<8xf32>
    %452 = vector.multi_reduction <maximumf>, %451, %cst_246 [1] : vector<8x8xf32> to vector<8xf32>
    %453 = vector.shape_cast %452 : vector<8xf32> to vector<8x1xf32>
    %454 = vector.broadcast %453 : vector<8x1xf32> to vector<8x8xf32>
    %455 = arith.subf %451, %454 : vector<8x8xf32>
    %456 = math.exp %455 : vector<8x8xf32>
    %cst_247 = arith.constant dense<0.000000e+00> : vector<8xf32>
    %457 = vector.multi_reduction <add>, %456, %cst_247 [1] : vector<8x8xf32> to vector<8xf32>
    %458 = vector.shape_cast %457 : vector<8xf32> to vector<8x1xf32>
    %459 = tpu.reciprocal %458 {approx = true} : vector<8x1xf32> -> vector<8x1xf32>
    %460 = vector.broadcast %459 : vector<8x1xf32> to vector<8x8xf32>
    %461 = arith.mulf %456, %460 : vector<8x8xf32>
    %462 = vector.extract_strided_slice %402 {offsets = [0, 16], sizes = [8, 8], strides = [1, 1]} : vector<8x32xf32> to vector<8x8xf32>
    %cst_248 = arith.constant dense<0.000000e+00> : vector<8x8xf32>
    %463 = tpu.matmul %461, %462, %cst_248 {dimension_numbers = #tpu.dot_dimension_numbers<[1], [0], [0], [1], [0, 0, 1, 1], [], []>} : vector<8x8xf32>, vector<8x8xf32>, vector<8x8xf32> -> vector<8x8xf32>
    %464 = vector.extract_strided_slice %18 {offsets = [16, 0], sizes = [8, 32], strides = [1, 1]} : vector<32x32xf32> to vector<8x32xf32>
    %cst_249 = arith.constant dense<0.000000e+00> : vector<8x32xf32>
    %465 = tpu.matmul %463, %464, %cst_249 {dimension_numbers = #tpu.dot_dimension_numbers<[1], [0], [0], [1], [0, 0, 1, 1], [], []>} : vector<8x8xf32>, vector<8x32xf32>, vector<8x32xf32> -> vector<8x32xf32>
    %466 = arith.addf %445, %465 : vector<8x32xf32>
    %467 = vector.extract_strided_slice %400 {offsets = [0, 24], sizes = [8, 8], strides = [1, 1]} : vector<8x32xf32> to vector<8x8xf32>
    %468 = vector.extract_strided_slice %401 {offsets = [0, 24], sizes = [8, 8], strides = [1, 1]} : vector<8x32xf32> to vector<8x8xf32>
    %cst_250 = arith.constant dense<0.000000e+00> : vector<8x8xf32>
    %469 = tpu.matmul %467, %468, %cst_250 {dimension_numbers = #tpu.dot_dimension_numbers<[1], [1], [0], [0], [0, 0, 1, 0], [], []>} : vector<8x8xf32>, vector<8x8xf32>, vector<8x8xf32> -> vector<8x8xf32>
    %cst_251 = arith.constant 0.353553385 : f32
    %470 = vector.broadcast %cst_251 : f32 to vector<8x8xf32>
    %471 = arith.mulf %469, %470 : vector<8x8xf32>
    %472 = arith.addf %471, %72 : vector<8x8xf32>
    %cst_252 = arith.constant dense<0xFF800000> : vector<8xf32>
    %473 = vector.multi_reduction <maximumf>, %472, %cst_252 [1] : vector<8x8xf32> to vector<8xf32>
    %474 = vector.shape_cast %473 : vector<8xf32> to vector<8x1xf32>
    %475 = vector.broadcast %474 : vector<8x1xf32> to vector<8x8xf32>
    %476 = arith.subf %472, %475 : vector<8x8xf32>
    %477 = math.exp %476 : vector<8x8xf32>
    %cst_253 = arith.constant dense<0.000000e+00> : vector<8xf32>
    %478 = vector.multi_reduction <add>, %477, %cst_253 [1] : vector<8x8xf32> to vector<8xf32>
    %479 = vector.shape_cast %478 : vector<8xf32> to vector<8x1xf32>
    %480 = tpu.reciprocal %479 {approx = true} : vector<8x1xf32> -> vector<8x1xf32>
    %481 = vector.broadcast %480 : vector<8x1xf32> to vector<8x8xf32>
    %482 = arith.mulf %477, %481 : vector<8x8xf32>
    %483 = vector.extract_strided_slice %402 {offsets = [0, 24], sizes = [8, 8], strides = [1, 1]} : vector<8x32xf32> to vector<8x8xf32>
    %cst_254 = arith.constant dense<0.000000e+00> : vector<8x8xf32>
    %484 = tpu.matmul %482, %483, %cst_254 {dimension_numbers = #tpu.dot_dimension_numbers<[1], [0], [0], [1], [0, 0, 1, 1], [], []>} : vector<8x8xf32>, vector<8x8xf32>, vector<8x8xf32> -> vector<8x8xf32>
    %485 = vector.extract_strided_slice %18 {offsets = [24, 0], sizes = [8, 32], strides = [1, 1]} : vector<32x32xf32> to vector<8x32xf32>
    %cst_255 = arith.constant dense<0.000000e+00> : vector<8x32xf32>
    %486 = tpu.matmul %484, %485, %cst_255 {dimension_numbers = #tpu.dot_dimension_numbers<[1], [0], [0], [1], [0, 0, 1, 1], [], []>} : vector<8x8xf32>, vector<8x32xf32>, vector<8x32xf32> -> vector<8x32xf32>
    %487 = arith.addf %466, %486 : vector<8x32xf32>
    %488 = vector.broadcast %16 : vector<1x32xf32> to vector<8x32xf32>
    %489 = arith.addf %487, %488 : vector<8x32xf32>
    %490 = arith.addf %396, %489 : vector<8x32xf32>
    %cst_256 = arith.constant dense<0.000000e+00> : vector<8xf32>
    %491 = vector.multi_reduction <add>, %490, %cst_256 [1] : vector<8x32xf32> to vector<8xf32>
    %492 = vector.shape_cast %491 : vector<8xf32> to vector<8x1xf32>
    %cst_257 = arith.constant 3.200000e+01 : f32
    %493 = vector.broadcast %cst_257 : f32 to vector<8x1xf32>
    %494 = arith.divf %492, %493 : vector<8x1xf32>
    %495 = vector.broadcast %494 : vector<8x1xf32> to vector<8x32xf32>
    %496 = arith.subf %490, %495 : vector<8x32xf32>
    %497 = arith.mulf %496, %496 : vector<8x32xf32>
    %cst_258 = arith.constant dense<0.000000e+00> : vector<8xf32>
    %498 = vector.multi_reduction <add>, %497, %cst_258 [1] : vector<8x32xf32> to vector<8xf32>
    %499 = vector.shape_cast %498 : vector<8xf32> to vector<8x1xf32>
    %cst_259 = arith.constant 3.200000e+01 : f32
    %500 = vector.broadcast %cst_259 : f32 to vector<8x1xf32>
    %501 = arith.divf %499, %500 : vector<8x1xf32>
    %502 = vector.broadcast %494 : vector<8x1xf32> to vector<8x32xf32>
    %503 = arith.subf %490, %502 : vector<8x32xf32>
    %cst_260 = arith.constant 9.99999974E-6 : f32
    %504 = vector.broadcast %cst_260 : f32 to vector<8x1xf32>
    %505 = arith.addf %501, %504 : vector<8x1xf32>
    %506 = math.rsqrt %505 : vector<8x1xf32>
    %507 = vector.broadcast %506 : vector<8x1xf32> to vector<8x32xf32>
    %508 = arith.mulf %503, %507 : vector<8x32xf32>
    %509 = vector.broadcast %11 : vector<1x32xf32> to vector<8x32xf32>
    %510 = arith.mulf %508, %509 : vector<8x32xf32>
    %511 = vector.broadcast %10 : vector<1x32xf32> to vector<8x32xf32>
    %512 = arith.addf %510, %511 : vector<8x32xf32>
    %cst_261 = arith.constant dense<0.000000e+00> : vector<8x32xf32>
    %513 = tpu.matmul %512, %5, %cst_261 {dimension_numbers = #tpu.dot_dimension_numbers<[1], [0], [0], [1], [0, 0, 1, 1], [], []>} : vector<8x32xf32>, vector<32x32xf32>, vector<8x32xf32> -> vector<8x32xf32>
    %514 = vector.broadcast %2 : vector<1x32xf32> to vector<8x32xf32>
    %515 = arith.addf %513, %514 : vector<8x32xf32>
    %cst_262 = arith.constant dense<0.000000e+00> : vector<8x64xf32>
    %516 = tpu.matmul %385, %3, %cst_262 {dimension_numbers = #tpu.dot_dimension_numbers<[1], [0], [0], [1], [0, 0, 1, 1], [], []>} : vector<8x32xf32>, vector<32x64xf32>, vector<8x64xf32> -> vector<8x64xf32>
    %517 = vector.broadcast %0 : vector<1x64xf32> to vector<8x64xf32>
    %518 = arith.addf %516, %517 : vector<8x64xf32>
    %519 = vector.extract_strided_slice %518 {offsets = [0, 0], sizes = [8, 32], strides = [1, 1]} : vector<8x64xf32> to vector<8x32xf32>
    %520 = vector.extract_strided_slice %518 {offsets = [0, 32], sizes = [8, 32], strides = [1, 1]} : vector<8x64xf32> to vector<8x32xf32>
    %cst_263 = arith.constant 0.000000e+00 : f32
    %521 = vector.broadcast %cst_263 : f32 to vector<8x32xf32>
    %522 = vector.extract_strided_slice %515 {offsets = [0, 0], sizes = [8, 8], strides = [1, 1]} : vector<8x32xf32> to vector<8x8xf32>
    %523 = vector.extract_strided_slice %519 {offsets = [0, 0], sizes = [8, 8], strides = [1, 1]} : vector<8x32xf32> to vector<8x8xf32>
    %cst_264 = arith.constant dense<0.000000e+00> : vector<8x8xf32>
    %524 = tpu.matmul %522, %523, %cst_264 {dimension_numbers = #tpu.dot_dimension_numbers<[1], [1], [0], [0], [0, 0, 1, 0], [], []>} : vector<8x8xf32>, vector<8x8xf32>, vector<8x8xf32> -> vector<8x8xf32>
    %cst_265 = arith.constant 0.353553385 : f32
    %525 = vector.broadcast %cst_265 : f32 to vector<8x8xf32>
    %526 = arith.mulf %524, %525 : vector<8x8xf32>
    %527 = vector.broadcast %70 : vector<1x8xf32> to vector<8x8xf32>
    %528 = arith.addf %526, %527 : vector<8x8xf32>
    %cst_266 = arith.constant dense<0xFF800000> : vector<8xf32>
    %529 = vector.multi_reduction <maximumf>, %528, %cst_266 [1] : vector<8x8xf32> to vector<8xf32>
    %530 = vector.shape_cast %529 : vector<8xf32> to vector<8x1xf32>
    %531 = vector.broadcast %530 : vector<8x1xf32> to vector<8x8xf32>
    %532 = arith.subf %528, %531 : vector<8x8xf32>
    %533 = math.exp %532 : vector<8x8xf32>
    %cst_267 = arith.constant dense<0.000000e+00> : vector<8xf32>
    %534 = vector.multi_reduction <add>, %533, %cst_267 [1] : vector<8x8xf32> to vector<8xf32>
    %535 = vector.shape_cast %534 : vector<8xf32> to vector<8x1xf32>
    %536 = tpu.reciprocal %535 {approx = true} : vector<8x1xf32> -> vector<8x1xf32>
    %537 = vector.broadcast %536 : vector<8x1xf32> to vector<8x8xf32>
    %538 = arith.mulf %533, %537 : vector<8x8xf32>
    %539 = vector.extract_strided_slice %520 {offsets = [0, 0], sizes = [8, 8], strides = [1, 1]} : vector<8x32xf32> to vector<8x8xf32>
    %cst_268 = arith.constant dense<0.000000e+00> : vector<8x8xf32>
    %540 = tpu.matmul %538, %539, %cst_268 {dimension_numbers = #tpu.dot_dimension_numbers<[1], [0], [0], [1], [0, 0, 1, 1], [], []>} : vector<8x8xf32>, vector<8x8xf32>, vector<8x8xf32> -> vector<8x8xf32>
    %541 = vector.extract_strided_slice %4 {offsets = [0, 0], sizes = [8, 32], strides = [1, 1]} : vector<32x32xf32> to vector<8x32xf32>
    %cst_269 = arith.constant dense<0.000000e+00> : vector<8x32xf32>
    %542 = tpu.matmul %540, %541, %cst_269 {dimension_numbers = #tpu.dot_dimension_numbers<[1], [0], [0], [1], [0, 0, 1, 1], [], []>} : vector<8x8xf32>, vector<8x32xf32>, vector<8x32xf32> -> vector<8x32xf32>
    %543 = arith.addf %521, %542 : vector<8x32xf32>
    %544 = vector.extract_strided_slice %515 {offsets = [0, 8], sizes = [8, 8], strides = [1, 1]} : vector<8x32xf32> to vector<8x8xf32>
    %545 = vector.extract_strided_slice %519 {offsets = [0, 8], sizes = [8, 8], strides = [1, 1]} : vector<8x32xf32> to vector<8x8xf32>
    %cst_270 = arith.constant dense<0.000000e+00> : vector<8x8xf32>
    %546 = tpu.matmul %544, %545, %cst_270 {dimension_numbers = #tpu.dot_dimension_numbers<[1], [1], [0], [0], [0, 0, 1, 0], [], []>} : vector<8x8xf32>, vector<8x8xf32>, vector<8x8xf32> -> vector<8x8xf32>
    %cst_271 = arith.constant 0.353553385 : f32
    %547 = vector.broadcast %cst_271 : f32 to vector<8x8xf32>
    %548 = arith.mulf %546, %547 : vector<8x8xf32>
    %549 = vector.broadcast %70 : vector<1x8xf32> to vector<8x8xf32>
    %550 = arith.addf %548, %549 : vector<8x8xf32>
    %cst_272 = arith.constant dense<0xFF800000> : vector<8xf32>
    %551 = vector.multi_reduction <maximumf>, %550, %cst_272 [1] : vector<8x8xf32> to vector<8xf32>
    %552 = vector.shape_cast %551 : vector<8xf32> to vector<8x1xf32>
    %553 = vector.broadcast %552 : vector<8x1xf32> to vector<8x8xf32>
    %554 = arith.subf %550, %553 : vector<8x8xf32>
    %555 = math.exp %554 : vector<8x8xf32>
    %cst_273 = arith.constant dense<0.000000e+00> : vector<8xf32>
    %556 = vector.multi_reduction <add>, %555, %cst_273 [1] : vector<8x8xf32> to vector<8xf32>
    %557 = vector.shape_cast %556 : vector<8xf32> to vector<8x1xf32>
    %558 = tpu.reciprocal %557 {approx = true} : vector<8x1xf32> -> vector<8x1xf32>
    %559 = vector.broadcast %558 : vector<8x1xf32> to vector<8x8xf32>
    %560 = arith.mulf %555, %559 : vector<8x8xf32>
    %561 = vector.extract_strided_slice %520 {offsets = [0, 8], sizes = [8, 8], strides = [1, 1]} : vector<8x32xf32> to vector<8x8xf32>
    %cst_274 = arith.constant dense<0.000000e+00> : vector<8x8xf32>
    %562 = tpu.matmul %560, %561, %cst_274 {dimension_numbers = #tpu.dot_dimension_numbers<[1], [0], [0], [1], [0, 0, 1, 1], [], []>} : vector<8x8xf32>, vector<8x8xf32>, vector<8x8xf32> -> vector<8x8xf32>
    %563 = vector.extract_strided_slice %4 {offsets = [8, 0], sizes = [8, 32], strides = [1, 1]} : vector<32x32xf32> to vector<8x32xf32>
    %cst_275 = arith.constant dense<0.000000e+00> : vector<8x32xf32>
    %564 = tpu.matmul %562, %563, %cst_275 {dimension_numbers = #tpu.dot_dimension_numbers<[1], [0], [0], [1], [0, 0, 1, 1], [], []>} : vector<8x8xf32>, vector<8x32xf32>, vector<8x32xf32> -> vector<8x32xf32>
    %565 = arith.addf %543, %564 : vector<8x32xf32>
    %566 = vector.extract_strided_slice %515 {offsets = [0, 16], sizes = [8, 8], strides = [1, 1]} : vector<8x32xf32> to vector<8x8xf32>
    %567 = vector.extract_strided_slice %519 {offsets = [0, 16], sizes = [8, 8], strides = [1, 1]} : vector<8x32xf32> to vector<8x8xf32>
    %cst_276 = arith.constant dense<0.000000e+00> : vector<8x8xf32>
    %568 = tpu.matmul %566, %567, %cst_276 {dimension_numbers = #tpu.dot_dimension_numbers<[1], [1], [0], [0], [0, 0, 1, 0], [], []>} : vector<8x8xf32>, vector<8x8xf32>, vector<8x8xf32> -> vector<8x8xf32>
    %cst_277 = arith.constant 0.353553385 : f32
    %569 = vector.broadcast %cst_277 : f32 to vector<8x8xf32>
    %570 = arith.mulf %568, %569 : vector<8x8xf32>
    %571 = vector.broadcast %70 : vector<1x8xf32> to vector<8x8xf32>
    %572 = arith.addf %570, %571 : vector<8x8xf32>
    %cst_278 = arith.constant dense<0xFF800000> : vector<8xf32>
    %573 = vector.multi_reduction <maximumf>, %572, %cst_278 [1] : vector<8x8xf32> to vector<8xf32>
    %574 = vector.shape_cast %573 : vector<8xf32> to vector<8x1xf32>
    %575 = vector.broadcast %574 : vector<8x1xf32> to vector<8x8xf32>
    %576 = arith.subf %572, %575 : vector<8x8xf32>
    %577 = math.exp %576 : vector<8x8xf32>
    %cst_279 = arith.constant dense<0.000000e+00> : vector<8xf32>
    %578 = vector.multi_reduction <add>, %577, %cst_279 [1] : vector<8x8xf32> to vector<8xf32>
    %579 = vector.shape_cast %578 : vector<8xf32> to vector<8x1xf32>
    %580 = tpu.reciprocal %579 {approx = true} : vector<8x1xf32> -> vector<8x1xf32>
    %581 = vector.broadcast %580 : vector<8x1xf32> to vector<8x8xf32>
    %582 = arith.mulf %577, %581 : vector<8x8xf32>
    %583 = vector.extract_strided_slice %520 {offsets = [0, 16], sizes = [8, 8], strides = [1, 1]} : vector<8x32xf32> to vector<8x8xf32>
    %cst_280 = arith.constant dense<0.000000e+00> : vector<8x8xf32>
    %584 = tpu.matmul %582, %583, %cst_280 {dimension_numbers = #tpu.dot_dimension_numbers<[1], [0], [0], [1], [0, 0, 1, 1], [], []>} : vector<8x8xf32>, vector<8x8xf32>, vector<8x8xf32> -> vector<8x8xf32>
    %585 = vector.extract_strided_slice %4 {offsets = [16, 0], sizes = [8, 32], strides = [1, 1]} : vector<32x32xf32> to vector<8x32xf32>
    %cst_281 = arith.constant dense<0.000000e+00> : vector<8x32xf32>
    %586 = tpu.matmul %584, %585, %cst_281 {dimension_numbers = #tpu.dot_dimension_numbers<[1], [0], [0], [1], [0, 0, 1, 1], [], []>} : vector<8x8xf32>, vector<8x32xf32>, vector<8x32xf32> -> vector<8x32xf32>
    %587 = arith.addf %565, %586 : vector<8x32xf32>
    %588 = vector.extract_strided_slice %515 {offsets = [0, 24], sizes = [8, 8], strides = [1, 1]} : vector<8x32xf32> to vector<8x8xf32>
    %589 = vector.extract_strided_slice %519 {offsets = [0, 24], sizes = [8, 8], strides = [1, 1]} : vector<8x32xf32> to vector<8x8xf32>
    %cst_282 = arith.constant dense<0.000000e+00> : vector<8x8xf32>
    %590 = tpu.matmul %588, %589, %cst_282 {dimension_numbers = #tpu.dot_dimension_numbers<[1], [1], [0], [0], [0, 0, 1, 0], [], []>} : vector<8x8xf32>, vector<8x8xf32>, vector<8x8xf32> -> vector<8x8xf32>
    %cst_283 = arith.constant 0.353553385 : f32
    %591 = vector.broadcast %cst_283 : f32 to vector<8x8xf32>
    %592 = arith.mulf %590, %591 : vector<8x8xf32>
    %593 = vector.broadcast %70 : vector<1x8xf32> to vector<8x8xf32>
    %594 = arith.addf %592, %593 : vector<8x8xf32>
    %cst_284 = arith.constant dense<0xFF800000> : vector<8xf32>
    %595 = vector.multi_reduction <maximumf>, %594, %cst_284 [1] : vector<8x8xf32> to vector<8xf32>
    %596 = vector.shape_cast %595 : vector<8xf32> to vector<8x1xf32>
    %597 = vector.broadcast %596 : vector<8x1xf32> to vector<8x8xf32>
    %598 = arith.subf %594, %597 : vector<8x8xf32>
    %599 = math.exp %598 : vector<8x8xf32>
    %cst_285 = arith.constant dense<0.000000e+00> : vector<8xf32>
    %600 = vector.multi_reduction <add>, %599, %cst_285 [1] : vector<8x8xf32> to vector<8xf32>
    %601 = vector.shape_cast %600 : vector<8xf32> to vector<8x1xf32>
    %602 = tpu.reciprocal %601 {approx = true} : vector<8x1xf32> -> vector<8x1xf32>
    %603 = vector.broadcast %602 : vector<8x1xf32> to vector<8x8xf32>
    %604 = arith.mulf %599, %603 : vector<8x8xf32>
    %605 = vector.extract_strided_slice %520 {offsets = [0, 24], sizes = [8, 8], strides = [1, 1]} : vector<8x32xf32> to vector<8x8xf32>
    %cst_286 = arith.constant dense<0.000000e+00> : vector<8x8xf32>
    %606 = tpu.matmul %604, %605, %cst_286 {dimension_numbers = #tpu.dot_dimension_numbers<[1], [0], [0], [1], [0, 0, 1, 1], [], []>} : vector<8x8xf32>, vector<8x8xf32>, vector<8x8xf32> -> vector<8x8xf32>
    %607 = vector.extract_strided_slice %4 {offsets = [24, 0], sizes = [8, 32], strides = [1, 1]} : vector<32x32xf32> to vector<8x32xf32>
    %cst_287 = arith.constant dense<0.000000e+00> : vector<8x32xf32>
    %608 = tpu.matmul %606, %607, %cst_287 {dimension_numbers = #tpu.dot_dimension_numbers<[1], [0], [0], [1], [0, 0, 1, 1], [], []>} : vector<8x8xf32>, vector<8x32xf32>, vector<8x32xf32> -> vector<8x32xf32>
    %609 = arith.addf %587, %608 : vector<8x32xf32>
    %610 = vector.broadcast %1 : vector<1x32xf32> to vector<8x32xf32>
    %611 = arith.addf %609, %610 : vector<8x32xf32>
    %612 = arith.addf %512, %611 : vector<8x32xf32>
    %cst_288 = arith.constant dense<0.000000e+00> : vector<8xf32>
    %613 = vector.multi_reduction <add>, %612, %cst_288 [1] : vector<8x32xf32> to vector<8xf32>
    %614 = vector.shape_cast %613 : vector<8xf32> to vector<8x1xf32>
    %cst_289 = arith.constant 3.200000e+01 : f32
    %615 = vector.broadcast %cst_289 : f32 to vector<8x1xf32>
    %616 = arith.divf %614, %615 : vector<8x1xf32>
    %617 = vector.broadcast %616 : vector<8x1xf32> to vector<8x32xf32>
    %618 = arith.subf %612, %617 : vector<8x32xf32>
    %619 = arith.mulf %618, %618 : vector<8x32xf32>
    %cst_290 = arith.constant dense<0.000000e+00> : vector<8xf32>
    %620 = vector.multi_reduction <add>, %619, %cst_290 [1] : vector<8x32xf32> to vector<8xf32>
    %621 = vector.shape_cast %620 : vector<8xf32> to vector<8x1xf32>
    %cst_291 = arith.constant 3.200000e+01 : f32
    %622 = vector.broadcast %cst_291 : f32 to vector<8x1xf32>
    %623 = arith.divf %621, %622 : vector<8x1xf32>
    %624 = vector.broadcast %616 : vector<8x1xf32> to vector<8x32xf32>
    %625 = arith.subf %612, %624 : vector<8x32xf32>
    %cst_292 = arith.constant 9.99999974E-6 : f32
    %626 = vector.broadcast %cst_292 : f32 to vector<8x1xf32>
    %627 = arith.addf %623, %626 : vector<8x1xf32>
    %628 = math.rsqrt %627 : vector<8x1xf32>
    %629 = vector.broadcast %628 : vector<8x1xf32> to vector<8x32xf32>
    %630 = arith.mulf %625, %629 : vector<8x32xf32>
    %631 = vector.broadcast %13 : vector<1x32xf32> to vector<8x32xf32>
    %632 = arith.mulf %630, %631 : vector<8x32xf32>
    %633 = vector.broadcast %12 : vector<1x32xf32> to vector<8x32xf32>
    %634 = arith.addf %632, %633 : vector<8x32xf32>
    %cst_293 = arith.constant dense<0.000000e+00> : vector<8x64xf32>
    %635 = tpu.matmul %634, %8, %cst_293 {dimension_numbers = #tpu.dot_dimension_numbers<[1], [0], [0], [1], [0, 0, 1, 1], [], []>} : vector<8x32xf32>, vector<32x64xf32>, vector<8x64xf32> -> vector<8x64xf32>
    %636 = vector.broadcast %6 : vector<1x64xf32> to vector<8x64xf32>
    %637 = arith.addf %635, %636 : vector<8x64xf32>
    %cst_294 = arith.constant 0.000000e+00 : f32
    %638 = vector.broadcast %cst_294 : f32 to vector<8x64xf32>
    %639 = arith.maximumf %637, %638 : vector<8x64xf32>
    %cst_295 = arith.constant dense<0.000000e+00> : vector<8x32xf32>
    %640 = tpu.matmul %639, %9, %cst_295 {dimension_numbers = #tpu.dot_dimension_numbers<[1], [0], [0], [1], [0, 0, 1, 1], [], []>} : vector<8x64xf32>, vector<64x32xf32>, vector<8x32xf32> -> vector<8x32xf32>
    %641 = vector.broadcast %7 : vector<1x32xf32> to vector<8x32xf32>
    %642 = arith.addf %640, %641 : vector<8x32xf32>
    %643 = arith.addf %634, %642 : vector<8x32xf32>
    %cst_296 = arith.constant dense<0.000000e+00> : vector<8xf32>
    %644 = vector.multi_reduction <add>, %643, %cst_296 [1] : vector<8x32xf32> to vector<8xf32>
    %645 = vector.shape_cast %644 : vector<8xf32> to vector<8x1xf32>
    %cst_297 = arith.constant 3.200000e+01 : f32
    %646 = vector.broadcast %cst_297 : f32 to vector<8x1xf32>
    %647 = arith.divf %645, %646 : vector<8x1xf32>
    %648 = vector.broadcast %647 : vector<8x1xf32> to vector<8x32xf32>
    %649 = arith.subf %643, %648 : vector<8x32xf32>
    %650 = arith.mulf %649, %649 : vector<8x32xf32>
    %cst_298 = arith.constant dense<0.000000e+00> : vector<8xf32>
    %651 = vector.multi_reduction <add>, %650, %cst_298 [1] : vector<8x32xf32> to vector<8xf32>
    %652 = vector.shape_cast %651 : vector<8xf32> to vector<8x1xf32>
    %cst_299 = arith.constant 3.200000e+01 : f32
    %653 = vector.broadcast %cst_299 : f32 to vector<8x1xf32>
    %654 = arith.divf %652, %653 : vector<8x1xf32>
    %655 = vector.broadcast %647 : vector<8x1xf32> to vector<8x32xf32>
    %656 = arith.subf %643, %655 : vector<8x32xf32>
    %cst_300 = arith.constant 9.99999974E-6 : f32
    %657 = vector.broadcast %cst_300 : f32 to vector<8x1xf32>
    %658 = arith.addf %654, %657 : vector<8x1xf32>
    %659 = math.rsqrt %658 : vector<8x1xf32>
    %660 = vector.broadcast %659 : vector<8x1xf32> to vector<8x32xf32>
    %661 = arith.mulf %656, %660 : vector<8x32xf32>
    %662 = vector.broadcast %15 : vector<1x32xf32> to vector<8x32xf32>
    %663 = arith.mulf %661, %662 : vector<8x32xf32>
    %664 = vector.broadcast %14 : vector<1x32xf32> to vector<8x32xf32>
    %665 = arith.addf %663, %664 : vector<8x32xf32>
    %cst_301 = arith.constant dense<0.000000e+00> : vector<8x96xf32>
    %666 = tpu.matmul %665, %39, %cst_301 {dimension_numbers = #tpu.dot_dimension_numbers<[1], [0], [0], [1], [0, 0, 1, 1], [], []>} : vector<8x32xf32>, vector<32x96xf32>, vector<8x96xf32> -> vector<8x96xf32>
    %667 = vector.broadcast %37 : vector<1x96xf32> to vector<8x96xf32>
    %668 = arith.addf %666, %667 : vector<8x96xf32>
    %669 = vector.extract_strided_slice %668 {offsets = [0, 0], sizes = [8, 32], strides = [1, 1]} : vector<8x96xf32> to vector<8x32xf32>
    %670 = vector.extract_strided_slice %668 {offsets = [0, 32], sizes = [8, 32], strides = [1, 1]} : vector<8x96xf32> to vector<8x32xf32>
    %671 = vector.extract_strided_slice %668 {offsets = [0, 64], sizes = [8, 32], strides = [1, 1]} : vector<8x96xf32> to vector<8x32xf32>
    %cst_302 = arith.constant 0.000000e+00 : f32
    %672 = vector.broadcast %cst_302 : f32 to vector<8x32xf32>
    %673 = vector.extract_strided_slice %669 {offsets = [0, 0], sizes = [8, 8], strides = [1, 1]} : vector<8x32xf32> to vector<8x8xf32>
    %674 = vector.extract_strided_slice %670 {offsets = [0, 0], sizes = [8, 8], strides = [1, 1]} : vector<8x32xf32> to vector<8x8xf32>
    %cst_303 = arith.constant dense<0.000000e+00> : vector<8x8xf32>
    %675 = tpu.matmul %673, %674, %cst_303 {dimension_numbers = #tpu.dot_dimension_numbers<[1], [1], [0], [0], [0, 0, 1, 0], [], []>} : vector<8x8xf32>, vector<8x8xf32>, vector<8x8xf32> -> vector<8x8xf32>
    %cst_304 = arith.constant 0.353553385 : f32
    %676 = vector.broadcast %cst_304 : f32 to vector<8x8xf32>
    %677 = arith.mulf %675, %676 : vector<8x8xf32>
    %678 = arith.addf %677, %72 : vector<8x8xf32>
    %cst_305 = arith.constant dense<0xFF800000> : vector<8xf32>
    %679 = vector.multi_reduction <maximumf>, %678, %cst_305 [1] : vector<8x8xf32> to vector<8xf32>
    %680 = vector.shape_cast %679 : vector<8xf32> to vector<8x1xf32>
    %681 = vector.broadcast %680 : vector<8x1xf32> to vector<8x8xf32>
    %682 = arith.subf %678, %681 : vector<8x8xf32>
    %683 = math.exp %682 : vector<8x8xf32>
    %cst_306 = arith.constant dense<0.000000e+00> : vector<8xf32>
    %684 = vector.multi_reduction <add>, %683, %cst_306 [1] : vector<8x8xf32> to vector<8xf32>
    %685 = vector.shape_cast %684 : vector<8xf32> to vector<8x1xf32>
    %686 = tpu.reciprocal %685 {approx = true} : vector<8x1xf32> -> vector<8x1xf32>
    %687 = vector.broadcast %686 : vector<8x1xf32> to vector<8x8xf32>
    %688 = arith.mulf %683, %687 : vector<8x8xf32>
    %689 = vector.extract_strided_slice %671 {offsets = [0, 0], sizes = [8, 8], strides = [1, 1]} : vector<8x32xf32> to vector<8x8xf32>
    %cst_307 = arith.constant dense<0.000000e+00> : vector<8x8xf32>
    %690 = tpu.matmul %688, %689, %cst_307 {dimension_numbers = #tpu.dot_dimension_numbers<[1], [0], [0], [1], [0, 0, 1, 1], [], []>} : vector<8x8xf32>, vector<8x8xf32>, vector<8x8xf32> -> vector<8x8xf32>
    %691 = vector.extract_strided_slice %38 {offsets = [0, 0], sizes = [8, 32], strides = [1, 1]} : vector<32x32xf32> to vector<8x32xf32>
    %cst_308 = arith.constant dense<0.000000e+00> : vector<8x32xf32>
    %692 = tpu.matmul %690, %691, %cst_308 {dimension_numbers = #tpu.dot_dimension_numbers<[1], [0], [0], [1], [0, 0, 1, 1], [], []>} : vector<8x8xf32>, vector<8x32xf32>, vector<8x32xf32> -> vector<8x32xf32>
    %693 = arith.addf %672, %692 : vector<8x32xf32>
    %694 = vector.extract_strided_slice %669 {offsets = [0, 8], sizes = [8, 8], strides = [1, 1]} : vector<8x32xf32> to vector<8x8xf32>
    %695 = vector.extract_strided_slice %670 {offsets = [0, 8], sizes = [8, 8], strides = [1, 1]} : vector<8x32xf32> to vector<8x8xf32>
    %cst_309 = arith.constant dense<0.000000e+00> : vector<8x8xf32>
    %696 = tpu.matmul %694, %695, %cst_309 {dimension_numbers = #tpu.dot_dimension_numbers<[1], [1], [0], [0], [0, 0, 1, 0], [], []>} : vector<8x8xf32>, vector<8x8xf32>, vector<8x8xf32> -> vector<8x8xf32>
    %cst_310 = arith.constant 0.353553385 : f32
    %697 = vector.broadcast %cst_310 : f32 to vector<8x8xf32>
    %698 = arith.mulf %696, %697 : vector<8x8xf32>
    %699 = arith.addf %698, %72 : vector<8x8xf32>
    %cst_311 = arith.constant dense<0xFF800000> : vector<8xf32>
    %700 = vector.multi_reduction <maximumf>, %699, %cst_311 [1] : vector<8x8xf32> to vector<8xf32>
    %701 = vector.shape_cast %700 : vector<8xf32> to vector<8x1xf32>
    %702 = vector.broadcast %701 : vector<8x1xf32> to vector<8x8xf32>
    %703 = arith.subf %699, %702 : vector<8x8xf32>
    %704 = math.exp %703 : vector<8x8xf32>
    %cst_312 = arith.constant dense<0.000000e+00> : vector<8xf32>
    %705 = vector.multi_reduction <add>, %704, %cst_312 [1] : vector<8x8xf32> to vector<8xf32>
    %706 = vector.shape_cast %705 : vector<8xf32> to vector<8x1xf32>
    %707 = tpu.reciprocal %706 {approx = true} : vector<8x1xf32> -> vector<8x1xf32>
    %708 = vector.broadcast %707 : vector<8x1xf32> to vector<8x8xf32>
    %709 = arith.mulf %704, %708 : vector<8x8xf32>
    %710 = vector.extract_strided_slice %671 {offsets = [0, 8], sizes = [8, 8], strides = [1, 1]} : vector<8x32xf32> to vector<8x8xf32>
    %cst_313 = arith.constant dense<0.000000e+00> : vector<8x8xf32>
    %711 = tpu.matmul %709, %710, %cst_313 {dimension_numbers = #tpu.dot_dimension_numbers<[1], [0], [0], [1], [0, 0, 1, 1], [], []>} : vector<8x8xf32>, vector<8x8xf32>, vector<8x8xf32> -> vector<8x8xf32>
    %712 = vector.extract_strided_slice %38 {offsets = [8, 0], sizes = [8, 32], strides = [1, 1]} : vector<32x32xf32> to vector<8x32xf32>
    %cst_314 = arith.constant dense<0.000000e+00> : vector<8x32xf32>
    %713 = tpu.matmul %711, %712, %cst_314 {dimension_numbers = #tpu.dot_dimension_numbers<[1], [0], [0], [1], [0, 0, 1, 1], [], []>} : vector<8x8xf32>, vector<8x32xf32>, vector<8x32xf32> -> vector<8x32xf32>
    %714 = arith.addf %693, %713 : vector<8x32xf32>
    %715 = vector.extract_strided_slice %669 {offsets = [0, 16], sizes = [8, 8], strides = [1, 1]} : vector<8x32xf32> to vector<8x8xf32>
    %716 = vector.extract_strided_slice %670 {offsets = [0, 16], sizes = [8, 8], strides = [1, 1]} : vector<8x32xf32> to vector<8x8xf32>
    %cst_315 = arith.constant dense<0.000000e+00> : vector<8x8xf32>
    %717 = tpu.matmul %715, %716, %cst_315 {dimension_numbers = #tpu.dot_dimension_numbers<[1], [1], [0], [0], [0, 0, 1, 0], [], []>} : vector<8x8xf32>, vector<8x8xf32>, vector<8x8xf32> -> vector<8x8xf32>
    %cst_316 = arith.constant 0.353553385 : f32
    %718 = vector.broadcast %cst_316 : f32 to vector<8x8xf32>
    %719 = arith.mulf %717, %718 : vector<8x8xf32>
    %720 = arith.addf %719, %72 : vector<8x8xf32>
    %cst_317 = arith.constant dense<0xFF800000> : vector<8xf32>
    %721 = vector.multi_reduction <maximumf>, %720, %cst_317 [1] : vector<8x8xf32> to vector<8xf32>
    %722 = vector.shape_cast %721 : vector<8xf32> to vector<8x1xf32>
    %723 = vector.broadcast %722 : vector<8x1xf32> to vector<8x8xf32>
    %724 = arith.subf %720, %723 : vector<8x8xf32>
    %725 = math.exp %724 : vector<8x8xf32>
    %cst_318 = arith.constant dense<0.000000e+00> : vector<8xf32>
    %726 = vector.multi_reduction <add>, %725, %cst_318 [1] : vector<8x8xf32> to vector<8xf32>
    %727 = vector.shape_cast %726 : vector<8xf32> to vector<8x1xf32>
    %728 = tpu.reciprocal %727 {approx = true} : vector<8x1xf32> -> vector<8x1xf32>
    %729 = vector.broadcast %728 : vector<8x1xf32> to vector<8x8xf32>
    %730 = arith.mulf %725, %729 : vector<8x8xf32>
    %731 = vector.extract_strided_slice %671 {offsets = [0, 16], sizes = [8, 8], strides = [1, 1]} : vector<8x32xf32> to vector<8x8xf32>
    %cst_319 = arith.constant dense<0.000000e+00> : vector<8x8xf32>
    %732 = tpu.matmul %730, %731, %cst_319 {dimension_numbers = #tpu.dot_dimension_numbers<[1], [0], [0], [1], [0, 0, 1, 1], [], []>} : vector<8x8xf32>, vector<8x8xf32>, vector<8x8xf32> -> vector<8x8xf32>
    %733 = vector.extract_strided_slice %38 {offsets = [16, 0], sizes = [8, 32], strides = [1, 1]} : vector<32x32xf32> to vector<8x32xf32>
    %cst_320 = arith.constant dense<0.000000e+00> : vector<8x32xf32>
    %734 = tpu.matmul %732, %733, %cst_320 {dimension_numbers = #tpu.dot_dimension_numbers<[1], [0], [0], [1], [0, 0, 1, 1], [], []>} : vector<8x8xf32>, vector<8x32xf32>, vector<8x32xf32> -> vector<8x32xf32>
    %735 = arith.addf %714, %734 : vector<8x32xf32>
    %736 = vector.extract_strided_slice %669 {offsets = [0, 24], sizes = [8, 8], strides = [1, 1]} : vector<8x32xf32> to vector<8x8xf32>
    %737 = vector.extract_strided_slice %670 {offsets = [0, 24], sizes = [8, 8], strides = [1, 1]} : vector<8x32xf32> to vector<8x8xf32>
    %cst_321 = arith.constant dense<0.000000e+00> : vector<8x8xf32>
    %738 = tpu.matmul %736, %737, %cst_321 {dimension_numbers = #tpu.dot_dimension_numbers<[1], [1], [0], [0], [0, 0, 1, 0], [], []>} : vector<8x8xf32>, vector<8x8xf32>, vector<8x8xf32> -> vector<8x8xf32>
    %cst_322 = arith.constant 0.353553385 : f32
    %739 = vector.broadcast %cst_322 : f32 to vector<8x8xf32>
    %740 = arith.mulf %738, %739 : vector<8x8xf32>
    %741 = arith.addf %740, %72 : vector<8x8xf32>
    %cst_323 = arith.constant dense<0xFF800000> : vector<8xf32>
    %742 = vector.multi_reduction <maximumf>, %741, %cst_323 [1] : vector<8x8xf32> to vector<8xf32>
    %743 = vector.shape_cast %742 : vector<8xf32> to vector<8x1xf32>
    %744 = vector.broadcast %743 : vector<8x1xf32> to vector<8x8xf32>
    %745 = arith.subf %741, %744 : vector<8x8xf32>
    %746 = math.exp %745 : vector<8x8xf32>
    %cst_324 = arith.constant dense<0.000000e+00> : vector<8xf32>
    %747 = vector.multi_reduction <add>, %746, %cst_324 [1] : vector<8x8xf32> to vector<8xf32>
    %748 = vector.shape_cast %747 : vector<8xf32> to vector<8x1xf32>
    %749 = tpu.reciprocal %748 {approx = true} : vector<8x1xf32> -> vector<8x1xf32>
    %750 = vector.broadcast %749 : vector<8x1xf32> to vector<8x8xf32>
    %751 = arith.mulf %746, %750 : vector<8x8xf32>
    %752 = vector.extract_strided_slice %671 {offsets = [0, 24], sizes = [8, 8], strides = [1, 1]} : vector<8x32xf32> to vector<8x8xf32>
    %cst_325 = arith.constant dense<0.000000e+00> : vector<8x8xf32>
    %753 = tpu.matmul %751, %752, %cst_325 {dimension_numbers = #tpu.dot_dimension_numbers<[1], [0], [0], [1], [0, 0, 1, 1], [], []>} : vector<8x8xf32>, vector<8x8xf32>, vector<8x8xf32> -> vector<8x8xf32>
    %754 = vector.extract_strided_slice %38 {offsets = [24, 0], sizes = [8, 32], strides = [1, 1]} : vector<32x32xf32> to vector<8x32xf32>
    %cst_326 = arith.constant dense<0.000000e+00> : vector<8x32xf32>
    %755 = tpu.matmul %753, %754, %cst_326 {dimension_numbers = #tpu.dot_dimension_numbers<[1], [0], [0], [1], [0, 0, 1, 1], [], []>} : vector<8x8xf32>, vector<8x32xf32>, vector<8x32xf32> -> vector<8x32xf32>
    %756 = arith.addf %735, %755 : vector<8x32xf32>
    %757 = vector.broadcast %36 : vector<1x32xf32> to vector<8x32xf32>
    %758 = arith.addf %756, %757 : vector<8x32xf32>
    %759 = arith.addf %665, %758 : vector<8x32xf32>
    %cst_327 = arith.constant dense<0.000000e+00> : vector<8xf32>
    %760 = vector.multi_reduction <add>, %759, %cst_327 [1] : vector<8x32xf32> to vector<8xf32>
    %761 = vector.shape_cast %760 : vector<8xf32> to vector<8x1xf32>
    %cst_328 = arith.constant 3.200000e+01 : f32
    %762 = vector.broadcast %cst_328 : f32 to vector<8x1xf32>
    %763 = arith.divf %761, %762 : vector<8x1xf32>
    %764 = vector.broadcast %763 : vector<8x1xf32> to vector<8x32xf32>
    %765 = arith.subf %759, %764 : vector<8x32xf32>
    %766 = arith.mulf %765, %765 : vector<8x32xf32>
    %cst_329 = arith.constant dense<0.000000e+00> : vector<8xf32>
    %767 = vector.multi_reduction <add>, %766, %cst_329 [1] : vector<8x32xf32> to vector<8xf32>
    %768 = vector.shape_cast %767 : vector<8xf32> to vector<8x1xf32>
    %cst_330 = arith.constant 3.200000e+01 : f32
    %769 = vector.broadcast %cst_330 : f32 to vector<8x1xf32>
    %770 = arith.divf %768, %769 : vector<8x1xf32>
    %771 = vector.broadcast %763 : vector<8x1xf32> to vector<8x32xf32>
    %772 = arith.subf %759, %771 : vector<8x32xf32>
    %cst_331 = arith.constant 9.99999974E-6 : f32
    %773 = vector.broadcast %cst_331 : f32 to vector<8x1xf32>
    %774 = arith.addf %770, %773 : vector<8x1xf32>
    %775 = math.rsqrt %774 : vector<8x1xf32>
    %776 = vector.broadcast %775 : vector<8x1xf32> to vector<8x32xf32>
    %777 = arith.mulf %772, %776 : vector<8x32xf32>
    %778 = vector.broadcast %31 : vector<1x32xf32> to vector<8x32xf32>
    %779 = arith.mulf %777, %778 : vector<8x32xf32>
    %780 = vector.broadcast %30 : vector<1x32xf32> to vector<8x32xf32>
    %781 = arith.addf %779, %780 : vector<8x32xf32>
    %cst_332 = arith.constant dense<0.000000e+00> : vector<8x32xf32>
    %782 = tpu.matmul %781, %25, %cst_332 {dimension_numbers = #tpu.dot_dimension_numbers<[1], [0], [0], [1], [0, 0, 1, 1], [], []>} : vector<8x32xf32>, vector<32x32xf32>, vector<8x32xf32> -> vector<8x32xf32>
    %783 = vector.broadcast %22 : vector<1x32xf32> to vector<8x32xf32>
    %784 = arith.addf %782, %783 : vector<8x32xf32>
    %cst_333 = arith.constant dense<0.000000e+00> : vector<8x64xf32>
    %785 = tpu.matmul %385, %23, %cst_333 {dimension_numbers = #tpu.dot_dimension_numbers<[1], [0], [0], [1], [0, 0, 1, 1], [], []>} : vector<8x32xf32>, vector<32x64xf32>, vector<8x64xf32> -> vector<8x64xf32>
    %786 = vector.broadcast %20 : vector<1x64xf32> to vector<8x64xf32>
    %787 = arith.addf %785, %786 : vector<8x64xf32>
    %788 = vector.extract_strided_slice %787 {offsets = [0, 0], sizes = [8, 32], strides = [1, 1]} : vector<8x64xf32> to vector<8x32xf32>
    %789 = vector.extract_strided_slice %787 {offsets = [0, 32], sizes = [8, 32], strides = [1, 1]} : vector<8x64xf32> to vector<8x32xf32>
    %cst_334 = arith.constant 0.000000e+00 : f32
    %790 = vector.broadcast %cst_334 : f32 to vector<8x32xf32>
    %791 = vector.extract_strided_slice %784 {offsets = [0, 0], sizes = [8, 8], strides = [1, 1]} : vector<8x32xf32> to vector<8x8xf32>
    %792 = vector.extract_strided_slice %788 {offsets = [0, 0], sizes = [8, 8], strides = [1, 1]} : vector<8x32xf32> to vector<8x8xf32>
    %cst_335 = arith.constant dense<0.000000e+00> : vector<8x8xf32>
    %793 = tpu.matmul %791, %792, %cst_335 {dimension_numbers = #tpu.dot_dimension_numbers<[1], [1], [0], [0], [0, 0, 1, 0], [], []>} : vector<8x8xf32>, vector<8x8xf32>, vector<8x8xf32> -> vector<8x8xf32>
    %cst_336 = arith.constant 0.353553385 : f32
    %794 = vector.broadcast %cst_336 : f32 to vector<8x8xf32>
    %795 = arith.mulf %793, %794 : vector<8x8xf32>
    %796 = vector.broadcast %70 : vector<1x8xf32> to vector<8x8xf32>
    %797 = arith.addf %795, %796 : vector<8x8xf32>
    %cst_337 = arith.constant dense<0xFF800000> : vector<8xf32>
    %798 = vector.multi_reduction <maximumf>, %797, %cst_337 [1] : vector<8x8xf32> to vector<8xf32>
    %799 = vector.shape_cast %798 : vector<8xf32> to vector<8x1xf32>
    %800 = vector.broadcast %799 : vector<8x1xf32> to vector<8x8xf32>
    %801 = arith.subf %797, %800 : vector<8x8xf32>
    %802 = math.exp %801 : vector<8x8xf32>
    %cst_338 = arith.constant dense<0.000000e+00> : vector<8xf32>
    %803 = vector.multi_reduction <add>, %802, %cst_338 [1] : vector<8x8xf32> to vector<8xf32>
    %804 = vector.shape_cast %803 : vector<8xf32> to vector<8x1xf32>
    %805 = tpu.reciprocal %804 {approx = true} : vector<8x1xf32> -> vector<8x1xf32>
    %806 = vector.broadcast %805 : vector<8x1xf32> to vector<8x8xf32>
    %807 = arith.mulf %802, %806 : vector<8x8xf32>
    %808 = vector.extract_strided_slice %789 {offsets = [0, 0], sizes = [8, 8], strides = [1, 1]} : vector<8x32xf32> to vector<8x8xf32>
    %cst_339 = arith.constant dense<0.000000e+00> : vector<8x8xf32>
    %809 = tpu.matmul %807, %808, %cst_339 {dimension_numbers = #tpu.dot_dimension_numbers<[1], [0], [0], [1], [0, 0, 1, 1], [], []>} : vector<8x8xf32>, vector<8x8xf32>, vector<8x8xf32> -> vector<8x8xf32>
    %810 = vector.extract_strided_slice %24 {offsets = [0, 0], sizes = [8, 32], strides = [1, 1]} : vector<32x32xf32> to vector<8x32xf32>
    %cst_340 = arith.constant dense<0.000000e+00> : vector<8x32xf32>
    %811 = tpu.matmul %809, %810, %cst_340 {dimension_numbers = #tpu.dot_dimension_numbers<[1], [0], [0], [1], [0, 0, 1, 1], [], []>} : vector<8x8xf32>, vector<8x32xf32>, vector<8x32xf32> -> vector<8x32xf32>
    %812 = arith.addf %790, %811 : vector<8x32xf32>
    %813 = vector.extract_strided_slice %784 {offsets = [0, 8], sizes = [8, 8], strides = [1, 1]} : vector<8x32xf32> to vector<8x8xf32>
    %814 = vector.extract_strided_slice %788 {offsets = [0, 8], sizes = [8, 8], strides = [1, 1]} : vector<8x32xf32> to vector<8x8xf32>
    %cst_341 = arith.constant dense<0.000000e+00> : vector<8x8xf32>
    %815 = tpu.matmul %813, %814, %cst_341 {dimension_numbers = #tpu.dot_dimension_numbers<[1], [1], [0], [0], [0, 0, 1, 0], [], []>} : vector<8x8xf32>, vector<8x8xf32>, vector<8x8xf32> -> vector<8x8xf32>
    %cst_342 = arith.constant 0.353553385 : f32
    %816 = vector.broadcast %cst_342 : f32 to vector<8x8xf32>
    %817 = arith.mulf %815, %816 : vector<8x8xf32>
    %818 = vector.broadcast %70 : vector<1x8xf32> to vector<8x8xf32>
    %819 = arith.addf %817, %818 : vector<8x8xf32>
    %cst_343 = arith.constant dense<0xFF800000> : vector<8xf32>
    %820 = vector.multi_reduction <maximumf>, %819, %cst_343 [1] : vector<8x8xf32> to vector<8xf32>
    %821 = vector.shape_cast %820 : vector<8xf32> to vector<8x1xf32>
    %822 = vector.broadcast %821 : vector<8x1xf32> to vector<8x8xf32>
    %823 = arith.subf %819, %822 : vector<8x8xf32>
    %824 = math.exp %823 : vector<8x8xf32>
    %cst_344 = arith.constant dense<0.000000e+00> : vector<8xf32>
    %825 = vector.multi_reduction <add>, %824, %cst_344 [1] : vector<8x8xf32> to vector<8xf32>
    %826 = vector.shape_cast %825 : vector<8xf32> to vector<8x1xf32>
    %827 = tpu.reciprocal %826 {approx = true} : vector<8x1xf32> -> vector<8x1xf32>
    %828 = vector.broadcast %827 : vector<8x1xf32> to vector<8x8xf32>
    %829 = arith.mulf %824, %828 : vector<8x8xf32>
    %830 = vector.extract_strided_slice %789 {offsets = [0, 8], sizes = [8, 8], strides = [1, 1]} : vector<8x32xf32> to vector<8x8xf32>
    %cst_345 = arith.constant dense<0.000000e+00> : vector<8x8xf32>
    %831 = tpu.matmul %829, %830, %cst_345 {dimension_numbers = #tpu.dot_dimension_numbers<[1], [0], [0], [1], [0, 0, 1, 1], [], []>} : vector<8x8xf32>, vector<8x8xf32>, vector<8x8xf32> -> vector<8x8xf32>
    %832 = vector.extract_strided_slice %24 {offsets = [8, 0], sizes = [8, 32], strides = [1, 1]} : vector<32x32xf32> to vector<8x32xf32>
    %cst_346 = arith.constant dense<0.000000e+00> : vector<8x32xf32>
    %833 = tpu.matmul %831, %832, %cst_346 {dimension_numbers = #tpu.dot_dimension_numbers<[1], [0], [0], [1], [0, 0, 1, 1], [], []>} : vector<8x8xf32>, vector<8x32xf32>, vector<8x32xf32> -> vector<8x32xf32>
    %834 = arith.addf %812, %833 : vector<8x32xf32>
    %835 = vector.extract_strided_slice %784 {offsets = [0, 16], sizes = [8, 8], strides = [1, 1]} : vector<8x32xf32> to vector<8x8xf32>
    %836 = vector.extract_strided_slice %788 {offsets = [0, 16], sizes = [8, 8], strides = [1, 1]} : vector<8x32xf32> to vector<8x8xf32>
    %cst_347 = arith.constant dense<0.000000e+00> : vector<8x8xf32>
    %837 = tpu.matmul %835, %836, %cst_347 {dimension_numbers = #tpu.dot_dimension_numbers<[1], [1], [0], [0], [0, 0, 1, 0], [], []>} : vector<8x8xf32>, vector<8x8xf32>, vector<8x8xf32> -> vector<8x8xf32>
    %cst_348 = arith.constant 0.353553385 : f32
    %838 = vector.broadcast %cst_348 : f32 to vector<8x8xf32>
    %839 = arith.mulf %837, %838 : vector<8x8xf32>
    %840 = vector.broadcast %70 : vector<1x8xf32> to vector<8x8xf32>
    %841 = arith.addf %839, %840 : vector<8x8xf32>
    %cst_349 = arith.constant dense<0xFF800000> : vector<8xf32>
    %842 = vector.multi_reduction <maximumf>, %841, %cst_349 [1] : vector<8x8xf32> to vector<8xf32>
    %843 = vector.shape_cast %842 : vector<8xf32> to vector<8x1xf32>
    %844 = vector.broadcast %843 : vector<8x1xf32> to vector<8x8xf32>
    %845 = arith.subf %841, %844 : vector<8x8xf32>
    %846 = math.exp %845 : vector<8x8xf32>
    %cst_350 = arith.constant dense<0.000000e+00> : vector<8xf32>
    %847 = vector.multi_reduction <add>, %846, %cst_350 [1] : vector<8x8xf32> to vector<8xf32>
    %848 = vector.shape_cast %847 : vector<8xf32> to vector<8x1xf32>
    %849 = tpu.reciprocal %848 {approx = true} : vector<8x1xf32> -> vector<8x1xf32>
    %850 = vector.broadcast %849 : vector<8x1xf32> to vector<8x8xf32>
    %851 = arith.mulf %846, %850 : vector<8x8xf32>
    %852 = vector.extract_strided_slice %789 {offsets = [0, 16], sizes = [8, 8], strides = [1, 1]} : vector<8x32xf32> to vector<8x8xf32>
    %cst_351 = arith.constant dense<0.000000e+00> : vector<8x8xf32>
    %853 = tpu.matmul %851, %852, %cst_351 {dimension_numbers = #tpu.dot_dimension_numbers<[1], [0], [0], [1], [0, 0, 1, 1], [], []>} : vector<8x8xf32>, vector<8x8xf32>, vector<8x8xf32> -> vector<8x8xf32>
    %854 = vector.extract_strided_slice %24 {offsets = [16, 0], sizes = [8, 32], strides = [1, 1]} : vector<32x32xf32> to vector<8x32xf32>
    %cst_352 = arith.constant dense<0.000000e+00> : vector<8x32xf32>
    %855 = tpu.matmul %853, %854, %cst_352 {dimension_numbers = #tpu.dot_dimension_numbers<[1], [0], [0], [1], [0, 0, 1, 1], [], []>} : vector<8x8xf32>, vector<8x32xf32>, vector<8x32xf32> -> vector<8x32xf32>
    %856 = arith.addf %834, %855 : vector<8x32xf32>
    %857 = vector.extract_strided_slice %784 {offsets = [0, 24], sizes = [8, 8], strides = [1, 1]} : vector<8x32xf32> to vector<8x8xf32>
    %858 = vector.extract_strided_slice %788 {offsets = [0, 24], sizes = [8, 8], strides = [1, 1]} : vector<8x32xf32> to vector<8x8xf32>
    %cst_353 = arith.constant dense<0.000000e+00> : vector<8x8xf32>
    %859 = tpu.matmul %857, %858, %cst_353 {dimension_numbers = #tpu.dot_dimension_numbers<[1], [1], [0], [0], [0, 0, 1, 0], [], []>} : vector<8x8xf32>, vector<8x8xf32>, vector<8x8xf32> -> vector<8x8xf32>
    %cst_354 = arith.constant 0.353553385 : f32
    %860 = vector.broadcast %cst_354 : f32 to vector<8x8xf32>
    %861 = arith.mulf %859, %860 : vector<8x8xf32>
    %862 = vector.broadcast %70 : vector<1x8xf32> to vector<8x8xf32>
    %863 = arith.addf %861, %862 : vector<8x8xf32>
    %cst_355 = arith.constant dense<0xFF800000> : vector<8xf32>
    %864 = vector.multi_reduction <maximumf>, %863, %cst_355 [1] : vector<8x8xf32> to vector<8xf32>
    %865 = vector.shape_cast %864 : vector<8xf32> to vector<8x1xf32>
    %866 = vector.broadcast %865 : vector<8x1xf32> to vector<8x8xf32>
    %867 = arith.subf %863, %866 : vector<8x8xf32>
    %868 = math.exp %867 : vector<8x8xf32>
    %cst_356 = arith.constant dense<0.000000e+00> : vector<8xf32>
    %869 = vector.multi_reduction <add>, %868, %cst_356 [1] : vector<8x8xf32> to vector<8xf32>
    %870 = vector.shape_cast %869 : vector<8xf32> to vector<8x1xf32>
    %871 = tpu.reciprocal %870 {approx = true} : vector<8x1xf32> -> vector<8x1xf32>
    %872 = vector.broadcast %871 : vector<8x1xf32> to vector<8x8xf32>
    %873 = arith.mulf %868, %872 : vector<8x8xf32>
    %874 = vector.extract_strided_slice %789 {offsets = [0, 24], sizes = [8, 8], strides = [1, 1]} : vector<8x32xf32> to vector<8x8xf32>
    %cst_357 = arith.constant dense<0.000000e+00> : vector<8x8xf32>
    %875 = tpu.matmul %873, %874, %cst_357 {dimension_numbers = #tpu.dot_dimension_numbers<[1], [0], [0], [1], [0, 0, 1, 1], [], []>} : vector<8x8xf32>, vector<8x8xf32>, vector<8x8xf32> -> vector<8x8xf32>
    %876 = vector.extract_strided_slice %24 {offsets = [24, 0], sizes = [8, 32], strides = [1, 1]} : vector<32x32xf32> to vector<8x32xf32>
    %cst_358 = arith.constant dense<0.000000e+00> : vector<8x32xf32>
    %877 = tpu.matmul %875, %876, %cst_358 {dimension_numbers = #tpu.dot_dimension_numbers<[1], [0], [0], [1], [0, 0, 1, 1], [], []>} : vector<8x8xf32>, vector<8x32xf32>, vector<8x32xf32> -> vector<8x32xf32>
    %878 = arith.addf %856, %877 : vector<8x32xf32>
    %879 = vector.broadcast %21 : vector<1x32xf32> to vector<8x32xf32>
    %880 = arith.addf %878, %879 : vector<8x32xf32>
    %881 = arith.addf %781, %880 : vector<8x32xf32>
    %cst_359 = arith.constant dense<0.000000e+00> : vector<8xf32>
    %882 = vector.multi_reduction <add>, %881, %cst_359 [1] : vector<8x32xf32> to vector<8xf32>
    %883 = vector.shape_cast %882 : vector<8xf32> to vector<8x1xf32>
    %cst_360 = arith.constant 3.200000e+01 : f32
    %884 = vector.broadcast %cst_360 : f32 to vector<8x1xf32>
    %885 = arith.divf %883, %884 : vector<8x1xf32>
    %886 = vector.broadcast %885 : vector<8x1xf32> to vector<8x32xf32>
    %887 = arith.subf %881, %886 : vector<8x32xf32>
    %888 = arith.mulf %887, %887 : vector<8x32xf32>
    %cst_361 = arith.constant dense<0.000000e+00> : vector<8xf32>
    %889 = vector.multi_reduction <add>, %888, %cst_361 [1] : vector<8x32xf32> to vector<8xf32>
    %890 = vector.shape_cast %889 : vector<8xf32> to vector<8x1xf32>
    %cst_362 = arith.constant 3.200000e+01 : f32
    %891 = vector.broadcast %cst_362 : f32 to vector<8x1xf32>
    %892 = arith.divf %890, %891 : vector<8x1xf32>
    %893 = vector.broadcast %885 : vector<8x1xf32> to vector<8x32xf32>
    %894 = arith.subf %881, %893 : vector<8x32xf32>
    %cst_363 = arith.constant 9.99999974E-6 : f32
    %895 = vector.broadcast %cst_363 : f32 to vector<8x1xf32>
    %896 = arith.addf %892, %895 : vector<8x1xf32>
    %897 = math.rsqrt %896 : vector<8x1xf32>
    %898 = vector.broadcast %897 : vector<8x1xf32> to vector<8x32xf32>
    %899 = arith.mulf %894, %898 : vector<8x32xf32>
    %900 = vector.broadcast %33 : vector<1x32xf32> to vector<8x32xf32>
    %901 = arith.mulf %899, %900 : vector<8x32xf32>
    %902 = vector.broadcast %32 : vector<1x32xf32> to vector<8x32xf32>
    %903 = arith.addf %901, %902 : vector<8x32xf32>
    %cst_364 = arith.constant dense<0.000000e+00> : vector<8x64xf32>
    %904 = tpu.matmul %903, %28, %cst_364 {dimension_numbers = #tpu.dot_dimension_numbers<[1], [0], [0], [1], [0, 0, 1, 1], [], []>} : vector<8x32xf32>, vector<32x64xf32>, vector<8x64xf32> -> vector<8x64xf32>
    %905 = vector.broadcast %26 : vector<1x64xf32> to vector<8x64xf32>
    %906 = arith.addf %904, %905 : vector<8x64xf32>
    %cst_365 = arith.constant 0.000000e+00 : f32
    %907 = vector.broadcast %cst_365 : f32 to vector<8x64xf32>
    %908 = arith.maximumf %906, %907 : vector<8x64xf32>
    %cst_366 = arith.constant dense<0.000000e+00> : vector<8x32xf32>
    %909 = tpu.matmul %908, %29, %cst_366 {dimension_numbers = #tpu.dot_dimension_numbers<[1], [0], [0], [1], [0, 0, 1, 1], [], []>} : vector<8x64xf32>, vector<64x32xf32>, vector<8x32xf32> -> vector<8x32xf32>
    %910 = vector.broadcast %27 : vector<1x32xf32> to vector<8x32xf32>
    %911 = arith.addf %909, %910 : vector<8x32xf32>
    %912 = arith.addf %903, %911 : vector<8x32xf32>
    %cst_367 = arith.constant dense<0.000000e+00> : vector<8xf32>
    %913 = vector.multi_reduction <add>, %912, %cst_367 [1] : vector<8x32xf32> to vector<8xf32>
    %914 = vector.shape_cast %913 : vector<8xf32> to vector<8x1xf32>
    %cst_368 = arith.constant 3.200000e+01 : f32
    %915 = vector.broadcast %cst_368 : f32 to vector<8x1xf32>
    %916 = arith.divf %914, %915 : vector<8x1xf32>
    %917 = vector.broadcast %916 : vector<8x1xf32> to vector<8x32xf32>
    %918 = arith.subf %912, %917 : vector<8x32xf32>
    %919 = arith.mulf %918, %918 : vector<8x32xf32>
    %cst_369 = arith.constant dense<0.000000e+00> : vector<8xf32>
    %920 = vector.multi_reduction <add>, %919, %cst_369 [1] : vector<8x32xf32> to vector<8xf32>
    %921 = vector.shape_cast %920 : vector<8xf32> to vector<8x1xf32>
    %cst_370 = arith.constant 3.200000e+01 : f32
    %922 = vector.broadcast %cst_370 : f32 to vector<8x1xf32>
    %923 = arith.divf %921, %922 : vector<8x1xf32>
    %924 = vector.broadcast %916 : vector<8x1xf32> to vector<8x32xf32>
    %925 = arith.subf %912, %924 : vector<8x32xf32>
    %cst_371 = arith.constant 9.99999974E-6 : f32
    %926 = vector.broadcast %cst_371 : f32 to vector<8x1xf32>
    %927 = arith.addf %923, %926 : vector<8x1xf32>
    %928 = math.rsqrt %927 : vector<8x1xf32>
    %929 = vector.broadcast %928 : vector<8x1xf32> to vector<8x32xf32>
    %930 = arith.mulf %925, %929 : vector<8x32xf32>
    %931 = vector.broadcast %35 : vector<1x32xf32> to vector<8x32xf32>
    %932 = arith.mulf %930, %931 : vector<8x32xf32>
    %933 = vector.broadcast %34 : vector<1x32xf32> to vector<8x32xf32>
    %934 = arith.addf %932, %933 : vector<8x32xf32>
    %cst_372 = arith.constant dense<0.000000e+00> : vector<8x128xf32>
    %935 = tpu.matmul %934, %65, %cst_372 {dimension_numbers = #tpu.dot_dimension_numbers<[1], [0], [0], [1], [0, 0, 1, 1], [], []>} : vector<8x32xf32>, vector<32x128xf32>, vector<8x128xf32> -> vector<8x128xf32>
    %936 = vector.broadcast %64 : vector<1x128xf32> to vector<8x128xf32>
    %937 = arith.addf %935, %936 : vector<8x128xf32>
    %c0_373 = arith.constant 0 : index
    %c0_374 = arith.constant 0 : index
    %938 = vector.load %arg73[%c0_373, %c0_374] : memref<16x128xf32, #tpu.memory_space<vmem>>, vector<8x128xf32>
    tpu.vector_store %arg73[%c0_373, %c0_374], %937 {strides = array<i32>} : memref<16x128xf32, #tpu.memory_space<vmem>>, vector<8x128xf32>,
    %c1 = arith.constant 1 : index
    %c0_375 = arith.constant 0 : index
    %c0_376 = arith.constant 0 : index
    %939 = vector.load %arg1[%c1, %c0_375, %c0_376] : memref<2x1x8xf32, #tpu.memory_space<vmem>>, vector<1x1x8xf32>
    %940 = vector.shape_cast %939 : vector<1x1x8xf32> to vector<1x8xf32>
    %c1_377 = arith.constant 1 : index
    %c0_378 = arith.constant 0 : index
    %c0_379 = arith.constant 0 : index
    %941 = vector.load %arg0[%c1_377, %c0_378, %c0_379] : memref<2x8x8xf32, #tpu.memory_space<vmem>>, vector<1x8x8xf32>
    %942 = vector.shape_cast %941 : vector<1x8x8xf32> to vector<8x8xf32>
    %c1_380 = arith.constant 1 : index
    %c0_381 = arith.constant 0 : index
    %c0_382 = arith.constant 0 : index
    %943 = vector.load %arg71[%c1_380, %c0_381, %c0_382] : memref<2x8x1xi32, #tpu.memory_space<vmem>>, vector<1x8x1xi32>
    %944 = vector.shape_cast %943 : vector<1x8x1xi32> to vector<8x1xi32>
    %945 = tpu.iota {dimensions = array<i32: 1>} : vector<8x50xi32>
    %946 = vector.broadcast %944 : vector<8x1xi32> to vector<8x50xi32>
    %947 = arith.cmpi eq, %945, %946 : vector<8x50xi32>
    %948 = arith.extui %947 : vector<8x50xi1> to vector<8x50xi32>
    %949 = arith.sitofp %948 : vector<8x50xi32> to vector<8x50xf32>
    %cst_383 = arith.constant dense<0.000000e+00> : vector<8x32xf32>
    %950 = tpu.matmul %949, %67, %cst_383 {dimension_numbers = #tpu.dot_dimension_numbers<[1], [0], [0], [1], [0, 0, 1, 1], [], []>} : vector<8x50xf32>, vector<50x32xf32>, vector<8x32xf32> -> vector<8x32xf32>
    %cst_384 = arith.constant 5.65685415 : f32
    %951 = vector.broadcast %cst_384 : f32 to vector<8x32xf32>
    %952 = arith.mulf %950, %951 : vector<8x32xf32>
    %953 = arith.addf %952, %66 : vector<8x32xf32>
    %cst_385 = arith.constant dense<0.000000e+00> : vector<8x96xf32>
    %954 = tpu.matmul %953, %43, %cst_385 {dimension_numbers = #tpu.dot_dimension_numbers<[1], [0], [0], [1], [0, 0, 1, 1], [], []>} : vector<8x32xf32>, vector<32x96xf32>, vector<8x96xf32> -> vector<8x96xf32>
    %955 = vector.broadcast %41 : vector<1x96xf32> to vector<8x96xf32>
    %956 = arith.addf %954, %955 : vector<8x96xf32>
    %957 = vector.extract_strided_slice %956 {offsets = [0, 0], sizes = [8, 32], strides = [1, 1]} : vector<8x96xf32> to vector<8x32xf32>
    %958 = vector.extract_strided_slice %956 {offsets = [0, 32], sizes = [8, 32], strides = [1, 1]} : vector<8x96xf32> to vector<8x32xf32>
    %959 = vector.extract_strided_slice %956 {offsets = [0, 64], sizes = [8, 32], strides = [1, 1]} : vector<8x96xf32> to vector<8x32xf32>
    %cst_386 = arith.constant 0.000000e+00 : f32
    %960 = vector.broadcast %cst_386 : f32 to vector<8x32xf32>
    %961 = vector.extract_strided_slice %957 {offsets = [0, 0], sizes = [8, 8], strides = [1, 1]} : vector<8x32xf32> to vector<8x8xf32>
    %962 = vector.extract_strided_slice %958 {offsets = [0, 0], sizes = [8, 8], strides = [1, 1]} : vector<8x32xf32> to vector<8x8xf32>
    %cst_387 = arith.constant dense<0.000000e+00> : vector<8x8xf32>
    %963 = tpu.matmul %961, %962, %cst_387 {dimension_numbers = #tpu.dot_dimension_numbers<[1], [1], [0], [0], [0, 0, 1, 0], [], []>} : vector<8x8xf32>, vector<8x8xf32>, vector<8x8xf32> -> vector<8x8xf32>
    %cst_388 = arith.constant 0.353553385 : f32
    %964 = vector.broadcast %cst_388 : f32 to vector<8x8xf32>
    %965 = arith.mulf %963, %964 : vector<8x8xf32>
    %966 = vector.broadcast %940 : vector<1x8xf32> to vector<8x8xf32>
    %967 = arith.addf %965, %966 : vector<8x8xf32>
    %cst_389 = arith.constant dense<0xFF800000> : vector<8xf32>
    %968 = vector.multi_reduction <maximumf>, %967, %cst_389 [1] : vector<8x8xf32> to vector<8xf32>
    %969 = vector.shape_cast %968 : vector<8xf32> to vector<8x1xf32>
    %970 = vector.broadcast %969 : vector<8x1xf32> to vector<8x8xf32>
    %971 = arith.subf %967, %970 : vector<8x8xf32>
    %972 = math.exp %971 : vector<8x8xf32>
    %cst_390 = arith.constant dense<0.000000e+00> : vector<8xf32>
    %973 = vector.multi_reduction <add>, %972, %cst_390 [1] : vector<8x8xf32> to vector<8xf32>
    %974 = vector.shape_cast %973 : vector<8xf32> to vector<8x1xf32>
    %975 = tpu.reciprocal %974 {approx = true} : vector<8x1xf32> -> vector<8x1xf32>
    %976 = vector.broadcast %975 : vector<8x1xf32> to vector<8x8xf32>
    %977 = arith.mulf %972, %976 : vector<8x8xf32>
    %978 = vector.extract_strided_slice %959 {offsets = [0, 0], sizes = [8, 8], strides = [1, 1]} : vector<8x32xf32> to vector<8x8xf32>
    %cst_391 = arith.constant dense<0.000000e+00> : vector<8x8xf32>
    %979 = tpu.matmul %977, %978, %cst_391 {dimension_numbers = #tpu.dot_dimension_numbers<[1], [0], [0], [1], [0, 0, 1, 1], [], []>} : vector<8x8xf32>, vector<8x8xf32>, vector<8x8xf32> -> vector<8x8xf32>
    %980 = vector.extract_strided_slice %42 {offsets = [0, 0], sizes = [8, 32], strides = [1, 1]} : vector<32x32xf32> to vector<8x32xf32>
    %cst_392 = arith.constant dense<0.000000e+00> : vector<8x32xf32>
    %981 = tpu.matmul %979, %980, %cst_392 {dimension_numbers = #tpu.dot_dimension_numbers<[1], [0], [0], [1], [0, 0, 1, 1], [], []>} : vector<8x8xf32>, vector<8x32xf32>, vector<8x32xf32> -> vector<8x32xf32>
    %982 = arith.addf %960, %981 : vector<8x32xf32>
    %983 = vector.extract_strided_slice %957 {offsets = [0, 8], sizes = [8, 8], strides = [1, 1]} : vector<8x32xf32> to vector<8x8xf32>
    %984 = vector.extract_strided_slice %958 {offsets = [0, 8], sizes = [8, 8], strides = [1, 1]} : vector<8x32xf32> to vector<8x8xf32>
    %cst_393 = arith.constant dense<0.000000e+00> : vector<8x8xf32>
    %985 = tpu.matmul %983, %984, %cst_393 {dimension_numbers = #tpu.dot_dimension_numbers<[1], [1], [0], [0], [0, 0, 1, 0], [], []>} : vector<8x8xf32>, vector<8x8xf32>, vector<8x8xf32> -> vector<8x8xf32>
    %cst_394 = arith.constant 0.353553385 : f32
    %986 = vector.broadcast %cst_394 : f32 to vector<8x8xf32>
    %987 = arith.mulf %985, %986 : vector<8x8xf32>
    %988 = vector.broadcast %940 : vector<1x8xf32> to vector<8x8xf32>
    %989 = arith.addf %987, %988 : vector<8x8xf32>
    %cst_395 = arith.constant dense<0xFF800000> : vector<8xf32>
    %990 = vector.multi_reduction <maximumf>, %989, %cst_395 [1] : vector<8x8xf32> to vector<8xf32>
    %991 = vector.shape_cast %990 : vector<8xf32> to vector<8x1xf32>
    %992 = vector.broadcast %991 : vector<8x1xf32> to vector<8x8xf32>
    %993 = arith.subf %989, %992 : vector<8x8xf32>
    %994 = math.exp %993 : vector<8x8xf32>
    %cst_396 = arith.constant dense<0.000000e+00> : vector<8xf32>
    %995 = vector.multi_reduction <add>, %994, %cst_396 [1] : vector<8x8xf32> to vector<8xf32>
    %996 = vector.shape_cast %995 : vector<8xf32> to vector<8x1xf32>
    %997 = tpu.reciprocal %996 {approx = true} : vector<8x1xf32> -> vector<8x1xf32>
    %998 = vector.broadcast %997 : vector<8x1xf32> to vector<8x8xf32>
    %999 = arith.mulf %994, %998 : vector<8x8xf32>
    %1000 = vector.extract_strided_slice %959 {offsets = [0, 8], sizes = [8, 8], strides = [1, 1]} : vector<8x32xf32> to vector<8x8xf32>
    %cst_397 = arith.constant dense<0.000000e+00> : vector<8x8xf32>
    %1001 = tpu.matmul %999, %1000, %cst_397 {dimension_numbers = #tpu.dot_dimension_numbers<[1], [0], [0], [1], [0, 0, 1, 1], [], []>} : vector<8x8xf32>, vector<8x8xf32>, vector<8x8xf32> -> vector<8x8xf32>
    %1002 = vector.extract_strided_slice %42 {offsets = [8, 0], sizes = [8, 32], strides = [1, 1]} : vector<32x32xf32> to vector<8x32xf32>
    %cst_398 = arith.constant dense<0.000000e+00> : vector<8x32xf32>
    %1003 = tpu.matmul %1001, %1002, %cst_398 {dimension_numbers = #tpu.dot_dimension_numbers<[1], [0], [0], [1], [0, 0, 1, 1], [], []>} : vector<8x8xf32>, vector<8x32xf32>, vector<8x32xf32> -> vector<8x32xf32>
    %1004 = arith.addf %982, %1003 : vector<8x32xf32>
    %1005 = vector.extract_strided_slice %957 {offsets = [0, 16], sizes = [8, 8], strides = [1, 1]} : vector<8x32xf32> to vector<8x8xf32>
    %1006 = vector.extract_strided_slice %958 {offsets = [0, 16], sizes = [8, 8], strides = [1, 1]} : vector<8x32xf32> to vector<8x8xf32>
    %cst_399 = arith.constant dense<0.000000e+00> : vector<8x8xf32>
    %1007 = tpu.matmul %1005, %1006, %cst_399 {dimension_numbers = #tpu.dot_dimension_numbers<[1], [1], [0], [0], [0, 0, 1, 0], [], []>} : vector<8x8xf32>, vector<8x8xf32>, vector<8x8xf32> -> vector<8x8xf32>
    %cst_400 = arith.constant 0.353553385 : f32
    %1008 = vector.broadcast %cst_400 : f32 to vector<8x8xf32>
    %1009 = arith.mulf %1007, %1008 : vector<8x8xf32>
    %1010 = vector.broadcast %940 : vector<1x8xf32> to vector<8x8xf32>
    %1011 = arith.addf %1009, %1010 : vector<8x8xf32>
    %cst_401 = arith.constant dense<0xFF800000> : vector<8xf32>
    %1012 = vector.multi_reduction <maximumf>, %1011, %cst_401 [1] : vector<8x8xf32> to vector<8xf32>
    %1013 = vector.shape_cast %1012 : vector<8xf32> to vector<8x1xf32>
    %1014 = vector.broadcast %1013 : vector<8x1xf32> to vector<8x8xf32>
    %1015 = arith.subf %1011, %1014 : vector<8x8xf32>
    %1016 = math.exp %1015 : vector<8x8xf32>
    %cst_402 = arith.constant dense<0.000000e+00> : vector<8xf32>
    %1017 = vector.multi_reduction <add>, %1016, %cst_402 [1] : vector<8x8xf32> to vector<8xf32>
    %1018 = vector.shape_cast %1017 : vector<8xf32> to vector<8x1xf32>
    %1019 = tpu.reciprocal %1018 {approx = true} : vector<8x1xf32> -> vector<8x1xf32>
    %1020 = vector.broadcast %1019 : vector<8x1xf32> to vector<8x8xf32>
    %1021 = arith.mulf %1016, %1020 : vector<8x8xf32>
    %1022 = vector.extract_strided_slice %959 {offsets = [0, 16], sizes = [8, 8], strides = [1, 1]} : vector<8x32xf32> to vector<8x8xf32>
    %cst_403 = arith.constant dense<0.000000e+00> : vector<8x8xf32>
    %1023 = tpu.matmul %1021, %1022, %cst_403 {dimension_numbers = #tpu.dot_dimension_numbers<[1], [0], [0], [1], [0, 0, 1, 1], [], []>} : vector<8x8xf32>, vector<8x8xf32>, vector<8x8xf32> -> vector<8x8xf32>
    %1024 = vector.extract_strided_slice %42 {offsets = [16, 0], sizes = [8, 32], strides = [1, 1]} : vector<32x32xf32> to vector<8x32xf32>
    %cst_404 = arith.constant dense<0.000000e+00> : vector<8x32xf32>
    %1025 = tpu.matmul %1023, %1024, %cst_404 {dimension_numbers = #tpu.dot_dimension_numbers<[1], [0], [0], [1], [0, 0, 1, 1], [], []>} : vector<8x8xf32>, vector<8x32xf32>, vector<8x32xf32> -> vector<8x32xf32>
    %1026 = arith.addf %1004, %1025 : vector<8x32xf32>
    %1027 = vector.extract_strided_slice %957 {offsets = [0, 24], sizes = [8, 8], strides = [1, 1]} : vector<8x32xf32> to vector<8x8xf32>
    %1028 = vector.extract_strided_slice %958 {offsets = [0, 24], sizes = [8, 8], strides = [1, 1]} : vector<8x32xf32> to vector<8x8xf32>
    %cst_405 = arith.constant dense<0.000000e+00> : vector<8x8xf32>
    %1029 = tpu.matmul %1027, %1028, %cst_405 {dimension_numbers = #tpu.dot_dimension_numbers<[1], [1], [0], [0], [0, 0, 1, 0], [], []>} : vector<8x8xf32>, vector<8x8xf32>, vector<8x8xf32> -> vector<8x8xf32>
    %cst_406 = arith.constant 0.353553385 : f32
    %1030 = vector.broadcast %cst_406 : f32 to vector<8x8xf32>
    %1031 = arith.mulf %1029, %1030 : vector<8x8xf32>
    %1032 = vector.broadcast %940 : vector<1x8xf32> to vector<8x8xf32>
    %1033 = arith.addf %1031, %1032 : vector<8x8xf32>
    %cst_407 = arith.constant dense<0xFF800000> : vector<8xf32>
    %1034 = vector.multi_reduction <maximumf>, %1033, %cst_407 [1] : vector<8x8xf32> to vector<8xf32>
    %1035 = vector.shape_cast %1034 : vector<8xf32> to vector<8x1xf32>
    %1036 = vector.broadcast %1035 : vector<8x1xf32> to vector<8x8xf32>
    %1037 = arith.subf %1033, %1036 : vector<8x8xf32>
    %1038 = math.exp %1037 : vector<8x8xf32>
    %cst_408 = arith.constant dense<0.000000e+00> : vector<8xf32>
    %1039 = vector.multi_reduction <add>, %1038, %cst_408 [1] : vector<8x8xf32> to vector<8xf32>
    %1040 = vector.shape_cast %1039 : vector<8xf32> to vector<8x1xf32>
    %1041 = tpu.reciprocal %1040 {approx = true} : vector<8x1xf32> -> vector<8x1xf32>
    %1042 = vector.broadcast %1041 : vector<8x1xf32> to vector<8x8xf32>
    %1043 = arith.mulf %1038, %1042 : vector<8x8xf32>
    %1044 = vector.extract_strided_slice %959 {offsets = [0, 24], sizes = [8, 8], strides = [1, 1]} : vector<8x32xf32> to vector<8x8xf32>
    %cst_409 = arith.constant dense<0.000000e+00> : vector<8x8xf32>
    %1045 = tpu.matmul %1043, %1044, %cst_409 {dimension_numbers = #tpu.dot_dimension_numbers<[1], [0], [0], [1], [0, 0, 1, 1], [], []>} : vector<8x8xf32>, vector<8x8xf32>, vector<8x8xf32> -> vector<8x8xf32>
    %1046 = vector.extract_strided_slice %42 {offsets = [24, 0], sizes = [8, 32], strides = [1, 1]} : vector<32x32xf32> to vector<8x32xf32>
    %cst_410 = arith.constant dense<0.000000e+00> : vector<8x32xf32>
    %1047 = tpu.matmul %1045, %1046, %cst_410 {dimension_numbers = #tpu.dot_dimension_numbers<[1], [0], [0], [1], [0, 0, 1, 1], [], []>} : vector<8x8xf32>, vector<8x32xf32>, vector<8x32xf32> -> vector<8x32xf32>
    %1048 = arith.addf %1026, %1047 : vector<8x32xf32>
    %1049 = vector.broadcast %40 : vector<1x32xf32> to vector<8x32xf32>
    %1050 = arith.addf %1048, %1049 : vector<8x32xf32>
    %1051 = arith.addf %953, %1050 : vector<8x32xf32>
    %cst_411 = arith.constant dense<0.000000e+00> : vector<8xf32>
    %1052 = vector.multi_reduction <add>, %1051, %cst_411 [1] : vector<8x32xf32> to vector<8xf32>
    %1053 = vector.shape_cast %1052 : vector<8xf32> to vector<8x1xf32>
    %cst_412 = arith.constant 3.200000e+01 : f32
    %1054 = vector.broadcast %cst_412 : f32 to vector<8x1xf32>
    %1055 = arith.divf %1053, %1054 : vector<8x1xf32>
    %1056 = vector.broadcast %1055 : vector<8x1xf32> to vector<8x32xf32>
    %1057 = arith.subf %1051, %1056 : vector<8x32xf32>
    %1058 = arith.mulf %1057, %1057 : vector<8x32xf32>
    %cst_413 = arith.constant dense<0.000000e+00> : vector<8xf32>
    %1059 = vector.multi_reduction <add>, %1058, %cst_413 [1] : vector<8x32xf32> to vector<8xf32>
    %1060 = vector.shape_cast %1059 : vector<8xf32> to vector<8x1xf32>
    %cst_414 = arith.constant 3.200000e+01 : f32
    %1061 = vector.broadcast %cst_414 : f32 to vector<8x1xf32>
    %1062 = arith.divf %1060, %1061 : vector<8x1xf32>
    %1063 = vector.broadcast %1055 : vector<8x1xf32> to vector<8x32xf32>
    %1064 = arith.subf %1051, %1063 : vector<8x32xf32>
    %cst_415 = arith.constant 9.99999974E-6 : f32
    %1065 = vector.broadcast %cst_415 : f32 to vector<8x1xf32>
    %1066 = arith.addf %1062, %1065 : vector<8x1xf32>
    %1067 = math.rsqrt %1066 : vector<8x1xf32>
    %1068 = vector.broadcast %1067 : vector<8x1xf32> to vector<8x32xf32>
    %1069 = arith.mulf %1064, %1068 : vector<8x32xf32>
    %1070 = vector.broadcast %49 : vector<1x32xf32> to vector<8x32xf32>
    %1071 = arith.mulf %1069, %1070 : vector<8x32xf32>
    %1072 = vector.broadcast %48 : vector<1x32xf32> to vector<8x32xf32>
    %1073 = arith.addf %1071, %1072 : vector<8x32xf32>
    %cst_416 = arith.constant dense<0.000000e+00> : vector<8x64xf32>
    %1074 = tpu.matmul %1073, %46, %cst_416 {dimension_numbers = #tpu.dot_dimension_numbers<[1], [0], [0], [1], [0, 0, 1, 1], [], []>} : vector<8x32xf32>, vector<32x64xf32>, vector<8x64xf32> -> vector<8x64xf32>
    %1075 = vector.broadcast %44 : vector<1x64xf32> to vector<8x64xf32>
    %1076 = arith.addf %1074, %1075 : vector<8x64xf32>
    %cst_417 = arith.constant 0.000000e+00 : f32
    %1077 = vector.broadcast %cst_417 : f32 to vector<8x64xf32>
    %1078 = arith.maximumf %1076, %1077 : vector<8x64xf32>
    %cst_418 = arith.constant dense<0.000000e+00> : vector<8x32xf32>
    %1079 = tpu.matmul %1078, %47, %cst_418 {dimension_numbers = #tpu.dot_dimension_numbers<[1], [0], [0], [1], [0, 0, 1, 1], [], []>} : vector<8x64xf32>, vector<64x32xf32>, vector<8x32xf32> -> vector<8x32xf32>
    %1080 = vector.broadcast %45 : vector<1x32xf32> to vector<8x32xf32>
    %1081 = arith.addf %1079, %1080 : vector<8x32xf32>
    %1082 = arith.addf %1073, %1081 : vector<8x32xf32>
    %cst_419 = arith.constant dense<0.000000e+00> : vector<8xf32>
    %1083 = vector.multi_reduction <add>, %1082, %cst_419 [1] : vector<8x32xf32> to vector<8xf32>
    %1084 = vector.shape_cast %1083 : vector<8xf32> to vector<8x1xf32>
    %cst_420 = arith.constant 3.200000e+01 : f32
    %1085 = vector.broadcast %cst_420 : f32 to vector<8x1xf32>
    %1086 = arith.divf %1084, %1085 : vector<8x1xf32>
    %1087 = vector.broadcast %1086 : vector<8x1xf32> to vector<8x32xf32>
    %1088 = arith.subf %1082, %1087 : vector<8x32xf32>
    %1089 = arith.mulf %1088, %1088 : vector<8x32xf32>
    %cst_421 = arith.constant dense<0.000000e+00> : vector<8xf32>
    %1090 = vector.multi_reduction <add>, %1089, %cst_421 [1] : vector<8x32xf32> to vector<8xf32>
    %1091 = vector.shape_cast %1090 : vector<8xf32> to vector<8x1xf32>
    %cst_422 = arith.constant 3.200000e+01 : f32
    %1092 = vector.broadcast %cst_422 : f32 to vector<8x1xf32>
    %1093 = arith.divf %1091, %1092 : vector<8x1xf32>
    %1094 = vector.broadcast %1086 : vector<8x1xf32> to vector<8x32xf32>
    %1095 = arith.subf %1082, %1094 : vector<8x32xf32>
    %cst_423 = arith.constant 9.99999974E-6 : f32
    %1096 = vector.broadcast %cst_423 : f32 to vector<8x1xf32>
    %1097 = arith.addf %1093, %1096 : vector<8x1xf32>
    %1098 = math.rsqrt %1097 : vector<8x1xf32>
    %1099 = vector.broadcast %1098 : vector<8x1xf32> to vector<8x32xf32>
    %1100 = arith.mulf %1095, %1099 : vector<8x32xf32>
    %1101 = vector.broadcast %51 : vector<1x32xf32> to vector<8x32xf32>
    %1102 = arith.mulf %1100, %1101 : vector<8x32xf32>
    %1103 = vector.broadcast %50 : vector<1x32xf32> to vector<8x32xf32>
    %1104 = arith.addf %1102, %1103 : vector<8x32xf32>
    %cst_424 = arith.constant dense<0.000000e+00> : vector<8x96xf32>
    %1105 = tpu.matmul %1104, %55, %cst_424 {dimension_numbers = #tpu.dot_dimension_numbers<[1], [0], [0], [1], [0, 0, 1, 1], [], []>} : vector<8x32xf32>, vector<32x96xf32>, vector<8x96xf32> -> vector<8x96xf32>
    %1106 = vector.broadcast %53 : vector<1x96xf32> to vector<8x96xf32>
    %1107 = arith.addf %1105, %1106 : vector<8x96xf32>
    %1108 = vector.extract_strided_slice %1107 {offsets = [0, 0], sizes = [8, 32], strides = [1, 1]} : vector<8x96xf32> to vector<8x32xf32>
    %1109 = vector.extract_strided_slice %1107 {offsets = [0, 32], sizes = [8, 32], strides = [1, 1]} : vector<8x96xf32> to vector<8x32xf32>
    %1110 = vector.extract_strided_slice %1107 {offsets = [0, 64], sizes = [8, 32], strides = [1, 1]} : vector<8x96xf32> to vector<8x32xf32>
    %cst_425 = arith.constant 0.000000e+00 : f32
    %1111 = vector.broadcast %cst_425 : f32 to vector<8x32xf32>
    %1112 = vector.extract_strided_slice %1108 {offsets = [0, 0], sizes = [8, 8], strides = [1, 1]} : vector<8x32xf32> to vector<8x8xf32>
    %1113 = vector.extract_strided_slice %1109 {offsets = [0, 0], sizes = [8, 8], strides = [1, 1]} : vector<8x32xf32> to vector<8x8xf32>
    %cst_426 = arith.constant dense<0.000000e+00> : vector<8x8xf32>
    %1114 = tpu.matmul %1112, %1113, %cst_426 {dimension_numbers = #tpu.dot_dimension_numbers<[1], [1], [0], [0], [0, 0, 1, 0], [], []>} : vector<8x8xf32>, vector<8x8xf32>, vector<8x8xf32> -> vector<8x8xf32>
    %cst_427 = arith.constant 0.353553385 : f32
    %1115 = vector.broadcast %cst_427 : f32 to vector<8x8xf32>
    %1116 = arith.mulf %1114, %1115 : vector<8x8xf32>
    %1117 = vector.broadcast %940 : vector<1x8xf32> to vector<8x8xf32>
    %1118 = arith.addf %1116, %1117 : vector<8x8xf32>
    %cst_428 = arith.constant dense<0xFF800000> : vector<8xf32>
    %1119 = vector.multi_reduction <maximumf>, %1118, %cst_428 [1] : vector<8x8xf32> to vector<8xf32>
    %1120 = vector.shape_cast %1119 : vector<8xf32> to vector<8x1xf32>
    %1121 = vector.broadcast %1120 : vector<8x1xf32> to vector<8x8xf32>
    %1122 = arith.subf %1118, %1121 : vector<8x8xf32>
    %1123 = math.exp %1122 : vector<8x8xf32>
    %cst_429 = arith.constant dense<0.000000e+00> : vector<8xf32>
    %1124 = vector.multi_reduction <add>, %1123, %cst_429 [1] : vector<8x8xf32> to vector<8xf32>
    %1125 = vector.shape_cast %1124 : vector<8xf32> to vector<8x1xf32>
    %1126 = tpu.reciprocal %1125 {approx = true} : vector<8x1xf32> -> vector<8x1xf32>
    %1127 = vector.broadcast %1126 : vector<8x1xf32> to vector<8x8xf32>
    %1128 = arith.mulf %1123, %1127 : vector<8x8xf32>
    %1129 = vector.extract_strided_slice %1110 {offsets = [0, 0], sizes = [8, 8], strides = [1, 1]} : vector<8x32xf32> to vector<8x8xf32>
    %cst_430 = arith.constant dense<0.000000e+00> : vector<8x8xf32>
    %1130 = tpu.matmul %1128, %1129, %cst_430 {dimension_numbers = #tpu.dot_dimension_numbers<[1], [0], [0], [1], [0, 0, 1, 1], [], []>} : vector<8x8xf32>, vector<8x8xf32>, vector<8x8xf32> -> vector<8x8xf32>
    %1131 = vector.extract_strided_slice %54 {offsets = [0, 0], sizes = [8, 32], strides = [1, 1]} : vector<32x32xf32> to vector<8x32xf32>
    %cst_431 = arith.constant dense<0.000000e+00> : vector<8x32xf32>
    %1132 = tpu.matmul %1130, %1131, %cst_431 {dimension_numbers = #tpu.dot_dimension_numbers<[1], [0], [0], [1], [0, 0, 1, 1], [], []>} : vector<8x8xf32>, vector<8x32xf32>, vector<8x32xf32> -> vector<8x32xf32>
    %1133 = arith.addf %1111, %1132 : vector<8x32xf32>
    %1134 = vector.extract_strided_slice %1108 {offsets = [0, 8], sizes = [8, 8], strides = [1, 1]} : vector<8x32xf32> to vector<8x8xf32>
    %1135 = vector.extract_strided_slice %1109 {offsets = [0, 8], sizes = [8, 8], strides = [1, 1]} : vector<8x32xf32> to vector<8x8xf32>
    %cst_432 = arith.constant dense<0.000000e+00> : vector<8x8xf32>
    %1136 = tpu.matmul %1134, %1135, %cst_432 {dimension_numbers = #tpu.dot_dimension_numbers<[1], [1], [0], [0], [0, 0, 1, 0], [], []>} : vector<8x8xf32>, vector<8x8xf32>, vector<8x8xf32> -> vector<8x8xf32>
    %cst_433 = arith.constant 0.353553385 : f32
    %1137 = vector.broadcast %cst_433 : f32 to vector<8x8xf32>
    %1138 = arith.mulf %1136, %1137 : vector<8x8xf32>
    %1139 = vector.broadcast %940 : vector<1x8xf32> to vector<8x8xf32>
    %1140 = arith.addf %1138, %1139 : vector<8x8xf32>
    %cst_434 = arith.constant dense<0xFF800000> : vector<8xf32>
    %1141 = vector.multi_reduction <maximumf>, %1140, %cst_434 [1] : vector<8x8xf32> to vector<8xf32>
    %1142 = vector.shape_cast %1141 : vector<8xf32> to vector<8x1xf32>
    %1143 = vector.broadcast %1142 : vector<8x1xf32> to vector<8x8xf32>
    %1144 = arith.subf %1140, %1143 : vector<8x8xf32>
    %1145 = math.exp %1144 : vector<8x8xf32>
    %cst_435 = arith.constant dense<0.000000e+00> : vector<8xf32>
    %1146 = vector.multi_reduction <add>, %1145, %cst_435 [1] : vector<8x8xf32> to vector<8xf32>
    %1147 = vector.shape_cast %1146 : vector<8xf32> to vector<8x1xf32>
    %1148 = tpu.reciprocal %1147 {approx = true} : vector<8x1xf32> -> vector<8x1xf32>
    %1149 = vector.broadcast %1148 : vector<8x1xf32> to vector<8x8xf32>
    %1150 = arith.mulf %1145, %1149 : vector<8x8xf32>
    %1151 = vector.extract_strided_slice %1110 {offsets = [0, 8], sizes = [8, 8], strides = [1, 1]} : vector<8x32xf32> to vector<8x8xf32>
    %cst_436 = arith.constant dense<0.000000e+00> : vector<8x8xf32>
    %1152 = tpu.matmul %1150, %1151, %cst_436 {dimension_numbers = #tpu.dot_dimension_numbers<[1], [0], [0], [1], [0, 0, 1, 1], [], []>} : vector<8x8xf32>, vector<8x8xf32>, vector<8x8xf32> -> vector<8x8xf32>
    %1153 = vector.extract_strided_slice %54 {offsets = [8, 0], sizes = [8, 32], strides = [1, 1]} : vector<32x32xf32> to vector<8x32xf32>
    %cst_437 = arith.constant dense<0.000000e+00> : vector<8x32xf32>
    %1154 = tpu.matmul %1152, %1153, %cst_437 {dimension_numbers = #tpu.dot_dimension_numbers<[1], [0], [0], [1], [0, 0, 1, 1], [], []>} : vector<8x8xf32>, vector<8x32xf32>, vector<8x32xf32> -> vector<8x32xf32>
    %1155 = arith.addf %1133, %1154 : vector<8x32xf32>
    %1156 = vector.extract_strided_slice %1108 {offsets = [0, 16], sizes = [8, 8], strides = [1, 1]} : vector<8x32xf32> to vector<8x8xf32>
    %1157 = vector.extract_strided_slice %1109 {offsets = [0, 16], sizes = [8, 8], strides = [1, 1]} : vector<8x32xf32> to vector<8x8xf32>
    %cst_438 = arith.constant dense<0.000000e+00> : vector<8x8xf32>
    %1158 = tpu.matmul %1156, %1157, %cst_438 {dimension_numbers = #tpu.dot_dimension_numbers<[1], [1], [0], [0], [0, 0, 1, 0], [], []>} : vector<8x8xf32>, vector<8x8xf32>, vector<8x8xf32> -> vector<8x8xf32>
    %cst_439 = arith.constant 0.353553385 : f32
    %1159 = vector.broadcast %cst_439 : f32 to vector<8x8xf32>
    %1160 = arith.mulf %1158, %1159 : vector<8x8xf32>
    %1161 = vector.broadcast %940 : vector<1x8xf32> to vector<8x8xf32>
    %1162 = arith.addf %1160, %1161 : vector<8x8xf32>
    %cst_440 = arith.constant dense<0xFF800000> : vector<8xf32>
    %1163 = vector.multi_reduction <maximumf>, %1162, %cst_440 [1] : vector<8x8xf32> to vector<8xf32>
    %1164 = vector.shape_cast %1163 : vector<8xf32> to vector<8x1xf32>
    %1165 = vector.broadcast %1164 : vector<8x1xf32> to vector<8x8xf32>
    %1166 = arith.subf %1162, %1165 : vector<8x8xf32>
    %1167 = math.exp %1166 : vector<8x8xf32>
    %cst_441 = arith.constant dense<0.000000e+00> : vector<8xf32>
    %1168 = vector.multi_reduction <add>, %1167, %cst_441 [1] : vector<8x8xf32> to vector<8xf32>
    %1169 = vector.shape_cast %1168 : vector<8xf32> to vector<8x1xf32>
    %1170 = tpu.reciprocal %1169 {approx = true} : vector<8x1xf32> -> vector<8x1xf32>
    %1171 = vector.broadcast %1170 : vector<8x1xf32> to vector<8x8xf32>
    %1172 = arith.mulf %1167, %1171 : vector<8x8xf32>
    %1173 = vector.extract_strided_slice %1110 {offsets = [0, 16], sizes = [8, 8], strides = [1, 1]} : vector<8x32xf32> to vector<8x8xf32>
    %cst_442 = arith.constant dense<0.000000e+00> : vector<8x8xf32>
    %1174 = tpu.matmul %1172, %1173, %cst_442 {dimension_numbers = #tpu.dot_dimension_numbers<[1], [0], [0], [1], [0, 0, 1, 1], [], []>} : vector<8x8xf32>, vector<8x8xf32>, vector<8x8xf32> -> vector<8x8xf32>
    %1175 = vector.extract_strided_slice %54 {offsets = [16, 0], sizes = [8, 32], strides = [1, 1]} : vector<32x32xf32> to vector<8x32xf32>
    %cst_443 = arith.constant dense<0.000000e+00> : vector<8x32xf32>
    %1176 = tpu.matmul %1174, %1175, %cst_443 {dimension_numbers = #tpu.dot_dimension_numbers<[1], [0], [0], [1], [0, 0, 1, 1], [], []>} : vector<8x8xf32>, vector<8x32xf32>, vector<8x32xf32> -> vector<8x32xf32>
    %1177 = arith.addf %1155, %1176 : vector<8x32xf32>
    %1178 = vector.extract_strided_slice %1108 {offsets = [0, 24], sizes = [8, 8], strides = [1, 1]} : vector<8x32xf32> to vector<8x8xf32>
    %1179 = vector.extract_strided_slice %1109 {offsets = [0, 24], sizes = [8, 8], strides = [1, 1]} : vector<8x32xf32> to vector<8x8xf32>
    %cst_444 = arith.constant dense<0.000000e+00> : vector<8x8xf32>
    %1180 = tpu.matmul %1178, %1179, %cst_444 {dimension_numbers = #tpu.dot_dimension_numbers<[1], [1], [0], [0], [0, 0, 1, 0], [], []>} : vector<8x8xf32>, vector<8x8xf32>, vector<8x8xf32> -> vector<8x8xf32>
    %cst_445 = arith.constant 0.353553385 : f32
    %1181 = vector.broadcast %cst_445 : f32 to vector<8x8xf32>
    %1182 = arith.mulf %1180, %1181 : vector<8x8xf32>
    %1183 = vector.broadcast %940 : vector<1x8xf32> to vector<8x8xf32>
    %1184 = arith.addf %1182, %1183 : vector<8x8xf32>
    %cst_446 = arith.constant dense<0xFF800000> : vector<8xf32>
    %1185 = vector.multi_reduction <maximumf>, %1184, %cst_446 [1] : vector<8x8xf32> to vector<8xf32>
    %1186 = vector.shape_cast %1185 : vector<8xf32> to vector<8x1xf32>
    %1187 = vector.broadcast %1186 : vector<8x1xf32> to vector<8x8xf32>
    %1188 = arith.subf %1184, %1187 : vector<8x8xf32>
    %1189 = math.exp %1188 : vector<8x8xf32>
    %cst_447 = arith.constant dense<0.000000e+00> : vector<8xf32>
    %1190 = vector.multi_reduction <add>, %1189, %cst_447 [1] : vector<8x8xf32> to vector<8xf32>
    %1191 = vector.shape_cast %1190 : vector<8xf32> to vector<8x1xf32>
    %1192 = tpu.reciprocal %1191 {approx = true} : vector<8x1xf32> -> vector<8x1xf32>
    %1193 = vector.broadcast %1192 : vector<8x1xf32> to vector<8x8xf32>
    %1194 = arith.mulf %1189, %1193 : vector<8x8xf32>
    %1195 = vector.extract_strided_slice %1110 {offsets = [0, 24], sizes = [8, 8], strides = [1, 1]} : vector<8x32xf32> to vector<8x8xf32>
    %cst_448 = arith.constant dense<0.000000e+00> : vector<8x8xf32>
    %1196 = tpu.matmul %1194, %1195, %cst_448 {dimension_numbers = #tpu.dot_dimension_numbers<[1], [0], [0], [1], [0, 0, 1, 1], [], []>} : vector<8x8xf32>, vector<8x8xf32>, vector<8x8xf32> -> vector<8x8xf32>
    %1197 = vector.extract_strided_slice %54 {offsets = [24, 0], sizes = [8, 32], strides = [1, 1]} : vector<32x32xf32> to vector<8x32xf32>
    %cst_449 = arith.constant dense<0.000000e+00> : vector<8x32xf32>
    %1198 = tpu.matmul %1196, %1197, %cst_449 {dimension_numbers = #tpu.dot_dimension_numbers<[1], [0], [0], [1], [0, 0, 1, 1], [], []>} : vector<8x8xf32>, vector<8x32xf32>, vector<8x32xf32> -> vector<8x32xf32>
    %1199 = arith.addf %1177, %1198 : vector<8x32xf32>
    %1200 = vector.broadcast %52 : vector<1x32xf32> to vector<8x32xf32>
    %1201 = arith.addf %1199, %1200 : vector<8x32xf32>
    %1202 = arith.addf %1104, %1201 : vector<8x32xf32>
    %cst_450 = arith.constant dense<0.000000e+00> : vector<8xf32>
    %1203 = vector.multi_reduction <add>, %1202, %cst_450 [1] : vector<8x32xf32> to vector<8xf32>
    %1204 = vector.shape_cast %1203 : vector<8xf32> to vector<8x1xf32>
    %cst_451 = arith.constant 3.200000e+01 : f32
    %1205 = vector.broadcast %cst_451 : f32 to vector<8x1xf32>
    %1206 = arith.divf %1204, %1205 : vector<8x1xf32>
    %1207 = vector.broadcast %1206 : vector<8x1xf32> to vector<8x32xf32>
    %1208 = arith.subf %1202, %1207 : vector<8x32xf32>
    %1209 = arith.mulf %1208, %1208 : vector<8x32xf32>
    %cst_452 = arith.constant dense<0.000000e+00> : vector<8xf32>
    %1210 = vector.multi_reduction <add>, %1209, %cst_452 [1] : vector<8x32xf32> to vector<8xf32>
    %1211 = vector.shape_cast %1210 : vector<8xf32> to vector<8x1xf32>
    %cst_453 = arith.constant 3.200000e+01 : f32
    %1212 = vector.broadcast %cst_453 : f32 to vector<8x1xf32>
    %1213 = arith.divf %1211, %1212 : vector<8x1xf32>
    %1214 = vector.broadcast %1206 : vector<8x1xf32> to vector<8x32xf32>
    %1215 = arith.subf %1202, %1214 : vector<8x32xf32>
    %cst_454 = arith.constant 9.99999974E-6 : f32
    %1216 = vector.broadcast %cst_454 : f32 to vector<8x1xf32>
    %1217 = arith.addf %1213, %1216 : vector<8x1xf32>
    %1218 = math.rsqrt %1217 : vector<8x1xf32>
    %1219 = vector.broadcast %1218 : vector<8x1xf32> to vector<8x32xf32>
    %1220 = arith.mulf %1215, %1219 : vector<8x32xf32>
    %1221 = vector.broadcast %61 : vector<1x32xf32> to vector<8x32xf32>
    %1222 = arith.mulf %1220, %1221 : vector<8x32xf32>
    %1223 = vector.broadcast %60 : vector<1x32xf32> to vector<8x32xf32>
    %1224 = arith.addf %1222, %1223 : vector<8x32xf32>
    %cst_455 = arith.constant dense<0.000000e+00> : vector<8x64xf32>
    %1225 = tpu.matmul %1224, %58, %cst_455 {dimension_numbers = #tpu.dot_dimension_numbers<[1], [0], [0], [1], [0, 0, 1, 1], [], []>} : vector<8x32xf32>, vector<32x64xf32>, vector<8x64xf32> -> vector<8x64xf32>
    %1226 = vector.broadcast %56 : vector<1x64xf32> to vector<8x64xf32>
    %1227 = arith.addf %1225, %1226 : vector<8x64xf32>
    %cst_456 = arith.constant 0.000000e+00 : f32
    %1228 = vector.broadcast %cst_456 : f32 to vector<8x64xf32>
    %1229 = arith.maximumf %1227, %1228 : vector<8x64xf32>
    %cst_457 = arith.constant dense<0.000000e+00> : vector<8x32xf32>
    %1230 = tpu.matmul %1229, %59, %cst_457 {dimension_numbers = #tpu.dot_dimension_numbers<[1], [0], [0], [1], [0, 0, 1, 1], [], []>} : vector<8x64xf32>, vector<64x32xf32>, vector<8x32xf32> -> vector<8x32xf32>
    %1231 = vector.broadcast %57 : vector<1x32xf32> to vector<8x32xf32>
    %1232 = arith.addf %1230, %1231 : vector<8x32xf32>
    %1233 = arith.addf %1224, %1232 : vector<8x32xf32>
    %cst_458 = arith.constant dense<0.000000e+00> : vector<8xf32>
    %1234 = vector.multi_reduction <add>, %1233, %cst_458 [1] : vector<8x32xf32> to vector<8xf32>
    %1235 = vector.shape_cast %1234 : vector<8xf32> to vector<8x1xf32>
    %cst_459 = arith.constant 3.200000e+01 : f32
    %1236 = vector.broadcast %cst_459 : f32 to vector<8x1xf32>
    %1237 = arith.divf %1235, %1236 : vector<8x1xf32>
    %1238 = vector.broadcast %1237 : vector<8x1xf32> to vector<8x32xf32>
    %1239 = arith.subf %1233, %1238 : vector<8x32xf32>
    %1240 = arith.mulf %1239, %1239 : vector<8x32xf32>
    %cst_460 = arith.constant dense<0.000000e+00> : vector<8xf32>
    %1241 = vector.multi_reduction <add>, %1240, %cst_460 [1] : vector<8x32xf32> to vector<8xf32>
    %1242 = vector.shape_cast %1241 : vector<8xf32> to vector<8x1xf32>
    %cst_461 = arith.constant 3.200000e+01 : f32
    %1243 = vector.broadcast %cst_461 : f32 to vector<8x1xf32>
    %1244 = arith.divf %1242, %1243 : vector<8x1xf32>
    %1245 = vector.broadcast %1237 : vector<8x1xf32> to vector<8x32xf32>
    %1246 = arith.subf %1233, %1245 : vector<8x32xf32>
    %cst_462 = arith.constant 9.99999974E-6 : f32
    %1247 = vector.broadcast %cst_462 : f32 to vector<8x1xf32>
    %1248 = arith.addf %1244, %1247 : vector<8x1xf32>
    %1249 = math.rsqrt %1248 : vector<8x1xf32>
    %1250 = vector.broadcast %1249 : vector<8x1xf32> to vector<8x32xf32>
    %1251 = arith.mulf %1246, %1250 : vector<8x32xf32>
    %1252 = vector.broadcast %63 : vector<1x32xf32> to vector<8x32xf32>
    %1253 = arith.mulf %1251, %1252 : vector<8x32xf32>
    %1254 = vector.broadcast %62 : vector<1x32xf32> to vector<8x32xf32>
    %1255 = arith.addf %1253, %1254 : vector<8x32xf32>
    %c1_463 = arith.constant 1 : index
    %c0_464 = arith.constant 0 : index
    %c0_465 = arith.constant 0 : index
    %1256 = vector.load %arg72[%c1_463, %c0_464, %c0_465] : memref<2x8x1xi32, #tpu.memory_space<vmem>>, vector<1x8x1xi32>
    %1257 = vector.shape_cast %1256 : vector<1x8x1xi32> to vector<8x1xi32>
    %1258 = tpu.iota {dimensions = array<i32: 1>} : vector<8x50xi32>
    %1259 = vector.broadcast %1257 : vector<8x1xi32> to vector<8x50xi32>
    %1260 = arith.cmpi eq, %1258, %1259 : vector<8x50xi32>
    %1261 = arith.extui %1260 : vector<8x50xi1> to vector<8x50xi32>
    %1262 = arith.sitofp %1261 : vector<8x50xi32> to vector<8x50xf32>
    %cst_466 = arith.constant dense<0.000000e+00> : vector<8x32xf32>
    %1263 = tpu.matmul %1262, %68, %cst_466 {dimension_numbers = #tpu.dot_dimension_numbers<[1], [0], [0], [1], [0, 0, 1, 1], [], []>} : vector<8x50xf32>, vector<50x32xf32>, vector<8x32xf32> -> vector<8x32xf32>
    %cst_467 = arith.constant 5.65685415 : f32
    %1264 = vector.broadcast %cst_467 : f32 to vector<8x32xf32>
    %1265 = arith.mulf %1263, %1264 : vector<8x32xf32>
    %1266 = arith.addf %1265, %66 : vector<8x32xf32>
    %cst_468 = arith.constant dense<0.000000e+00> : vector<8x96xf32>
    %1267 = tpu.matmul %1266, %19, %cst_468 {dimension_numbers = #tpu.dot_dimension_numbers<[1], [0], [0], [1], [0, 0, 1, 1], [], []>} : vector<8x32xf32>, vector<32x96xf32>, vector<8x96xf32> -> vector<8x96xf32>
    %1268 = vector.broadcast %17 : vector<1x96xf32> to vector<8x96xf32>
    %1269 = arith.addf %1267, %1268 : vector<8x96xf32>
    %1270 = vector.extract_strided_slice %1269 {offsets = [0, 0], sizes = [8, 32], strides = [1, 1]} : vector<8x96xf32> to vector<8x32xf32>
    %1271 = vector.extract_strided_slice %1269 {offsets = [0, 32], sizes = [8, 32], strides = [1, 1]} : vector<8x96xf32> to vector<8x32xf32>
    %1272 = vector.extract_strided_slice %1269 {offsets = [0, 64], sizes = [8, 32], strides = [1, 1]} : vector<8x96xf32> to vector<8x32xf32>
    %cst_469 = arith.constant 0.000000e+00 : f32
    %1273 = vector.broadcast %cst_469 : f32 to vector<8x32xf32>
    %1274 = vector.extract_strided_slice %1270 {offsets = [0, 0], sizes = [8, 8], strides = [1, 1]} : vector<8x32xf32> to vector<8x8xf32>
    %1275 = vector.extract_strided_slice %1271 {offsets = [0, 0], sizes = [8, 8], strides = [1, 1]} : vector<8x32xf32> to vector<8x8xf32>
    %cst_470 = arith.constant dense<0.000000e+00> : vector<8x8xf32>
    %1276 = tpu.matmul %1274, %1275, %cst_470 {dimension_numbers = #tpu.dot_dimension_numbers<[1], [1], [0], [0], [0, 0, 1, 0], [], []>} : vector<8x8xf32>, vector<8x8xf32>, vector<8x8xf32> -> vector<8x8xf32>
    %cst_471 = arith.constant 0.353553385 : f32
    %1277 = vector.broadcast %cst_471 : f32 to vector<8x8xf32>
    %1278 = arith.mulf %1276, %1277 : vector<8x8xf32>
    %1279 = arith.addf %1278, %942 : vector<8x8xf32>
    %cst_472 = arith.constant dense<0xFF800000> : vector<8xf32>
    %1280 = vector.multi_reduction <maximumf>, %1279, %cst_472 [1] : vector<8x8xf32> to vector<8xf32>
    %1281 = vector.shape_cast %1280 : vector<8xf32> to vector<8x1xf32>
    %1282 = vector.broadcast %1281 : vector<8x1xf32> to vector<8x8xf32>
    %1283 = arith.subf %1279, %1282 : vector<8x8xf32>
    %1284 = math.exp %1283 : vector<8x8xf32>
    %cst_473 = arith.constant dense<0.000000e+00> : vector<8xf32>
    %1285 = vector.multi_reduction <add>, %1284, %cst_473 [1] : vector<8x8xf32> to vector<8xf32>
    %1286 = vector.shape_cast %1285 : vector<8xf32> to vector<8x1xf32>
    %1287 = tpu.reciprocal %1286 {approx = true} : vector<8x1xf32> -> vector<8x1xf32>
    %1288 = vector.broadcast %1287 : vector<8x1xf32> to vector<8x8xf32>
    %1289 = arith.mulf %1284, %1288 : vector<8x8xf32>
    %1290 = vector.extract_strided_slice %1272 {offsets = [0, 0], sizes = [8, 8], strides = [1, 1]} : vector<8x32xf32> to vector<8x8xf32>
    %cst_474 = arith.constant dense<0.000000e+00> : vector<8x8xf32>
    %1291 = tpu.matmul %1289, %1290, %cst_474 {dimension_numbers = #tpu.dot_dimension_numbers<[1], [0], [0], [1], [0, 0, 1, 1], [], []>} : vector<8x8xf32>, vector<8x8xf32>, vector<8x8xf32> -> vector<8x8xf32>
    %1292 = vector.extract_strided_slice %18 {offsets = [0, 0], sizes = [8, 32], strides = [1, 1]} : vector<32x32xf32> to vector<8x32xf32>
    %cst_475 = arith.constant dense<0.000000e+00> : vector<8x32xf32>
    %1293 = tpu.matmul %1291, %1292, %cst_475 {dimension_numbers = #tpu.dot_dimension_numbers<[1], [0], [0], [1], [0, 0, 1, 1], [], []>} : vector<8x8xf32>, vector<8x32xf32>, vector<8x32xf32> -> vector<8x32xf32>
    %1294 = arith.addf %1273, %1293 : vector<8x32xf32>
    %1295 = vector.extract_strided_slice %1270 {offsets = [0, 8], sizes = [8, 8], strides = [1, 1]} : vector<8x32xf32> to vector<8x8xf32>
    %1296 = vector.extract_strided_slice %1271 {offsets = [0, 8], sizes = [8, 8], strides = [1, 1]} : vector<8x32xf32> to vector<8x8xf32>
    %cst_476 = arith.constant dense<0.000000e+00> : vector<8x8xf32>
    %1297 = tpu.matmul %1295, %1296, %cst_476 {dimension_numbers = #tpu.dot_dimension_numbers<[1], [1], [0], [0], [0, 0, 1, 0], [], []>} : vector<8x8xf32>, vector<8x8xf32>, vector<8x8xf32> -> vector<8x8xf32>
    %cst_477 = arith.constant 0.353553385 : f32
    %1298 = vector.broadcast %cst_477 : f32 to vector<8x8xf32>
    %1299 = arith.mulf %1297, %1298 : vector<8x8xf32>
    %1300 = arith.addf %1299, %942 : vector<8x8xf32>
    %cst_478 = arith.constant dense<0xFF800000> : vector<8xf32>
    %1301 = vector.multi_reduction <maximumf>, %1300, %cst_478 [1] : vector<8x8xf32> to vector<8xf32>
    %1302 = vector.shape_cast %1301 : vector<8xf32> to vector<8x1xf32>
    %1303 = vector.broadcast %1302 : vector<8x1xf32> to vector<8x8xf32>
    %1304 = arith.subf %1300, %1303 : vector<8x8xf32>
    %1305 = math.exp %1304 : vector<8x8xf32>
    %cst_479 = arith.constant dense<0.000000e+00> : vector<8xf32>
    %1306 = vector.multi_reduction <add>, %1305, %cst_479 [1] : vector<8x8xf32> to vector<8xf32>
    %1307 = vector.shape_cast %1306 : vector<8xf32> to vector<8x1xf32>
    %1308 = tpu.reciprocal %1307 {approx = true} : vector<8x1xf32> -> vector<8x1xf32>
    %1309 = vector.broadcast %1308 : vector<8x1xf32> to vector<8x8xf32>
    %1310 = arith.mulf %1305, %1309 : vector<8x8xf32>
    %1311 = vector.extract_strided_slice %1272 {offsets = [0, 8], sizes = [8, 8], strides = [1, 1]} : vector<8x32xf32> to vector<8x8xf32>
    %cst_480 = arith.constant dense<0.000000e+00> : vector<8x8xf32>
    %1312 = tpu.matmul %1310, %1311, %cst_480 {dimension_numbers = #tpu.dot_dimension_numbers<[1], [0], [0], [1], [0, 0, 1, 1], [], []>} : vector<8x8xf32>, vector<8x8xf32>, vector<8x8xf32> -> vector<8x8xf32>
    %1313 = vector.extract_strided_slice %18 {offsets = [8, 0], sizes = [8, 32], strides = [1, 1]} : vector<32x32xf32> to vector<8x32xf32>
    %cst_481 = arith.constant dense<0.000000e+00> : vector<8x32xf32>
    %1314 = tpu.matmul %1312, %1313, %cst_481 {dimension_numbers = #tpu.dot_dimension_numbers<[1], [0], [0], [1], [0, 0, 1, 1], [], []>} : vector<8x8xf32>, vector<8x32xf32>, vector<8x32xf32> -> vector<8x32xf32>
    %1315 = arith.addf %1294, %1314 : vector<8x32xf32>
    %1316 = vector.extract_strided_slice %1270 {offsets = [0, 16], sizes = [8, 8], strides = [1, 1]} : vector<8x32xf32> to vector<8x8xf32>
    %1317 = vector.extract_strided_slice %1271 {offsets = [0, 16], sizes = [8, 8], strides = [1, 1]} : vector<8x32xf32> to vector<8x8xf32>
    %cst_482 = arith.constant dense<0.000000e+00> : vector<8x8xf32>
    %1318 = tpu.matmul %1316, %1317, %cst_482 {dimension_numbers = #tpu.dot_dimension_numbers<[1], [1], [0], [0], [0, 0, 1, 0], [], []>} : vector<8x8xf32>, vector<8x8xf32>, vector<8x8xf32> -> vector<8x8xf32>
    %cst_483 = arith.constant 0.353553385 : f32
    %1319 = vector.broadcast %cst_483 : f32 to vector<8x8xf32>
    %1320 = arith.mulf %1318, %1319 : vector<8x8xf32>
    %1321 = arith.addf %1320, %942 : vector<8x8xf32>
    %cst_484 = arith.constant dense<0xFF800000> : vector<8xf32>
    %1322 = vector.multi_reduction <maximumf>, %1321, %cst_484 [1] : vector<8x8xf32> to vector<8xf32>
    %1323 = vector.shape_cast %1322 : vector<8xf32> to vector<8x1xf32>
    %1324 = vector.broadcast %1323 : vector<8x1xf32> to vector<8x8xf32>
    %1325 = arith.subf %1321, %1324 : vector<8x8xf32>
    %1326 = math.exp %1325 : vector<8x8xf32>
    %cst_485 = arith.constant dense<0.000000e+00> : vector<8xf32>
    %1327 = vector.multi_reduction <add>, %1326, %cst_485 [1] : vector<8x8xf32> to vector<8xf32>
    %1328 = vector.shape_cast %1327 : vector<8xf32> to vector<8x1xf32>
    %1329 = tpu.reciprocal %1328 {approx = true} : vector<8x1xf32> -> vector<8x1xf32>
    %1330 = vector.broadcast %1329 : vector<8x1xf32> to vector<8x8xf32>
    %1331 = arith.mulf %1326, %1330 : vector<8x8xf32>
    %1332 = vector.extract_strided_slice %1272 {offsets = [0, 16], sizes = [8, 8], strides = [1, 1]} : vector<8x32xf32> to vector<8x8xf32>
    %cst_486 = arith.constant dense<0.000000e+00> : vector<8x8xf32>
    %1333 = tpu.matmul %1331, %1332, %cst_486 {dimension_numbers = #tpu.dot_dimension_numbers<[1], [0], [0], [1], [0, 0, 1, 1], [], []>} : vector<8x8xf32>, vector<8x8xf32>, vector<8x8xf32> -> vector<8x8xf32>
    %1334 = vector.extract_strided_slice %18 {offsets = [16, 0], sizes = [8, 32], strides = [1, 1]} : vector<32x32xf32> to vector<8x32xf32>
    %cst_487 = arith.constant dense<0.000000e+00> : vector<8x32xf32>
    %1335 = tpu.matmul %1333, %1334, %cst_487 {dimension_numbers = #tpu.dot_dimension_numbers<[1], [0], [0], [1], [0, 0, 1, 1], [], []>} : vector<8x8xf32>, vector<8x32xf32>, vector<8x32xf32> -> vector<8x32xf32>
    %1336 = arith.addf %1315, %1335 : vector<8x32xf32>
    %1337 = vector.extract_strided_slice %1270 {offsets = [0, 24], sizes = [8, 8], strides = [1, 1]} : vector<8x32xf32> to vector<8x8xf32>
    %1338 = vector.extract_strided_slice %1271 {offsets = [0, 24], sizes = [8, 8], strides = [1, 1]} : vector<8x32xf32> to vector<8x8xf32>
    %cst_488 = arith.constant dense<0.000000e+00> : vector<8x8xf32>
    %1339 = tpu.matmul %1337, %1338, %cst_488 {dimension_numbers = #tpu.dot_dimension_numbers<[1], [1], [0], [0], [0, 0, 1, 0], [], []>} : vector<8x8xf32>, vector<8x8xf32>, vector<8x8xf32> -> vector<8x8xf32>
    %cst_489 = arith.constant 0.353553385 : f32
    %1340 = vector.broadcast %cst_489 : f32 to vector<8x8xf32>
    %1341 = arith.mulf %1339, %1340 : vector<8x8xf32>
    %1342 = arith.addf %1341, %942 : vector<8x8xf32>
    %cst_490 = arith.constant dense<0xFF800000> : vector<8xf32>
    %1343 = vector.multi_reduction <maximumf>, %1342, %cst_490 [1] : vector<8x8xf32> to vector<8xf32>
    %1344 = vector.shape_cast %1343 : vector<8xf32> to vector<8x1xf32>
    %1345 = vector.broadcast %1344 : vector<8x1xf32> to vector<8x8xf32>
    %1346 = arith.subf %1342, %1345 : vector<8x8xf32>
    %1347 = math.exp %1346 : vector<8x8xf32>
    %cst_491 = arith.constant dense<0.000000e+00> : vector<8xf32>
    %1348 = vector.multi_reduction <add>, %1347, %cst_491 [1] : vector<8x8xf32> to vector<8xf32>
    %1349 = vector.shape_cast %1348 : vector<8xf32> to vector<8x1xf32>
    %1350 = tpu.reciprocal %1349 {approx = true} : vector<8x1xf32> -> vector<8x1xf32>
    %1351 = vector.broadcast %1350 : vector<8x1xf32> to vector<8x8xf32>
    %1352 = arith.mulf %1347, %1351 : vector<8x8xf32>
    %1353 = vector.extract_strided_slice %1272 {offsets = [0, 24], sizes = [8, 8], strides = [1, 1]} : vector<8x32xf32> to vector<8x8xf32>
    %cst_492 = arith.constant dense<0.000000e+00> : vector<8x8xf32>
    %1354 = tpu.matmul %1352, %1353, %cst_492 {dimension_numbers = #tpu.dot_dimension_numbers<[1], [0], [0], [1], [0, 0, 1, 1], [], []>} : vector<8x8xf32>, vector<8x8xf32>, vector<8x8xf32> -> vector<8x8xf32>
    %1355 = vector.extract_strided_slice %18 {offsets = [24, 0], sizes = [8, 32], strides = [1, 1]} : vector<32x32xf32> to vector<8x32xf32>
    %cst_493 = arith.constant dense<0.000000e+00> : vector<8x32xf32>
    %1356 = tpu.matmul %1354, %1355, %cst_493 {dimension_numbers = #tpu.dot_dimension_numbers<[1], [0], [0], [1], [0, 0, 1, 1], [], []>} : vector<8x8xf32>, vector<8x32xf32>, vector<8x32xf32> -> vector<8x32xf32>
    %1357 = arith.addf %1336, %1356 : vector<8x32xf32>
    %1358 = vector.broadcast %16 : vector<1x32xf32> to vector<8x32xf32>
    %1359 = arith.addf %1357, %1358 : vector<8x32xf32>
    %1360 = arith.addf %1266, %1359 : vector<8x32xf32>
    %cst_494 = arith.constant dense<0.000000e+00> : vector<8xf32>
    %1361 = vector.multi_reduction <add>, %1360, %cst_494 [1] : vector<8x32xf32> to vector<8xf32>
    %1362 = vector.shape_cast %1361 : vector<8xf32> to vector<8x1xf32>
    %cst_495 = arith.constant 3.200000e+01 : f32
    %1363 = vector.broadcast %cst_495 : f32 to vector<8x1xf32>
    %1364 = arith.divf %1362, %1363 : vector<8x1xf32>
    %1365 = vector.broadcast %1364 : vector<8x1xf32> to vector<8x32xf32>
    %1366 = arith.subf %1360, %1365 : vector<8x32xf32>
    %1367 = arith.mulf %1366, %1366 : vector<8x32xf32>
    %cst_496 = arith.constant dense<0.000000e+00> : vector<8xf32>
    %1368 = vector.multi_reduction <add>, %1367, %cst_496 [1] : vector<8x32xf32> to vector<8xf32>
    %1369 = vector.shape_cast %1368 : vector<8xf32> to vector<8x1xf32>
    %cst_497 = arith.constant 3.200000e+01 : f32
    %1370 = vector.broadcast %cst_497 : f32 to vector<8x1xf32>
    %1371 = arith.divf %1369, %1370 : vector<8x1xf32>
    %1372 = vector.broadcast %1364 : vector<8x1xf32> to vector<8x32xf32>
    %1373 = arith.subf %1360, %1372 : vector<8x32xf32>
    %cst_498 = arith.constant 9.99999974E-6 : f32
    %1374 = vector.broadcast %cst_498 : f32 to vector<8x1xf32>
    %1375 = arith.addf %1371, %1374 : vector<8x1xf32>
    %1376 = math.rsqrt %1375 : vector<8x1xf32>
    %1377 = vector.broadcast %1376 : vector<8x1xf32> to vector<8x32xf32>
    %1378 = arith.mulf %1373, %1377 : vector<8x32xf32>
    %1379 = vector.broadcast %11 : vector<1x32xf32> to vector<8x32xf32>
    %1380 = arith.mulf %1378, %1379 : vector<8x32xf32>
    %1381 = vector.broadcast %10 : vector<1x32xf32> to vector<8x32xf32>
    %1382 = arith.addf %1380, %1381 : vector<8x32xf32>
    %cst_499 = arith.constant dense<0.000000e+00> : vector<8x32xf32>
    %1383 = tpu.matmul %1382, %5, %cst_499 {dimension_numbers = #tpu.dot_dimension_numbers<[1], [0], [0], [1], [0, 0, 1, 1], [], []>} : vector<8x32xf32>, vector<32x32xf32>, vector<8x32xf32> -> vector<8x32xf32>
    %1384 = vector.broadcast %2 : vector<1x32xf32> to vector<8x32xf32>
    %1385 = arith.addf %1383, %1384 : vector<8x32xf32>
    %cst_500 = arith.constant dense<0.000000e+00> : vector<8x64xf32>
    %1386 = tpu.matmul %1255, %3, %cst_500 {dimension_numbers = #tpu.dot_dimension_numbers<[1], [0], [0], [1], [0, 0, 1, 1], [], []>} : vector<8x32xf32>, vector<32x64xf32>, vector<8x64xf32> -> vector<8x64xf32>
    %1387 = vector.broadcast %0 : vector<1x64xf32> to vector<8x64xf32>
    %1388 = arith.addf %1386, %1387 : vector<8x64xf32>
    %1389 = vector.extract_strided_slice %1388 {offsets = [0, 0], sizes = [8, 32], strides = [1, 1]} : vector<8x64xf32> to vector<8x32xf32>
    %1390 = vector.extract_strided_slice %1388 {offsets = [0, 32], sizes = [8, 32], strides = [1, 1]} : vector<8x64xf32> to vector<8x32xf32>
    %cst_501 = arith.constant 0.000000e+00 : f32
    %1391 = vector.broadcast %cst_501 : f32 to vector<8x32xf32>
    %1392 = vector.extract_strided_slice %1385 {offsets = [0, 0], sizes = [8, 8], strides = [1, 1]} : vector<8x32xf32> to vector<8x8xf32>
    %1393 = vector.extract_strided_slice %1389 {offsets = [0, 0], sizes = [8, 8], strides = [1, 1]} : vector<8x32xf32> to vector<8x8xf32>
    %cst_502 = arith.constant dense<0.000000e+00> : vector<8x8xf32>
    %1394 = tpu.matmul %1392, %1393, %cst_502 {dimension_numbers = #tpu.dot_dimension_numbers<[1], [1], [0], [0], [0, 0, 1, 0], [], []>} : vector<8x8xf32>, vector<8x8xf32>, vector<8x8xf32> -> vector<8x8xf32>
    %cst_503 = arith.constant 0.353553385 : f32
    %1395 = vector.broadcast %cst_503 : f32 to vector<8x8xf32>
    %1396 = arith.mulf %1394, %1395 : vector<8x8xf32>
    %1397 = vector.broadcast %940 : vector<1x8xf32> to vector<8x8xf32>
    %1398 = arith.addf %1396, %1397 : vector<8x8xf32>
    %cst_504 = arith.constant dense<0xFF800000> : vector<8xf32>
    %1399 = vector.multi_reduction <maximumf>, %1398, %cst_504 [1] : vector<8x8xf32> to vector<8xf32>
    %1400 = vector.shape_cast %1399 : vector<8xf32> to vector<8x1xf32>
    %1401 = vector.broadcast %1400 : vector<8x1xf32> to vector<8x8xf32>
    %1402 = arith.subf %1398, %1401 : vector<8x8xf32>
    %1403 = math.exp %1402 : vector<8x8xf32>
    %cst_505 = arith.constant dense<0.000000e+00> : vector<8xf32>
    %1404 = vector.multi_reduction <add>, %1403, %cst_505 [1] : vector<8x8xf32> to vector<8xf32>
    %1405 = vector.shape_cast %1404 : vector<8xf32> to vector<8x1xf32>
    %1406 = tpu.reciprocal %1405 {approx = true} : vector<8x1xf32> -> vector<8x1xf32>
    %1407 = vector.broadcast %1406 : vector<8x1xf32> to vector<8x8xf32>
    %1408 = arith.mulf %1403, %1407 : vector<8x8xf32>
    %1409 = vector.extract_strided_slice %1390 {offsets = [0, 0], sizes = [8, 8], strides = [1, 1]} : vector<8x32xf32> to vector<8x8xf32>
    %cst_506 = arith.constant dense<0.000000e+00> : vector<8x8xf32>
    %1410 = tpu.matmul %1408, %1409, %cst_506 {dimension_numbers = #tpu.dot_dimension_numbers<[1], [0], [0], [1], [0, 0, 1, 1], [], []>} : vector<8x8xf32>, vector<8x8xf32>, vector<8x8xf32> -> vector<8x8xf32>
    %1411 = vector.extract_strided_slice %4 {offsets = [0, 0], sizes = [8, 32], strides = [1, 1]} : vector<32x32xf32> to vector<8x32xf32>
    %cst_507 = arith.constant dense<0.000000e+00> : vector<8x32xf32>
    %1412 = tpu.matmul %1410, %1411, %cst_507 {dimension_numbers = #tpu.dot_dimension_numbers<[1], [0], [0], [1], [0, 0, 1, 1], [], []>} : vector<8x8xf32>, vector<8x32xf32>, vector<8x32xf32> -> vector<8x32xf32>
    %1413 = arith.addf %1391, %1412 : vector<8x32xf32>
    %1414 = vector.extract_strided_slice %1385 {offsets = [0, 8], sizes = [8, 8], strides = [1, 1]} : vector<8x32xf32> to vector<8x8xf32>
    %1415 = vector.extract_strided_slice %1389 {offsets = [0, 8], sizes = [8, 8], strides = [1, 1]} : vector<8x32xf32> to vector<8x8xf32>
    %cst_508 = arith.constant dense<0.000000e+00> : vector<8x8xf32>
    %1416 = tpu.matmul %1414, %1415, %cst_508 {dimension_numbers = #tpu.dot_dimension_numbers<[1], [1], [0], [0], [0, 0, 1, 0], [], []>} : vector<8x8xf32>, vector<8x8xf32>, vector<8x8xf32> -> vector<8x8xf32>
    %cst_509 = arith.constant 0.353553385 : f32
    %1417 = vector.broadcast %cst_509 : f32 to vector<8x8xf32>
    %1418 = arith.mulf %1416, %1417 : vector<8x8xf32>
    %1419 = vector.broadcast %940 : vector<1x8xf32> to vector<8x8xf32>
    %1420 = arith.addf %1418, %1419 : vector<8x8xf32>
    %cst_510 = arith.constant dense<0xFF800000> : vector<8xf32>
    %1421 = vector.multi_reduction <maximumf>, %1420, %cst_510 [1] : vector<8x8xf32> to vector<8xf32>
    %1422 = vector.shape_cast %1421 : vector<8xf32> to vector<8x1xf32>
    %1423 = vector.broadcast %1422 : vector<8x1xf32> to vector<8x8xf32>
    %1424 = arith.subf %1420, %1423 : vector<8x8xf32>
    %1425 = math.exp %1424 : vector<8x8xf32>
    %cst_511 = arith.constant dense<0.000000e+00> : vector<8xf32>
    %1426 = vector.multi_reduction <add>, %1425, %cst_511 [1] : vector<8x8xf32> to vector<8xf32>
    %1427 = vector.shape_cast %1426 : vector<8xf32> to vector<8x1xf32>
    %1428 = tpu.reciprocal %1427 {approx = true} : vector<8x1xf32> -> vector<8x1xf32>
    %1429 = vector.broadcast %1428 : vector<8x1xf32> to vector<8x8xf32>
    %1430 = arith.mulf %1425, %1429 : vector<8x8xf32>
    %1431 = vector.extract_strided_slice %1390 {offsets = [0, 8], sizes = [8, 8], strides = [1, 1]} : vector<8x32xf32> to vector<8x8xf32>
    %cst_512 = arith.constant dense<0.000000e+00> : vector<8x8xf32>
    %1432 = tpu.matmul %1430, %1431, %cst_512 {dimension_numbers = #tpu.dot_dimension_numbers<[1], [0], [0], [1], [0, 0, 1, 1], [], []>} : vector<8x8xf32>, vector<8x8xf32>, vector<8x8xf32> -> vector<8x8xf32>
    %1433 = vector.extract_strided_slice %4 {offsets = [8, 0], sizes = [8, 32], strides = [1, 1]} : vector<32x32xf32> to vector<8x32xf32>
    %cst_513 = arith.constant dense<0.000000e+00> : vector<8x32xf32>
    %1434 = tpu.matmul %1432, %1433, %cst_513 {dimension_numbers = #tpu.dot_dimension_numbers<[1], [0], [0], [1], [0, 0, 1, 1], [], []>} : vector<8x8xf32>, vector<8x32xf32>, vector<8x32xf32> -> vector<8x32xf32>
    %1435 = arith.addf %1413, %1434 : vector<8x32xf32>
    %1436 = vector.extract_strided_slice %1385 {offsets = [0, 16], sizes = [8, 8], strides = [1, 1]} : vector<8x32xf32> to vector<8x8xf32>
    %1437 = vector.extract_strided_slice %1389 {offsets = [0, 16], sizes = [8, 8], strides = [1, 1]} : vector<8x32xf32> to vector<8x8xf32>
    %cst_514 = arith.constant dense<0.000000e+00> : vector<8x8xf32>
    %1438 = tpu.matmul %1436, %1437, %cst_514 {dimension_numbers = #tpu.dot_dimension_numbers<[1], [1], [0], [0], [0, 0, 1, 0], [], []>} : vector<8x8xf32>, vector<8x8xf32>, vector<8x8xf32> -> vector<8x8xf32>
    %cst_515 = arith.constant 0.353553385 : f32
    %1439 = vector.broadcast %cst_515 : f32 to vector<8x8xf32>
    %1440 = arith.mulf %1438, %1439 : vector<8x8xf32>
    %1441 = vector.broadcast %940 : vector<1x8xf32> to vector<8x8xf32>
    %1442 = arith.addf %1440, %1441 : vector<8x8xf32>
    %cst_516 = arith.constant dense<0xFF800000> : vector<8xf32>
    %1443 = vector.multi_reduction <maximumf>, %1442, %cst_516 [1] : vector<8x8xf32> to vector<8xf32>
    %1444 = vector.shape_cast %1443 : vector<8xf32> to vector<8x1xf32>
    %1445 = vector.broadcast %1444 : vector<8x1xf32> to vector<8x8xf32>
    %1446 = arith.subf %1442, %1445 : vector<8x8xf32>
    %1447 = math.exp %1446 : vector<8x8xf32>
    %cst_517 = arith.constant dense<0.000000e+00> : vector<8xf32>
    %1448 = vector.multi_reduction <add>, %1447, %cst_517 [1] : vector<8x8xf32> to vector<8xf32>
    %1449 = vector.shape_cast %1448 : vector<8xf32> to vector<8x1xf32>
    %1450 = tpu.reciprocal %1449 {approx = true} : vector<8x1xf32> -> vector<8x1xf32>
    %1451 = vector.broadcast %1450 : vector<8x1xf32> to vector<8x8xf32>
    %1452 = arith.mulf %1447, %1451 : vector<8x8xf32>
    %1453 = vector.extract_strided_slice %1390 {offsets = [0, 16], sizes = [8, 8], strides = [1, 1]} : vector<8x32xf32> to vector<8x8xf32>
    %cst_518 = arith.constant dense<0.000000e+00> : vector<8x8xf32>
    %1454 = tpu.matmul %1452, %1453, %cst_518 {dimension_numbers = #tpu.dot_dimension_numbers<[1], [0], [0], [1], [0, 0, 1, 1], [], []>} : vector<8x8xf32>, vector<8x8xf32>, vector<8x8xf32> -> vector<8x8xf32>
    %1455 = vector.extract_strided_slice %4 {offsets = [16, 0], sizes = [8, 32], strides = [1, 1]} : vector<32x32xf32> to vector<8x32xf32>
    %cst_519 = arith.constant dense<0.000000e+00> : vector<8x32xf32>
    %1456 = tpu.matmul %1454, %1455, %cst_519 {dimension_numbers = #tpu.dot_dimension_numbers<[1], [0], [0], [1], [0, 0, 1, 1], [], []>} : vector<8x8xf32>, vector<8x32xf32>, vector<8x32xf32> -> vector<8x32xf32>
    %1457 = arith.addf %1435, %1456 : vector<8x32xf32>
    %1458 = vector.extract_strided_slice %1385 {offsets = [0, 24], sizes = [8, 8], strides = [1, 1]} : vector<8x32xf32> to vector<8x8xf32>
    %1459 = vector.extract_strided_slice %1389 {offsets = [0, 24], sizes = [8, 8], strides = [1, 1]} : vector<8x32xf32> to vector<8x8xf32>
    %cst_520 = arith.constant dense<0.000000e+00> : vector<8x8xf32>
    %1460 = tpu.matmul %1458, %1459, %cst_520 {dimension_numbers = #tpu.dot_dimension_numbers<[1], [1], [0], [0], [0, 0, 1, 0], [], []>} : vector<8x8xf32>, vector<8x8xf32>, vector<8x8xf32> -> vector<8x8xf32>
    %cst_521 = arith.constant 0.353553385 : f32
    %1461 = vector.broadcast %cst_521 : f32 to vector<8x8xf32>
    %1462 = arith.mulf %1460, %1461 : vector<8x8xf32>
    %1463 = vector.broadcast %940 : vector<1x8xf32> to vector<8x8xf32>
    %1464 = arith.addf %1462, %1463 : vector<8x8xf32>
    %cst_522 = arith.constant dense<0xFF800000> : vector<8xf32>
    %1465 = vector.multi_reduction <maximumf>, %1464, %cst_522 [1] : vector<8x8xf32> to vector<8xf32>
    %1466 = vector.shape_cast %1465 : vector<8xf32> to vector<8x1xf32>
    %1467 = vector.broadcast %1466 : vector<8x1xf32> to vector<8x8xf32>
    %1468 = arith.subf %1464, %1467 : vector<8x8xf32>
    %1469 = math.exp %1468 : vector<8x8xf32>
    %cst_523 = arith.constant dense<0.000000e+00> : vector<8xf32>
    %1470 = vector.multi_reduction <add>, %1469, %cst_523 [1] : vector<8x8xf32> to vector<8xf32>
    %1471 = vector.shape_cast %1470 : vector<8xf32> to vector<8x1xf32>
    %1472 = tpu.reciprocal %1471 {approx = true} : vector<8x1xf32> -> vector<8x1xf32>
    %1473 = vector.broadcast %1472 : vector<8x1xf32> to vector<8x8xf32>
    %1474 = arith.mulf %1469, %1473 : vector<8x8xf32>
    %1475 = vector.extract_strided_slice %1390 {offsets = [0, 24], sizes = [8, 8], strides = [1, 1]} : vector<8x32xf32> to vector<8x8xf32>
    %cst_524 = arith.constant dense<0.000000e+00> : vector<8x8xf32>
    %1476 = tpu.matmul %1474, %1475, %cst_524 {dimension_numbers = #tpu.dot_dimension_numbers<[1], [0], [0], [1], [0, 0, 1, 1], [], []>} : vector<8x8xf32>, vector<8x8xf32>, vector<8x8xf32> -> vector<8x8xf32>
    %1477 = vector.extract_strided_slice %4 {offsets = [24, 0], sizes = [8, 32], strides = [1, 1]} : vector<32x32xf32> to vector<8x32xf32>
    %cst_525 = arith.constant dense<0.000000e+00> : vector<8x32xf32>
    %1478 = tpu.matmul %1476, %1477, %cst_525 {dimension_numbers = #tpu.dot_dimension_numbers<[1], [0], [0], [1], [0, 0, 1, 1], [], []>} : vector<8x8xf32>, vector<8x32xf32>, vector<8x32xf32> -> vector<8x32xf32>
    %1479 = arith.addf %1457, %1478 : vector<8x32xf32>
    %1480 = vector.broadcast %1 : vector<1x32xf32> to vector<8x32xf32>
    %1481 = arith.addf %1479, %1480 : vector<8x32xf32>
    %1482 = arith.addf %1382, %1481 : vector<8x32xf32>
    %cst_526 = arith.constant dense<0.000000e+00> : vector<8xf32>
    %1483 = vector.multi_reduction <add>, %1482, %cst_526 [1] : vector<8x32xf32> to vector<8xf32>
    %1484 = vector.shape_cast %1483 : vector<8xf32> to vector<8x1xf32>
    %cst_527 = arith.constant 3.200000e+01 : f32
    %1485 = vector.broadcast %cst_527 : f32 to vector<8x1xf32>
    %1486 = arith.divf %1484, %1485 : vector<8x1xf32>
    %1487 = vector.broadcast %1486 : vector<8x1xf32> to vector<8x32xf32>
    %1488 = arith.subf %1482, %1487 : vector<8x32xf32>
    %1489 = arith.mulf %1488, %1488 : vector<8x32xf32>
    %cst_528 = arith.constant dense<0.000000e+00> : vector<8xf32>
    %1490 = vector.multi_reduction <add>, %1489, %cst_528 [1] : vector<8x32xf32> to vector<8xf32>
    %1491 = vector.shape_cast %1490 : vector<8xf32> to vector<8x1xf32>
    %cst_529 = arith.constant 3.200000e+01 : f32
    %1492 = vector.broadcast %cst_529 : f32 to vector<8x1xf32>
    %1493 = arith.divf %1491, %1492 : vector<8x1xf32>
    %1494 = vector.broadcast %1486 : vector<8x1xf32> to vector<8x32xf32>
    %1495 = arith.subf %1482, %1494 : vector<8x32xf32>
    %cst_530 = arith.constant 9.99999974E-6 : f32
    %1496 = vector.broadcast %cst_530 : f32 to vector<8x1xf32>
    %1497 = arith.addf %1493, %1496 : vector<8x1xf32>
    %1498 = math.rsqrt %1497 : vector<8x1xf32>
    %1499 = vector.broadcast %1498 : vector<8x1xf32> to vector<8x32xf32>
    %1500 = arith.mulf %1495, %1499 : vector<8x32xf32>
    %1501 = vector.broadcast %13 : vector<1x32xf32> to vector<8x32xf32>
    %1502 = arith.mulf %1500, %1501 : vector<8x32xf32>
    %1503 = vector.broadcast %12 : vector<1x32xf32> to vector<8x32xf32>
    %1504 = arith.addf %1502, %1503 : vector<8x32xf32>
    %cst_531 = arith.constant dense<0.000000e+00> : vector<8x64xf32>
    %1505 = tpu.matmul %1504, %8, %cst_531 {dimension_numbers = #tpu.dot_dimension_numbers<[1], [0], [0], [1], [0, 0, 1, 1], [], []>} : vector<8x32xf32>, vector<32x64xf32>, vector<8x64xf32> -> vector<8x64xf32>
    %1506 = vector.broadcast %6 : vector<1x64xf32> to vector<8x64xf32>
    %1507 = arith.addf %1505, %1506 : vector<8x64xf32>
    %cst_532 = arith.constant 0.000000e+00 : f32
    %1508 = vector.broadcast %cst_532 : f32 to vector<8x64xf32>
    %1509 = arith.maximumf %1507, %1508 : vector<8x64xf32>
    %cst_533 = arith.constant dense<0.000000e+00> : vector<8x32xf32>
    %1510 = tpu.matmul %1509, %9, %cst_533 {dimension_numbers = #tpu.dot_dimension_numbers<[1], [0], [0], [1], [0, 0, 1, 1], [], []>} : vector<8x64xf32>, vector<64x32xf32>, vector<8x32xf32> -> vector<8x32xf32>
    %1511 = vector.broadcast %7 : vector<1x32xf32> to vector<8x32xf32>
    %1512 = arith.addf %1510, %1511 : vector<8x32xf32>
    %1513 = arith.addf %1504, %1512 : vector<8x32xf32>
    %cst_534 = arith.constant dense<0.000000e+00> : vector<8xf32>
    %1514 = vector.multi_reduction <add>, %1513, %cst_534 [1] : vector<8x32xf32> to vector<8xf32>
    %1515 = vector.shape_cast %1514 : vector<8xf32> to vector<8x1xf32>
    %cst_535 = arith.constant 3.200000e+01 : f32
    %1516 = vector.broadcast %cst_535 : f32 to vector<8x1xf32>
    %1517 = arith.divf %1515, %1516 : vector<8x1xf32>
    %1518 = vector.broadcast %1517 : vector<8x1xf32> to vector<8x32xf32>
    %1519 = arith.subf %1513, %1518 : vector<8x32xf32>
    %1520 = arith.mulf %1519, %1519 : vector<8x32xf32>
    %cst_536 = arith.constant dense<0.000000e+00> : vector<8xf32>
    %1521 = vector.multi_reduction <add>, %1520, %cst_536 [1] : vector<8x32xf32> to vector<8xf32>
    %1522 = vector.shape_cast %1521 : vector<8xf32> to vector<8x1xf32>
    %cst_537 = arith.constant 3.200000e+01 : f32
    %1523 = vector.broadcast %cst_537 : f32 to vector<8x1xf32>
    %1524 = arith.divf %1522, %1523 : vector<8x1xf32>
    %1525 = vector.broadcast %1517 : vector<8x1xf32> to vector<8x32xf32>
    %1526 = arith.subf %1513, %1525 : vector<8x32xf32>
    %cst_538 = arith.constant 9.99999974E-6 : f32
    %1527 = vector.broadcast %cst_538 : f32 to vector<8x1xf32>
    %1528 = arith.addf %1524, %1527 : vector<8x1xf32>
    %1529 = math.rsqrt %1528 : vector<8x1xf32>
    %1530 = vector.broadcast %1529 : vector<8x1xf32> to vector<8x32xf32>
    %1531 = arith.mulf %1526, %1530 : vector<8x32xf32>
    %1532 = vector.broadcast %15 : vector<1x32xf32> to vector<8x32xf32>
    %1533 = arith.mulf %1531, %1532 : vector<8x32xf32>
    %1534 = vector.broadcast %14 : vector<1x32xf32> to vector<8x32xf32>
    %1535 = arith.addf %1533, %1534 : vector<8x32xf32>
    %cst_539 = arith.constant dense<0.000000e+00> : vector<8x96xf32>
    %1536 = tpu.matmul %1535, %39, %cst_539 {dimension_numbers = #tpu.dot_dimension_numbers<[1], [0], [0], [1], [0, 0, 1, 1], [], []>} : vector<8x32xf32>, vector<32x96xf32>, vector<8x96xf32> -> vector<8x96xf32>
    %1537 = vector.broadcast %37 : vector<1x96xf32> to vector<8x96xf32>
    %1538 = arith.addf %1536, %1537 : vector<8x96xf32>
    %1539 = vector.extract_strided_slice %1538 {offsets = [0, 0], sizes = [8, 32], strides = [1, 1]} : vector<8x96xf32> to vector<8x32xf32>
    %1540 = vector.extract_strided_slice %1538 {offsets = [0, 32], sizes = [8, 32], strides = [1, 1]} : vector<8x96xf32> to vector<8x32xf32>
    %1541 = vector.extract_strided_slice %1538 {offsets = [0, 64], sizes = [8, 32], strides = [1, 1]} : vector<8x96xf32> to vector<8x32xf32>
    %cst_540 = arith.constant 0.000000e+00 : f32
    %1542 = vector.broadcast %cst_540 : f32 to vector<8x32xf32>
    %1543 = vector.extract_strided_slice %1539 {offsets = [0, 0], sizes = [8, 8], strides = [1, 1]} : vector<8x32xf32> to vector<8x8xf32>
    %1544 = vector.extract_strided_slice %1540 {offsets = [0, 0], sizes = [8, 8], strides = [1, 1]} : vector<8x32xf32> to vector<8x8xf32>
    %cst_541 = arith.constant dense<0.000000e+00> : vector<8x8xf32>
    %1545 = tpu.matmul %1543, %1544, %cst_541 {dimension_numbers = #tpu.dot_dimension_numbers<[1], [1], [0], [0], [0, 0, 1, 0], [], []>} : vector<8x8xf32>, vector<8x8xf32>, vector<8x8xf32> -> vector<8x8xf32>
    %cst_542 = arith.constant 0.353553385 : f32
    %1546 = vector.broadcast %cst_542 : f32 to vector<8x8xf32>
    %1547 = arith.mulf %1545, %1546 : vector<8x8xf32>
    %1548 = arith.addf %1547, %942 : vector<8x8xf32>
    %cst_543 = arith.constant dense<0xFF800000> : vector<8xf32>
    %1549 = vector.multi_reduction <maximumf>, %1548, %cst_543 [1] : vector<8x8xf32> to vector<8xf32>
    %1550 = vector.shape_cast %1549 : vector<8xf32> to vector<8x1xf32>
    %1551 = vector.broadcast %1550 : vector<8x1xf32> to vector<8x8xf32>
    %1552 = arith.subf %1548, %1551 : vector<8x8xf32>
    %1553 = math.exp %1552 : vector<8x8xf32>
    %cst_544 = arith.constant dense<0.000000e+00> : vector<8xf32>
    %1554 = vector.multi_reduction <add>, %1553, %cst_544 [1] : vector<8x8xf32> to vector<8xf32>
    %1555 = vector.shape_cast %1554 : vector<8xf32> to vector<8x1xf32>
    %1556 = tpu.reciprocal %1555 {approx = true} : vector<8x1xf32> -> vector<8x1xf32>
    %1557 = vector.broadcast %1556 : vector<8x1xf32> to vector<8x8xf32>
    %1558 = arith.mulf %1553, %1557 : vector<8x8xf32>
    %1559 = vector.extract_strided_slice %1541 {offsets = [0, 0], sizes = [8, 8], strides = [1, 1]} : vector<8x32xf32> to vector<8x8xf32>
    %cst_545 = arith.constant dense<0.000000e+00> : vector<8x8xf32>
    %1560 = tpu.matmul %1558, %1559, %cst_545 {dimension_numbers = #tpu.dot_dimension_numbers<[1], [0], [0], [1], [0, 0, 1, 1], [], []>} : vector<8x8xf32>, vector<8x8xf32>, vector<8x8xf32> -> vector<8x8xf32>
    %1561 = vector.extract_strided_slice %38 {offsets = [0, 0], sizes = [8, 32], strides = [1, 1]} : vector<32x32xf32> to vector<8x32xf32>
    %cst_546 = arith.constant dense<0.000000e+00> : vector<8x32xf32>
    %1562 = tpu.matmul %1560, %1561, %cst_546 {dimension_numbers = #tpu.dot_dimension_numbers<[1], [0], [0], [1], [0, 0, 1, 1], [], []>} : vector<8x8xf32>, vector<8x32xf32>, vector<8x32xf32> -> vector<8x32xf32>
    %1563 = arith.addf %1542, %1562 : vector<8x32xf32>
    %1564 = vector.extract_strided_slice %1539 {offsets = [0, 8], sizes = [8, 8], strides = [1, 1]} : vector<8x32xf32> to vector<8x8xf32>
    %1565 = vector.extract_strided_slice %1540 {offsets = [0, 8], sizes = [8, 8], strides = [1, 1]} : vector<8x32xf32> to vector<8x8xf32>
    %cst_547 = arith.constant dense<0.000000e+00> : vector<8x8xf32>
    %1566 = tpu.matmul %1564, %1565, %cst_547 {dimension_numbers = #tpu.dot_dimension_numbers<[1], [1], [0], [0], [0, 0, 1, 0], [], []>} : vector<8x8xf32>, vector<8x8xf32>, vector<8x8xf32> -> vector<8x8xf32>
    %cst_548 = arith.constant 0.353553385 : f32
    %1567 = vector.broadcast %cst_548 : f32 to vector<8x8xf32>
    %1568 = arith.mulf %1566, %1567 : vector<8x8xf32>
    %1569 = arith.addf %1568, %942 : vector<8x8xf32>
    %cst_549 = arith.constant dense<0xFF800000> : vector<8xf32>
    %1570 = vector.multi_reduction <maximumf>, %1569, %cst_549 [1] : vector<8x8xf32> to vector<8xf32>
    %1571 = vector.shape_cast %1570 : vector<8xf32> to vector<8x1xf32>
    %1572 = vector.broadcast %1571 : vector<8x1xf32> to vector<8x8xf32>
    %1573 = arith.subf %1569, %1572 : vector<8x8xf32>
    %1574 = math.exp %1573 : vector<8x8xf32>
    %cst_550 = arith.constant dense<0.000000e+00> : vector<8xf32>
    %1575 = vector.multi_reduction <add>, %1574, %cst_550 [1] : vector<8x8xf32> to vector<8xf32>
    %1576 = vector.shape_cast %1575 : vector<8xf32> to vector<8x1xf32>
    %1577 = tpu.reciprocal %1576 {approx = true} : vector<8x1xf32> -> vector<8x1xf32>
    %1578 = vector.broadcast %1577 : vector<8x1xf32> to vector<8x8xf32>
    %1579 = arith.mulf %1574, %1578 : vector<8x8xf32>
    %1580 = vector.extract_strided_slice %1541 {offsets = [0, 8], sizes = [8, 8], strides = [1, 1]} : vector<8x32xf32> to vector<8x8xf32>
    %cst_551 = arith.constant dense<0.000000e+00> : vector<8x8xf32>
    %1581 = tpu.matmul %1579, %1580, %cst_551 {dimension_numbers = #tpu.dot_dimension_numbers<[1], [0], [0], [1], [0, 0, 1, 1], [], []>} : vector<8x8xf32>, vector<8x8xf32>, vector<8x8xf32> -> vector<8x8xf32>
    %1582 = vector.extract_strided_slice %38 {offsets = [8, 0], sizes = [8, 32], strides = [1, 1]} : vector<32x32xf32> to vector<8x32xf32>
    %cst_552 = arith.constant dense<0.000000e+00> : vector<8x32xf32>
    %1583 = tpu.matmul %1581, %1582, %cst_552 {dimension_numbers = #tpu.dot_dimension_numbers<[1], [0], [0], [1], [0, 0, 1, 1], [], []>} : vector<8x8xf32>, vector<8x32xf32>, vector<8x32xf32> -> vector<8x32xf32>
    %1584 = arith.addf %1563, %1583 : vector<8x32xf32>
    %1585 = vector.extract_strided_slice %1539 {offsets = [0, 16], sizes = [8, 8], strides = [1, 1]} : vector<8x32xf32> to vector<8x8xf32>
    %1586 = vector.extract_strided_slice %1540 {offsets = [0, 16], sizes = [8, 8], strides = [1, 1]} : vector<8x32xf32> to vector<8x8xf32>
    %cst_553 = arith.constant dense<0.000000e+00> : vector<8x8xf32>
    %1587 = tpu.matmul %1585, %1586, %cst_553 {dimension_numbers = #tpu.dot_dimension_numbers<[1], [1], [0], [0], [0, 0, 1, 0], [], []>} : vector<8x8xf32>, vector<8x8xf32>, vector<8x8xf32> -> vector<8x8xf32>
    %cst_554 = arith.constant 0.353553385 : f32
    %1588 = vector.broadcast %cst_554 : f32 to vector<8x8xf32>
    %1589 = arith.mulf %1587, %1588 : vector<8x8xf32>
    %1590 = arith.addf %1589, %942 : vector<8x8xf32>
    %cst_555 = arith.constant dense<0xFF800000> : vector<8xf32>
    %1591 = vector.multi_reduction <maximumf>, %1590, %cst_555 [1] : vector<8x8xf32> to vector<8xf32>
    %1592 = vector.shape_cast %1591 : vector<8xf32> to vector<8x1xf32>
    %1593 = vector.broadcast %1592 : vector<8x1xf32> to vector<8x8xf32>
    %1594 = arith.subf %1590, %1593 : vector<8x8xf32>
    %1595 = math.exp %1594 : vector<8x8xf32>
    %cst_556 = arith.constant dense<0.000000e+00> : vector<8xf32>
    %1596 = vector.multi_reduction <add>, %1595, %cst_556 [1] : vector<8x8xf32> to vector<8xf32>
    %1597 = vector.shape_cast %1596 : vector<8xf32> to vector<8x1xf32>
    %1598 = tpu.reciprocal %1597 {approx = true} : vector<8x1xf32> -> vector<8x1xf32>
    %1599 = vector.broadcast %1598 : vector<8x1xf32> to vector<8x8xf32>
    %1600 = arith.mulf %1595, %1599 : vector<8x8xf32>
    %1601 = vector.extract_strided_slice %1541 {offsets = [0, 16], sizes = [8, 8], strides = [1, 1]} : vector<8x32xf32> to vector<8x8xf32>
    %cst_557 = arith.constant dense<0.000000e+00> : vector<8x8xf32>
    %1602 = tpu.matmul %1600, %1601, %cst_557 {dimension_numbers = #tpu.dot_dimension_numbers<[1], [0], [0], [1], [0, 0, 1, 1], [], []>} : vector<8x8xf32>, vector<8x8xf32>, vector<8x8xf32> -> vector<8x8xf32>
    %1603 = vector.extract_strided_slice %38 {offsets = [16, 0], sizes = [8, 32], strides = [1, 1]} : vector<32x32xf32> to vector<8x32xf32>
    %cst_558 = arith.constant dense<0.000000e+00> : vector<8x32xf32>
    %1604 = tpu.matmul %1602, %1603, %cst_558 {dimension_numbers = #tpu.dot_dimension_numbers<[1], [0], [0], [1], [0, 0, 1, 1], [], []>} : vector<8x8xf32>, vector<8x32xf32>, vector<8x32xf32> -> vector<8x32xf32>
    %1605 = arith.addf %1584, %1604 : vector<8x32xf32>
    %1606 = vector.extract_strided_slice %1539 {offsets = [0, 24], sizes = [8, 8], strides = [1, 1]} : vector<8x32xf32> to vector<8x8xf32>
    %1607 = vector.extract_strided_slice %1540 {offsets = [0, 24], sizes = [8, 8], strides = [1, 1]} : vector<8x32xf32> to vector<8x8xf32>
    %cst_559 = arith.constant dense<0.000000e+00> : vector<8x8xf32>
    %1608 = tpu.matmul %1606, %1607, %cst_559 {dimension_numbers = #tpu.dot_dimension_numbers<[1], [1], [0], [0], [0, 0, 1, 0], [], []>} : vector<8x8xf32>, vector<8x8xf32>, vector<8x8xf32> -> vector<8x8xf32>
    %cst_560 = arith.constant 0.353553385 : f32
    %1609 = vector.broadcast %cst_560 : f32 to vector<8x8xf32>
    %1610 = arith.mulf %1608, %1609 : vector<8x8xf32>
    %1611 = arith.addf %1610, %942 : vector<8x8xf32>
    %cst_561 = arith.constant dense<0xFF800000> : vector<8xf32>
    %1612 = vector.multi_reduction <maximumf>, %1611, %cst_561 [1] : vector<8x8xf32> to vector<8xf32>
    %1613 = vector.shape_cast %1612 : vector<8xf32> to vector<8x1xf32>
    %1614 = vector.broadcast %1613 : vector<8x1xf32> to vector<8x8xf32>
    %1615 = arith.subf %1611, %1614 : vector<8x8xf32>
    %1616 = math.exp %1615 : vector<8x8xf32>
    %cst_562 = arith.constant dense<0.000000e+00> : vector<8xf32>
    %1617 = vector.multi_reduction <add>, %1616, %cst_562 [1] : vector<8x8xf32> to vector<8xf32>
    %1618 = vector.shape_cast %1617 : vector<8xf32> to vector<8x1xf32>
    %1619 = tpu.reciprocal %1618 {approx = true} : vector<8x1xf32> -> vector<8x1xf32>
    %1620 = vector.broadcast %1619 : vector<8x1xf32> to vector<8x8xf32>
    %1621 = arith.mulf %1616, %1620 : vector<8x8xf32>
    %1622 = vector.extract_strided_slice %1541 {offsets = [0, 24], sizes = [8, 8], strides = [1, 1]} : vector<8x32xf32> to vector<8x8xf32>
    %cst_563 = arith.constant dense<0.000000e+00> : vector<8x8xf32>
    %1623 = tpu.matmul %1621, %1622, %cst_563 {dimension_numbers = #tpu.dot_dimension_numbers<[1], [0], [0], [1], [0, 0, 1, 1], [], []>} : vector<8x8xf32>, vector<8x8xf32>, vector<8x8xf32> -> vector<8x8xf32>
    %1624 = vector.extract_strided_slice %38 {offsets = [24, 0], sizes = [8, 32], strides = [1, 1]} : vector<32x32xf32> to vector<8x32xf32>
    %cst_564 = arith.constant dense<0.000000e+00> : vector<8x32xf32>
    %1625 = tpu.matmul %1623, %1624, %cst_564 {dimension_numbers = #tpu.dot_dimension_numbers<[1], [0], [0], [1], [0, 0, 1, 1], [], []>} : vector<8x8xf32>, vector<8x32xf32>, vector<8x32xf32> -> vector<8x32xf32>
    %1626 = arith.addf %1605, %1625 : vector<8x32xf32>
    %1627 = vector.broadcast %36 : vector<1x32xf32> to vector<8x32xf32>
    %1628 = arith.addf %1626, %1627 : vector<8x32xf32>
    %1629 = arith.addf %1535, %1628 : vector<8x32xf32>
    %cst_565 = arith.constant dense<0.000000e+00> : vector<8xf32>
    %1630 = vector.multi_reduction <add>, %1629, %cst_565 [1] : vector<8x32xf32> to vector<8xf32>
    %1631 = vector.shape_cast %1630 : vector<8xf32> to vector<8x1xf32>
    %cst_566 = arith.constant 3.200000e+01 : f32
    %1632 = vector.broadcast %cst_566 : f32 to vector<8x1xf32>
    %1633 = arith.divf %1631, %1632 : vector<8x1xf32>
    %1634 = vector.broadcast %1633 : vector<8x1xf32> to vector<8x32xf32>
    %1635 = arith.subf %1629, %1634 : vector<8x32xf32>
    %1636 = arith.mulf %1635, %1635 : vector<8x32xf32>
    %cst_567 = arith.constant dense<0.000000e+00> : vector<8xf32>
    %1637 = vector.multi_reduction <add>, %1636, %cst_567 [1] : vector<8x32xf32> to vector<8xf32>
    %1638 = vector.shape_cast %1637 : vector<8xf32> to vector<8x1xf32>
    %cst_568 = arith.constant 3.200000e+01 : f32
    %1639 = vector.broadcast %cst_568 : f32 to vector<8x1xf32>
    %1640 = arith.divf %1638, %1639 : vector<8x1xf32>
    %1641 = vector.broadcast %1633 : vector<8x1xf32> to vector<8x32xf32>
    %1642 = arith.subf %1629, %1641 : vector<8x32xf32>
    %cst_569 = arith.constant 9.99999974E-6 : f32
    %1643 = vector.broadcast %cst_569 : f32 to vector<8x1xf32>
    %1644 = arith.addf %1640, %1643 : vector<8x1xf32>
    %1645 = math.rsqrt %1644 : vector<8x1xf32>
    %1646 = vector.broadcast %1645 : vector<8x1xf32> to vector<8x32xf32>
    %1647 = arith.mulf %1642, %1646 : vector<8x32xf32>
    %1648 = vector.broadcast %31 : vector<1x32xf32> to vector<8x32xf32>
    %1649 = arith.mulf %1647, %1648 : vector<8x32xf32>
    %1650 = vector.broadcast %30 : vector<1x32xf32> to vector<8x32xf32>
    %1651 = arith.addf %1649, %1650 : vector<8x32xf32>
    %cst_570 = arith.constant dense<0.000000e+00> : vector<8x32xf32>
    %1652 = tpu.matmul %1651, %25, %cst_570 {dimension_numbers = #tpu.dot_dimension_numbers<[1], [0], [0], [1], [0, 0, 1, 1], [], []>} : vector<8x32xf32>, vector<32x32xf32>, vector<8x32xf32> -> vector<8x32xf32>
    %1653 = vector.broadcast %22 : vector<1x32xf32> to vector<8x32xf32>
    %1654 = arith.addf %1652, %1653 : vector<8x32xf32>
    %cst_571 = arith.constant dense<0.000000e+00> : vector<8x64xf32>
    %1655 = tpu.matmul %1255, %23, %cst_571 {dimension_numbers = #tpu.dot_dimension_numbers<[1], [0], [0], [1], [0, 0, 1, 1], [], []>} : vector<8x32xf32>, vector<32x64xf32>, vector<8x64xf32> -> vector<8x64xf32>
    %1656 = vector.broadcast %20 : vector<1x64xf32> to vector<8x64xf32>
    %1657 = arith.addf %1655, %1656 : vector<8x64xf32>
    %1658 = vector.extract_strided_slice %1657 {offsets = [0, 0], sizes = [8, 32], strides = [1, 1]} : vector<8x64xf32> to vector<8x32xf32>
    %1659 = vector.extract_strided_slice %1657 {offsets = [0, 32], sizes = [8, 32], strides = [1, 1]} : vector<8x64xf32> to vector<8x32xf32>
    %cst_572 = arith.constant 0.000000e+00 : f32
    %1660 = vector.broadcast %cst_572 : f32 to vector<8x32xf32>
    %1661 = vector.extract_strided_slice %1654 {offsets = [0, 0], sizes = [8, 8], strides = [1, 1]} : vector<8x32xf32> to vector<8x8xf32>
    %1662 = vector.extract_strided_slice %1658 {offsets = [0, 0], sizes = [8, 8], strides = [1, 1]} : vector<8x32xf32> to vector<8x8xf32>
    %cst_573 = arith.constant dense<0.000000e+00> : vector<8x8xf32>
    %1663 = tpu.matmul %1661, %1662, %cst_573 {dimension_numbers = #tpu.dot_dimension_numbers<[1], [1], [0], [0], [0, 0, 1, 0], [], []>} : vector<8x8xf32>, vector<8x8xf32>, vector<8x8xf32> -> vector<8x8xf32>
    %cst_574 = arith.constant 0.353553385 : f32
    %1664 = vector.broadcast %cst_574 : f32 to vector<8x8xf32>
    %1665 = arith.mulf %1663, %1664 : vector<8x8xf32>
    %1666 = vector.broadcast %940 : vector<1x8xf32> to vector<8x8xf32>
    %1667 = arith.addf %1665, %1666 : vector<8x8xf32>
    %cst_575 = arith.constant dense<0xFF800000> : vector<8xf32>
    %1668 = vector.multi_reduction <maximumf>, %1667, %cst_575 [1] : vector<8x8xf32> to vector<8xf32>
    %1669 = vector.shape_cast %1668 : vector<8xf32> to vector<8x1xf32>
    %1670 = vector.broadcast %1669 : vector<8x1xf32> to vector<8x8xf32>
    %1671 = arith.subf %1667, %1670 : vector<8x8xf32>
    %1672 = math.exp %1671 : vector<8x8xf32>
    %cst_576 = arith.constant dense<0.000000e+00> : vector<8xf32>
    %1673 = vector.multi_reduction <add>, %1672, %cst_576 [1] : vector<8x8xf32> to vector<8xf32>
    %1674 = vector.shape_cast %1673 : vector<8xf32> to vector<8x1xf32>
    %1675 = tpu.reciprocal %1674 {approx = true} : vector<8x1xf32> -> vector<8x1xf32>
    %1676 = vector.broadcast %1675 : vector<8x1xf32> to vector<8x8xf32>
    %1677 = arith.mulf %1672, %1676 : vector<8x8xf32>
    %1678 = vector.extract_strided_slice %1659 {offsets = [0, 0], sizes = [8, 8], strides = [1, 1]} : vector<8x32xf32> to vector<8x8xf32>
    %cst_577 = arith.constant dense<0.000000e+00> : vector<8x8xf32>
    %1679 = tpu.matmul %1677, %1678, %cst_577 {dimension_numbers = #tpu.dot_dimension_numbers<[1], [0], [0], [1], [0, 0, 1, 1], [], []>} : vector<8x8xf32>, vector<8x8xf32>, vector<8x8xf32> -> vector<8x8xf32>
    %1680 = vector.extract_strided_slice %24 {offsets = [0, 0], sizes = [8, 32], strides = [1, 1]} : vector<32x32xf32> to vector<8x32xf32>
    %cst_578 = arith.constant dense<0.000000e+00> : vector<8x32xf32>
    %1681 = tpu.matmul %1679, %1680, %cst_578 {dimension_numbers = #tpu.dot_dimension_numbers<[1], [0], [0], [1], [0, 0, 1, 1], [], []>} : vector<8x8xf32>, vector<8x32xf32>, vector<8x32xf32> -> vector<8x32xf32>
    %1682 = arith.addf %1660, %1681 : vector<8x32xf32>
    %1683 = vector.extract_strided_slice %1654 {offsets = [0, 8], sizes = [8, 8], strides = [1, 1]} : vector<8x32xf32> to vector<8x8xf32>
    %1684 = vector.extract_strided_slice %1658 {offsets = [0, 8], sizes = [8, 8], strides = [1, 1]} : vector<8x32xf32> to vector<8x8xf32>
    %cst_579 = arith.constant dense<0.000000e+00> : vector<8x8xf32>
    %1685 = tpu.matmul %1683, %1684, %cst_579 {dimension_numbers = #tpu.dot_dimension_numbers<[1], [1], [0], [0], [0, 0, 1, 0], [], []>} : vector<8x8xf32>, vector<8x8xf32>, vector<8x8xf32> -> vector<8x8xf32>
    %cst_580 = arith.constant 0.353553385 : f32
    %1686 = vector.broadcast %cst_580 : f32 to vector<8x8xf32>
    %1687 = arith.mulf %1685, %1686 : vector<8x8xf32>
    %1688 = vector.broadcast %940 : vector<1x8xf32> to vector<8x8xf32>
    %1689 = arith.addf %1687, %1688 : vector<8x8xf32>
    %cst_581 = arith.constant dense<0xFF800000> : vector<8xf32>
    %1690 = vector.multi_reduction <maximumf>, %1689, %cst_581 [1] : vector<8x8xf32> to vector<8xf32>
    %1691 = vector.shape_cast %1690 : vector<8xf32> to vector<8x1xf32>
    %1692 = vector.broadcast %1691 : vector<8x1xf32> to vector<8x8xf32>
    %1693 = arith.subf %1689, %1692 : vector<8x8xf32>
    %1694 = math.exp %1693 : vector<8x8xf32>
    %cst_582 = arith.constant dense<0.000000e+00> : vector<8xf32>
    %1695 = vector.multi_reduction <add>, %1694, %cst_582 [1] : vector<8x8xf32> to vector<8xf32>
    %1696 = vector.shape_cast %1695 : vector<8xf32> to vector<8x1xf32>
    %1697 = tpu.reciprocal %1696 {approx = true} : vector<8x1xf32> -> vector<8x1xf32>
    %1698 = vector.broadcast %1697 : vector<8x1xf32> to vector<8x8xf32>
    %1699 = arith.mulf %1694, %1698 : vector<8x8xf32>
    %1700 = vector.extract_strided_slice %1659 {offsets = [0, 8], sizes = [8, 8], strides = [1, 1]} : vector<8x32xf32> to vector<8x8xf32>
    %cst_583 = arith.constant dense<0.000000e+00> : vector<8x8xf32>
    %1701 = tpu.matmul %1699, %1700, %cst_583 {dimension_numbers = #tpu.dot_dimension_numbers<[1], [0], [0], [1], [0, 0, 1, 1], [], []>} : vector<8x8xf32>, vector<8x8xf32>, vector<8x8xf32> -> vector<8x8xf32>
    %1702 = vector.extract_strided_slice %24 {offsets = [8, 0], sizes = [8, 32], strides = [1, 1]} : vector<32x32xf32> to vector<8x32xf32>
    %cst_584 = arith.constant dense<0.000000e+00> : vector<8x32xf32>
    %1703 = tpu.matmul %1701, %1702, %cst_584 {dimension_numbers = #tpu.dot_dimension_numbers<[1], [0], [0], [1], [0, 0, 1, 1], [], []>} : vector<8x8xf32>, vector<8x32xf32>, vector<8x32xf32> -> vector<8x32xf32>
    %1704 = arith.addf %1682, %1703 : vector<8x32xf32>
    %1705 = vector.extract_strided_slice %1654 {offsets = [0, 16], sizes = [8, 8], strides = [1, 1]} : vector<8x32xf32> to vector<8x8xf32>
    %1706 = vector.extract_strided_slice %1658 {offsets = [0, 16], sizes = [8, 8], strides = [1, 1]} : vector<8x32xf32> to vector<8x8xf32>
    %cst_585 = arith.constant dense<0.000000e+00> : vector<8x8xf32>
    %1707 = tpu.matmul %1705, %1706, %cst_585 {dimension_numbers = #tpu.dot_dimension_numbers<[1], [1], [0], [0], [0, 0, 1, 0], [], []>} : vector<8x8xf32>, vector<8x8xf32>, vector<8x8xf32> -> vector<8x8xf32>
    %cst_586 = arith.constant 0.353553385 : f32
    %1708 = vector.broadcast %cst_586 : f32 to vector<8x8xf32>
    %1709 = arith.mulf %1707, %1708 : vector<8x8xf32>
    %1710 = vector.broadcast %940 : vector<1x8xf32> to vector<8x8xf32>
    %1711 = arith.addf %1709, %1710 : vector<8x8xf32>
    %cst_587 = arith.constant dense<0xFF800000> : vector<8xf32>
    %1712 = vector.multi_reduction <maximumf>, %1711, %cst_587 [1] : vector<8x8xf32> to vector<8xf32>
    %1713 = vector.shape_cast %1712 : vector<8xf32> to vector<8x1xf32>
    %1714 = vector.broadcast %1713 : vector<8x1xf32> to vector<8x8xf32>
    %1715 = arith.subf %1711, %1714 : vector<8x8xf32>
    %1716 = math.exp %1715 : vector<8x8xf32>
    %cst_588 = arith.constant dense<0.000000e+00> : vector<8xf32>
    %1717 = vector.multi_reduction <add>, %1716, %cst_588 [1] : vector<8x8xf32> to vector<8xf32>
    %1718 = vector.shape_cast %1717 : vector<8xf32> to vector<8x1xf32>
    %1719 = tpu.reciprocal %1718 {approx = true} : vector<8x1xf32> -> vector<8x1xf32>
    %1720 = vector.broadcast %1719 : vector<8x1xf32> to vector<8x8xf32>
    %1721 = arith.mulf %1716, %1720 : vector<8x8xf32>
    %1722 = vector.extract_strided_slice %1659 {offsets = [0, 16], sizes = [8, 8], strides = [1, 1]} : vector<8x32xf32> to vector<8x8xf32>
    %cst_589 = arith.constant dense<0.000000e+00> : vector<8x8xf32>
    %1723 = tpu.matmul %1721, %1722, %cst_589 {dimension_numbers = #tpu.dot_dimension_numbers<[1], [0], [0], [1], [0, 0, 1, 1], [], []>} : vector<8x8xf32>, vector<8x8xf32>, vector<8x8xf32> -> vector<8x8xf32>
    %1724 = vector.extract_strided_slice %24 {offsets = [16, 0], sizes = [8, 32], strides = [1, 1]} : vector<32x32xf32> to vector<8x32xf32>
    %cst_590 = arith.constant dense<0.000000e+00> : vector<8x32xf32>
    %1725 = tpu.matmul %1723, %1724, %cst_590 {dimension_numbers = #tpu.dot_dimension_numbers<[1], [0], [0], [1], [0, 0, 1, 1], [], []>} : vector<8x8xf32>, vector<8x32xf32>, vector<8x32xf32> -> vector<8x32xf32>
    %1726 = arith.addf %1704, %1725 : vector<8x32xf32>
    %1727 = vector.extract_strided_slice %1654 {offsets = [0, 24], sizes = [8, 8], strides = [1, 1]} : vector<8x32xf32> to vector<8x8xf32>
    %1728 = vector.extract_strided_slice %1658 {offsets = [0, 24], sizes = [8, 8], strides = [1, 1]} : vector<8x32xf32> to vector<8x8xf32>
    %cst_591 = arith.constant dense<0.000000e+00> : vector<8x8xf32>
    %1729 = tpu.matmul %1727, %1728, %cst_591 {dimension_numbers = #tpu.dot_dimension_numbers<[1], [1], [0], [0], [0, 0, 1, 0], [], []>} : vector<8x8xf32>, vector<8x8xf32>, vector<8x8xf32> -> vector<8x8xf32>
    %cst_592 = arith.constant 0.353553385 : f32
    %1730 = vector.broadcast %cst_592 : f32 to vector<8x8xf32>
    %1731 = arith.mulf %1729, %1730 : vector<8x8xf32>
    %1732 = vector.broadcast %940 : vector<1x8xf32> to vector<8x8xf32>
    %1733 = arith.addf %1731, %1732 : vector<8x8xf32>
    %cst_593 = arith.constant dense<0xFF800000> : vector<8xf32>
    %1734 = vector.multi_reduction <maximumf>, %1733, %cst_593 [1] : vector<8x8xf32> to vector<8xf32>
    %1735 = vector.shape_cast %1734 : vector<8xf32> to vector<8x1xf32>
    %1736 = vector.broadcast %1735 : vector<8x1xf32> to vector<8x8xf32>
    %1737 = arith.subf %1733, %1736 : vector<8x8xf32>
    %1738 = math.exp %1737 : vector<8x8xf32>
    %cst_594 = arith.constant dense<0.000000e+00> : vector<8xf32>
    %1739 = vector.multi_reduction <add>, %1738, %cst_594 [1] : vector<8x8xf32> to vector<8xf32>
    %1740 = vector.shape_cast %1739 : vector<8xf32> to vector<8x1xf32>
    %1741 = tpu.reciprocal %1740 {approx = true} : vector<8x1xf32> -> vector<8x1xf32>
    %1742 = vector.broadcast %1741 : vector<8x1xf32> to vector<8x8xf32>
    %1743 = arith.mulf %1738, %1742 : vector<8x8xf32>
    %1744 = vector.extract_strided_slice %1659 {offsets = [0, 24], sizes = [8, 8], strides = [1, 1]} : vector<8x32xf32> to vector<8x8xf32>
    %cst_595 = arith.constant dense<0.000000e+00> : vector<8x8xf32>
    %1745 = tpu.matmul %1743, %1744, %cst_595 {dimension_numbers = #tpu.dot_dimension_numbers<[1], [0], [0], [1], [0, 0, 1, 1], [], []>} : vector<8x8xf32>, vector<8x8xf32>, vector<8x8xf32> -> vector<8x8xf32>
    %1746 = vector.extract_strided_slice %24 {offsets = [24, 0], sizes = [8, 32], strides = [1, 1]} : vector<32x32xf32> to vector<8x32xf32>
    %cst_596 = arith.constant dense<0.000000e+00> : vector<8x32xf32>
    %1747 = tpu.matmul %1745, %1746, %cst_596 {dimension_numbers = #tpu.dot_dimension_numbers<[1], [0], [0], [1], [0, 0, 1, 1], [], []>} : vector<8x8xf32>, vector<8x32xf32>, vector<8x32xf32> -> vector<8x32xf32>
    %1748 = arith.addf %1726, %1747 : vector<8x32xf32>
    %1749 = vector.broadcast %21 : vector<1x32xf32> to vector<8x32xf32>
    %1750 = arith.addf %1748, %1749 : vector<8x32xf32>
    %1751 = arith.addf %1651, %1750 : vector<8x32xf32>
    %cst_597 = arith.constant dense<0.000000e+00> : vector<8xf32>
    %1752 = vector.multi_reduction <add>, %1751, %cst_597 [1] : vector<8x32xf32> to vector<8xf32>
    %1753 = vector.shape_cast %1752 : vector<8xf32> to vector<8x1xf32>
    %cst_598 = arith.constant 3.200000e+01 : f32
    %1754 = vector.broadcast %cst_598 : f32 to vector<8x1xf32>
    %1755 = arith.divf %1753, %1754 : vector<8x1xf32>
    %1756 = vector.broadcast %1755 : vector<8x1xf32> to vector<8x32xf32>
    %1757 = arith.subf %1751, %1756 : vector<8x32xf32>
    %1758 = arith.mulf %1757, %1757 : vector<8x32xf32>
    %cst_599 = arith.constant dense<0.000000e+00> : vector<8xf32>
    %1759 = vector.multi_reduction <add>, %1758, %cst_599 [1] : vector<8x32xf32> to vector<8xf32>
    %1760 = vector.shape_cast %1759 : vector<8xf32> to vector<8x1xf32>
    %cst_600 = arith.constant 3.200000e+01 : f32
    %1761 = vector.broadcast %cst_600 : f32 to vector<8x1xf32>
    %1762 = arith.divf %1760, %1761 : vector<8x1xf32>
    %1763 = vector.broadcast %1755 : vector<8x1xf32> to vector<8x32xf32>
    %1764 = arith.subf %1751, %1763 : vector<8x32xf32>
    %cst_601 = arith.constant 9.99999974E-6 : f32
    %1765 = vector.broadcast %cst_601 : f32 to vector<8x1xf32>
    %1766 = arith.addf %1762, %1765 : vector<8x1xf32>
    %1767 = math.rsqrt %1766 : vector<8x1xf32>
    %1768 = vector.broadcast %1767 : vector<8x1xf32> to vector<8x32xf32>
    %1769 = arith.mulf %1764, %1768 : vector<8x32xf32>
    %1770 = vector.broadcast %33 : vector<1x32xf32> to vector<8x32xf32>
    %1771 = arith.mulf %1769, %1770 : vector<8x32xf32>
    %1772 = vector.broadcast %32 : vector<1x32xf32> to vector<8x32xf32>
    %1773 = arith.addf %1771, %1772 : vector<8x32xf32>
    %cst_602 = arith.constant dense<0.000000e+00> : vector<8x64xf32>
    %1774 = tpu.matmul %1773, %28, %cst_602 {dimension_numbers = #tpu.dot_dimension_numbers<[1], [0], [0], [1], [0, 0, 1, 1], [], []>} : vector<8x32xf32>, vector<32x64xf32>, vector<8x64xf32> -> vector<8x64xf32>
    %1775 = vector.broadcast %26 : vector<1x64xf32> to vector<8x64xf32>
    %1776 = arith.addf %1774, %1775 : vector<8x64xf32>
    %cst_603 = arith.constant 0.000000e+00 : f32
    %1777 = vector.broadcast %cst_603 : f32 to vector<8x64xf32>
    %1778 = arith.maximumf %1776, %1777 : vector<8x64xf32>
    %cst_604 = arith.constant dense<0.000000e+00> : vector<8x32xf32>
    %1779 = tpu.matmul %1778, %29, %cst_604 {dimension_numbers = #tpu.dot_dimension_numbers<[1], [0], [0], [1], [0, 0, 1, 1], [], []>} : vector<8x64xf32>, vector<64x32xf32>, vector<8x32xf32> -> vector<8x32xf32>
    %1780 = vector.broadcast %27 : vector<1x32xf32> to vector<8x32xf32>
    %1781 = arith.addf %1779, %1780 : vector<8x32xf32>
    %1782 = arith.addf %1773, %1781 : vector<8x32xf32>
    %cst_605 = arith.constant dense<0.000000e+00> : vector<8xf32>
    %1783 = vector.multi_reduction <add>, %1782, %cst_605 [1] : vector<8x32xf32> to vector<8xf32>
    %1784 = vector.shape_cast %1783 : vector<8xf32> to vector<8x1xf32>
    %cst_606 = arith.constant 3.200000e+01 : f32
    %1785 = vector.broadcast %cst_606 : f32 to vector<8x1xf32>
    %1786 = arith.divf %1784, %1785 : vector<8x1xf32>
    %1787 = vector.broadcast %1786 : vector<8x1xf32> to vector<8x32xf32>
    %1788 = arith.subf %1782, %1787 : vector<8x32xf32>
    %1789 = arith.mulf %1788, %1788 : vector<8x32xf32>
    %cst_607 = arith.constant dense<0.000000e+00> : vector<8xf32>
    %1790 = vector.multi_reduction <add>, %1789, %cst_607 [1] : vector<8x32xf32> to vector<8xf32>
    %1791 = vector.shape_cast %1790 : vector<8xf32> to vector<8x1xf32>
    %cst_608 = arith.constant 3.200000e+01 : f32
    %1792 = vector.broadcast %cst_608 : f32 to vector<8x1xf32>
    %1793 = arith.divf %1791, %1792 : vector<8x1xf32>
    %1794 = vector.broadcast %1786 : vector<8x1xf32> to vector<8x32xf32>
    %1795 = arith.subf %1782, %1794 : vector<8x32xf32>
    %cst_609 = arith.constant 9.99999974E-6 : f32
    %1796 = vector.broadcast %cst_609 : f32 to vector<8x1xf32>
    %1797 = arith.addf %1793, %1796 : vector<8x1xf32>
    %1798 = math.rsqrt %1797 : vector<8x1xf32>
    %1799 = vector.broadcast %1798 : vector<8x1xf32> to vector<8x32xf32>
    %1800 = arith.mulf %1795, %1799 : vector<8x32xf32>
    %1801 = vector.broadcast %35 : vector<1x32xf32> to vector<8x32xf32>
    %1802 = arith.mulf %1800, %1801 : vector<8x32xf32>
    %1803 = vector.broadcast %34 : vector<1x32xf32> to vector<8x32xf32>
    %1804 = arith.addf %1802, %1803 : vector<8x32xf32>
    %cst_610 = arith.constant dense<0.000000e+00> : vector<8x128xf32>
    %1805 = tpu.matmul %1804, %65, %cst_610 {dimension_numbers = #tpu.dot_dimension_numbers<[1], [0], [0], [1], [0, 0, 1, 1], [], []>} : vector<8x32xf32>, vector<32x128xf32>, vector<8x128xf32> -> vector<8x128xf32>
    %1806 = vector.broadcast %64 : vector<1x128xf32> to vector<8x128xf32>
    %1807 = arith.addf %1805, %1806 : vector<8x128xf32>
    %c8 = arith.constant 8 : index
    %c0_611 = arith.constant 0 : index
    %1808 = vector.load %arg73[%c8, %c0_611] : memref<16x128xf32, #tpu.memory_space<vmem>>, vector<8x128xf32>
    tpu.vector_store %arg73[%c8, %c0_611], %1807 {strides = array<i32>} : memref<16x128xf32, #tpu.memory_space<vmem>>, vector<8x128xf32>,
    return
  }
}

</mosaic_0001>

<bundles_post_ra>
// kernel: translation_forward.1
= control target key start
LH: loop header
LB: loop body
LE: loop exit
PB: predicated region body
PF: predicated region fallthrough
CT: control target
= control target key end

     0   :  { %s8611_s6 = smov 1   ;;  %s8612_s10 = smov 2   ;;  %s10358_s0 = inlined_call_operand.smem [shape: u32[74], index: -1, kind: input, shape index: {}] }
   0x1   :  { %s8742_s5 = sld [smem:[%s10358_s0]]   ;;  %s8613_s14 = smov 3  }
   0x2   :  { %s8747_s9 = sld [smem:[%s10358_s0 + %s8611_s6]]   ;;  %s8614_s18 = smov 4  }
   0x3   :  { %s8752_s13 = sld [smem:[%s10358_s0 + %s8612_s10]]   ;;  %s8615_s22 = smov 5  }
   0x4   :  { %s8757_s17 = sld [smem:[%s10358_s0 + %s8613_s14]]   ;;  %s8616_s26 = smov 6  }
   0x5   :  { %s8762_s21 = sld [smem:[%s10358_s0 + %s8614_s18]]   ;;  %s8617_s30 = smov 7  }
   0x6   :  { %s8767_s25 = sld [smem:[%s10358_s0 + %s8615_s22]]   ;;  %s8618_s4 = smov 8  }
   0x7   :  { %10448 = sst [smem:[#allocation72_spill]] %s8742_s5  ;;  %s8619_s10 = smov 9  }
   0x8   :  { %10449 = sst [smem:[#allocation73_spill]] %s8747_s9  ;;  %s8620_s15 = smov 10  }
   0x9   :  { %10450 = sst [smem:[#allocation74_spill]] %s8752_s13  ;;  %s8621_s20 = smov 11  }
   0xa   :  { %10451 = sst [smem:[#allocation75_spill]] %s8757_s17  ;;  %s8623_s1 = smov 13  }
   0xb   :  { %10452 = sst [smem:[#allocation76_spill]] %s8762_s21  ;;  %s8624_s7 = smov 14  }
   0xc   :  { %10453 = sst [smem:[#allocation77_spill]] %s8767_s25  ;;  %s8626_s22 = smov 16  }
   0xd   :  { %s8772_s29 = sld [smem:[%s10358_s0 + %s8616_s26]]   ;;  %s8622_s26 = smov 12  }
   0xe   :  { %s8777_s3 = sld [smem:[%s10358_s0 + %s8617_s30]]   ;;  %s8627_s28 = smov 17  }
   0xf   :  { %s8782_s8 = sld [smem:[%s10358_s0 + %s8618_s4]]  }
  0x10   :  { %s8787_s14 = sld [smem:[%s10358_s0 + %s8619_s10]]  }
  0x11   :  { %s8792_s19 = sld [smem:[%s10358_s0 + %s8620_s15]]   ;;  %s8625_s15 = smov 15  }
  0x12   :  { %s8797_s24 = sld [smem:[%s10358_s0 + %s8621_s20]]  }
  0x13   :  { %10454 = sst [smem:[#allocation78_spill]] %s8772_s29 }
  0x14   :  { %10455 = sst [smem:[#allocation79_spill]] %s8777_s3 }
  0x15   :  { %10456 = sst [smem:[#allocation80_spill]] %s8782_s8 }
  0x16   :  { %10457 = sst [smem:[#allocation81_spill]] %s8787_s14 }
  0x17   :  { %10458 = sst [smem:[#allocation82_spill]] %s8792_s19 }
  0x18   :  { %10459 = sst [smem:[#allocation83_spill]] %s8797_s24 }
  0x19   :  { %s8802_s30 = sld [smem:[%s10358_s0 + %s8622_s26]]  }
  0x1a   :  { %s8807_s6 = sld [smem:[%s10358_s0 + %s8623_s1]]  }
  0x1b   :  { %s8812_s12 = sld [smem:[%s10358_s0 + %s8624_s7]]   ;;  %s8628_s7 = smov 18  }
  0x1c   :  { %s8817_s20 = sld [smem:[%s10358_s0 + %s8625_s15]]   ;;  %s8629_s15 = smov 19  }
  0x1d   :  { %s8822_s27 = sld [smem:[%s10358_s0 + %s8626_s22]]   ;;  %s8630_s22 = smov 20  }
  0x1e   :  { %s8827_s4 = sld [smem:[%s10358_s0 + %s8627_s28]]   ;;  %s8631_s28 = smov 21  }
  0x1f   :  { %10460 = sst [smem:[#allocation84_spill]] %s8802_s30 }
  0x20   :  { %10461 = sst [smem:[#allocation85_spill]] %s8807_s6 }
  0x21   :  { %s8832_s14 = sld [smem:[%s10358_s0 + %s8628_s7]]   ;;  %s8632_s7 = smov 22  }
  0x22   :  { %10462 = sst [smem:[#allocation86_spill]] %s8817_s20 }
  0x23   :  { %10463 = sst [smem:[#allocation87_spill]] %s8822_s27 }
  0x24   :  { %10464 = sst [smem:[#allocation88_spill]] %s8827_s4 }
  0x25   :  { %s8837_s8 = sld [smem:[%s10358_s0 + %s8629_s15]]   ;;  %s8633_s15 = smov 23  }
  0x26   :  { %s8842_s27 = sld [smem:[%s10358_s0 + %s8630_s22]]   ;;  %s8634_s22 = smov 24  }
  0x27   :  { %s8847_s20 = sld [smem:[%s10358_s0 + %s8631_s28]]   ;;  %s8635_s28 = smov 25  }
  0x28   :  { %s8852_s24 = sld [smem:[%s10358_s0 + %s8632_s7]]   ;;  %s8636_s7 = smov 26  }
  0x29   :  { %s8857_s19 = sld [smem:[%s10358_s0 + %s8633_s15]]   ;;  %s8637_s15 = smov 27  }
  0x2a   :  { %s8862_s17 = sld [smem:[%s10358_s0 + %s8634_s22]]   ;;  %s8638_s22 = smov 28  }
  0x2b   :  { %10465 = sst [smem:[#allocation89_spill]] %s8837_s8 }
  0x2c   :  { %10466 = sst [smem:[#allocation90_spill]] %s8842_s27 }
  0x2d   :  { %10467 = sst [smem:[#allocation91_spill]] %s8847_s20 }
  0x2e   :  { %s8867_s29 = sld [smem:[%s10358_s0 + %s8635_s28]]   ;;  %s8639_s28 = smov 29  }
  0x2f   :  { %10468 = sst [smem:[#allocation92_spill]] %s8857_s19 }
  0x30   :  { %s8872_s13 = sld [smem:[%s10358_s0 + %s8636_s7]]   ;;  %s8640_s7 = smov 30  }
  0x31   :  { %s8877_s30 = sld [smem:[%s10358_s0 + %s8637_s15]]   ;;  %s8641_s15 = smov 31  }
  0x32   :  { %s8882_s6 = sld [smem:[%s10358_s0 + %s8638_s22]]   ;;  %s8642_s22 = smov 32  }
  0x33   :  { %s8902_s3 = sld [smem:[%s10358_s0 + %s8642_s22]]   ;;  %s8646_s22 = smov 36  }
  0x34   :  { %10469 = sst [smem:[#allocation93_spill]] %s8867_s29 }
  0x35   :  { %s8887_s29 = sld [smem:[%s10358_s0 + %s8639_s28]]   ;;  %s8643_s28 = smov 33  }
  0x36   :  { %10470 = sst [smem:[#allocation94_spill]] %s8872_s13 }
  0x37   :  { %10471 = sst [smem:[#allocation95_spill]] %s8877_s30 }
  0x38   :  { %10472 = sst [smem:[#allocation96_spill]] %s8882_s6 }
  0x39   :  { %s8892_s13 = sld [smem:[%s10358_s0 + %s8640_s7]]   ;;  %s8644_s7 = smov 34  }
  0x3a   :  { %s8897_s30 = sld [smem:[%s10358_s0 + %s8641_s15]]   ;;  %s8645_s15 = smov 35  }
  0x3b   :  { %10475 = sst [smem:[#allocation99_spill]] %s8902_s3 }
  0x3c   :  { %s8907_s25 = sld [smem:[%s10358_s0 + %s8643_s28]]   ;;  %s8647_s28 = smov 37  }
  0x3d   :  { %s8922_s27 = sld [smem:[%s10358_s0 + %s8646_s22]]   ;;  %s8650_s22 = smov 40  }
  0x3e   :  { %s8927_s5 = sld [smem:[%s10358_s0 + %s8647_s28]]   ;;  %s8651_s28 = smov 41  }
  0x3f   :  { %10473 = sst [smem:[#allocation97_spill]] %s8892_s13 }
  0x40   :  { %10474 = sst [smem:[#allocation98_spill]] %s8897_s30 }
  0x41   :  { %s8912_s13 = sld [smem:[%s10358_s0 + %s8644_s7]]   ;;  %s8648_s7 = smov 38  }
  0x42   :  { %s8917_s30 = sld [smem:[%s10358_s0 + %s8645_s15]]   ;;  %s8649_s15 = smov 39  }
  0x43   :  { %10477 = sst [smem:[#allocation101_spill]] %s8922_s27 }
  0x44   :  { %s8932_s20 = sld [smem:[%s10358_s0 + %s8648_s7]]   ;;  %s8652_s7 = smov 42  }
  0x45   :  { %s8937_s9 = sld [smem:[%s10358_s0 + %s8649_s15]]   ;;  %s8653_s15 = smov 43  }
  0x46   :  { %s8942_s27 = sld [smem:[%s10358_s0 + %s8650_s22]]   ;;  %s8654_s22 = smov 44  }
  0x47   :  { %10476 = sst [smem:[#allocation100_spill]] %s8912_s13 }
  0x48   :  { %s8947_s13 = sld [smem:[%s10358_s0 + %s8651_s28]]   ;;  %s8655_s28 = smov 45  }
  0x49   :  { %s8957_s3 = sld [smem:[%s10358_s0 + %s8653_s15]]   ;;  %s8657_s15 = smov 47  }
  0x4a   :  { %10478 = sst [smem:[#allocation102_spill]] %s8932_s20 }
  0x4b   :  { %s8952_s20 = sld [smem:[%s10358_s0 + %s8652_s7]]   ;;  %s8656_s7 = smov 46  }
  0x4c   :  { %10479 = sst [smem:[#allocation103_spill]] %s8942_s27 }
  0x4d   :  { %s8962_s27 = sld [smem:[%s10358_s0 + %s8654_s22]]   ;;  %s8658_s22 = smov 48  }
  0x4e   :  { %10480 = sst [smem:[#allocation104_spill]] %s8947_s13 }
  0x4f   :  { %s8967_s13 = sld [smem:[%s10358_s0 + %s8655_s28]]   ;;  %s8659_s28 = smov 49  }
  0x50   :  { %s8977_s6 = sld [smem:[%s10358_s0 + %s8657_s15]]   ;;  %s8661_s15 = smov 51  }
  0x51   :  { %10481 = sst [smem:[#allocation105_spill]] %s8952_s20 }
  0x52   :  { %s8972_s20 = sld [smem:[%s10358_s0 + %s8656_s7]]   ;;  %s8660_s7 = smov 50  }
  0x53   :  { %10482 = sst [smem:[#allocation106_spill]] %s8962_s27 }
  0x54   :  { %s8982_s27 = sld [smem:[%s10358_s0 + %s8658_s22]]   ;;  %s8662_s22 = smov 52  }
  0x55   :  { %10483 = sst [smem:[#allocation107_spill]] %s8967_s13 }
  0x56   :  { %s8987_s13 = sld [smem:[%s10358_s0 + %s8659_s28]]   ;;  %s8663_s28 = smov 53  }
  0x57   :  { %s8997_s19 = sld [smem:[%s10358_s0 + %s8661_s15]]   ;;  %s8665_s15 = smov 55  }
  0x58   :  { %10484 = sst [smem:[#allocation108_spill]] %s8972_s20 }
  0x59   :  { %s8992_s20 = sld [smem:[%s10358_s0 + %s8660_s7]]   ;;  %s8664_s7 = smov 54  }
  0x5a   :  { %10485 = sst [smem:[#allocation109_spill]] %s8982_s27 }
  0x5b   :  { %s9002_s27 = sld [smem:[%s10358_s0 + %s8662_s22]]   ;;  %s8666_s22 = smov 56  }
  0x5c   :  { %10486 = sst [smem:[#allocation110_spill]] %s8987_s13 }
  0x5d   :  { %10488 = sst [smem:[#allocation112_spill]] %s8997_s19 }
  0x5e   :  { %s9007_s13 = sld [smem:[%s10358_s0 + %s8663_s28]]   ;;  %s8667_s28 = smov 57  }
  0x5f   :  { %10487 = sst [smem:[#allocation111_spill]] %s8992_s20 }
  0x60   :  { %s9012_s20 = sld [smem:[%s10358_s0 + %s8664_s7]]   ;;  %s8668_s7 = smov 58  }
  0x61   :  { %10489 = sst [smem:[#allocation113_spill]] %s9002_s27 }
  0x62   :  { %s9017_s19 = sld [smem:[%s10358_s0 + %s8665_s15]]   ;;  %s8669_s15 = smov 59  }
  0x63   :  { %s9022_s27 = sld [smem:[%s10358_s0 + %s8666_s22]]   ;;  %s8670_s22 = smov 60  }
  0x64   :  { %10490 = sst [smem:[#allocation114_spill]] %s9007_s13 }
  0x65   :  { %s9027_s13 = sld [smem:[%s10358_s0 + %s8667_s28]]   ;;  %s8671_s28 = smov 61  }
  0x66   :  { %10491 = sst [smem:[#allocation115_spill]] %s9012_s20 }
  0x67   :  { %s9032_s20 = sld [smem:[%s10358_s0 + %s8668_s7]]   ;;  %s8672_s7 = smov 62  }
  0x68   :  { %10492 = sst [smem:[#allocation116_spill]] %s9017_s19 }
  0x69   :  { %s9037_s19 = sld [smem:[%s10358_s0 + %s8669_s15]]   ;;  %s8673_s15 = smov 63  }
  0x6a   :  { %s9042_s8 = sld [smem:[%s10358_s0 + %s8670_s22]]   ;;  %s8674_s22 = smov 64  }
  0x6b   :  { %10493 = sst [smem:[#allocation117_spill]] %s9027_s13 }
  0x6c   :  { %s9047_s13 = sld [smem:[%s10358_s0 + %s8671_s28]]   ;;  %s8675_s28 = smov 65  }
  0x6d   :  { %10494 = sst [smem:[#allocation118_spill]] %s9032_s20 }
  0x6e   :  { %s9052_s20 = sld [smem:[%s10358_s0 + %s8672_s7]]   ;;  %s8676_s7 = smov 66  }
  0x6f   :  { %s9057_s4 = sld [smem:[%s10358_s0 + %s8673_s15]]   ;;  %s8677_s15 = smov 67  }
  0x70   :  { %10495 = sst [smem:[#allocation119_spill]] %s9042_s8 }
  0x71   :  { %s9062_s8 = sld [smem:[%s10358_s0 + %s8674_s22]]   ;;  %s8678_s22 = smov 68  }
  0x72   :  { %10496 = sst [smem:[#allocation120_spill]] %s9047_s13 }
  0x73   :  { %s9067_s13 = sld [smem:[%s10358_s0 + %s8675_s28]]   ;;  %s8679_s28 = smov 69  }
  0x74   :  { %s9072_s21 = sld [smem:[%s10358_s0 + %s8676_s7]]   ;;  %s8680_s7 = smov 70  }
  0x75   :  { %10497 = sst [smem:[#allocation121_spill]] %s9057_s4 }
  0x76   :  { %s9077_s4 = sld [smem:[%s10358_s0 + %s8677_s15]]   ;;  %s8681_s15 = smov 71  }
  0x77   :  { %10498 = sst [smem:[#allocation122_spill]] %s9062_s8 }
  0x78   :  { %s9082_s8 = sld [smem:[%s10358_s0 + %s8678_s22]]   ;;  %s8682_s22 = smov 72  }
  0x79   :  { %10499 = sst [smem:[#allocation123_spill]] %s9067_s13 }
  0x7a   :  { %10500 = sst [smem:[#allocation124_spill]] %s9072_s21 }
  0x7b   :  { %s9087_s13 = sld [smem:[%s10358_s0 + %s8679_s28]]   ;;  %s8683_s28 = smov 73  }
  0x7c   :  { %10501 = sst [smem:[#allocation125_spill]] %s9077_s4 }
  0x7d   :  { %s9092_s21 = sld [smem:[%s10358_s0 + %s8680_s7]]  }
  0x7e   :  { %10502 = sst [smem:[#allocation126_spill]] %s9082_s8 }
  0x7f   :  { %s9097_s4 = sld [smem:[%s10358_s0 + %s8681_s15]]  }
  0x80   :  { %s9102_s8 = sld [smem:[%s10358_s0 + %s8682_s22]]  }
  0x81   :  { %10503 = sst [smem:[#allocation127_spill]] %s9087_s13 }
  0x82   :  { %s9107_s13 = sld [smem:[%s10358_s0 + %s8683_s28]]  }
  0x88   :  { %10504 = sst [smem:[#allocation128_spill]] %s9107_s13 }
  0x89   :  { %152 = vsyncpa [#allocation3], 0 }
  0x8a   :  { %153 = vsyncpa [#allocation6], 0 }
  0x8b   :  { %154 = vsyncpa [#allocation9], 0 }
  0x8c   :  { %155 = vsyncpa [#allocation12], 0 }
  0x8d   :  { %156 = vsyncpa [#allocation15], 0 }
  0x8e   :  { %157 = vsyncpa [#allocation18], 0 }
  0x8f   :  { %158 = vsyncpa [#allocation21], 0 }
  0x90   :  { %159 = vsyncpa [#allocation24], 0 }
  0x91   :  { %160 = vsyncpa [#allocation27], 0 }
  0x92   :  { %161 = vsyncpa [#allocation30], 0 }
  0x93   :  { %162 = vsyncpa [#allocation33], 0 }
  0x94   :  { %163 = vsyncpa [#allocation36], 0 }
  0x95   :  { %164 = vsyncpa [#allocation39], 0 }
  0x96   :  { %165 = vsyncpa [#allocation42], 0 }
  0x97   :  { %166 = vsyncpa [#allocation45], 0 }
  0x98   :  { %167 = vsyncpa [#allocation48], 0 }
  0x99   :  { %168 = vsyncpa [#allocation51], 0  ;;  %s212_s0 = sshll.u32 %s8812_s12, 4  ;;  %s213_s0 = int_to_ptr.hbm [resolvable:$true] %s212_s0 }
  0x9a   :  { %169 = vsyncpa [#allocation4], 0  ;;  %s8684_s7 = smov [#allocation5]   ;;  %s238_s11 = sshll.u32 %s8832_s14, 4  ;;  %s239_s11 = int_to_ptr.hbm [resolvable:$true] %s238_s11 }
  0x9b   :  { %s214_s10 = sshll.u32 %s8684_s7, 4  ;;  %s7759_s15 = sshra.s32 %s213_s0, 4  ;;  %s215_s10 = int_to_ptr.vmem [resolvable:$true] %s214_s10  ;;  %s7760_s15 = int_to_ptr.hbm [resolvable:$true] %s7759_s15 }
  0x9c   :  { %s7761_s16 = scalar_lea.hbm %s7760_s15, 1  ;;  %s7763_s18 = scalar_lea.hbm %s8812_s12, 1 }
  0x9d   :  { %p7762_p0 = scmp.ne.s32.totalorder %s7760_s15, %s7761_s16  ;;  %p7764_p1 = scmp.lt.s32.totalorder %s7760_s15, %s8812_s12 }
  0x9e   :  { %p7765_p2 = scmp.lt.s32.totalorder %s7763_s18, %s7761_s16 }
  0xa0   :  { %p7766_p3 = por %p7765_p2, %p7764_p1 }
  0xa2   :  { %p7767_p4 = pnand %p7766_p3, %p7762_p0 }
  0xa4   :  { %7770 = shalt.err (!%p7767_p4)
}
  0xa5   :  { %217 = dma.hbm_to_vmem [thread:$0]  %s213_s0, 16, %s215_s10, [#allocation6]  }
  0xa6   :  { %s8685_s22 = smov [#allocation8]   ;;  %s264_s26 = sshll.u32 %s8852_s24, 4  ;;  %s265_s26 = int_to_ptr.hbm [resolvable:$true] %s264_s26 }
  0xa7   :  { %s240_s23 = sshll.u32 %s8685_s22, 4  ;;  %s7783_s28 = sshra.s32 %s239_s11, 4  ;;  %s241_s23 = int_to_ptr.vmem [resolvable:$true] %s240_s23  ;;  %s7784_s28 = int_to_ptr.hbm [resolvable:$true] %s7783_s28 }
  0xa8   :  { %s7785_s1 = scalar_lea.hbm %s7784_s28, 1  ;;  %s7787_s2 = scalar_lea.hbm %s8832_s14, 1 }
  0xa9   :  { %p7786_p5 = scmp.ne.s32.totalorder %s7784_s28, %s7785_s1  ;;  %p7788_p6 = scmp.lt.s32.totalorder %s7784_s28, %s8832_s14 }
  0xaa   :  { %p7789_p7 = scmp.lt.s32.totalorder %s7787_s2, %s7785_s1 }
  0xac   :  { %p7790_p8 = por %p7789_p7, %p7788_p6 }
  0xae   :  { %p7791_p9 = pnand %p7790_p8, %p7786_p5 }
  0xb0   :  { %7794 = shalt.err (!%p7791_p9)
}
  0xb1   :  { %243 = dma.hbm_to_vmem [thread:$0]  %s239_s11, 16, %s241_s23, [#allocation9]  }
  0xb2   :  { %s286_s12 = sshll.u32 %s8862_s17, 4  ;;  %s8686_s0 = smov [#allocation11]   ;;  %s287_s12 = int_to_ptr.hbm [resolvable:$true] %s286_s12 }
  0xb3   :  { %s266_s7 = sshll.u32 %s8686_s0, 4  ;;  %s7807_s10 = sshra.s32 %s265_s26, 4  ;;  %s267_s7 = int_to_ptr.vmem [resolvable:$true] %s266_s7  ;;  %s7808_s10 = int_to_ptr.hbm [resolvable:$true] %s7807_s10 }
  0xb4   :  { %s7809_s15 = scalar_lea.hbm %s7808_s10, 1  ;;  %s7811_s16 = scalar_lea.hbm %s8852_s24, 1 }
  0xb5   :  { %p7810_p10 = scmp.ne.s32.totalorder %s7808_s10, %s7809_s15  ;;  %p7812_p11 = scmp.lt.s32.totalorder %s7808_s10, %s8852_s24 }
  0xb6   :  { %p7813_p12 = scmp.lt.s32.totalorder %s7811_s16, %s7809_s15 }
  0xb8   :  { %p7814_p13 = por %p7813_p12, %p7812_p11 }
  0xba   :  { %p7815_p0 = pnand %p7814_p13, %p7810_p10 }
  0xbc   :  { %7818 = shalt.err (!%p7815_p0)
}
  0xbd   :  { %269 = dma.hbm_to_vmem [thread:$0]  %s265_s26, 16, %s267_s7, [#allocation12]  }
  0xbe   :  { %s8687_s14 = smov [#allocation14]   ;;  %s314_s18 = sshll.u32 %s8887_s29, 4  ;;  %s315_s18 = int_to_ptr.hbm [resolvable:$true] %s314_s18 }
  0xbf   :  { %s288_s11 = sshll.u32 %s8687_s14, 4  ;;  %s7831_s22 = sshra.s32 %s287_s12, 4  ;;  %s289_s11 = int_to_ptr.vmem [resolvable:$true] %s288_s11  ;;  %s7832_s22 = int_to_ptr.hbm [resolvable:$true] %s7831_s22 }
  0xc0   :  { %s7833_s23 = scalar_lea.hbm %s7832_s22, 1  ;;  %s7835_s28 = scalar_lea.hbm %s8862_s17, 1 }
  0xc1   :  { %p7834_p1 = scmp.ne.s32.totalorder %s7832_s22, %s7833_s23  ;;  %p7836_p2 = scmp.lt.s32.totalorder %s7832_s22, %s8862_s17 }
  0xc2   :  { %p7837_p3 = scmp.lt.s32.totalorder %s7835_s28, %s7833_s23 }
  0xc4   :  { %p7838_p4 = por %p7837_p3, %p7836_p2 }
  0xc6   :  { %p7839_p5 = pnand %p7838_p4, %p7834_p1 }
  0xc8   :  { %7842 = shalt.err (!%p7839_p5)
}
  0xc9   :  { %291 = dma.hbm_to_vmem [thread:$0]  %s287_s12, 16, %s289_s11, [#allocation15]  }
  0xca   :  { %s340_s24 = sshll.u32 %s8907_s25, 4  ;;  %s8688_s26 = smov [#allocation17]   ;;  %s341_s24 = int_to_ptr.hbm [resolvable:$true] %s340_s24 }
  0xcb   :  { %s316_s1 = sshll.u32 %s8688_s26, 4  ;;  %s7855_s2 = sshra.s32 %s315_s18, 4  ;;  %s317_s1 = int_to_ptr.vmem [resolvable:$true] %s316_s1  ;;  %s7856_s2 = int_to_ptr.hbm [resolvable:$true] %s7855_s2 }
  0xcc   :  { %s7857_s0 = scalar_lea.hbm %s7856_s2, 1  ;;  %s7859_s7 = scalar_lea.hbm %s8887_s29, 1 }
  0xcd   :  { %p7858_p6 = scmp.ne.s32.totalorder %s7856_s2, %s7857_s0  ;;  %p7860_p7 = scmp.lt.s32.totalorder %s7856_s2, %s8887_s29 }
  0xce   :  { %p7861_p8 = scmp.lt.s32.totalorder %s7859_s7, %s7857_s0 }
  0xd0   :  { %p7862_p9 = por %p7861_p8, %p7860_p7 }
  0xd2   :  { %p7863_p10 = pnand %p7862_p9, %p7858_p6 }
  0xd4   :  { %7866 = shalt.err (!%p7863_p10)
}
  0xd5   :  { %319 = dma.hbm_to_vmem [thread:$0]  %s315_s18, 16, %s317_s1, [#allocation18]  }
  0xd6   :  { %s8689_s17 = smov [#allocation20]   ;;  %s362_s10 = sshll.u32 %s8917_s30, 4  ;;  %s363_s10 = int_to_ptr.hbm [resolvable:$true] %s362_s10 }
  0xd7   :  { %s342_s12 = sshll.u32 %s8689_s17, 4  ;;  %s7879_s15 = sshra.s32 %s341_s24, 4  ;;  %s343_s12 = int_to_ptr.vmem [resolvable:$true] %s342_s12  ;;  %s7880_s15 = int_to_ptr.hbm [resolvable:$true] %s7879_s15 }
  0xd8   :  { %s7881_s16 = scalar_lea.hbm %s7880_s15, 1  ;;  %s7883_s14 = scalar_lea.hbm %s8907_s25, 1 }
  0xd9   :  { %p7882_p11 = scmp.ne.s32.totalorder %s7880_s15, %s7881_s16  ;;  %p7884_p12 = scmp.lt.s32.totalorder %s7880_s15, %s8907_s25 }
  0xda   :  { %p7885_p13 = scmp.lt.s32.totalorder %s7883_s14, %s7881_s16 }
  0xdc   :  { %p7886_p0 = por %p7885_p13, %p7884_p12 }
  0xde   :  { %p7887_p1 = pnand %p7886_p0, %p7882_p11 }
  0xe0   :  { %7890 = shalt.err (!%p7887_p1)
}
  0xe1   :  { %345 = dma.hbm_to_vmem [thread:$0]  %s341_s24, 16, %s343_s12, [#allocation21]  }
  0xe2   :  { %s384_s29 = sshll.u32 %s8927_s5, 4  ;;  %s8690_s11 = smov [#allocation23]   ;;  %s385_s29 = int_to_ptr.hbm [resolvable:$true] %s384_s29 }
  0xe3   :  { %s364_s18 = sshll.u32 %s8690_s11, 4  ;;  %s7903_s22 = sshra.s32 %s363_s10, 4  ;;  %s365_s18 = int_to_ptr.vmem [resolvable:$true] %s364_s18  ;;  %s7904_s22 = int_to_ptr.hbm [resolvable:$true] %s7903_s22 }
  0xe4   :  { %s7905_s23 = scalar_lea.hbm %s7904_s22, 1  ;;  %s7907_s28 = scalar_lea.hbm %s8917_s30, 1 }
  0xe5   :  { %p7906_p2 = scmp.ne.s32.totalorder %s7904_s22, %s7905_s23  ;;  %p7908_p3 = scmp.lt.s32.totalorder %s7904_s22, %s8917_s30 }
  0xe6   :  { %p7909_p4 = scmp.lt.s32.totalorder %s7907_s28, %s7905_s23 }
  0xe8   :  { %p7910_p5 = por %p7909_p4, %p7908_p3 }
  0xea   :  { %p7911_p6 = pnand %p7910_p5, %p7906_p2 }
  0xec   :  { %7914 = shalt.err (!%p7911_p6)
}
  0xed   :  { %367 = dma.hbm_to_vmem [thread:$0]  %s363_s10, 16, %s365_s18, [#allocation24]  }
  0xee   :  { %s8691_s25 = smov [#allocation26]   ;;  %s406_s26 = sshll.u32 %s8937_s9, 4  ;;  %s407_s26 = int_to_ptr.hbm [resolvable:$true] %s406_s26 }
  0xef   :  { %s386_s24 = sshll.u32 %s8691_s25, 4  ;;  %s7927_s1 = sshra.s32 %s385_s29, 4  ;;  %s387_s24 = int_to_ptr.vmem [resolvable:$true] %s386_s24  ;;  %s7928_s1 = int_to_ptr.hbm [resolvable:$true] %s7927_s1 }
  0xf0   :  { %s7929_s2 = scalar_lea.hbm %s7928_s1, 1  ;;  %s7931_s0 = scalar_lea.hbm %s8927_s5, 1 }
  0xf1   :  { %p7930_p7 = scmp.ne.s32.totalorder %s7928_s1, %s7929_s2  ;;  %p7932_p8 = scmp.lt.s32.totalorder %s7928_s1, %s8927_s5 }
  0xf2   :  { %p7933_p9 = scmp.lt.s32.totalorder %s7931_s0, %s7929_s2 }
  0xf4   :  { %p7934_p10 = por %p7933_p9, %p7932_p8 }
  0xf6   :  { %p7935_p11 = pnand %p7934_p10, %p7930_p7 }
  0xf8   :  { %7938 = shalt.err (!%p7935_p11)
}
  0xf9   :  { %389 = dma.hbm_to_vmem [thread:$0]  %s385_s29, 16, %s387_s24, [#allocation27]  }
  0xfa   :  { %s432_s30 = sshll.u32 %s8957_s3, 4  ;;  %s8692_s7 = smov [#allocation29]   ;;  %s433_s30 = int_to_ptr.hbm [resolvable:$true] %s432_s30 }
  0xfb   :  { %s408_s17 = sshll.u32 %s8692_s7, 4  ;;  %s7951_s12 = sshra.s32 %s407_s26, 4  ;;  %s409_s17 = int_to_ptr.vmem [resolvable:$true] %s408_s17  ;;  %s7952_s12 = int_to_ptr.hbm [resolvable:$true] %s7951_s12 }
  0xfc   :  { %s7953_s10 = scalar_lea.hbm %s7952_s12, 1  ;;  %s7955_s15 = scalar_lea.hbm %s8937_s9, 1 }
  0xfd   :  { %p7954_p12 = scmp.ne.s32.totalorder %s7952_s12, %s7953_s10  ;;  %p7956_p13 = scmp.lt.s32.totalorder %s7952_s12, %s8937_s9 }
  0xfe   :  { %p7957_p0 = scmp.lt.s32.totalorder %s7955_s15, %s7953_s10 }
 0x100   :  { %p7958_p1 = por %p7957_p0, %p7956_p13 }
 0x102   :  { %p7959_p2 = pnand %p7958_p1, %p7954_p12 }
 0x104   :  { %7962 = shalt.err (!%p7959_p2)
}
 0x105   :  { %411 = dma.hbm_to_vmem [thread:$0]  %s407_s26, 16, %s409_s17, [#allocation30]  }
 0x106   :  { %s8693_s5 = smov [#allocation32]   ;;  %s458_s14 = sshll.u32 %s8977_s6, 4  ;;  %s459_s14 = int_to_ptr.hbm [resolvable:$true] %s458_s14 }
 0x107   :  { %s434_s16 = sshll.u32 %s8693_s5, 4  ;;  %s7975_s29 = sshra.s32 %s433_s30, 4  ;;  %s435_s16 = int_to_ptr.vmem [resolvable:$true] %s434_s16  ;;  %s7976_s29 = int_to_ptr.hbm [resolvable:$true] %s7975_s29 }
 0x108   :  { %s7977_s11 = scalar_lea.hbm %s7976_s29, 1  ;;  %s7979_s18 = scalar_lea.hbm %s8957_s3, 1 }
 0x109   :  { %p7978_p3 = scmp.ne.s32.totalorder %s7976_s29, %s7977_s11  ;;  %p7980_p4 = scmp.lt.s32.totalorder %s7976_s29, %s8957_s3 }
 0x10a   :  { %p7981_p5 = scmp.lt.s32.totalorder %s7979_s18, %s7977_s11 }
 0x10c   :  { %p7982_p6 = por %p7981_p5, %p7980_p4 }
 0x10e   :  { %p7983_p7 = pnand %p7982_p6, %p7978_p3 }
 0x110   :  { %7986 = shalt.err (!%p7983_p7)
}
 0x111   :  { %437 = dma.hbm_to_vmem [thread:$0]  %s433_s30, 16, %s435_s16, [#allocation33]  }
 0x112   :  { %s8694_s9 = smov [#allocation35]   ;;  %s495_s23 = sshll.u32 %s9022_s27, 4  ;;  %s496_s23 = int_to_ptr.hbm [resolvable:$true] %s495_s23 }
 0x113   :  { %s460_s22 = sshll.u32 %s8694_s9, 4  ;;  %s7999_s28 = sshra.s32 %s459_s14, 4  ;;  %s461_s22 = int_to_ptr.vmem [resolvable:$true] %s460_s22  ;;  %s8000_s28 = int_to_ptr.hbm [resolvable:$true] %s7999_s28 }
 0x114   :  { %s8001_s25 = scalar_lea.hbm %s8000_s28, 1  ;;  %s8003_s24 = scalar_lea.hbm %s8977_s6, 1 }
 0x115   :  { %p8002_p8 = scmp.ne.s32.totalorder %s8000_s28, %s8001_s25  ;;  %p8004_p9 = scmp.lt.s32.totalorder %s8000_s28, %s8977_s6 }
 0x116   :  { %p8005_p10 = scmp.lt.s32.totalorder %s8003_s24, %s8001_s25 }
 0x118   :  { %p8006_p11 = por %p8005_p10, %p8004_p9 }
 0x11a   :  { %p8007_p12 = pnand %p8006_p11, %p8002_p8 }
 0x11c   :  { %8010 = shalt.err (!%p8007_p12)
}
 0x11d   :  { %463 = dma.hbm_to_vmem [thread:$0]  %s459_s14, 16, %s461_s22, [#allocation36]  }
 0x11e   :  { %s8695_s3 = smov [#allocation38]   ;;  %s524_s1 = sshll.u32 %s9037_s19, 4  ;;  %s9144_s1 = int_to_ptr.hbm [resolvable:$true] %s524_s1 }
 0x11f   :  { %s497_s26 = sshll.u32 %s8695_s3, 4  ;;  %s8023_s2 = sshra.s32 %s496_s23, 4  ;;  %s498_s26 = int_to_ptr.vmem [resolvable:$true] %s497_s26  ;;  %s8024_s2 = int_to_ptr.hbm [resolvable:$true] %s8023_s2 }
 0x120   :  { %s8025_s0 = scalar_lea.hbm %s8024_s2, 32  ;;  %s8027_s6 = scalar_lea.hbm %s9022_s27, 32 }
 0x121   :  { %p8026_p13 = scmp.ne.s32.totalorder %s8024_s2, %s8025_s0  ;;  %p8028_p0 = scmp.lt.s32.totalorder %s8024_s2, %s9022_s27 }
 0x122   :  { %p8029_p1 = scmp.lt.s32.totalorder %s8027_s6, %s8025_s0 }
 0x124   :  { %p8030_p2 = por %p8029_p1, %p8028_p0 }
 0x126   :  { %p8031_p3 = pnand %p8030_p2, %p8026_p13 }
 0x128   :  { %8034 = shalt.err (!%p8031_p3)
}
 0x129   :  { %s10415_s30 = smov 128   ;;  %s10416_s7 = smov 8  }
 0x12a   :  { %503 = dma.hbm_to_vmem [thread:$0]  %s496_s23, 512, %s498_s26, [#allocation39], %s10415_s30, %s10415_s30, %s10416_s7  }
 0x12b   :  { %s550_s17 = sshll.u32 %s9052_s20, 4  ;;  %s8698_s12 = smov [#allocation41]   ;;  %s551_s17 = int_to_ptr.hbm [resolvable:$true] %s550_s17 }
 0x12c   :  { %s526_s10 = sshll.u32 %s8698_s12, 4  ;;  %s8047_s27 = sshra.s32 %s9144_s1, 4  ;;  %s527_s10 = int_to_ptr.vmem [resolvable:$true] %s526_s10  ;;  %s8048_s27 = int_to_ptr.hbm [resolvable:$true] %s8047_s27 }
 0x12d   :  { %s8049_s15 = scalar_lea.hbm %s8048_s27, 1  ;;  %s8051_s5 = scalar_lea.hbm %s9037_s19, 1 }
 0x12e   :  { %p8050_p4 = scmp.ne.s32.totalorder %s8048_s27, %s8049_s15  ;;  %p8052_p5 = scmp.lt.s32.totalorder %s8048_s27, %s9037_s19 }
 0x12f   :  { %p8053_p6 = scmp.lt.s32.totalorder %s8051_s5, %s8049_s15 }
 0x131   :  { %p8054_p7 = por %p8053_p6, %p8052_p5 }
 0x133   :  { %p8055_p8 = pnand %p8054_p7, %p8050_p4 }
 0x135   :  { %8058 = shalt.err (!%p8055_p8)
}
 0x136   :  { %s10505_s16 = sld [smem:[#allocation122_spill]]  ;;  %s8699_s14 = smov [#allocation44]  }
 0x137   :  { %529 = dma.hbm_to_vmem [thread:$0]  %s9144_s1, 16, %s527_s10, [#allocation42]  }
 0x138   :  { %s552_s29 = sshll.u32 %s8699_s14, 4  ;;  %s8071_s18 = sshra.s32 %s551_s17, 4  ;;  %s553_s29 = int_to_ptr.vmem [resolvable:$true] %s552_s29  ;;  %s8072_s18 = int_to_ptr.hbm [resolvable:$true] %s8071_s18 }
 0x139   :  { %s8073_s9 = scalar_lea.hbm %s8072_s18, 1  ;;  %s8075_s22 = scalar_lea.hbm %s9052_s20, 1 }
 0x13a   :  { %p8074_p9 = scmp.ne.s32.totalorder %s8072_s18, %s8073_s9  ;;  %p8076_p10 = scmp.lt.s32.totalorder %s8072_s18, %s9052_s20 }
 0x13b   :  { %p8077_p11 = scmp.lt.s32.totalorder %s8075_s22, %s8073_s9 }
 0x13c   :  { %s572_s11 = sshll.u32 %s10505_s16, 4  ;;  %s573_s11 = int_to_ptr.hbm [resolvable:$true] %s572_s11 }
 0x13d   :  { %p8078_p12 = por %p8077_p11, %p8076_p10 }
 0x13f   :  { %p8079_p13 = pnand %p8078_p12, %p8074_p9 }
 0x141   :  { %8082 = shalt.err (!%p8079_p13)
}
 0x142   :  { %555 = dma.hbm_to_vmem [thread:$0]  %s551_s17, 16, %s553_s29, [#allocation45]  }
 0x143   :  { %s10506_s19 = sld [smem:[#allocation124_spill]]  ;;  %s8700_s28 = smov [#allocation47]  }
 0x144   :  { %s574_s25 = sshll.u32 %s8700_s28, 4  ;;  %s8095_s24 = sshra.s32 %s573_s11, 4  ;;  %s575_s25 = int_to_ptr.vmem [resolvable:$true] %s574_s25  ;;  %s8096_s24 = int_to_ptr.hbm [resolvable:$true] %s8095_s24 }
 0x145   :  { %s8097_s3 = scalar_lea.hbm %s8096_s24, 1  ;;  %s8099_s26 = scalar_lea.hbm %s10505_s16, 1 }
 0x146   :  { %p8098_p0 = scmp.ne.s32.totalorder %s8096_s24, %s8097_s3  ;;  %p8100_p1 = scmp.lt.s32.totalorder %s8096_s24, %s10505_s16 }
 0x147   :  { %p8101_p2 = scmp.lt.s32.totalorder %s8099_s26, %s8097_s3 }
 0x149   :  { %s594_s23 = sshll.u32 %s10506_s19, 4  ;;  %p8102_p3 = por %p8101_p2, %p8100_p1  ;;  %s595_s23 = int_to_ptr.hbm [resolvable:$true] %s594_s23 }
 0x14b   :  { %p8103_p4 = pnand %p8102_p3, %p8098_p0 }
 0x14d   :  { %8106 = shalt.err (!%p8103_p4)
}
 0x14e   :  { %577 = dma.hbm_to_vmem [thread:$0]  %s573_s11, 16, %s575_s25, [#allocation48]  }
 0x14f   :  { %s10507_s20 = sld [smem:[#allocation76_spill]]  ;;  %s8701_s1 = smov [#allocation50]  }
 0x150   :  { %s596_s2 = sshll.u32 %s8701_s1, 4  ;;  %s8119_s6 = sshra.s32 %s595_s23, 4  ;;  %s597_s2 = int_to_ptr.vmem [resolvable:$true] %s596_s2  ;;  %s8120_s6 = int_to_ptr.hbm [resolvable:$true] %s8119_s6 }
 0x151   :  { %s8121_s17 = scalar_lea.hbm %s8120_s6, 1  ;;  %s8123_s12 = scalar_lea.hbm %s10506_s19, 1 }
 0x152   :  { %p8122_p5 = scmp.ne.s32.totalorder %s8120_s6, %s8121_s17  ;;  %p8124_p6 = scmp.lt.s32.totalorder %s8120_s6, %s10506_s19 }
 0x153   :  { %p8125_p7 = scmp.lt.s32.totalorder %s8123_s12, %s8121_s17 }
 0x155   :  { %s183_s0 = sshll.u32 %s10507_s20, 4  ;;  %p8126_p8 = por %p8125_p7, %p8124_p6  ;;  %s184_s0 = int_to_ptr.hbm [resolvable:$true] %s183_s0 }
 0x157   :  { %p8127_p9 = pnand %p8126_p8, %p8122_p5 }
 0x159   :  { %8130 = shalt.err (!%p8127_p9)
}
 0x15a   :  { %599 = dma.hbm_to_vmem [thread:$0]  %s595_s23, 16, %s597_s2, [#allocation51]  }
 0x15b   :  { %s10508_s10 = sld [smem:[#allocation88_spill]]  ;;  %s8702_s15 = smov [#allocation2]  }
 0x15c   :  { %s185_s5 = sshll.u32 %s8702_s15, 4  ;;  %s8143_s16 = sshra.s32 %s184_s0, 4  ;;  %s186_s5 = int_to_ptr.vmem [resolvable:$true] %s185_s5  ;;  %s8144_s16 = int_to_ptr.hbm [resolvable:$true] %s8143_s16 }
 0x15d   :  { %s8145_s14 = scalar_lea.hbm %s8144_s16, 1  ;;  %s8147_s29 = scalar_lea.hbm %s10507_s20, 1 }
 0x15e   :  { %p8146_p10 = scmp.ne.s32.totalorder %s8144_s16, %s8145_s14  ;;  %p8148_p11 = scmp.lt.s32.totalorder %s8144_s16, %s10507_s20 }
 0x15f   :  { %p8149_p12 = scmp.lt.s32.totalorder %s8147_s29, %s8145_s14 }
 0x161   :  { %s227_s27 = sshll.u32 %s10508_s10, 4  ;;  %p8150_p13 = por %p8149_p12, %p8148_p11  ;;  %s228_s27 = int_to_ptr.hbm [resolvable:$true] %s227_s27 }
 0x163   :  { %p8151_p0 = pnand %p8150_p13, %p8146_p10 }
 0x165   :  { %8154 = shalt.err (!%p8151_p0)
}
 0x166   :  { %188 = dma.hbm_to_vmem [thread:$0]  %s184_s0, 16, %s186_s5, [#allocation3]  }
 0x167   :  { %s10509_s11 = sld [smem:[#allocation89_spill]]  ;;  %s8703_s18 = smov [#allocation7]  }
 0x168   :  { %s229_s9 = sshll.u32 %s8703_s18, 4  ;;  %s8167_s19 = sshra.s32 %s228_s27, 4  ;;  %s230_s9 = int_to_ptr.vmem [resolvable:$true] %s229_s9  ;;  %s8168_s19 = int_to_ptr.hbm [resolvable:$true] %s8167_s19 }
 0x169   :  { %s8169_s23 = scalar_lea.hbm %s8168_s19, 1  ;;  %s8171_s28 = scalar_lea.hbm %s10508_s10, 1 }
 0x16a   :  { %p8170_p1 = scmp.ne.s32.totalorder %s8168_s19, %s8169_s23  ;;  %p8172_p2 = scmp.lt.s32.totalorder %s8168_s19, %s10508_s10 }
 0x16b   :  { %p8173_p3 = scmp.lt.s32.totalorder %s8171_s28, %s8169_s23 }
 0x16d   :  { %s249_s22 = sshll.u32 %s10509_s11, 4  ;;  %p8174_p4 = por %p8173_p3, %p8172_p2  ;;  %s250_s22 = int_to_ptr.hbm [resolvable:$true] %s249_s22 }
 0x16f   :  { %p8175_p5 = pnand %p8174_p4, %p8170_p1 }
 0x171   :  { %8178 = shalt.err (!%p8175_p5)
}
 0x172   :  { %232 = dma.hbm_to_vmem [thread:$0]  %s228_s27, 16, %s230_s9, [#allocation6]  }
 0x173   :  { %s10510_s25 = sld [smem:[#allocation92_spill]]  ;;  %s8704_s3 = smov [#allocation10]  }
 0x174   :  { %s251_s26 = sshll.u32 %s8704_s3, 4  ;;  %s8191_s20 = sshra.s32 %s250_s22, 4  ;;  %s252_s26 = int_to_ptr.vmem [resolvable:$true] %s251_s26  ;;  %s8192_s20 = int_to_ptr.hbm [resolvable:$true] %s8191_s20 }
 0x175   :  { %s8193_s1 = scalar_lea.hbm %s8192_s20, 1  ;;  %s8195_s2 = scalar_lea.hbm %s10509_s11, 1 }
 0x176   :  { %p8194_p6 = scmp.ne.s32.totalorder %s8192_s20, %s8193_s1  ;;  %p8196_p7 = scmp.lt.s32.totalorder %s8192_s20, %s10509_s11 }
 0x177   :  { %p8197_p8 = scmp.lt.s32.totalorder %s8195_s2, %s8193_s1 }
 0x179   :  { %s275_s24 = sshll.u32 %s10510_s25, 4  ;;  %p8198_p9 = por %p8197_p8, %p8196_p7  ;;  %s276_s24 = int_to_ptr.hbm [resolvable:$true] %s275_s24 }
 0x17b   :  { %p8199_p10 = pnand %p8198_p9, %p8194_p6 }
 0x17d   :  { %8202 = shalt.err (!%p8199_p10)
}
 0x17e   :  { %254 = dma.hbm_to_vmem [thread:$0]  %s250_s22, 16, %s252_s26, [#allocation9]  }
 0x17f   :  { %s10511_s0 = sld [smem:[#allocation96_spill]]  ;;  %s8705_s6 = smov [#allocation13]  }
 0x180   :  { %s277_s17 = sshll.u32 %s8705_s6, 4  ;;  %s8215_s10 = sshra.s32 %s276_s24, 4  ;;  %s278_s17 = int_to_ptr.vmem [resolvable:$true] %s277_s17  ;;  %s8216_s10 = int_to_ptr.hbm [resolvable:$true] %s8215_s10 }
 0x181   :  { %s8217_s27 = scalar_lea.hbm %s8216_s10, 1  ;;  %s8219_s15 = scalar_lea.hbm %s10510_s25, 1 }
 0x182   :  { %p8218_p11 = scmp.ne.s32.totalorder %s8216_s10, %s8217_s27  ;;  %p8220_p12 = scmp.lt.s32.totalorder %s8216_s10, %s10510_s25 }
 0x183   :  { %p8221_p13 = scmp.lt.s32.totalorder %s8219_s15, %s8217_s27 }
 0x185   :  { %s303_s12 = sshll.u32 %s10511_s0, 4  ;;  %p8222_p0 = por %p8221_p13, %p8220_p12  ;;  %s304_s12 = int_to_ptr.hbm [resolvable:$true] %s303_s12 }
 0x187   :  { %p8223_p1 = pnand %p8222_p0, %p8218_p11 }
 0x189   :  { %8226 = shalt.err (!%p8223_p1)
}
 0x18a   :  { %280 = dma.hbm_to_vmem [thread:$0]  %s276_s24, 16, %s278_s17, [#allocation12]  }
 0x18b   :  { %s10512_s5 = sld [smem:[#allocation99_spill]]  ;;  %s8706_s14 = smov [#allocation16]  }
 0x18c   :  { %s305_s29 = sshll.u32 %s8706_s14, 4  ;;  %s8239_s11 = sshra.s32 %s304_s12, 4  ;;  %s306_s29 = int_to_ptr.vmem [resolvable:$true] %s305_s29  ;;  %s8240_s11 = int_to_ptr.hbm [resolvable:$true] %s8239_s11 }
 0x18d   :  { %s8241_s18 = scalar_lea.hbm %s8240_s11, 1  ;;  %s8243_s9 = scalar_lea.hbm %s10511_s0, 1 }
 0x18e   :  { %p8242_p2 = scmp.ne.s32.totalorder %s8240_s11, %s8241_s18  ;;  %p8244_p3 = scmp.lt.s32.totalorder %s8240_s11, %s10511_s0 }
 0x18f   :  { %p8245_p4 = scmp.lt.s32.totalorder %s8243_s9, %s8241_s18 }
 0x191   :  { %s329_s16 = sshll.u32 %s10512_s5, 4  ;;  %p8246_p5 = por %p8245_p4, %p8244_p3  ;;  %s330_s16 = int_to_ptr.hbm [resolvable:$true] %s329_s16 }
 0x193   :  { %p8247_p6 = pnand %p8246_p5, %p8242_p2 }
 0x195   :  { %8250 = shalt.err (!%p8247_p6)
}
 0x196   :  { %308 = dma.hbm_to_vmem [thread:$0]  %s304_s12, 16, %s306_s29, [#allocation15]  }
 0x197   :  { %s10513_s22 = sld [smem:[#allocation100_spill]]  ;;  %s8707_s19 = smov [#allocation19]  }
 0x198   :  { %s331_s23 = sshll.u32 %s8707_s19, 4  ;;  %s8263_s25 = sshra.s32 %s330_s16, 4  ;;  %s332_s23 = int_to_ptr.vmem [resolvable:$true] %s331_s23  ;;  %s8264_s25 = int_to_ptr.hbm [resolvable:$true] %s8263_s25 }
 0x199   :  { %s8265_s24 = scalar_lea.hbm %s8264_s25, 1  ;;  %s8267_s3 = scalar_lea.hbm %s10512_s5, 1 }
 0x19a   :  { %p8266_p7 = scmp.ne.s32.totalorder %s8264_s25, %s8265_s24  ;;  %p8268_p8 = scmp.lt.s32.totalorder %s8264_s25, %s10512_s5 }
 0x19b   :  { %p8269_p9 = scmp.lt.s32.totalorder %s8267_s3, %s8265_s24 }
 0x19d   :  { %s351_s28 = sshll.u32 %s10513_s22, 4  ;;  %p8270_p10 = por %p8269_p9, %p8268_p8  ;;  %s352_s28 = int_to_ptr.hbm [resolvable:$true] %s351_s28 }
 0x19f   :  { %p8271_p11 = pnand %p8270_p10, %p8266_p7 }
 0x1a1   :  { %8274 = shalt.err (!%p8271_p11)
}
 0x1a2   :  { %334 = dma.hbm_to_vmem [thread:$0]  %s330_s16, 16, %s332_s23, [#allocation18]  }
 0x1a3   :  { %s10514_s26 = sld [smem:[#allocation101_spill]]  ;;  %s8708_s1 = smov [#allocation22]  }
 0x1a4   :  { %s353_s2 = sshll.u32 %s8708_s1, 4  ;;  %s8287_s0 = sshra.s32 %s352_s28, 4  ;;  %s354_s2 = int_to_ptr.vmem [resolvable:$true] %s353_s2  ;;  %s8288_s0 = int_to_ptr.hbm [resolvable:$true] %s8287_s0 }
 0x1a5   :  { %s8289_s6 = scalar_lea.hbm %s8288_s0, 1  ;;  %s8291_s17 = scalar_lea.hbm %s10513_s22, 1 }
 0x1a6   :  { %p8290_p12 = scmp.ne.s32.totalorder %s8288_s0, %s8289_s6  ;;  %p8292_p13 = scmp.lt.s32.totalorder %s8288_s0, %s10513_s22 }
 0x1a7   :  { %p8293_p0 = scmp.lt.s32.totalorder %s8291_s17, %s8289_s6 }
 0x1a9   :  { %s373_s20 = sshll.u32 %s10514_s26, 4  ;;  %p8294_p1 = por %p8293_p0, %p8292_p13  ;;  %s374_s20 = int_to_ptr.hbm [resolvable:$true] %s373_s20 }
 0x1ab   :  { %p8295_p2 = pnand %p8294_p1, %p8290_p12 }
 0x1ad   :  { %8298 = shalt.err (!%p8295_p2)
}
 0x1ae   :  { %356 = dma.hbm_to_vmem [thread:$0]  %s352_s28, 16, %s354_s2, [#allocation21]  }
 0x1af   :  { %s10515_s12 = sld [smem:[#allocation102_spill]]  ;;  %s8709_s10 = smov [#allocation25]  }
 0x1b0   :  { %s375_s27 = sshll.u32 %s8709_s10, 4  ;;  %s8311_s5 = sshra.s32 %s374_s20, 4  ;;  %s376_s27 = int_to_ptr.vmem [resolvable:$true] %s375_s27  ;;  %s8312_s5 = int_to_ptr.hbm [resolvable:$true] %s8311_s5 }
 0x1b1   :  { %s8313_s16 = scalar_lea.hbm %s8312_s5, 1  ;;  %s8315_s14 = scalar_lea.hbm %s10514_s26, 1 }
 0x1b2   :  { %p8314_p3 = scmp.ne.s32.totalorder %s8312_s5, %s8313_s16  ;;  %p8316_p4 = scmp.lt.s32.totalorder %s8312_s5, %s10514_s26 }
 0x1b3   :  { %p8317_p5 = scmp.lt.s32.totalorder %s8315_s14, %s8313_s16 }
 0x1b5   :  { %s395_s15 = sshll.u32 %s10515_s12, 4  ;;  %p8318_p6 = por %p8317_p5, %p8316_p4  ;;  %s396_s15 = int_to_ptr.hbm [resolvable:$true] %s395_s15 }
 0x1b7   :  { %p8319_p7 = pnand %p8318_p6, %p8314_p3 }
 0x1b9   :  { %8322 = shalt.err (!%p8319_p7)
}
 0x1ba   :  { %378 = dma.hbm_to_vmem [thread:$0]  %s374_s20, 16, %s376_s27, [#allocation24]  }
 0x1bb   :  { %s10516_s29 = sld [smem:[#allocation105_spill]]  ;;  %s8710_s18 = smov [#allocation28]  }
 0x1bc   :  { %s397_s9 = sshll.u32 %s8710_s18, 4  ;;  %s8335_s22 = sshra.s32 %s396_s15, 4  ;;  %s398_s9 = int_to_ptr.vmem [resolvable:$true] %s397_s9  ;;  %s8336_s22 = int_to_ptr.hbm [resolvable:$true] %s8335_s22 }
 0x1bd   :  { %s8337_s19 = scalar_lea.hbm %s8336_s22, 1  ;;  %s8339_s23 = scalar_lea.hbm %s10515_s12, 1 }
 0x1be   :  { %p8338_p8 = scmp.ne.s32.totalorder %s8336_s22, %s8337_s19  ;;  %p8340_p9 = scmp.lt.s32.totalorder %s8336_s22, %s10515_s12 }
 0x1bf   :  { %p8341_p10 = scmp.lt.s32.totalorder %s8339_s23, %s8337_s19 }
 0x1c1   :  { %s421_s11 = sshll.u32 %s10516_s29, 4  ;;  %p8342_p11 = por %p8341_p10, %p8340_p9  ;;  %s422_s11 = int_to_ptr.hbm [resolvable:$true] %s421_s11 }
 0x1c3   :  { %p8343_p12 = pnand %p8342_p11, %p8338_p8 }
 0x1c5   :  { %8346 = shalt.err (!%p8343_p12)
}
 0x1c6   :  { %400 = dma.hbm_to_vmem [thread:$0]  %s396_s15, 16, %s398_s9, [#allocation27]  }
 0x1c7   :  { %s10517_s28 = sld [smem:[#allocation108_spill]]  ;;  %s8711_s25 = smov [#allocation31]  }
 0x1c8   :  { %s423_s24 = sshll.u32 %s8711_s25, 4  ;;  %s8359_s26 = sshra.s32 %s422_s11, 4  ;;  %s424_s24 = int_to_ptr.vmem [resolvable:$true] %s423_s24  ;;  %s8360_s26 = int_to_ptr.hbm [resolvable:$true] %s8359_s26 }
 0x1c9   :  { %s8361_s20 = scalar_lea.hbm %s8360_s26, 1  ;;  %s8363_s1 = scalar_lea.hbm %s10516_s29, 1 }
 0x1ca   :  { %p8362_p13 = scmp.ne.s32.totalorder %s8360_s26, %s8361_s20  ;;  %p8364_p0 = scmp.lt.s32.totalorder %s8360_s26, %s10516_s29 }
 0x1cb   :  { %p8365_p1 = scmp.lt.s32.totalorder %s8363_s1, %s8361_s20 }
 0x1cd   :  { %s447_s3 = sshll.u32 %s10517_s28, 4  ;;  %p8366_p2 = por %p8365_p1, %p8364_p0  ;;  %s448_s3 = int_to_ptr.hbm [resolvable:$true] %s447_s3 }
 0x1cf   :  { %p8367_p3 = pnand %p8366_p2, %p8362_p13 }
 0x1d1   :  { %8370 = shalt.err (!%p8367_p3)
}
 0x1d2   :  { %426 = dma.hbm_to_vmem [thread:$0]  %s422_s11, 16, %s424_s24, [#allocation30]  }
 0x1d3   :  { %s10518_s2 = sld [smem:[#allocation109_spill]]  ;;  %s8712_s6 = smov [#allocation34]  }
 0x1d4   :  { %s449_s17 = sshll.u32 %s8712_s6, 4  ;;  %s8383_s12 = sshra.s32 %s448_s3, 4  ;;  %s450_s17 = int_to_ptr.vmem [resolvable:$true] %s449_s17  ;;  %s8384_s12 = int_to_ptr.hbm [resolvable:$true] %s8383_s12 }
 0x1d5   :  { %s8385_s10 = scalar_lea.hbm %s8384_s12, 1  ;;  %s8387_s27 = scalar_lea.hbm %s10517_s28, 1 }
 0x1d6   :  { %p8386_p4 = scmp.ne.s32.totalorder %s8384_s12, %s8385_s10  ;;  %p8388_p5 = scmp.lt.s32.totalorder %s8384_s12, %s10517_s28 }
 0x1d7   :  { %p8389_p6 = scmp.lt.s32.totalorder %s8387_s27, %s8385_s10 }
 0x1d9   :  { %s468_s0 = sshll.u32 %s10518_s2, 4  ;;  %p8390_p7 = por %p8389_p6, %p8388_p5  ;;  %s9196_s0 = int_to_ptr.hbm [resolvable:$true] %s468_s0 }
 0x1db   :  { %p8391_p8 = pnand %p8390_p7, %p8386_p4 }
 0x1dd   :  { %8394 = shalt.err (!%p8391_p8)
}
 0x1de   :  { %452 = dma.hbm_to_vmem [thread:$0]  %s448_s3, 16, %s450_s17, [#allocation33]  }
 0x1df   :  { %s10519_s15 = sld [smem:[#allocation117_spill]]  ;;  %s8713_s5 = smov [#allocation37]  }
 0x1e0   :  { %s470_s16 = sshll.u32 %s8713_s5, 4  ;;  %s8407_s29 = sshra.s32 %s9196_s0, 4  ;;  %s471_s16 = int_to_ptr.vmem [resolvable:$true] %s470_s16  ;;  %s8408_s29 = int_to_ptr.hbm [resolvable:$true] %s8407_s29 }
 0x1e1   :  { %s8409_s11 = scalar_lea.hbm %s8408_s29, 32  ;;  %s8411_s18 = scalar_lea.hbm %s10518_s2, 32 }
 0x1e2   :  { %p8410_p9 = scmp.ne.s32.totalorder %s8408_s29, %s8409_s11  ;;  %p8412_p10 = scmp.lt.s32.totalorder %s8408_s29, %s10518_s2 }
 0x1e3   :  { %p8413_p11 = scmp.lt.s32.totalorder %s8411_s18, %s8409_s11 }
 0x1e5   :  { %s508_s14 = sshll.u32 %s10519_s15, 4  ;;  %p8414_p12 = por %p8413_p11, %p8412_p10  ;;  %s9201_s14 = int_to_ptr.hbm [resolvable:$true] %s508_s14 }
 0x1e7   :  { %p8415_p13 = pnand %p8414_p12, %p8410_p9 }
 0x1e9   :  { %8418 = shalt.err (!%p8415_p13)
}
 0x1ea   :  { %s10520_s9 = sld [smem:[#allocation119_spill]]  ;;  %s8714_s19 = smov [#allocation40]  }
 0x1eb   :  { %476 = dma.hbm_to_vmem [thread:$0]  %s9196_s0, 512, %s471_s16, [#allocation36], %s10415_s30, %s10415_s30, %s10416_s7  }
 0x1ec   :  { %s510_s23 = sshll.u32 %s8714_s19, 4  ;;  %s8431_s28 = sshra.s32 %s9201_s14, 4  ;;  %s511_s23 = int_to_ptr.vmem [resolvable:$true] %s510_s23  ;;  %s8432_s28 = int_to_ptr.hbm [resolvable:$true] %s8431_s28 }
 0x1ed   :  { %s8433_s25 = scalar_lea.hbm %s8432_s28, 32  ;;  %s8435_s24 = scalar_lea.hbm %s10519_s15, 32 }
 0x1ee   :  { %p8434_p0 = scmp.ne.s32.totalorder %s8432_s28, %s8433_s25  ;;  %p8436_p1 = scmp.lt.s32.totalorder %s8432_s28, %s10519_s15 }
 0x1ef   :  { %p8437_p2 = scmp.lt.s32.totalorder %s8435_s24, %s8433_s25 }
 0x1f0   :  { %s534_s22 = sshll.u32 %s10520_s9, 4  ;;  %s9211_s22 = int_to_ptr.hbm [resolvable:$true] %s534_s22 }
 0x1f1   :  { %p8438_p3 = por %p8437_p2, %p8436_p1 }
 0x1f3   :  { %p8439_p4 = pnand %p8438_p3, %p8434_p0 }
 0x1f5   :  { %8442 = shalt.err (!%p8439_p4)
}
 0x1f6   :  { %s10521_s3 = sld [smem:[#allocation121_spill]]  ;;  %s8715_s26 = smov [#allocation43]  }
 0x1f7   :  { %516 = dma.hbm_to_vmem [thread:$0]  %s9201_s14, 512, %s511_s23, [#allocation39], %s10415_s30, %s10415_s30, %s10416_s7  }
 0x1f8   :  { %s536_s20 = sshll.u32 %s8715_s26, 4  ;;  %s8455_s2 = sshra.s32 %s9211_s22, 4  ;;  %s537_s20 = int_to_ptr.vmem [resolvable:$true] %s536_s20  ;;  %s8456_s2 = int_to_ptr.hbm [resolvable:$true] %s8455_s2 }
 0x1f9   :  { %s8457_s0 = scalar_lea.hbm %s8456_s2, 32  ;;  %s8459_s6 = scalar_lea.hbm %s10520_s9, 32 }
 0x1fa   :  { %p8458_p5 = scmp.ne.s32.totalorder %s8456_s2, %s8457_s0  ;;  %p8460_p6 = scmp.lt.s32.totalorder %s8456_s2, %s10520_s9 }
 0x1fb   :  { %p8461_p7 = scmp.lt.s32.totalorder %s8459_s6, %s8457_s0 }
 0x1fc   :  { %s561_s1 = sshll.u32 %s10521_s3, 4  ;;  %s562_s1 = int_to_ptr.hbm [resolvable:$true] %s561_s1 }
 0x1fd   :  { %p8462_p8 = por %p8461_p7, %p8460_p6 }
 0x1ff   :  { %p8463_p9 = pnand %p8462_p8, %p8458_p5 }
 0x201   :  { %8466 = shalt.err (!%p8463_p9)
}
 0x202   :  { %s10522_s17 = sld [smem:[#allocation123_spill]]  ;;  %s8716_s10 = smov [#allocation46]  }
 0x203   :  { %542 = dma.hbm_to_vmem [thread:$0]  %s9211_s22, 512, %s537_s20, [#allocation42], %s10415_s30, %s10415_s30, %s10416_s7  }
 0x204   :  { %s563_s27 = sshll.u32 %s8716_s10, 4  ;;  %s8479_s15 = sshra.s32 %s562_s1, 4  ;;  %s564_s27 = int_to_ptr.vmem [resolvable:$true] %s563_s27  ;;  %s8480_s15 = int_to_ptr.hbm [resolvable:$true] %s8479_s15 }
 0x205   :  { %s8481_s5 = scalar_lea.hbm %s8480_s15, 1  ;;  %s8483_s16 = scalar_lea.hbm %s10521_s3, 1 }
 0x206   :  { %p8482_p10 = scmp.ne.s32.totalorder %s8480_s15, %s8481_s5  ;;  %p8484_p11 = scmp.lt.s32.totalorder %s8480_s15, %s10521_s3 }
 0x207   :  { %p8485_p12 = scmp.lt.s32.totalorder %s8483_s16, %s8481_s5 }
 0x208   :  { %s583_s12 = sshll.u32 %s10522_s17, 4  ;;  %s584_s12 = int_to_ptr.hbm [resolvable:$true] %s583_s12 }
 0x209   :  { %p8486_p13 = por %p8485_p12, %p8484_p11 }
 0x20b   :  { %p8487_p0 = pnand %p8486_p13, %p8482_p10 }
 0x20d   :  { %8490 = shalt.err (!%p8487_p0)
}
 0x20e   :  { %566 = dma.hbm_to_vmem [thread:$0]  %s562_s1, 16, %s564_s27, [#allocation45]  }
 0x20f   :  { %s10523_s14 = sld [smem:[#allocation125_spill]]  ;;  %s8717_s29 = smov [#allocation49]  }
 0x210   :  { %s585_s11 = sshll.u32 %s8717_s29, 4  ;;  %s8503_s9 = sshra.s32 %s584_s12, 4  ;;  %s586_s11 = int_to_ptr.vmem [resolvable:$true] %s585_s11  ;;  %s8504_s9 = int_to_ptr.hbm [resolvable:$true] %s8503_s9 }
 0x211   :  { %s8505_s22 = scalar_lea.hbm %s8504_s9, 1  ;;  %s8507_s19 = scalar_lea.hbm %s10522_s17, 1 }
 0x212   :  { %p8506_p1 = scmp.ne.s32.totalorder %s8504_s9, %s8505_s22  ;;  %p8508_p2 = scmp.lt.s32.totalorder %s8504_s9, %s10522_s17 }
 0x213   :  { %p8509_p3 = scmp.lt.s32.totalorder %s8507_s19, %s8505_s22 }
 0x215   :  { %s604_s18 = sshll.u32 %s10523_s14, 4  ;;  %p8510_p4 = por %p8509_p3, %p8508_p2  ;;  %s605_s18 = int_to_ptr.hbm [resolvable:$true] %s604_s18 }
 0x217   :  { %p8511_p5 = pnand %p8510_p4, %p8506_p1 }
 0x219   :  { %8514 = shalt.err (!%p8511_p5)
}
 0x21a   :  { %588 = dma.hbm_to_vmem [thread:$0]  %s584_s12, 16, %s586_s11, [#allocation48]  }
 0x21b   :  { %s8718_s23 = smov [#allocation52]   ;;  %s8527_s25 = sshra.s32 %s605_s18, 4  ;;  %s8528_s25 = int_to_ptr.hbm [resolvable:$true] %s8527_s25 }
 0x21c   :  { %s606_s28 = sshll.u32 %s8718_s23, 4  ;;  %s8529_s24 = scalar_lea.hbm %s8528_s25, 32  ;;  %s607_s28 = int_to_ptr.vmem [resolvable:$true] %s606_s28 }
 0x21d   :  { %p8530_p6 = scmp.ne.s32.totalorder %s8528_s25, %s8529_s24  ;;  %s8531_s3 = scalar_lea.hbm %s10523_s14, 32 }
 0x21e   :  { %p8532_p7 = scmp.lt.s32.totalorder %s8528_s25, %s10523_s14  ;;  %p8533_p8 = scmp.lt.s32.totalorder %s8531_s3, %s8529_s24 }
 0x220   :  { %p8534_p9 = por %p8533_p8, %p8532_p7 }
 0x222   :  { %p8535_p10 = pnand %p8534_p9, %p8530_p6 }
 0x224   :  { %8538 = shalt.err (!%p8535_p10)
}
 0x225   :  { %612 = dma.hbm_to_vmem [thread:$0]  %s605_s18, 512, %s607_s28, [#allocation51], %s10415_s30, %s10415_s30, %s10416_s7  }
 0x226   :  { %8575 = dma.done.wait [#allocation3], 16  }
 0x227   :  { %8576 = vsyncadd [#allocation3], 4294967280 }
 0x228   :  { %8577 = dma.done.wait [#allocation6], 32  }
 0x229   :  { %8578 = vsyncadd [#allocation6], 4294967264 }
 0x22a   :  { %8579 = dma.done.wait [#allocation9], 32  }
 0x22b   :  { %8580 = vsyncadd [#allocation9], 4294967264 }
 0x22c   :  { %8581 = dma.done.wait [#allocation12], 32  }
 0x22d   :  { %8582 = vsyncadd [#allocation12], 4294967264 }
 0x22e   :  { %8583 = dma.done.wait [#allocation15], 32  }
 0x22f   :  { %8584 = vsyncadd [#allocation15], 4294967264 }
 0x230   :  { %8585 = dma.done.wait [#allocation18], 32  }
 0x231   :  { %8586 = vsyncadd [#allocation18], 4294967264 }
 0x232   :  { %8587 = dma.done.wait [#allocation21], 32  }
 0x233   :  { %8588 = vsyncadd [#allocation21], 4294967264 }
 0x234   :  { %8589 = dma.done.wait [#allocation24], 32  }
 0x235   :  { %8590 = vsyncadd [#allocation24], 4294967264 }
 0x236   :  { %8591 = dma.done.wait [#allocation27], 32  }
 0x237   :  { %8592 = vsyncadd [#allocation27], 4294967264 }
 0x238   :  { %8593 = dma.done.wait [#allocation30], 32  }
 0x239   :  { %8594 = vsyncadd [#allocation30], 4294967264 }
 0x23a   :  { %8595 = dma.done.wait [#allocation33], 32  }
 0x23b   :  { %8596 = vsyncadd [#allocation33], 4294967264 }
 0x23c   :  { %8597 = dma.done.wait [#allocation36], 528  }
 0x23d   :  { %8598 = vsyncadd [#allocation36], 4294966768 }
 0x23e   :  { %8599 = dma.done.wait [#allocation39], 1024  }
 0x23f   :  { %8600 = vsyncadd [#allocation39], 4294966272 }
 0x240   :  { %8601 = dma.done.wait [#allocation42], 528  }
 0x241   :  { %8602 = vsyncadd [#allocation42], 4294966768 }
 0x242   :  { %8603 = dma.done.wait [#allocation45], 32  }
 0x243   :  { %8604 = vsyncadd [#allocation45], 4294967264 }
 0x244   :  { %8605 = dma.done.wait [#allocation48], 32  }
 0x245   :  { %8606 = vsyncadd [#allocation48], 4294967264 }
 0x246   :  { %8607 = dma.done.wait [#allocation51], 528  }
 0x247   :  { %8608 = vsyncadd [#allocation51], 4294966768  ;;  %s10524_s26 = sld [smem:[#allocation127_spill]]  ;;  %v8719_v0 = vmov 0   ;;  %vm936_vm0 = vcmask 1041408   ;;  %v923_v1 = vld [vmem:[%s9097_s4] sm:$0xff]  ;;  %v924_v10 = vlaneseq }
 0x248   :  { %7311 = vset.pattern.permute.xlu0 %v8719_v0  ;;  %s10525_s20 = sld [smem:[#allocation107_spill]]  ;;  %vm932_vm1 = vcmask 408576   ;;  %v8720_v13 = vmov 0.0   ;;  %vm965_vm3 = vcmask 261120   ;;  %v7312_v22 = vld [vmem:[#allocation32] ss:$0 sm:$0xff] }
 0x249   :  { %927 = vperm.xlu0 %7311, %v923_v1   ;;  %s10526_s1 = sld [smem:[#allocation126_spill]]  ;;  %v9249_v11 = vand.u32 127, %v924_v10  ;;  %s10417_s2 = smov 64   ;;  %vm992_vm4 = vcmask 64512   ;;  %vm1426_vm9 = vcmask 523264  }
 0x24a   :  { %s10429_s0 = smov 96   ;;  %s10433_s6 = smov 88  }
 0x24b   :  { %s10437_s17 = smov 120   ;;  %s10423_s12 = smov 56  }
 0x24c   :  { %s10431_s10 = smov 104   ;;  %s10427_s27 = smov 80  }
 0x24d   :  { %v913_v2 = vld [vmem:[%s10524_s26 + $0x30] sm:$0x3]  ;;  %v912_v3 = vld [vmem:[%s10524_s26 + $0x28] sm:$0xff]  ;;  %v911_v4 = vld [vmem:[%s10524_s26 + $0x20] sm:$0xff]  ;;  %s10435_s15 = smov 112   ;;  %s10527_s5 = sld [smem:[#allocation73_spill]] }
 0x24e   :  { %6947 = vmatpush.msk.msra.mxu0 %vm936_vm0, %v913_v2  ;;  %v910_v5 = vld [vmem:[%s10524_s26 + $0x18] sm:$0xff]  ;;  %v909_v6 = vld [vmem:[%s10524_s26 + $0x10] sm:$0xff]  ;;  %v908_v7 = vld [vmem:[%s10524_s26 + $0x8] sm:$0xff]  ;;  %s10528_s16 = sld [smem:[#allocation106_spill]]  ;;  %s10425_s14 = smov 72  }
 0x24f   :  { %v907_v8 = vld [vmem:[%s10524_s26] sm:$0xff]  ;;  %v854_v9 = vld [vmem:[%s10525_s20 + $0x18] sm:$0xff]  ;;  %v853_v15 = vld [vmem:[%s10525_s20 + $0x10] sm:$0xff]  ;;  %s10421_s29 = smov 48   ;;  %s10419_s11 = smov 40  }
 0x250   :  { %950 = vmatpush.msra.mxu0 %v912_v3  ;;  %981 = vmatpush.msra.mxu1 %v854_v9  ;;  %v852_v16 = vld [vmem:[%s10525_s20 + $0x8] sm:$0xff]  ;;  %v851_v17 = vld [vmem:[%s10525_s20] sm:$0xff]  ;;  %s10529_s18 = sld [smem:[#allocation110_spill]] }
 0x251   :  { %v9258_v18 = vld [vmem:[%s10526_s1] sm:$0xff]  ;;  %s10530_s9 = sld [smem:[#allocation112_spill]] }
 0x252   :  { %951 = vmatpush.msra.mxu0 %v911_v4  ;;  %982 = vmatpush.msra.mxu1 %v853_v15  ;;  %s10531_s22 = sld [smem:[#allocation111_spill]] }
 0x253   :  { %v9289_v32 = vld [vmem:[%s10527_s5] ss:$0 sm:$0xff]  ;;  %s10532_s19 = sld [smem:[#allocation114_spill]] }
 0x254   :  { %952 = vmatpush.msra.mxu0 %v910_v5  ;;  %983 = vmatpush.msra.mxu1 %v852_v16  ;;  %v848_v55 = vld [vmem:[%s10528_s16 + $0x8] sm:$0xff]  ;;  %v847_v60 = vld [vmem:[%s10528_s16] sm:$0xff]  ;;  %s10533_s23 = sld [smem:[#allocation113_spill]] }
 0x255   :  { %s10534_s28 = sld [smem:[#allocation116_spill]] }
 0x256   :  { %953 = vmatpush.msra.mxu0 %v909_v6  ;;  %984 = vmatpush.msra.mxu1 %v851_v17  ;;  %s10535_s25 = sld [smem:[#allocation91_spill]] }
 0x257   :  { %s10536_s24 = sld [smem:[#allocation115_spill]] }
 0x258   :  { %954 = vmatpush.msra.mxu0 %v908_v7  ;;  %s10537_s3 = sld [smem:[#allocation120_spill]] }
 0x259   :  { %s10538_s30 = sld [smem:[#allocation118_spill]] }
 0x25a   :  { %955 = vmatpush.msra.mxu0 %v907_v8  ;;  %s10539_s7 = sld [smem:[#allocation72_spill]] }
 0x25b   :  { %s10551_s13 = sld [smem:[#allocation83_spill]] }
 0x2bb   :  { %v928_v12 = vpop.permute.xlu0 %927 }
 0x2bc   :  { %vm929_vm2 = vcmp.eq.s32.totalorder %v9249_v11, %v928_v12 }
 0x2bd   :  { %v6946_v14 = vsel %vm929_vm2, 1.0, %v8720_v13 }
 0x2be   :  { %6948 = vmatmul.msk.f32.vlgmr.msra.gmra.mxu0 %vm932_vm1, %v6946_v14 }
 0x33b   :  { %v957_v19 = vpop.f32.mrf.mxu0 }
 0x33c   :  { %v960_v20 = vmul.f32 5.656854, %v957_v19 }
 0x33e   :  { %v9261_v21 = vadd.f32 %v960_v20, %v9258_v18 }
 0x340   :  { %6949 = vmatmul.msk.f32.vlgmr.msra.gmra.mxu1 %vm965_vm3, %v9261_v21 }
 0x3bd   :  { %v986_v23 = vpop.f32.mrf.mxu1 }
 0x3be   :  { %v9265_v24 = vadd.f32 %v7312_v22, %v986_v23 }
 0x3c0   :  { %1033 = vrot.lane.b32.xlu2 %v9265_v24, %s10417_s2  ;;  %990 = vrot.lane.b32.xlu0 %v9265_v24, %s10429_s0 }
 0x3c8   :  { %1061 = vrot.lane.b32.xlu2 %v9265_v24, %s10433_s6  ;;  %1059 = vrot.lane.b32.xlu0 %v9265_v24, %s10437_s17 }
 0x3d0   :  { %1100 = vrot.lane.b32.xlu0 %v9265_v24, %s10423_s12 }
 0x3d8   :  { %1263 = vrot.lane.b32.xlu0 %v9265_v24, %s10431_s10 }
 0x3e0   :  { %1174 = vrot.lane.b32.xlu0 %v9265_v24, %s10427_s27 }
 0x3e8   :  { %1172 = vrot.lane.b32.xlu0 %v9265_v24, %s10435_s15 }
 0x41a   :  { %v1034_v25 = vpop.permute.xlu2 %1033 }
 0x41b   :  { %1054 = vmatpush.msra.mxu3 %v1034_v25 }
 0x422   :  { %v1062_v26 = vpop.permute.xlu2 %1061 }
 0x423   :  { %6953 = vmatpush.xpose.msk.msrb.mxu3 %vm992_vm4, %v1062_v26 }
 0x432   :  { %v991_v27 = vpop.permute.xlu0 %990 }
 0x433   :  { %6950 = vmatpush.xpose.msk.msra.mxu2 %vm992_vm4, %v991_v27 }
 0x436   :  { %6951 = vmatmul.msk.f32.vlgmr.msra.gmra.mxu2 %vm992_vm4, %v9265_v24 }
 0x43a   :  { %v1060_v28 = vpop.permute.xlu0 %1059 }
 0x442   :  { %v1101_v29 = vpop.permute.xlu0 %1100 }
 0x443   :  { %1121 = vmatpush.msrb.mxu2 %v1101_v29 }
 0x44a   :  { %v1264_v30 = vpop.permute.xlu0 %1263 }
 0x452   :  { %v1175_v31 = vpop.permute.xlu0 %1174 }
 0x453   :  { %6958 = vmatpush.xpose.msk.msra.mxu2 %vm992_vm4, %v1175_v31 }
 0x45a   :  { %v1173_v59 = vpop.permute.xlu0 %1172 }
 0x4b9   :  { %v1014_v33 = vpop.f32.mrf.mxu2 }
 0x4ba   :  { %v1017_v34 = vmul.f32 0.35355338, %v1014_v33 }
 0x4bc   :  { %v1021_v35 = vadd.f32 %v9289_v32, %v1017_v34 }
 0x4be   :  { %v1022_v36 = vsel %vm992_vm4, %v1021_v35, -inf }
 0x4bf   :  { %1023 = vmax.xlane.f32.xlu1 %v1022_v36 }
 0x532   :  { %v1024_v37 = vpop.xlane.xlu1 %1023 }
 0x533   :  { %v1025_v38 = vsub.f32 %v1021_v35, %v1024_v37  ;;  %v850_v35 = vld [vmem:[%s10528_s16 + $0x18] sm:$0xff] }
 0x535   :  { %v1026_v39 = vmul.f32 1.442695, %v1025_v38 }
 0x537   :  { %7357 = vpow2.f32 %v1026_v39  ;;  %v7314_v39 = vld [vmem:[#allocation31] ss:$0 sm:$0xff] }
 0x53d   :  { %v7358_v40 = vpop.eup %7357 }
 0x53e   :  { %v1028_v41 = vsel %vm992_vm4, %v7358_v40, 0.0 }
 0x53f   :  { %1029 = vadd.xlane.f32.xlu1 %v1028_v41 }
 0x5b2   :  { %v1030_v42 = vpop.xlane.xlu1 %1029 }
 0x5b3   :  { %7359 = vrcp.f32 %v1030_v42 }
 0x5b9   :  { %v7360_v43 = vpop.eup %7359 }
 0x5ba   :  { %v1032_v44 = vmul.f32 %v7360_v43, %v7358_v40 }
 0x5bc   :  { %6952 = vmatmul.msk.f32.vlgmr.msra.gmra.mxu3 %vm992_vm4, %v1032_v44 }
 0x5bd   :  { %1144 = vmatpush.msra.mxu3 %v848_v55 }
 0x5c4   :  { %6954 = vmatmul.msk.f32.vlgmr.msrb.gmra.mxu3 %vm992_vm4, %v1060_v28  ;;  %v849_v28 = vld [vmem:[%s10528_s16 + $0x10] sm:$0xff] }
 0x5c5   :  { %1167 = vmatpush.msrb.mxu3 %v847_v60  ;;  %1257 = vmatpush.msrb.mxu1 %v849_v28  ;;  %v868_v60 = vld [vmem:[%s10529_s18 + $0x38] sm:$0xff]  ;;  %v7318_v28 = vld [vmem:[#allocation35] ss:$0 sm:$0xff] }
 0x63f   :  { %v1056_v45 = vpop.f32.mrf.mxu3 }
 0x647   :  { %v1084_v46 = vpop.f32.mrf.mxu3 }
 0x648   :  { %v1087_v47 = vmul.f32 0.35355338, %v1084_v46 }
 0x64a   :  { %v1088_v48 = vadd.f32 %v9289_v32, %v1087_v47 }
 0x64c   :  { %v1089_v49 = vsel %vm992_vm4, %v1088_v48, -inf }
 0x64d   :  { %1090 = vmax.xlane.f32.xlu1 %v1089_v49 }
 0x666   :  { %1265 = vrot.lane.b32.xlu1 %v9265_v24, %s10425_s14 }
 0x6c0   :  { %v1091_v50 = vpop.xlane.xlu1 %1090 }
 0x6c1   :  { %v1092_v51 = vsub.f32 %v1088_v48, %v1091_v50 }
 0x6c3   :  { %v1093_v52 = vmul.f32 1.442695, %v1092_v51 }
 0x6c5   :  { %7361 = vpow2.f32 %v1093_v52 }
 0x6cb   :  { %v7362_v53 = vpop.eup %7361 }
 0x6cc   :  { %v1095_v54 = vsel %vm992_vm4, %v7362_v53, 0.0 }
 0x6cd   :  { %1096 = vadd.xlane.f32.xlu2 %v1095_v54 }
 0x6d8   :  { %v1266_v62 = vpop.permute.xlu1 %1265 }
 0x740   :  { %v1097_v56 = vpop.xlane.xlu2 %1096 }
 0x741   :  { %7363 = vrcp.f32 %v1097_v56  ;;  %v860_v56 = vld [vmem:[#allocation37 + $0x18] sm:$0xff] }
 0x742   :  { %1414 = vmatpush.msra.mxu1 %v860_v56 }
 0x747   :  { %v7364_v57 = vpop.eup %7363 }
 0x748   :  { %v1099_v58 = vmul.f32 %v7364_v57, %v7362_v53  ;;  %v859_v57 = vld [vmem:[#allocation37 + $0x10] sm:$0xff] }
 0x749   :  { %1415 = vmatpush.msra.mxu1 %v859_v57  ;;  %v7321_v57 = vld [vmem:[%s10534_s28] ss:$0 sm:$0xff] }
 0x74a   :  { %6955 = vmatmul.msk.f32.vlgmr.msrb.gmra.mxu2 %vm992_vm4, %v1099_v58  ;;  %v858_v58 = vld [vmem:[#allocation37 + $0x8] sm:$0xff] }
 0x74b   :  { %1416 = vmatpush.msra.mxu1 %v858_v58 }
 0x752   :  { %6959 = vmatmul.msk.f32.vlgmr.msra.gmra.mxu2 %vm992_vm4, %v1173_v59  ;;  %v857_v59 = vld [vmem:[#allocation37] sm:$0xff] }
 0x753   :  { %1417 = vmatpush.msra.mxu1 %v857_v59 }
 0x7cd   :  { %v1123_v61 = vpop.f32.mrf.mxu2 }
 0x7ce   :  { %6956 = vmatmul.msk.f32.vlgmr.msra.gmra.mxu3 %vm992_vm4, %v1123_v61  ;;  %v867_v61 = vld [vmem:[%s10529_s18 + $0x30] sm:$0xff] }
 0x7cf   :  { %6962 = vmatpush.xpose.msk.msra.mxu3 %vm992_vm4, %v1266_v62  ;;  %v866_v62 = vld [vmem:[%s10529_s18 + $0x28] sm:$0xff] }
 0x7d5   :  { %v1197_v63 = vpop.f32.mrf.mxu2 }
 0x7d6   :  { %v1200_v0 = vmul.f32 0.35355338, %v1197_v63  ;;  %6957 = vmatmul.msk.f32.vlgmr.msrb.gmra.mxu3 %vm992_vm4, %v1056_v45  ;;  %v8732_v45 = vmov 32.0  }
 0x7d7   :  { %1438 = vmatpush.msrb.mxu3 %v868_v60 }
 0x7d8   :  { %v1201_v1 = vadd.f32 %v9289_v32, %v1200_v0 }
 0x7d9   :  { %1439 = vmatpush.msrb.mxu3 %v867_v61 }
 0x7da   :  { %v1202_v2 = vsel %vm992_vm4, %v1201_v1, -inf }
 0x7db   :  { %1203 = vmax.xlane.f32.xlu0 %v1202_v2  ;;  %1440 = vmatpush.msrb.mxu3 %v866_v62 }
 0x7de   :  { %6963 = vmatmul.msk.f32.vlgmr.msra.gmra.mxu3 %vm992_vm4, %v1264_v30 }
 0x84e   :  { %v1204_v3 = vpop.xlane.xlu0 %1203 }
 0x84f   :  { %v1205_v4 = vsub.f32 %v1201_v1, %v1204_v3  ;;  %v865_v1 = vld [vmem:[%s10529_s18 + $0x20] sm:$0xff]  ;;  %v864_v3 = vld [vmem:[%s10529_s18 + $0x18] sm:$0xff] }
 0x850   :  { %1441 = vmatpush.msrb.mxu3 %v865_v1 }
 0x851   :  { %v1206_v5 = vmul.f32 1.442695, %v1205_v4  ;;  %v1146_v6 = vpop.f32.mrf.mxu3 }
 0x852   :  { %1442 = vmatpush.msrb.mxu3 %v864_v3 }
 0x853   :  { %7365 = vpow2.f32 %v1206_v5 }
 0x859   :  { %v7366_v7 = vpop.eup %7365  ;;  %v1169_v8 = vpop.f32.mrf.mxu3 }
 0x85a   :  { %v1208_v9 = vsel %vm992_vm4, %v7366_v7, 0.0 }
 0x85b   :  { %1209 = vadd.xlane.f32.xlu2 %v1208_v9 }
 0x861   :  { %v1288_v10 = vpop.f32.mrf.mxu3 }
 0x862   :  { %v1291_v12 = vmul.f32 0.35355338, %v1288_v10  ;;  %v7315_v10 = vld [vmem:[%s10530_s9] ss:$0 sm:$0xff] }
 0x864   :  { %v1292_v14 = vadd.f32 %v9289_v32, %v1291_v12 }
 0x866   :  { %v1293_v15 = vsel %vm992_vm4, %v1292_v14, -inf }
 0x867   :  { %1294 = vmax.xlane.f32.xlu1 %v1293_v15  ;;  %v7316_v15 = vld [vmem:[%s10531_s22] ss:$0 sm:$0xff] }
 0x880   :  { %1213 = vrot.lane.b32.xlu1 %v9265_v24, %s10421_s29 }
 0x8ce   :  { %v1210_v22 = vpop.xlane.xlu2 %1209 }
 0x8da   :  { %v1295_v16 = vpop.xlane.xlu1 %1294 }
 0x8db   :  { %v1296_v17 = vsub.f32 %v1292_v14, %v1295_v16 }
 0x8dd   :  { %v1297_v19 = vmul.f32 1.442695, %v1296_v17 }
 0x8df   :  { %7367 = vpow2.f32 %v1297_v19  ;;  %v863_v19 = vld [vmem:[%s10529_s18 + $0x10] sm:$0xff] }
 0x8e0   :  { %7369 = vrcp.f32 %v1210_v22  ;;  %1443 = vmatpush.msrb.mxu3 %v863_v19  ;;  %v861_v22 = vld [vmem:[%s10529_s18] sm:$0xff] }
 0x8e5   :  { %v7368_v20 = vpop.eup %7367 }
 0x8e6   :  { %v1299_v23 = vsel %vm992_vm4, %v7368_v20, 0.0  ;;  %v7370_v25 = vpop.eup %7369 }
 0x8e7   :  { %1300 = vadd.xlane.f32.xlu2 %v1299_v23  ;;  %v1212_v27 = vmul.f32 %v7370_v25, %v7366_v7  ;;  %v7317_v23 = vld [vmem:[#allocation34] ss:$0 sm:$0xff] }
 0x8f2   :  { %v1214_v26 = vpop.permute.xlu1 %1213 }
 0x8f3   :  { %1234 = vmatpush.msrb.mxu0 %v1214_v26 }
 0x8f4   :  { %6960 = vmatmul.msk.f32.vlgmr.msrb.gmra.mxu0 %vm992_vm4, %v1212_v27 }
 0x8f5   :  { %1348 = vmatpush.msra.mxu0 %v850_v35 }
 0x8ff   :  { %1304 = vrot.lane.b32.xlu2 %v9265_v24, %s10419_s11  ;;  %v1170_v24 = vadd.f32 %v1169_v8, %v1146_v6 }
 0x95a   :  { %v1301_v29 = vpop.xlane.xlu2 %1300 }
 0x95b   :  { %7371 = vrcp.f32 %v1301_v29 }
 0x95c   :  { %7373 = vrcp.f32 %v8732_v45 }
 0x961   :  { %v7372_v30 = vpop.eup %7371 }
 0x962   :  { %v1303_v31 = vmul.f32 %v7372_v30, %v7368_v20  ;;  %v1305_v33 = vpop.permute.xlu2 %1304  ;;  %v7374_v46 = vpop.eup %7373  ;;  %v862_v20 = vld [vmem:[%s10529_s18 + $0x8] sm:$0xff] }
 0x963   :  { %1325 = vmatpush.msrb.mxu2 %v1305_v33  ;;  %v1363_v47 = vmul.f32 32.0, %v7374_v46  ;;  %vm1367_vm5 = vweird.f32 %v7374_v46  ;;  %1444 = vmatpush.msrb.mxu3 %v862_v20 }
 0x964   :  { %6964 = vmatmul.msk.f32.vlgmr.msrb.gmra.mxu2 %vm992_vm4, %v1303_v31 }
 0x965   :  { %v1364_v48 = vsub.f32 1.0, %v1363_v47  ;;  %1445 = vmatpush.msrb.mxu3 %v861_v22 }
 0x967   :  { %v1365_v49 = vmul.f32 %v7374_v46, %v1364_v48 }
 0x969   :  { %v1366_v50 = vadd.f32 %v7374_v46, %v1365_v49 }
 0x96b   :  { %v9327_v51 = vsel %vm1367_vm5, %v7374_v46, %v1366_v50 }
 0x971   :  { %v1236_v34 = vpop.f32.mrf.mxu0 }
 0x972   :  { %6961 = vmatmul.msk.f32.vlgmr.msrb.gmra.mxu1 %vm992_vm4, %v1236_v34 }
 0x9e7   :  { %v1327_v36 = vpop.f32.mrf.mxu2 }
 0x9e8   :  { %6965 = vmatmul.msk.f32.vlgmr.msra.gmra.mxu0 %vm992_vm4, %v1327_v36 }
 0x9ef   :  { %v1259_v37 = vpop.f32.mrf.mxu1 }
 0x9f0   :  { %v1262_v38 = vadd.f32 %v1259_v37, %v1170_v24 }
 0xa65   :  { %v1350_v40 = vpop.f32.mrf.mxu0 }
 0xa66   :  { %v1353_v41 = vadd.f32 %v1350_v40, %v1262_v38  ;;  %v882_v38 = vld [vmem:[#allocation40 + $0x18] sm:$0xff]  ;;  %v880_v40 = vld [vmem:[#allocation40 + $0x8] sm:$0xff] }
 0xa67   :  { %1499 = vmatpush.msra.mxu2 %v882_v38 }
 0xa68   :  { %v1357_v42 = vadd.f32 %v7314_v39, %v1353_v41  ;;  %v881_v39 = vld [vmem:[#allocation40 + $0x10] sm:$0xff]  ;;  %v879_v41 = vld [vmem:[#allocation40] sm:$0xff] }
 0xa69   :  { %1500 = vmatpush.msra.mxu2 %v881_v39 }
 0xa6a   :  { %v1358_v43 = vadd.f32 %v1357_v42, %v9261_v21 }
 0xa6b   :  { %1501 = vmatpush.msra.mxu2 %v880_v40 }
 0xa6c   :  { %v1359_v44 = vsel %vm965_vm3, %v1358_v43, 0.0 }
 0xa6d   :  { %1360 = vadd.xlane.f32.xlu2 %v1359_v44  ;;  %1502 = vmatpush.msra.mxu2 %v879_v41 }
 0xae0   :  { %v1361_v52 = vpop.xlane.xlu2 %1360 }
 0xae1   :  { %v1369_v53 = vmul.f32 %v9327_v51, %v1361_v52  ;;  %v7319_v52 = vld [vmem:[%s10532_s19] ss:$0 sm:$0xff] }
 0xae3   :  { %v1370_v21 = vsub.f32 %v1358_v43, %v1369_v53 }
 0xae5   :  { %v1371_v54 = vmul.f32 %v1370_v21, %v1370_v21 }
 0xae7   :  { %v1372_v55 = vsel %vm965_vm3, %v1371_v54, 0.0  ;;  %v7320_v54 = vld [vmem:[%s10533_s23] ss:$0 sm:$0xff] }
 0xae8   :  { %1373 = vadd.xlane.f32.xlu0 %v1372_v55 }
 0xb5b   :  { %v1374_v63 = vpop.xlane.xlu0 %1373 }
 0xb5c   :  { %v1375_v0 = vmul.f32 %v1374_v63, %v9327_v51 }
 0xb5e   :  { %v1376_v2 = vadd.f32 1e-05, %v1375_v0 }
 0xb60   :  { %7375 = vrsqrt.f32 %v1376_v2  ;;  %vm1383_vm7 = vweird.f32 %v1376_v2 }
 0xb66   :  { %v7376_v4 = vpop.eup %7375 }
 0xb67   :  { %v1378_v5 = vmul.f32 %v7376_v4, %v1376_v2  ;;  %vm1384_vm6 = vweird.f32 %v7376_v4  ;;  %v875_v2 = vld [vmem:[#allocation38] sm:$0xff] }
 0xb68   :  { %vm1385_vm8 = vmor %vm1383_vm7, %vm1384_vm6  ;;  %1681 = vmatpush.msra.mxu3 %v875_v2 }
 0xb69   :  { %v1379_v6 = vmul.f32 %v7376_v4, %v1378_v5 }
 0xb6b   :  { %v1380_v7 = vmul.f32 0.5, %v1379_v6 }
 0xb6d   :  { %v1381_v8 = vsub.f32 1.5, %v1380_v7 }
 0xb6f   :  { %v1382_v9 = vmul.f32 %v7376_v4, %v1381_v8 }
 0xb71   :  { %v1386_v12 = vsel %vm1385_vm8, %v7376_v4, %v1382_v9 }
 0xb72   :  { %v1387_v14 = vmul.f32 %v1386_v12, %v1370_v21 }
 0xb74   :  { %v1391_v16 = vmul.f32 %v7315_v10, %v1387_v14 }
 0xb76   :  { %v1395_v17 = vadd.f32 %v7316_v15, %v1391_v16 }
 0xb78   :  { %6966 = vmatmul.msk.f32.vlgmr.msra.gmra.mxu1 %vm965_vm3, %v1395_v17 }
 0xbf5   :  { %v1419_v25 = vpop.f32.mrf.mxu1 }
 0xbf6   :  { %v1420_v26 = vadd.f32 %v7317_v23, %v1419_v25 }
 0xbf8   :  { %v1422_v27 = vmax.f32 %v1420_v26, 0.0 }
 0xbfa   :  { %6967 = vmatmul.msk.f32.vlgmr.msrb.gmra.mxu3 %vm1426_vm9, %v1422_v27 }
 0xc7d   :  { %v1447_v29 = vpop.f32.mrf.mxu3 }
 0xc7e   :  { %v1448_v30 = vadd.f32 %v7318_v28, %v1447_v29 }
 0xc80   :  { %v1450_v31 = vadd.f32 %v1448_v30, %v1395_v17 }
 0xc82   :  { %v1451_v33 = vsel %vm965_vm3, %v1450_v31, 0.0 }
 0xc83   :  { %1452 = vadd.xlane.f32.xlu0 %v1451_v33 }
 0xcf6   :  { %v1453_v34 = vpop.xlane.xlu0 %1452 }
 0xcf7   :  { %v1454_v35 = vmul.f32 %v1453_v34, %v9327_v51 }
 0xcf9   :  { %v1455_v36 = vsub.f32 %v1450_v31, %v1454_v35 }
 0xcfb   :  { %v1456_v37 = vmul.f32 %v1455_v36, %v1455_v36 }
 0xcfd   :  { %v1457_v24 = vsel %vm965_vm3, %v1456_v37, 0.0 }
 0xcfe   :  { %1458 = vadd.xlane.f32.xlu0 %v1457_v24 }
 0xd71   :  { %v1459_v42 = vpop.xlane.xlu0 %1458 }
 0xd72   :  { %v1460_v43 = vmul.f32 %v1459_v42, %v9327_v51 }
 0xd74   :  { %v1461_v44 = vadd.f32 1e-05, %v1460_v43 }
 0xd76   :  { %7377 = vrsqrt.f32 %v1461_v44  ;;  %vm1468_vm11 = vweird.f32 %v1461_v44 }
 0xd7c   :  { %v7378_v45 = vpop.eup %7377 }
 0xd7d   :  { %v1463_v46 = vmul.f32 %v7378_v45, %v1461_v44  ;;  %vm1469_vm10 = vweird.f32 %v7378_v45 }
 0xd7e   :  { %vm1470_vm12 = vmor %vm1468_vm11, %vm1469_vm10 }
 0xd7f   :  { %v1464_v47 = vmul.f32 %v7378_v45, %v1463_v46 }
 0xd81   :  { %v1465_v48 = vmul.f32 0.5, %v1464_v47 }
 0xd83   :  { %v1466_v49 = vsub.f32 1.5, %v1465_v48 }
 0xd85   :  { %v1467_v50 = vmul.f32 %v7378_v45, %v1466_v49 }
 0xd87   :  { %v1471_v53 = vsel %vm1470_vm12, %v7378_v45, %v1467_v50 }
 0xd88   :  { %v1472_v21 = vmul.f32 %v1471_v53, %v1455_v36 }
 0xd8a   :  { %v1476_v55 = vmul.f32 %v7319_v52, %v1472_v21  ;;  %v1987_v21 = vld [vmem:[%s9102_s8] sm:$0xff] }
 0xd8c   :  { %v9350_v56 = vadd.f32 %v7320_v54, %v1476_v55  ;;  %v920_v54 = vld [vmem:[%s9092_s21 + $0x30] sm:$0x3]  ;;  %v919_v55 = vld [vmem:[%s9092_s21 + $0x28] sm:$0xff] }
 0xd8e   :  { %6968 = vmatmul.msk.f32.vlgmr.msra.gmra.mxu2 %vm965_vm3, %v9350_v56 }
 0xe11   :  { %v1504_v58 = vpop.f32.mrf.mxu2 }
 0xe12   :  { %v9355_v59 = vadd.f32 %v7321_v57, %v1504_v58  ;;  %v918_v57 = vld [vmem:[%s9092_s21 + $0x20] sm:$0xff]  ;;  %v917_v58 = vld [vmem:[%s9092_s21 + $0x18] sm:$0xff] }
 0xe14   :  { %1575 = vrot.lane.b32.xlu2 %v9355_v59, %s10433_s6  ;;  %1508 = vrot.lane.b32.xlu1 %v9355_v59, %s10429_s0 }
 0xe1c   :  { %1777 = vrot.lane.b32.xlu2 %v9355_v59, %s10431_s10 }
 0xe6e   :  { %v1576_v60 = vpop.permute.xlu2 %1575 }
 0xe6f   :  { %6972 = vmatpush.xpose.msk.msrb.mxu2 %vm992_vm4, %v1576_v60  ;;  %v916_v60 = vld [vmem:[%s9092_s21 + $0x10] sm:$0xff] }
 0xe76   :  { %v1778_v26 = vpop.permute.xlu2 %1777 }
 0xe86   :  { %v1509_v61 = vpop.permute.xlu1 %1508 }
 0xe87   :  { %6969 = vmatpush.xpose.msk.msrb.mxu0 %vm992_vm4, %v1509_v61  ;;  %v915_v61 = vld [vmem:[%s9092_s21 + $0x8] sm:$0xff] }
 0xe8a   :  { %6970 = vmatmul.msk.f32.vlgmr.msrb.gmra.mxu0 %vm992_vm4, %v9355_v59 }
 0xf07   :  { %v1531_v62 = vpop.f32.mrf.mxu0 }
 0xf08   :  { %v1534_v63 = vmul.f32 0.35355338, %v1531_v62  ;;  %v914_v62 = vld [vmem:[%s9092_s21] sm:$0xff] }
 0xf0a   :  { %v1535_v0 = vadd.f32 %v9289_v32, %v1534_v63 }
 0xf0c   :  { %v1536_v1 = vsel %vm992_vm4, %v1535_v0, -inf }
 0xf0d   :  { %1537 = vmax.xlane.f32.xlu0 %v1536_v1 }
 0xf21   :  { %1547 = vrot.lane.b32.xlu0 %v9355_v59, %s10417_s2 }
 0xf29   :  { %1573 = vrot.lane.b32.xlu0 %v9355_v59, %s10437_s17 }
 0xf31   :  { %1779 = vrot.lane.b32.xlu0 %v9355_v59, %s10425_s14 }
 0xf39   :  { %1688 = vrot.lane.b32.xlu0 %v9355_v59, %s10427_s27 }
 0xf80   :  { %v1538_v3 = vpop.xlane.xlu0 %1537 }
 0xf81   :  { %v1539_v4 = vsub.f32 %v1535_v0, %v1538_v3 }
 0xf83   :  { %v1540_v5 = vmul.f32 1.442695, %v1539_v4 }
 0xf85   :  { %7379 = vpow2.f32 %v1540_v5 }
 0xf8b   :  { %v7380_v6 = vpop.eup %7379 }
 0xf8c   :  { %v1542_v7 = vsel %vm992_vm4, %v7380_v6, 0.0 }
 0xf8d   :  { %1543 = vadd.xlane.f32.xlu1 %v1542_v7 }
 0xf93   :  { %v1548_v8 = vpop.permute.xlu0 %1547 }
 0xf94   :  { %1568 = vmatpush.msrb.mxu1 %v1548_v8 }
 0xf9b   :  { %v1574_v9 = vpop.permute.xlu0 %1573 }
 0xf9c   :  { %6973 = vmatmul.msk.f32.vlgmr.msrb.gmra.mxu2 %vm992_vm4, %v1574_v9  ;;  %v878_v9 = vld [vmem:[#allocation38 + $0x18] sm:$0xff] }
 0xfa3   :  { %v1780_v10 = vpop.permute.xlu0 %1779 }
 0xfa4   :  { %6981 = vmatpush.xpose.msk.msrb.mxu3 %vm992_vm4, %v1780_v10  ;;  %v876_v10 = vld [vmem:[#allocation38 + $0x8] sm:$0xff] }
 0xfa5   :  { %1658 = vmatpush.msra.mxu1 %v876_v10 }
 0xfa6   :  { %1686 = vrot.lane.b32.xlu1 %v9355_v59, %s10435_s15 }
 0xfab   :  { %v1689_v12 = vpop.permute.xlu0 %1688 }
 0xfac   :  { %6977 = vmatpush.xpose.msk.msra.mxu2 %vm992_vm4, %v1689_v12  ;;  %v877_v12 = vld [vmem:[#allocation38 + $0x10] sm:$0xff] }
0x1000   :  { %v1544_v14 = vpop.xlane.xlu1 %1543 }
0x1001   :  { %7381 = vrcp.f32 %v1544_v14  ;;  %v799_v14 = vld [vmem:[%s10535_s25 + $0x18] sm:$0xff] }
0x1007   :  { %v7382_v15 = vpop.eup %7381 }
0x1008   :  { %v1546_v16 = vmul.f32 %v7382_v15, %v7380_v6  ;;  %v798_v15 = vld [vmem:[%s10535_s25 + $0x10] sm:$0xff] }
0x100a   :  { %6971 = vmatmul.msk.f32.vlgmr.msrb.gmra.mxu1 %vm992_vm4, %v1546_v16  ;;  %v797_v16 = vld [vmem:[%s10535_s25 + $0x8] sm:$0xff] }
0x100b   :  { %1771 = vmatpush.msrb.mxu1 %v877_v12 }
0x1018   :  { %v1687_v17 = vpop.permute.xlu1 %1686 }
0x1019   :  { %6978 = vmatmul.msk.f32.vlgmr.msra.gmra.mxu2 %vm992_vm4, %v1687_v17  ;;  %v796_v17 = vld [vmem:[%s10535_s25] sm:$0xff] }
0x101f   :  { %v1598_v19 = vpop.f32.mrf.mxu2 }
0x1020   :  { %v1601_v20 = vmul.f32 0.35355338, %v1598_v19 }
0x1022   :  { %v1602_v22 = vadd.f32 %v9289_v32, %v1601_v20 }
0x1024   :  { %v1603_v23 = vsel %vm992_vm4, %v1602_v22, -inf }
0x1025   :  { %1604 = vmax.xlane.f32.xlu2 %v1603_v23 }
0x1087   :  { %v1570_v25 = vpop.f32.mrf.mxu1 }
0x1088   :  { %6976 = vmatmul.msk.f32.vlgmr.msra.gmra.mxu3 %vm992_vm4, %v1570_v25 }
0x1090   :  { %6982 = vmatmul.msk.f32.vlgmr.msrb.gmra.mxu3 %vm992_vm4, %v1778_v26 }
0x1098   :  { %v1605_v27 = vpop.xlane.xlu2 %1604 }
0x1099   :  { %v1606_v28 = vsub.f32 %v1602_v22, %v1605_v27  ;;  %v888_v27 = vld [vmem:[#allocation43 + $0x18] sm:$0xff] }
0x109b   :  { %v1607_v29 = vmul.f32 1.442695, %v1606_v28  ;;  %v887_v28 = vld [vmem:[#allocation43 + $0x10] sm:$0xff] }
0x109c   :  { %v1711_v30 = vpop.f32.mrf.mxu2 }
0x109d   :  { %7383 = vpow2.f32 %v1607_v29  ;;  %v1714_v31 = vmul.f32 0.35355338, %v1711_v30 }
0x109f   :  { %v1715_v33 = vadd.f32 %v9289_v32, %v1714_v31 }
0x10a1   :  { %v1716_v34 = vsel %vm992_vm4, %v1715_v33, -inf }
0x10a2   :  { %1717 = vmax.xlane.f32.xlu1 %v1716_v34  ;;  %v7322_v34 = vld [vmem:[%s10536_s24] ss:$0 sm:$0xff] }
0x10a3   :  { %v7384_v35 = vpop.eup %7383 }
0x10a4   :  { %v1609_v36 = vsel %vm992_vm4, %v7384_v35, 0.0 }
0x10a5   :  { %1610 = vadd.xlane.f32.xlu2 %v1609_v36 }
0x10bb   :  { %1727 = vrot.lane.b32.xlu1 %v9355_v59, %s10421_s29 }
0x110b   :  { %v9394_v37 = vpop.f32.mrf.mxu3 }
0x1113   :  { %v1802_v24 = vpop.f32.mrf.mxu3 }
0x1114   :  { %v1805_v38 = vmul.f32 0.35355338, %v1802_v24 }
0x1115   :  { %v1718_v39 = vpop.xlane.xlu1 %1717 }
0x1116   :  { %v1719_v40 = vsub.f32 %v1715_v33, %v1718_v39  ;;  %v1806_v41 = vadd.f32 %v9289_v32, %v1805_v38 }
0x1118   :  { %v1720_v42 = vmul.f32 1.442695, %v1719_v40  ;;  %v1807_v43 = vsel %vm992_vm4, %v1806_v41, -inf  ;;  %v1611_v47 = vpop.xlane.xlu2 %1610 }
0x1119   :  { %1808 = vmax.xlane.f32.xlu0 %v1807_v43 }
0x111a   :  { %7385 = vpow2.f32 %v1720_v42  ;;  %v886_v42 = vld [vmem:[#allocation43 + $0x8] sm:$0xff] }
0x1120   :  { %v7386_v44 = vpop.eup %7385 }
0x1121   :  { %v1722_v45 = vsel %vm992_vm4, %v7386_v44, 0.0 }
0x1122   :  { %1723 = vadd.xlane.f32.xlu2 %v1722_v45 }
0x112d   :  { %v1728_v4 = vpop.permute.xlu1 %1727 }
0x113a   :  { %1818 = vrot.lane.b32.xlu2 %v9355_v59, %s10419_s11 }
0x118c   :  { %v1809_v46 = vpop.xlane.xlu0 %1808 }
0x118d   :  { %v1810_v48 = vsub.f32 %v1806_v41, %v1809_v46 }
0x118f   :  { %v1811_v32 = vmul.f32 1.442695, %v1810_v48 }
0x1191   :  { %7387 = vpow2.f32 %v1811_v32 }
0x1195   :  { %v1724_v49 = vpop.xlane.xlu2 %1723 }
0x1197   :  { %v7388_v50 = vpop.eup %7387 }
0x1198   :  { %v1813_v52 = vsel %vm992_vm4, %v7388_v50, 0.0 }
0x1199   :  { %1814 = vadd.xlane.f32.xlu0 %v1813_v52  ;;  %v896_v52 = vld [vmem:[%s10537_s3 + $0x38] sm:$0xff] }
0x119a   :  { %1944 = vmatpush.msra.mxu3 %v896_v52 }
0x119d   :  { %v1819_v53 = vpop.permute.xlu2 %1818 }
0x119e   :  { %1839 = vmatpush.msrb.mxu2 %v1819_v53  ;;  %v895_v53 = vld [vmem:[%s10537_s3 + $0x30] sm:$0xff] }
0x119f   :  { %1945 = vmatpush.msra.mxu3 %v895_v53 }
0x11a0   :  { %6988 = vmatpush.msk.msra.mxu2 %vm936_vm0, %v920_v54  ;;  %v894_v54 = vld [vmem:[%s10537_s3 + $0x28] sm:$0xff] }
0x11a1   :  { %1946 = vmatpush.msra.mxu3 %v894_v54 }
0x11a2   :  { %2010 = vmatpush.msra.mxu2 %v919_v55 }
0x11a4   :  { %2011 = vmatpush.msra.mxu2 %v918_v57  ;;  %v893_v57 = vld [vmem:[%s10537_s3 + $0x20] sm:$0xff] }
0x11a5   :  { %1947 = vmatpush.msra.mxu3 %v893_v57 }
0x11a6   :  { %2012 = vmatpush.msra.mxu2 %v917_v58 }
0x11a8   :  { %2013 = vmatpush.msra.mxu2 %v916_v60  ;;  %v892_v60 = vld [vmem:[%s10537_s3 + $0x18] sm:$0xff] }
0x11a9   :  { %1948 = vmatpush.msra.mxu3 %v892_v60 }
0x11aa   :  { %2014 = vmatpush.msra.mxu2 %v915_v61 }
0x11ac   :  { %2015 = vmatpush.msra.mxu2 %v914_v62 }
0x11ad   :  { %1614 = vrot.lane.b32.xlu0 %v9355_v59, %s10423_s12 }
0x11b5   :  { %1989 = vperm.xlu0 %7311, %v1987_v21  }
0x120c   :  { %v1815_v63 = vpop.xlane.xlu0 %1814 }
0x120d   :  { %7389 = vrcp.f32 %v1815_v63 }
0x120e   :  { %7391 = vrcp.f32 %v1611_v47 }
0x120f   :  { %7393 = vrcp.f32 %v1724_v49 }
0x1213   :  { %v7390_v59 = vpop.eup %7389 }
0x1214   :  { %v1817_v0 = vmul.f32 %v7390_v59, %v7388_v50  ;;  %v7392_v1 = vpop.eup %7391  ;;  %v7324_v59 = vld [vmem:[#allocation46] ss:$0 sm:$0xff] }
0x1215   :  { %v1613_v2 = vmul.f32 %v7392_v1, %v7384_v35  ;;  %v7394_v5 = vpop.eup %7393 }
0x1216   :  { %6983 = vmatmul.msk.f32.vlgmr.msrb.gmra.mxu2 %vm992_vm4, %v1817_v0  ;;  %v1726_v6 = vmul.f32 %v7394_v5, %v7386_v44  ;;  %v891_v5 = vld [vmem:[%s10537_s3 + $0x10] sm:$0xff] }
0x1217   :  { %1949 = vmatpush.msra.mxu3 %v891_v5 }
0x121f   :  { %v1615_v3 = vpop.permute.xlu0 %1614 }
0x1220   :  { %1635 = vmatpush.msra.mxu0 %v1615_v3 }
0x1221   :  { %6974 = vmatmul.msk.f32.vlgmr.msra.gmra.mxu0 %vm992_vm4, %v1613_v2  ;;  %v7325_v2 = vld [vmem:[#allocation44] ss:$0 sm:$0xff] }
0x1222   :  { %1748 = vmatpush.msrb.mxu0 %v1728_v4 }
0x1224   :  { %1862 = vmatpush.msra.mxu0 %v878_v9 }
0x1227   :  { %v1990_v7 = vpop.permute.xlu0 %1989 }
0x1228   :  { %vm1991_vm13 = vcmp.eq.s32.totalorder %v9249_v11, %v1990_v7  ;;  %v889_v7 = vld [vmem:[%s10537_s3] sm:$0xff] }
0x1229   :  { %v6987_v8 = vsel %vm1991_vm13, 1.0, %v8720_v13  ;;  %6979 = vmatmul.msk.f32.vlgmr.msrb.gmra.mxu0 %vm992_vm4, %v1726_v6  ;;  %v890_v6 = vld [vmem:[%s10537_s3 + $0x8] sm:$0xff] }
0x122a   :  { %6989 = vmatmul.msk.f32.vlgmr.msra.gmra.mxu2 %vm932_vm1, %v6987_v8  ;;  %2040 = vmatpush.msrb.mxu0 %v799_v14  ;;  %v7326_v8 = vld [vmem:[%s10538_s30] ss:$0 sm:$0xff]  ;;  %s10568_s30 = sld [smem:[#allocation95_spill]] }
0x122b   :  { %1950 = vmatpush.msra.mxu3 %v890_v6 }
0x122c   :  { %2041 = vmatpush.msrb.mxu0 %v798_v15  ;;  %v9468_v15 = vld [vmem:[%s10539_s7] sm:$0xff]  ;;  %s10567_s7 = smov 40  }
0x122d   :  { %1951 = vmatpush.msra.mxu3 %v889_v7 }
0x122e   :  { %2042 = vmatpush.msrb.mxu0 %v797_v16 }
0x1230   :  { %2043 = vmatpush.msrb.mxu0 %v796_v17 }
0x1299   :  { %v1841_v19 = vpop.f32.mrf.mxu2 }
0x129a   :  { %6984 = vmatmul.msk.f32.vlgmr.msra.gmra.mxu0 %vm992_vm4, %v1841_v19 }
0x129e   :  { %v1637_v20 = vpop.f32.mrf.mxu0 }
0x129f   :  { %6975 = vmatmul.msk.f32.vlgmr.msra.gmra.mxu1 %vm992_vm4, %v1637_v20 }
0x12a0   :  { %1921 = vmatpush.msra.mxu1 %v888_v27 }
0x12a2   :  { %1922 = vmatpush.msra.mxu1 %v887_v28 }
0x12a4   :  { %1923 = vmatpush.msra.mxu1 %v886_v42 }
0x12a6   :  { %v1750_v22 = vpop.f32.mrf.mxu0 }
0x12a7   :  { %6980 = vmatmul.msk.f32.vlgmr.msrb.gmra.mxu1 %vm992_vm4, %v1750_v22 }
0x12ad   :  { %v2017_v23 = vpop.f32.mrf.mxu2 }
0x12ae   :  { %v2020_v25 = vmul.f32 5.656854, %v2017_v23 }
0x12b0   :  { %v9427_v26 = vadd.f32 %v2020_v25, %v9258_v18  ;;  %v7323_v18 = vld [vmem:[#allocation10] ss:$0 sm:$0xff] }
0x12b2   :  { %6990 = vmatmul.msk.f32.vlgmr.msrb.gmra.mxu0 %vm965_vm3, %v9427_v26 }
0x1317   :  { %v1864_v35 = vpop.f32.mrf.mxu0 }
0x131c   :  { %v1660_v29 = vpop.f32.mrf.mxu1 }
0x131d   :  { %v1684_v30 = vadd.f32 %v9394_v37, %v1660_v29  ;;  %v885_v37 = vld [vmem:[#allocation43] sm:$0xff] }
0x131e   :  { %1924 = vmatpush.msra.mxu1 %v885_v37 }
0x1324   :  { %v1773_v31 = vpop.f32.mrf.mxu1 }
0x1325   :  { %v1776_v33 = vadd.f32 %v1773_v31, %v1684_v30 }
0x1327   :  { %v1867_v36 = vadd.f32 %v1864_v35, %v1776_v33 }
0x1329   :  { %v1871_v24 = vadd.f32 %v7322_v34, %v1867_v36 }
0x132b   :  { %v1872_v38 = vadd.f32 %v1871_v24, %v9350_v56 }
0x132d   :  { %v1873_v39 = vsel %vm965_vm3, %v1872_v38, 0.0 }
0x132e   :  { %1874 = vadd.xlane.f32.xlu2 %v1873_v39 }
0x132f   :  { %v2045_v40 = vpop.f32.mrf.mxu0 }
0x1330   :  { %v9435_v41 = vadd.f32 %v7323_v18, %v2045_v40 }
0x1332   :  { %2049 = vrot.lane.b32.xlu1 %v9435_v41, %s10429_s0 }
0x13a1   :  { %v1875_v43 = vpop.xlane.xlu2 %1874 }
0x13a2   :  { %v1876_v44 = vmul.f32 %v1875_v43, %v9327_v51 }
0x13a4   :  { %v1877_v45 = vsub.f32 %v1872_v38, %v1876_v44  ;;  %v2050_v56 = vpop.permute.xlu1 %2049 }
0x13a5   :  { %6991 = vmatpush.xpose.msk.msrb.mxu1 %vm992_vm4, %v2050_v56 }
0x13a6   :  { %v1878_v46 = vmul.f32 %v1877_v45, %v1877_v45 }
0x13a8   :  { %v1879_v47 = vsel %vm965_vm3, %v1878_v46, 0.0 }
0x13a9   :  { %1880 = vadd.xlane.f32.xlu0 %v1879_v47 }
0x13bd   :  { %2088 = vrot.lane.b32.xlu0 %v9435_v41, %s10417_s2  ;;  %s10540_s2 = sld [smem:[#allocation90_spill]] }
0x13c3   :  { %v792_v28 = vld [vmem:[%s10540_s2] sm:$0xff] }
0x13c5   :  { %2229 = vrot.lane.b32.xlu0 %v9435_v41, %s10427_s27  ;;  %s10545_s27 = sld [smem:[#allocation74_spill]] }
0x13cd   :  { %2227 = vrot.lane.b32.xlu0 %v9435_v41, %s10435_s15 }
0x13d5   :  { %2318 = vrot.lane.b32.xlu0 %v9435_v41, %s10431_s10 }
0x141c   :  { %v1881_v48 = vpop.xlane.xlu0 %1880 }
0x141d   :  { %v1882_v32 = vmul.f32 %v1881_v48, %v9327_v51 }
0x141f   :  { %v1883_v49 = vadd.f32 1e-05, %v1882_v32 }
0x1421   :  { %7395 = vrsqrt.f32 %v1883_v49  ;;  %vm1890_vm15 = vweird.f32 %v1883_v49 }
0x1427   :  { %v7396_v50 = vpop.eup %7395 }
0x1428   :  { %v1885_v21 = vmul.f32 %v7396_v50, %v1883_v49  ;;  %vm1891_vm14 = vweird.f32 %v7396_v50 }
0x1429   :  { %vm1892_vm2 = vmor %vm1890_vm15, %vm1891_vm14 }
0x142a   :  { %v1886_v55 = vmul.f32 %v7396_v50, %v1885_v21 }
0x142c   :  { %v1887_v58 = vmul.f32 0.5, %v1886_v55 }
0x142e   :  { %v1888_v61 = vsub.f32 1.5, %v1887_v58 }
0x142f   :  { %v2089_v62 = vpop.permute.xlu0 %2088 }
0x1430   :  { %v1889_v63 = vmul.f32 %v7396_v50, %v1888_v61  ;;  %2109 = vmatpush.msra.mxu0 %v2089_v62  ;;  %v7327_v62 = vld [vmem:[#allocation41] ss:$0 sm:$0xff] }
0x1432   :  { %v1893_v0 = vsel %vm1892_vm2, %v7396_v50, %v1889_v63  ;;  %2222 = vmatpush.msrb.mxu0 %v792_v28 }
0x1433   :  { %v1894_v1 = vmul.f32 %v1893_v0, %v1877_v45 }
0x1435   :  { %v1898_v3 = vmul.f32 %v7324_v59, %v1894_v1 }
0x1437   :  { %v9456_v4 = vadd.f32 %v7325_v2, %v1898_v3  ;;  %v2230_v34 = vpop.permute.xlu0 %2229 }
0x1439   :  { %6985 = vmatmul.msk.f32.vlgmr.msra.gmra.mxu1 %vm965_vm3, %v9456_v4 }
0x143f   :  { %v2228_v24 = vpop.permute.xlu0 %2227 }
0x1441   :  { %6992 = vmatmul.msk.f32.vlgmr.msrb.gmra.mxu1 %vm992_vm4, %v9435_v41 }
0x1447   :  { %v2319_v37 = vpop.permute.xlu0 %2318 }
0x14b6   :  { %v1926_v9 = vpop.f32.mrf.mxu1 }
0x14b7   :  { %v1927_v10 = vadd.f32 %v7326_v8, %v1926_v9 }
0x14b9   :  { %v1929_v12 = vmax.f32 %v1927_v10, 0.0 }
0x14bb   :  { %6986 = vmatmul.msk.f32.vlgmr.msra.gmra.mxu3 %vm1426_vm9, %v1929_v12 }
0x14be   :  { %v2072_v14 = vpop.f32.mrf.mxu1 }
0x14bf   :  { %v2075_v16 = vmul.f32 0.35355338, %v2072_v14 }
0x14c1   :  { %v2076_v17 = vadd.f32 %v2075_v16, %v9468_v15 }
0x14c3   :  { %v2077_v19 = vsel %vm992_vm4, %v2076_v17, -inf }
0x14c4   :  { %2078 = vmax.xlane.f32.xlu1 %v2077_v19  ;;  %v793_v19 = vld [vmem:[%s10540_s2 + $0x8] sm:$0xff] }
0x14c5   :  { %2199 = vmatpush.msrb.mxu3 %v793_v19 }
0x14dd   :  { %2114 = vrot.lane.b32.xlu1 %v9435_v41, %s10437_s17 }
0x1537   :  { %v2079_v20 = vpop.xlane.xlu1 %2078 }
0x1538   :  { %v2080_v22 = vsub.f32 %v2076_v17, %v2079_v20 }
0x153a   :  { %v2081_v23 = vmul.f32 1.442695, %v2080_v22  ;;  %v794_v22 = vld [vmem:[%s10540_s2 + $0x10] sm:$0xff] }
0x153b   :  { %2312 = vmatpush.msra.mxu3 %v794_v22 }
0x153c   :  { %7397 = vpow2.f32 %v2081_v23 }
0x153e   :  { %v1953_v63 = vpop.f32.mrf.mxu3 }
0x153f   :  { %v1954_v59 = vadd.f32 %v7327_v62, %v1953_v63  ;;  %v7329_v63 = vld [vmem:[#allocation49] ss:$0 sm:$0xff] }
0x1541   :  { %v1956_v0 = vadd.f32 %v1954_v59, %v9456_v4 }
0x1542   :  { %v7398_v25 = vpop.eup %7397 }
0x1543   :  { %v2083_v27 = vsel %vm992_vm4, %v7398_v25, 0.0  ;;  %v1957_v1 = vsel %vm965_vm3, %v1956_v0, 0.0 }
0x1544   :  { %2084 = vadd.xlane.f32.xlu2 %v2083_v27 }
0x154f   :  { %v2115_v35 = vpop.permute.xlu1 %2114 }
0x155c   :  { %2116 = vrot.lane.b32.xlu2 %v9435_v41, %s10433_s6 }
0x1564   :  { %2320 = vrot.lane.b32.xlu2 %v9435_v41, %s10425_s14  ;;  %s10544_s14 = sld [smem:[#allocation84_spill]] }
0x15b7   :  { %v2085_v29 = vpop.xlane.xlu2 %2084 }
0x15b8   :  { %7399 = vrcp.f32 %v2085_v29 }
0x15be   :  { %v7400_v30 = vpop.eup %7399 }
0x15bf   :  { %v2087_v31 = vmul.f32 %v7400_v30, %v7398_v25  ;;  %v2117_v33 = vpop.permute.xlu2 %2116 }
0x15c0   :  { %6994 = vmatpush.xpose.msk.msra.mxu1 %vm992_vm4, %v2117_v33 }
0x15c1   :  { %6993 = vmatmul.msk.f32.vlgmr.msra.gmra.mxu0 %vm992_vm4, %v2087_v31 }
0x15c3   :  { %6995 = vmatmul.msk.f32.vlgmr.msra.gmra.mxu1 %vm992_vm4, %v2115_v35 }
0x15c4   :  { %6999 = vmatpush.xpose.msk.msrb.mxu1 %vm992_vm4, %v2230_v34 }
0x15c7   :  { %v2321_v36 = vpop.permute.xlu2 %2320 }
0x15c8   :  { %7003 = vmatpush.xpose.msk.msra.mxu0 %vm992_vm4, %v2321_v36  ;;  %v7328_v36 = vld [vmem:[#allocation8] ss:$0 sm:$0xff] }
0x15cb   :  { %7000 = vmatmul.msk.f32.vlgmr.msrb.gmra.mxu1 %vm992_vm4, %v2228_v24 }
0x163e   :  { %v2111_v38 = vpop.f32.mrf.mxu0 }
0x163f   :  { %6998 = vmatmul.msk.f32.vlgmr.msrb.gmra.mxu0 %vm992_vm4, %v2111_v38 }
0x1640   :  { %v2139_v18 = vpop.f32.mrf.mxu1 }
0x1641   :  { %v2142_v39 = vmul.f32 0.35355338, %v2139_v18 }
0x1643   :  { %v2143_v40 = vadd.f32 %v2142_v39, %v9468_v15 }
0x1645   :  { %v2144_v42 = vsel %vm992_vm4, %v2143_v40, -inf }
0x1646   :  { %2145 = vmax.xlane.f32.xlu2 %v2144_v42 }
0x1647   :  { %7004 = vmatmul.msk.f32.vlgmr.msra.gmra.mxu0 %vm992_vm4, %v2319_v37 }
0x1648   :  { %v2252_v43 = vpop.f32.mrf.mxu1 }
0x1649   :  { %v2255_v44 = vmul.f32 0.35355338, %v2252_v43 }
0x164b   :  { %v2256_v45 = vadd.f32 %v2255_v44, %v9468_v15 }
0x164d   :  { %v2257_v56 = vsel %vm992_vm4, %v2256_v45, -inf }
0x164e   :  { %2258 = vmax.xlane.f32.xlu1 %v2257_v56 }
0x16b9   :  { %v2146_v46 = vpop.xlane.xlu2 %2145 }
0x16ba   :  { %v2147_v47 = vsub.f32 %v2143_v40, %v2146_v46 }
0x16bc   :  { %v2148_v48 = vmul.f32 1.442695, %v2147_v47  ;;  %v9492_v32 = vpop.f32.mrf.mxu0 }
0x16be   :  { %7401 = vpow2.f32 %v2148_v48 }
0x16c1   :  { %v2259_v49 = vpop.xlane.xlu1 %2258 }
0x16c2   :  { %v2260_v50 = vsub.f32 %v2256_v45, %v2259_v49 }
0x16c4   :  { %v7402_v52 = vpop.eup %7401  ;;  %v2261_v53 = vmul.f32 1.442695, %v2260_v50  ;;  %v2343_v21 = vpop.f32.mrf.mxu0 }
0x16c5   :  { %v2346_v54 = vmul.f32 0.35355338, %v2343_v21  ;;  %v2150_v55 = vsel %vm992_vm4, %v7402_v52, 0.0 }
0x16c6   :  { %7403 = vpow2.f32 %v2261_v53  ;;  %2151 = vadd.xlane.f32.xlu2 %v2150_v55 }
0x16c7   :  { %v2347_v57 = vadd.f32 %v2346_v54, %v9468_v15 }
0x16c9   :  { %v2348_v58 = vsel %vm992_vm4, %v2347_v57, -inf }
0x16ca   :  { %2349 = vmax.xlane.f32.xlu0 %v2348_v58 }
0x16cc   :  { %v7404_v60 = vpop.eup %7403 }
0x16cd   :  { %v2263_v61 = vsel %vm992_vm4, %v7404_v60, 0.0 }
0x16ce   :  { %2264 = vadd.xlane.f32.xlu1 %v2263_v61 }
0x16de   :  { %2155 = vrot.lane.b32.xlu0 %v9435_v41, %s10423_s12  ;;  %s10543_s12 = sld [smem:[#allocation85_spill]] }
0x16e4   :  { %v7331_v22 = vld [vmem:[%s10543_s12] ss:$0 sm:$0xff]  ;;  %s10555_s12 = sld [smem:[#allocation104_spill]] }
0x16e7   :  { %2268 = vrot.lane.b32.xlu1 %v9435_v41, %s10421_s29  ;;  %s10542_s29 = sld [smem:[#allocation79_spill]] }
0x1711   :  { %1958 = vadd.xlane.f32.xlu1 %v1957_v1  ;;  %v7330_v1 = vld [vmem:[#allocation47] ss:$0 sm:$0xff] }
0x1739   :  { %v2152_v6 = vpop.xlane.xlu2 %2151 }
0x173d   :  { %v2350_v2 = vpop.xlane.xlu0 %2349 }
0x173e   :  { %v2351_v3 = vsub.f32 %v2347_v57, %v2350_v2 }
0x1740   :  { %v2352_v5 = vmul.f32 1.442695, %v2351_v3 }
0x1741   :  { %v2265_v10 = vpop.xlane.xlu1 %2264 }
0x1742   :  { %7405 = vpow2.f32 %v2352_v5  ;;  %v769_v5 = vld [vmem:[%s10542_s29 + $0x18] sm:$0xff] }
0x1743   :  { %7407 = vrcp.f32 %v2152_v6  ;;  %v768_v6 = vld [vmem:[%s10542_s29 + $0x10] sm:$0xff] }
0x1744   :  { %7409 = vrcp.f32 %v2265_v10 }
0x1748   :  { %v7406_v7 = vpop.eup %7405 }
0x1749   :  { %v2354_v8 = vsel %vm992_vm4, %v7406_v7, 0.0  ;;  %v7408_v9 = vpop.eup %7407 }
0x174a   :  { %2355 = vadd.xlane.f32.xlu2 %v2354_v8  ;;  %v2154_v12 = vmul.f32 %v7408_v9, %v7402_v52  ;;  %v7410_v14 = vpop.eup %7409  ;;  %v766_v8 = vld [vmem:[%s10542_s29] sm:$0xff] }
0x174b   :  { %v2267_v16 = vmul.f32 %v7410_v14, %v7404_v60 }
0x1750   :  { %v2156_v4 = vpop.permute.xlu0 %2155 }
0x1751   :  { %2176 = vmatpush.msrb.mxu2 %v2156_v4 }
0x1752   :  { %6996 = vmatmul.msk.f32.vlgmr.msrb.gmra.mxu2 %vm992_vm4, %v2154_v12 }
0x1759   :  { %v2269_v17 = vpop.permute.xlu1 %2268 }
0x175a   :  { %2289 = vmatpush.msra.mxu2 %v2269_v17 }
0x175b   :  { %7001 = vmatmul.msk.f32.vlgmr.msra.gmra.mxu2 %vm992_vm4, %v2267_v16 }
0x1762   :  { %2359 = vrot.lane.b32.xlu2 %v9435_v41, %s10419_s11  ;;  %v795_v41 = vld [vmem:[%s10540_s2 + $0x18] sm:$0xff]  ;;  %s10541_s11 = sld [smem:[#allocation77_spill]] }
0x1763   :  { %2403 = vmatpush.msrb.mxu2 %v795_v41  ;;  %v7333_v41 = vld [vmem:[%s10545_s27] ss:$0 sm:$0xff]  ;;  %s10563_s27 = smov 88  }
0x1768   :  { %v761_v56 = vld [vmem:[%s10541_s11 + $0x18] sm:$0xff]  ;;  %v760_v47 = vld [vmem:[%s10541_s11 + $0x10] sm:$0xff]  ;;  %v758_v49 = vld [vmem:[%s10541_s11] sm:$0xff] }
0x1769   :  { %2488 = vmatpush.msrb.mxu0 %v761_v56 }
0x176b   :  { %2489 = vmatpush.msrb.mxu0 %v760_v47 }
0x1784   :  { %v1959_v24 = vpop.xlane.xlu1 %1958 }
0x1785   :  { %v1960_v39 = vmul.f32 %v1959_v24, %v9327_v51 }
0x1787   :  { %v1961_v37 = vsub.f32 %v1956_v0, %v1960_v39 }
0x1789   :  { %v1962_v44 = vmul.f32 %v1961_v37, %v1961_v37 }
0x178b   :  { %v1963_v45 = vsel %vm965_vm3, %v1962_v44, 0.0 }
0x17bd   :  { %v2356_v20 = vpop.xlane.xlu2 %2355 }
0x17be   :  { %7411 = vrcp.f32 %v2356_v20 }
0x17c4   :  { %v7412_v23 = vpop.eup %7411 }
0x17c5   :  { %v2358_v25 = vmul.f32 %v7412_v23, %v7406_v7  ;;  %v2360_v27 = vpop.permute.xlu2 %2359  ;;  %v767_v7 = vld [vmem:[%s10542_s29 + $0x8] sm:$0xff]  ;;  %s10564_s29 = smov 104  }
0x17c6   :  { %2380 = vmatpush.msra.mxu1 %v2360_v27  ;;  %v7332_v27 = vld [vmem:[%s10544_s14] ss:$0 sm:$0xff]  ;;  %s10554_s14 = sld [smem:[#allocation81_spill]] }
0x17c7   :  { %7005 = vmatmul.msk.f32.vlgmr.msra.gmra.mxu1 %vm992_vm4, %v2358_v25 }
0x17d5   :  { %v2178_v28 = vpop.f32.mrf.mxu2 }
0x17d6   :  { %6997 = vmatmul.msk.f32.vlgmr.msrb.gmra.mxu3 %vm992_vm4, %v2178_v28 }
0x17d7   :  { %2462 = vmatpush.msrb.mxu3 %v769_v5 }
0x17d9   :  { %2463 = vmatpush.msrb.mxu3 %v768_v6 }
0x17db   :  { %2464 = vmatpush.msrb.mxu3 %v767_v7 }
0x17dd   :  { %2465 = vmatpush.msrb.mxu3 %v766_v8 }
0x17de   :  { %v2291_v29 = vpop.f32.mrf.mxu2 }
0x17df   :  { %7002 = vmatmul.msk.f32.vlgmr.msra.gmra.mxu3 %vm992_vm4, %v2291_v29 }
0x1844   :  { %v2382_v30 = vpop.f32.mrf.mxu1 }
0x1845   :  { %7006 = vmatmul.msk.f32.vlgmr.msrb.gmra.mxu2 %vm992_vm4, %v2382_v30 }
0x1859   :  { %v2201_v31 = vpop.f32.mrf.mxu3 }
0x185a   :  { %v2225_v34 = vadd.f32 %v9492_v32, %v2201_v31  ;;  %v759_v32 = vld [vmem:[%s10541_s11 + $0x8] sm:$0xff]  ;;  %s10566_s11 = smov 48  }
0x185b   :  { %2490 = vmatpush.msrb.mxu0 %v759_v32 }
0x185d   :  { %2491 = vmatpush.msrb.mxu0 %v758_v49 }
0x1862   :  { %v2314_v33 = vpop.f32.mrf.mxu3 }
0x1863   :  { %v2317_v35 = vadd.f32 %v2314_v33, %v2225_v34  ;;  %v7334_v34 = vld [vmem:[#allocation2] ss:$0 sm:$0xff] }
0x18c8   :  { %v2405_v38 = vpop.f32.mrf.mxu2 }
0x18c9   :  { %v2408_v18 = vadd.f32 %v2405_v38, %v2317_v35 }
0x18cb   :  { %v2412_v40 = vadd.f32 %v7328_v36, %v2408_v18  ;;  %v9553_v18 = vld [vmem:[%s10527_s5] ss:$0 sm:$0xff] }
0x18cd   :  { %v2413_v42 = vadd.f32 %v2412_v40, %v9427_v26 }
0x18cf   :  { %v2414_v43 = vsel %vm965_vm3, %v2413_v42, 0.0 }
0x18d0   :  { %2415 = vadd.xlane.f32.xlu0 %v2414_v43 }
0x18d8   :  { %1964 = vadd.xlane.f32.xlu0 %v1963_v45 }
0x1943   :  { %v2416_v46 = vpop.xlane.xlu0 %2415 }
0x1944   :  { %v2417_v48 = vmul.f32 %v2416_v46, %v9327_v51 }
0x1946   :  { %v2418_v50 = vsub.f32 %v2413_v42, %v2417_v48 }
0x1948   :  { %v2419_v26 = vmul.f32 %v2418_v50, %v2418_v50 }
0x194a   :  { %v2420_v52 = vsel %vm965_vm3, %v2419_v26, 0.0 }
0x194b   :  { %2421 = vadd.xlane.f32.xlu2 %v2420_v52  ;;  %v1965_v53 = vpop.xlane.xlu0 %1964 }
0x194c   :  { %v1966_v21 = vmul.f32 %v1965_v53, %v9327_v51 }
0x194e   :  { %v1967_v54 = vadd.f32 1e-05, %v1966_v21 }
0x1950   :  { %7413 = vrsqrt.f32 %v1967_v54  ;;  %vm1974_vm6 = vweird.f32 %v1967_v54 }
0x1956   :  { %v7414_v55 = vpop.eup %7413 }
0x1957   :  { %v1969_v57 = vmul.f32 %v7414_v55, %v1967_v54  ;;  %vm1975_vm5 = vweird.f32 %v7414_v55 }
0x1958   :  { %vm1976_vm7 = vmor %vm1974_vm6, %vm1975_vm5 }
0x1959   :  { %v1970_v58 = vmul.f32 %v7414_v55, %v1969_v57 }
0x195b   :  { %v1971_v60 = vmul.f32 0.5, %v1970_v58 }
0x195d   :  { %v1972_v61 = vsub.f32 1.5, %v1971_v60 }
0x195f   :  { %v1973_v62 = vmul.f32 %v7414_v55, %v1972_v61 }
0x1961   :  { %v1977_v59 = vsel %vm1976_vm7, %v7414_v55, %v1973_v62 }
0x1962   :  { %v1978_v0 = vmul.f32 %v1977_v59, %v1961_v37 }
0x1964   :  { %v1982_v2 = vmul.f32 %v7329_v63, %v1978_v0 }
0x1966   :  { %v9528_v3 = vadd.f32 %v7330_v1, %v1982_v2 }
0x1968   :  { %7008 = vmatmul.msk.f32.vlgmr.msrb.gmra.mxu0 %vm965_vm3, %v9528_v3 }
0x19be   :  { %v2422_v9 = vpop.xlane.xlu2 %2421 }
0x19bf   :  { %v2423_v10 = vmul.f32 %v2422_v9, %v9327_v51 }
0x19c1   :  { %v2424_v12 = vadd.f32 1e-05, %v2423_v10 }
0x19c3   :  { %7415 = vrsqrt.f32 %v2424_v12  ;;  %vm2431_vm10 = vweird.f32 %v2424_v12 }
0x19c9   :  { %v7416_v4 = vpop.eup %7415 }
0x19ca   :  { %v2426_v14 = vmul.f32 %v7416_v4, %v2424_v12  ;;  %vm2432_vm8 = vweird.f32 %v7416_v4 }
0x19cb   :  { %vm2433_vm11 = vmor %vm2431_vm10, %vm2432_vm8 }
0x19cc   :  { %v2427_v16 = vmul.f32 %v7416_v4, %v2426_v14 }
0x19ce   :  { %v2428_v17 = vmul.f32 0.5, %v2427_v16 }
0x19d0   :  { %v2429_v19 = vsub.f32 1.5, %v2428_v17 }
0x19d2   :  { %v2430_v20 = vmul.f32 %v7416_v4, %v2429_v19 }
0x19d4   :  { %v2434_v23 = vsel %vm2433_vm11, %v7416_v4, %v2430_v20 }
0x19d5   :  { %v2435_v25 = vmul.f32 %v2434_v23, %v2418_v50 }
0x19d7   :  { %v2439_v28 = vmul.f32 %v7331_v22, %v2435_v25 }
0x19d9   :  { %v9539_v29 = vadd.f32 %v7332_v27, %v2439_v28 }
0x19db   :  { %7007 = vmatmul.msk.f32.vlgmr.msrb.gmra.mxu3 %vm965_vm3, %v9539_v29 }
0x19e5   :  { %v2493_v30 = vpop.f32.mrf.mxu0 }
0x19e6   :  { %v9544_v31 = vadd.f32 %v7333_v41, %v2493_v30 }
0x19e8   :  { %2535 = vrot.lane.b32.xlu2 %v9544_v31, %s10429_s0  ;;  %7009 = vmatpush.xpose.msk.msrb.mxu1 %vm992_vm4, %v9544_v31  ;;  %s10546_s0 = sld [smem:[#allocation78_spill]] }
0x19ee   :  { %v762_v46 = vld [vmem:[%s10546_s0] sm:$0xff] }
0x1a42   :  { %v2536_v33 = vpop.permute.xlu2 %2535 }
0x1a43   :  { %2556 = vmatpush.msra.mxu2 %v2536_v33 }
0x1a45   :  { %2669 = vmatpush.msrb.mxu2 %v762_v46 }
0x1a5e   :  { %v2467_v35 = vpop.f32.mrf.mxu3 }
0x1a5f   :  { %v2468_v36 = vadd.f32 %v7334_v34, %v2467_v35 }
0x1a61   :  { %2765 = vrot.lane.b32.xlu2 %v2468_v36, %s10431_s10  ;;  %7010 = vmatmul.msk.f32.vlgmr.msrb.gmra.mxu1 %vm992_vm4, %v2468_v36 }
0x1abb   :  { %v2766_v21 = vpop.permute.xlu2 %2765 }
0x1ade   :  { %v2519_v24 = vpop.f32.mrf.mxu1 }
0x1adf   :  { %v2522_v38 = vmul.f32 0.35355338, %v2519_v24  ;;  %v763_v24 = vld [vmem:[%s10546_s0 + $0x8] sm:$0xff] }
0x1ae0   :  { %2646 = vmatpush.msra.mxu1 %v763_v24 }
0x1ae1   :  { %v2523_v39 = vadd.f32 %v9553_v18, %v2522_v38  ;;  %v764_v38 = vld [vmem:[%s10546_s0 + $0x10] sm:$0xff] }
0x1ae2   :  { %2759 = vmatpush.msrb.mxu1 %v764_v38 }
0x1ae3   :  { %v2524_v40 = vsel %vm992_vm4, %v2523_v39, -inf }
0x1ae4   :  { %2525 = vmax.xlane.f32.xlu0 %v2524_v40 }
0x1af8   :  { %2563 = vrot.lane.b32.xlu0 %v9544_v31, %s10437_s17 }
0x1b00   :  { %2767 = vrot.lane.b32.xlu0 %v9544_v31, %s10431_s10  ;;  %s10547_s10 = smov 80  }
0x1b08   :  { %2674 = vrot.lane.b32.xlu0 %v2468_v36, %s10435_s15 }
0x1b57   :  { %v2526_v42 = vpop.xlane.xlu0 %2525 }
0x1b58   :  { %v2527_v37 = vsub.f32 %v2523_v39, %v2526_v42 }
0x1b5a   :  { %v2528_v43 = vmul.f32 1.442695, %v2527_v37 }
0x1b5c   :  { %7417 = vpow2.f32 %v2528_v43 }
0x1b62   :  { %v7418_v44 = vpop.eup %7417 }
0x1b63   :  { %v2530_v45 = vsel %vm992_vm4, %v7418_v44, 0.0 }
0x1b64   :  { %2531 = vadd.xlane.f32.xlu1 %v2530_v45 }
0x1b6a   :  { %v2564_v56 = vpop.permute.xlu0 %2563 }
0x1b6b   :  { %7012 = vmatpush.xpose.msk.msra.mxu3 %vm992_vm4, %v2564_v56 }
0x1b72   :  { %v2768_v49 = vpop.permute.xlu0 %2767 }
0x1b7a   :  { %v2675_v52 = vpop.permute.xlu0 %2674 }
0x1b7d   :  { %2561 = vrot.lane.b32.xlu1 %v2468_v36, %s10437_s17  ;;  %s10550_s17 = sld [smem:[#allocation82_spill]] }
0x1b85   :  { %2676 = vrot.lane.b32.xlu1 %v9544_v31, %s10435_s15  ;;  %s10549_s15 = sld [smem:[#allocation75_spill]] }
0x1bd7   :  { %v2532_v47 = vpop.xlane.xlu1 %2531 }
0x1bd8   :  { %7419 = vrcp.f32 %v2532_v47 }
0x1bde   :  { %v7420_v48 = vpop.eup %7419 }
0x1bdf   :  { %v2534_v32 = vmul.f32 %v7420_v48, %v7418_v44 }
0x1be1   :  { %7011 = vmatmul.msk.f32.vlgmr.msra.gmra.mxu2 %vm992_vm4, %v2534_v32  ;;  %v7335_v32 = vld [vmem:[%s10549_s15] ss:$0 sm:$0xff]  ;;  %s10552_s15 = sld [smem:[#allocation86_spill]] }
0x1be2   :  { %7021 = vmatpush.xpose.msk.msra.mxu2 %vm992_vm4, %v2768_v49 }
0x1bef   :  { %v2562_v50 = vpop.permute.xlu1 %2561 }
0x1bf0   :  { %7013 = vmatmul.msk.f32.vlgmr.msra.gmra.mxu3 %vm992_vm4, %v2562_v50 }
0x1bf7   :  { %v2677_v26 = vpop.permute.xlu1 %2676 }
0x1bf8   :  { %7017 = vmatpush.xpose.msk.msrb.mxu3 %vm992_vm4, %v2677_v26 }
0x1bfb   :  { %7018 = vmatmul.msk.f32.vlgmr.msrb.gmra.mxu3 %vm992_vm4, %v2675_v52 }
0x1c64   :  { %v2558_v53 = vpop.f32.mrf.mxu2 }
0x1c65   :  { %7016 = vmatmul.msk.f32.vlgmr.msrb.gmra.mxu2 %vm992_vm4, %v2558_v53 }
0x1c6d   :  { %7022 = vmatmul.msk.f32.vlgmr.msra.gmra.mxu2 %vm992_vm4, %v2766_v21 }
0x1c73   :  { %v2586_v54 = vpop.f32.mrf.mxu3 }
0x1c74   :  { %v2589_v55 = vmul.f32 0.35355338, %v2586_v54 }
0x1c76   :  { %v2590_v57 = vadd.f32 %v9553_v18, %v2589_v55 }
0x1c78   :  { %v2591_v58 = vsel %vm992_vm4, %v2590_v57, -inf }
0x1c79   :  { %2592 = vmax.xlane.f32.xlu2 %v2591_v58 }
0x1c7e   :  { %v2699_v60 = vpop.f32.mrf.mxu3 }
0x1c7f   :  { %v2702_v61 = vmul.f32 0.35355338, %v2699_v60  ;;  %v775_v60 = vld [vmem:[%s10550_s17 + $0x18] sm:$0xff] }
0x1c81   :  { %v2703_v62 = vadd.f32 %v9553_v18, %v2702_v61  ;;  %v774_v61 = vld [vmem:[%s10550_s17 + $0x10] sm:$0xff] }
0x1c83   :  { %v2704_v63 = vsel %vm992_vm4, %v2703_v62, -inf }
0x1c84   :  { %2705 = vmax.xlane.f32.xlu0 %v2704_v63  ;;  %v783_v63 = vld [vmem:[%s10551_s13 + $0x38] sm:$0xff] }
0x1c85   :  { %2932 = vmatpush.msrb.mxu2 %v783_v63 }
0x1c98   :  { %2602 = vrot.lane.b32.xlu0 %v9544_v31, %s10433_s6  ;;  %s10548_s6 = smov 72  }
0x1ce8   :  { %v9581_v59 = vpop.f32.mrf.mxu2 }
0x1cec   :  { %v2593_v0 = vpop.xlane.xlu2 %2592 }
0x1ced   :  { %v2594_v1 = vsub.f32 %v2590_v57, %v2593_v0  ;;  %v781_v0 = vld [vmem:[%s10551_s13 + $0x28] sm:$0xff] }
0x1cef   :  { %v2595_v2 = vmul.f32 1.442695, %v2594_v1 }
0x1cf0   :  { %v2790_v5 = vpop.f32.mrf.mxu2 }
0x1cf1   :  { %7421 = vpow2.f32 %v2595_v2  ;;  %v2793_v6 = vmul.f32 0.35355338, %v2790_v5  ;;  %v780_v5 = vld [vmem:[%s10551_s13 + $0x20] sm:$0xff] }
0x1cf3   :  { %v2794_v7 = vadd.f32 %v9553_v18, %v2793_v6 }
0x1cf5   :  { %v2795_v8 = vsel %vm992_vm4, %v2794_v7, -inf }
0x1cf6   :  { %2796 = vmax.xlane.f32.xlu1 %v2795_v8 }
0x1cf7   :  { %v7422_v9 = vpop.eup %7421  ;;  %v2706_v10 = vpop.xlane.xlu0 %2705 }
0x1cf8   :  { %v2707_v12 = vsub.f32 %v2703_v62, %v2706_v10  ;;  %v2597_v4 = vsel %vm992_vm4, %v7422_v9, 0.0  ;;  %v772_v62 = vld [vmem:[%s10550_s17] sm:$0xff] }
0x1cf9   :  { %2598 = vadd.xlane.f32.xlu2 %v2597_v4 }
0x1cfa   :  { %v2708_v14 = vmul.f32 1.442695, %v2707_v12 }
0x1cfc   :  { %7423 = vpow2.f32 %v2708_v14 }
0x1d02   :  { %v7424_v16 = vpop.eup %7423 }
0x1d03   :  { %v2710_v17 = vsel %vm992_vm4, %v7424_v16, 0.0 }
0x1d04   :  { %2711 = vadd.xlane.f32.xlu2 %v2710_v17 }
0x1d0a   :  { %v2603_v19 = vpop.permute.xlu0 %2602 }
0x1d0b   :  { %2623 = vmatpush.msra.mxu0 %v2603_v19 }
0x1d1c   :  { %2715 = vrot.lane.b32.xlu2 %v9544_v31, %s10547_s10 }
0x1d69   :  { %v2797_v20 = vpop.xlane.xlu1 %2796 }
0x1d6a   :  { %v2798_v22 = vsub.f32 %v2794_v7, %v2797_v20  ;;  %v779_v7 = vld [vmem:[%s10551_s13 + $0x18] sm:$0xff]  ;;  %v7337_v20 = vld [vmem:[#allocation5] ss:$0 sm:$0xff] }
0x1d6c   :  { %v2799_v23 = vmul.f32 1.442695, %v2798_v22  ;;  %v2599_v25 = vpop.xlane.xlu2 %2598 }
0x1d6d   :  { %7425 = vrcp.f32 %v2599_v25  ;;  %v778_v25 = vld [vmem:[%s10551_s13 + $0x10] sm:$0xff] }
0x1d6e   :  { %7427 = vpow2.f32 %v2799_v23 }
0x1d73   :  { %v7426_v27 = vpop.eup %7425 }
0x1d74   :  { %v7428_v28 = vpop.eup %7427  ;;  %v2601_v41 = vmul.f32 %v7426_v27, %v7422_v9  ;;  %v777_v27 = vld [vmem:[%s10551_s13 + $0x8] sm:$0xff] }
0x1d75   :  { %v2801_v30 = vsel %vm992_vm4, %v7428_v28, 0.0 }
0x1d76   :  { %2802 = vadd.xlane.f32.xlu1 %v2801_v30  ;;  %7014 = vmatmul.msk.f32.vlgmr.msra.gmra.mxu0 %vm992_vm4, %v2601_v41 }
0x1d77   :  { %v2712_v33 = vpop.xlane.xlu2 %2711 }
0x1d78   :  { %7429 = vrcp.f32 %v2712_v33 }
0x1d7e   :  { %v7430_v34 = vpop.eup %7429 }
0x1d7f   :  { %v2714_v35 = vmul.f32 %v7430_v34, %v7424_v16  ;;  %v2716_v36 = vpop.permute.xlu2 %2715  ;;  %v7336_v16 = vld [vmem:[%s10552_s15] ss:$0 sm:$0xff]  ;;  %s10558_s15 = smov 96  }
0x1d80   :  { %2736 = vmatpush.msrb.mxu0 %v2716_v36 }
0x1d81   :  { %7019 = vmatmul.msk.f32.vlgmr.msrb.gmra.mxu0 %vm992_vm4, %v2714_v35  ;;  %v7339_v35 = vld [vmem:[%s10554_s14] ss:$0 sm:$0xff]  ;;  %s10556_s14 = sld [smem:[#allocation87_spill]] }
0x1d8f   :  { %2806 = vrot.lane.b32.xlu1 %v9544_v31, %s10548_s6  ;;  %v765_v31 = vld [vmem:[%s10546_s0 + $0x18] sm:$0xff]  ;;  %s10562_s0 = sld [smem:[#allocation93_spill]] }
0x1d90   :  { %2850 = vmatpush.msra.mxu0 %v765_v31  ;;  %v844_v31 = vld [vmem:[%s10555_s12 + $0x18] sm:$0xff] }
0x1de9   :  { %v2803_v40 = vpop.xlane.xlu1 %2802 }
0x1dea   :  { %7431 = vrcp.f32 %v2803_v40 }
0x1df0   :  { %v7432_v42 = vpop.eup %7431 }
0x1df1   :  { %v2805_v43 = vmul.f32 %v7432_v42, %v7428_v28  ;;  %v776_v28 = vld [vmem:[%s10551_s13] sm:$0xff] }
0x1df3   :  { %v2625_v39 = vpop.f32.mrf.mxu0 }
0x1df4   :  { %7015 = vmatmul.msk.f32.vlgmr.msra.gmra.mxu1 %vm992_vm4, %v2625_v39 }
0x1df5   :  { %2909 = vmatpush.msra.mxu1 %v775_v60 }
0x1df7   :  { %2910 = vmatpush.msra.mxu1 %v774_v61 }
0x1dfe   :  { %v2738_v37 = vpop.f32.mrf.mxu0 }
0x1dff   :  { %7020 = vmatmul.msk.f32.vlgmr.msrb.gmra.mxu1 %vm992_vm4, %v2738_v37 }
0x1e01   :  { %v2807_v44 = vpop.permute.xlu1 %2806 }
0x1e02   :  { %2827 = vmatpush.msra.mxu3 %v2807_v44 }
0x1e03   :  { %7023 = vmatmul.msk.f32.vlgmr.msra.gmra.mxu3 %vm992_vm4, %v2805_v43 }
0x1e04   :  { %2993 = vmatpush.msrb.mxu3 %v844_v31 }
0x1e71   :  { %v2648_v56 = vpop.f32.mrf.mxu1 }
0x1e72   :  { %v2672_v47 = vadd.f32 %v9581_v59, %v2648_v56  ;;  %v782_v59 = vld [vmem:[%s10551_s13 + $0x30] sm:$0xff]  ;;  %v842_v56 = vld [vmem:[%s10555_s12 + $0x8] sm:$0xff]  ;;  %s10561_s13 = smov 64  }
0x1e73   :  { %2933 = vmatpush.msrb.mxu2 %v782_v59 }
0x1e75   :  { %2934 = vmatpush.msrb.mxu2 %v781_v0 }
0x1e77   :  { %2935 = vmatpush.msrb.mxu2 %v780_v5 }
0x1e79   :  { %2936 = vmatpush.msrb.mxu2 %v779_v7 }
0x1e7b   :  { %2937 = vmatpush.msrb.mxu2 %v778_v25 }
0x1e7c   :  { %v2761_v46 = vpop.f32.mrf.mxu1 }
0x1e7d   :  { %v2764_v48 = vadd.f32 %v2761_v46, %v2672_v47  ;;  %2938 = vmatpush.msrb.mxu2 %v777_v27  ;;  %v841_v46 = vld [vmem:[%s10555_s12] sm:$0xff]  ;;  %v806_v27 = vld [vmem:[%s10562_s0 + $0x18] sm:$0xff] }
0x1e7f   :  { %2939 = vmatpush.msrb.mxu2 %v776_v28 }
0x1e86   :  { %v2829_v45 = vpop.f32.mrf.mxu3 }
0x1e87   :  { %7024 = vmatmul.msk.f32.vlgmr.msra.gmra.mxu0 %vm992_vm4, %v2829_v45  ;;  %v843_v45 = vld [vmem:[%s10555_s12 + $0x10] sm:$0xff]  ;;  %s10559_s12 = smov 120  }
0x1e88   :  { %2994 = vmatpush.msrb.mxu3 %v843_v45 }
0x1e8a   :  { %2995 = vmatpush.msrb.mxu3 %v842_v56 }
0x1e8c   :  { %2996 = vmatpush.msrb.mxu3 %v841_v46 }
0x1f04   :  { %v2852_v49 = vpop.f32.mrf.mxu0 }
0x1f05   :  { %v2855_v50 = vadd.f32 %v2852_v49, %v2764_v48 }
0x1f07   :  { %v2859_v26 = vadd.f32 %v7335_v32, %v2855_v50 }
0x1f09   :  { %v2860_v52 = vadd.f32 %v2859_v26, %v9539_v29  ;;  %v773_v29 = vld [vmem:[%s10550_s17 + $0x8] sm:$0xff]  ;;  %s10553_s17 = sld [smem:[#allocation80_spill]] }
0x1f0a   :  { %2911 = vmatpush.msra.mxu1 %v773_v29  ;;  %v7342_v29 = vld [vmem:[#allocation29] ss:$0 sm:$0xff] }
0x1f0b   :  { %v2861_v53 = vsel %vm965_vm3, %v2860_v52, 0.0 }
0x1f0c   :  { %2862 = vadd.xlane.f32.xlu0 %v2861_v53  ;;  %2912 = vmatpush.msra.mxu1 %v772_v62 }
0x1f0f   :  { %v7338_v41 = vld [vmem:[%s10553_s17] ss:$0 sm:$0xff]  ;;  %s10557_s17 = sld [smem:[#allocation103_spill]] }
0x1f15   :  { %v837_v59 = vld [vmem:[%s10557_s17] sm:$0xff] }
0x1f16   :  { %3175 = vmatpush.msra.mxu2 %v837_v59 }
0x1f7f   :  { %v2863_v21 = vpop.xlane.xlu0 %2862 }
0x1f80   :  { %v2864_v54 = vmul.f32 %v2863_v21, %v9327_v51 }
0x1f82   :  { %v2865_v55 = vsub.f32 %v2860_v52, %v2864_v54  ;;  %v7340_v54 = vld [vmem:[#allocation7] ss:$0 sm:$0xff] }
0x1f84   :  { %v2866_v57 = vmul.f32 %v2865_v55, %v2865_v55 }
0x1f86   :  { %v2867_v58 = vsel %vm965_vm3, %v2866_v57, 0.0 }
0x1f87   :  { %2868 = vadd.xlane.f32.xlu1 %v2867_v58  ;;  %v7341_v58 = vld [vmem:[%s10556_s14] ss:$0 sm:$0xff]  ;;  %s10560_s14 = smov 112  }
0x1ffa   :  { %v2869_v1 = vpop.xlane.xlu1 %2868 }
0x1ffb   :  { %v2870_v2 = vmul.f32 %v2869_v1, %v9327_v51 }
0x1ffd   :  { %v2871_v6 = vadd.f32 1e-05, %v2870_v2 }
0x1fff   :  { %7433 = vrsqrt.f32 %v2871_v6  ;;  %vm2878_vm13 = vweird.f32 %v2871_v6 }
0x2005   :  { %v7434_v8 = vpop.eup %7433 }
0x2006   :  { %v2873_v9 = vmul.f32 %v7434_v8, %v2871_v6  ;;  %vm2879_vm12 = vweird.f32 %v7434_v8 }
0x2007   :  { %vm2880_vm14 = vmor %vm2878_vm13, %vm2879_vm12 }
0x2008   :  { %v2874_v10 = vmul.f32 %v7434_v8, %v2873_v9 }
0x200a   :  { %v2875_v12 = vmul.f32 0.5, %v2874_v10 }
0x200c   :  { %v2876_v4 = vsub.f32 1.5, %v2875_v12 }
0x200e   :  { %v2877_v14 = vmul.f32 %v7434_v8, %v2876_v4 }
0x2010   :  { %v2881_v17 = vsel %vm2880_vm14, %v7434_v8, %v2877_v14 }
0x2011   :  { %v2882_v19 = vmul.f32 %v2881_v17, %v2865_v55 }
0x2013   :  { %v2886_v22 = vmul.f32 %v7336_v16, %v2882_v19 }
0x2015   :  { %v2890_v23 = vadd.f32 %v7337_v20, %v2886_v22 }
0x2017   :  { %7025 = vmatmul.msk.f32.vlgmr.msra.gmra.mxu1 %vm965_vm3, %v2890_v23 }
0x2094   :  { %v2914_v30 = vpop.f32.mrf.mxu1 }
0x2095   :  { %v2915_v33 = vadd.f32 %v7338_v41, %v2914_v30  ;;  %v805_v41 = vld [vmem:[%s10562_s0 + $0x10] sm:$0xff]  ;;  %v804_v30 = vld [vmem:[%s10562_s0 + $0x8] sm:$0xff] }
0x2097   :  { %v2917_v34 = vmax.f32 %v2915_v33, 0.0  ;;  %v803_v33 = vld [vmem:[%s10562_s0] sm:$0xff]  ;;  %s10565_s0 = smov 56  }
0x2099   :  { %7026 = vmatmul.msk.f32.vlgmr.msrb.gmra.mxu2 %vm1426_vm9, %v2917_v34 }
0x211c   :  { %v2941_v36 = vpop.f32.mrf.mxu2 }
0x211d   :  { %v2942_v24 = vadd.f32 %v7339_v35, %v2941_v36 }
0x211f   :  { %v2944_v38 = vadd.f32 %v2942_v24, %v2890_v23 }
0x2121   :  { %v2945_v39 = vsel %vm965_vm3, %v2944_v38, 0.0 }
0x2122   :  { %2946 = vadd.xlane.f32.xlu2 %v2945_v39 }
0x2195   :  { %v2947_v40 = vpop.xlane.xlu2 %2946 }
0x2196   :  { %v2948_v42 = vmul.f32 %v2947_v40, %v9327_v51 }
0x2198   :  { %v2949_v37 = vsub.f32 %v2944_v38, %v2948_v42 }
0x219a   :  { %v2950_v43 = vmul.f32 %v2949_v37, %v2949_v37 }
0x219c   :  { %v2951_v44 = vsel %vm965_vm3, %v2950_v43, 0.0 }
0x219d   :  { %2952 = vadd.xlane.f32.xlu0 %v2951_v44 }
0x2210   :  { %v2953_v47 = vpop.xlane.xlu0 %2952 }
0x2211   :  { %v2954_v48 = vmul.f32 %v2953_v47, %v9327_v51 }
0x2213   :  { %v2955_v32 = vadd.f32 1e-05, %v2954_v48 }
0x2215   :  { %7435 = vrsqrt.f32 %v2955_v32  ;;  %vm2962_vm2 = vweird.f32 %v2955_v32 }
0x221b   :  { %v7436_v49 = vpop.eup %7435 }
0x221c   :  { %v2957_v50 = vmul.f32 %v7436_v49, %v2955_v32  ;;  %vm2963_vm15 = vweird.f32 %v7436_v49 }
0x221d   :  { %vm2964_vm5 = vmor %vm2962_vm2, %vm2963_vm15 }
0x221e   :  { %v2958_v26 = vmul.f32 %v7436_v49, %v2957_v50 }
0x2220   :  { %v2959_v52 = vmul.f32 0.5, %v2958_v26 }
0x2222   :  { %v2960_v53 = vsub.f32 1.5, %v2959_v52 }
0x2224   :  { %v2961_v21 = vmul.f32 %v7436_v49, %v2960_v53 }
0x2226   :  { %v2965_v55 = vsel %vm2964_vm5, %v7436_v49, %v2961_v21 }
0x2227   :  { %v2966_v57 = vmul.f32 %v2965_v55, %v2949_v37 }
0x2229   :  { %v2970_v60 = vmul.f32 %v7340_v54, %v2966_v57 }
0x222b   :  { %v9634_v61 = vadd.f32 %v7341_v58, %v2970_v60 }
0x222d   :  { %7027 = vmatmul.msk.f32.vlgmr.msrb.gmra.mxu3 %vm965_vm3, %v9634_v61 }
0x22b0   :  { %v2998_v62 = vpop.f32.mrf.mxu3 }
0x22b1   :  { %v9638_v63 = vadd.f32 %v7342_v29, %v2998_v62 }
0x22b3   :  { %3002 = vrot.lane.b32.xlu0 %v9638_v63, %s10558_s15 }
0x22bb   :  { %3067 = vrot.lane.b32.xlu0 %v9638_v63, %s10559_s12 }
0x22c3   :  { %3273 = vrot.lane.b32.xlu0 %v9638_v63, %s10548_s6 }
0x22cb   :  { %3180 = vrot.lane.b32.xlu0 %v9638_v63, %s10560_s14 }
0x2325   :  { %v3003_v0 = vpop.permute.xlu0 %3002 }
0x2326   :  { %7028 = vmatpush.xpose.msk.msrb.mxu0 %vm992_vm4, %v3003_v0 }
0x2329   :  { %7029 = vmatmul.msk.f32.vlgmr.msrb.gmra.mxu0 %vm992_vm4, %v9638_v63 }
0x232d   :  { %v3068_v1 = vpop.permute.xlu0 %3067 }
0x2335   :  { %v3274_v2 = vpop.permute.xlu0 %3273 }
0x2336   :  { %7040 = vmatpush.xpose.msk.msrb.mxu2 %vm992_vm4, %v3274_v2 }
0x233d   :  { %v3181_v25 = vpop.permute.xlu0 %3180 }
0x23a6   :  { %v3025_v5 = vpop.f32.mrf.mxu0 }
0x23a7   :  { %v3028_v6 = vmul.f32 0.35355338, %v3025_v5  ;;  %v838_v5 = vld [vmem:[%s10557_s17 + $0x8] sm:$0xff] }
0x23a9   :  { %v3029_v7 = vadd.f32 %v3028_v6, %v9468_v15  ;;  %v839_v6 = vld [vmem:[%s10557_s17 + $0x10] sm:$0xff] }
0x23ab   :  { %v3030_v8 = vsel %vm992_vm4, %v3029_v7, -inf }
0x23ac   :  { %3031 = vmax.xlane.f32.xlu1 %v3030_v8 }
0x23c5   :  { %3041 = vrot.lane.b32.xlu1 %v9638_v63, %s10561_s13 }
0x23cd   :  { %3182 = vrot.lane.b32.xlu1 %v9638_v63, %s10547_s10 }
0x241f   :  { %v3032_v9 = vpop.xlane.xlu1 %3031 }
0x2420   :  { %v3033_v10 = vsub.f32 %v3029_v7, %v3032_v9 }
0x2422   :  { %v3034_v12 = vmul.f32 1.442695, %v3033_v10  ;;  %v7343_v10 = vld [vmem:[#allocation11] ss:$0 sm:$0xff] }
0x2424   :  { %7437 = vpow2.f32 %v3034_v12 }
0x242a   :  { %v7438_v4 = vpop.eup %7437 }
0x242b   :  { %v3036_v14 = vsel %vm992_vm4, %v7438_v4, 0.0 }
0x242c   :  { %3037 = vadd.xlane.f32.xlu2 %v3036_v14 }
0x2437   :  { %v3042_v16 = vpop.permute.xlu1 %3041 }
0x2438   :  { %3062 = vmatpush.msrb.mxu1 %v3042_v16 }
0x243a   :  { %3152 = vmatpush.msra.mxu1 %v838_v5 }
0x243f   :  { %v3183_v23 = vpop.permute.xlu1 %3182 }
0x2444   :  { %3069 = vrot.lane.b32.xlu2 %v9638_v63, %s10563_s27 }
0x244c   :  { %3271 = vrot.lane.b32.xlu2 %v9638_v63, %s10564_s29 }
0x249f   :  { %v3038_v17 = vpop.xlane.xlu2 %3037 }
0x24a0   :  { %7439 = vrcp.f32 %v3038_v17 }
0x24a6   :  { %v7440_v19 = vpop.eup %7439 }
0x24a7   :  { %v3040_v20 = vmul.f32 %v7440_v19, %v7438_v4  ;;  %v3070_v22 = vpop.permute.xlu2 %3069 }
0x24a8   :  { %7031 = vmatpush.xpose.msk.msra.mxu3 %vm992_vm4, %v3070_v22 }
0x24a9   :  { %7030 = vmatmul.msk.f32.vlgmr.msrb.gmra.mxu1 %vm992_vm4, %v3040_v20 }
0x24aa   :  { %3265 = vmatpush.msrb.mxu1 %v839_v6 }
0x24ab   :  { %7032 = vmatmul.msk.f32.vlgmr.msra.gmra.mxu3 %vm992_vm4, %v3068_v1 }
0x24ac   :  { %7036 = vmatpush.xpose.msk.msrb.mxu3 %vm992_vm4, %v3183_v23 }
0x24af   :  { %v3272_v34 = vpop.permute.xlu2 %3271 }
0x24b3   :  { %7037 = vmatmul.msk.f32.vlgmr.msrb.gmra.mxu3 %vm992_vm4, %v3181_v25 }
0x2526   :  { %v3064_v28 = vpop.f32.mrf.mxu1 }
0x2527   :  { %7035 = vmatmul.msk.f32.vlgmr.msra.gmra.mxu2 %vm992_vm4, %v3064_v28 }
0x2528   :  { %3438 = vmatpush.msra.mxu2 %v806_v27  ;;  %v7344_v27 = vld [vmem:[#allocation28] ss:$0 sm:$0xff] }
0x252a   :  { %3439 = vmatpush.msra.mxu2 %v805_v41 }
0x252c   :  { %3440 = vmatpush.msra.mxu2 %v804_v30 }
0x252e   :  { %v3092_v35 = vpop.f32.mrf.mxu3  ;;  %3441 = vmatpush.msra.mxu2 %v803_v33 }
0x252f   :  { %v3095_v36 = vmul.f32 0.35355338, %v3092_v35  ;;  %7041 = vmatmul.msk.f32.vlgmr.msrb.gmra.mxu2 %vm992_vm4, %v3272_v34 }
0x2531   :  { %v3096_v24 = vadd.f32 %v3095_v36, %v9468_v15 }
0x2533   :  { %v3097_v38 = vsel %vm992_vm4, %v3096_v24, -inf }
0x2534   :  { %3098 = vmax.xlane.f32.xlu2 %v3097_v38 }
0x2536   :  { %v3205_v39 = vpop.f32.mrf.mxu3 }
0x2537   :  { %v3208_v40 = vmul.f32 0.35355338, %v3205_v39  ;;  %7045 = vmatmul.msk.f32.vlgmr.msra.gmra.mxu2 %vm965_vm3, %v9528_v3 }
0x2539   :  { %v3209_v42 = vadd.f32 %v3208_v40, %v9468_v15  ;;  %v814_v40 = vld [vmem:[%s10568_s30 + $0x18] sm:$0xff] }
0x253b   :  { %v3210_v37 = vsel %vm992_vm4, %v3209_v42, -inf }
0x253c   :  { %3211 = vmax.xlane.f32.xlu0 %v3210_v37  ;;  %v811_v37 = vld [vmem:[%s10568_s30] sm:$0xff] }
0x25a7   :  { %v3099_v43 = vpop.xlane.xlu2 %3098 }
0x25a8   :  { %v3100_v44 = vsub.f32 %v3096_v24, %v3099_v43 }
0x25aa   :  { %v3101_v31 = vmul.f32 1.442695, %v3100_v44  ;;  %v9681_v45 = vpop.f32.mrf.mxu2 }
0x25ac   :  { %7441 = vpow2.f32 %v3101_v31 }
0x25af   :  { %v3212_v56 = vpop.xlane.xlu0 %3211 }
0x25b0   :  { %v3213_v46 = vsub.f32 %v3209_v42, %v3212_v56  ;;  %v812_v42 = vld [vmem:[%s10568_s30 + $0x8] sm:$0xff] }
0x25b2   :  { %v7442_v47 = vpop.eup %7441  ;;  %v3214_v48 = vmul.f32 1.442695, %v3213_v46  ;;  %v3296_v32 = vpop.f32.mrf.mxu2 }
0x25b3   :  { %v3299_v49 = vmul.f32 0.35355338, %v3296_v32  ;;  %v3103_v50 = vsel %vm992_vm4, %v7442_v47, 0.0 }
0x25b4   :  { %7443 = vpow2.f32 %v3214_v48  ;;  %3104 = vadd.xlane.f32.xlu2 %v3103_v50  ;;  %v7345_v50 = vld [vmem:[#allocation20] ss:$0 sm:$0xff] }
0x25b5   :  { %v3300_v3 = vadd.f32 %v3299_v49, %v9468_v15 }
0x25b7   :  { %v3301_v26 = vsel %vm992_vm4, %v3300_v3, -inf }
0x25b8   :  { %3302 = vmax.xlane.f32.xlu1 %v3301_v26 }
0x25ba   :  { %v7444_v52 = vpop.eup %7443  ;;  %v3443_v12 = vpop.f32.mrf.mxu2 }
0x25bb   :  { %v3216_v53 = vsel %vm992_vm4, %v7444_v52, 0.0  ;;  %v9700_v17 = vadd.f32 %v7343_v10, %v3443_v12 }
0x25bc   :  { %3217 = vadd.xlane.f32.xlu0 %v3216_v53 }
0x25cc   :  { %3108 = vrot.lane.b32.xlu2 %v9638_v63, %s10565_s0 }
0x25d0   :  { %3221 = vrot.lane.b32.xlu0 %v9638_v63, %s10566_s11 }
0x2627   :  { %v3105_v21 = vpop.xlane.xlu2 %3104 }
0x2628   :  { %7445 = vrcp.f32 %v3105_v21 }
0x262b   :  { %v3303_v54 = vpop.xlane.xlu1 %3302 }
0x262c   :  { %v3304_v55 = vsub.f32 %v3300_v3, %v3303_v54  ;;  %v7347_v54 = vld [vmem:[#allocation14] ss:$0 sm:$0xff] }
0x262e   :  { %v7446_v57 = vpop.eup %7445  ;;  %v3305_v58 = vmul.f32 1.442695, %v3304_v55 }
0x262f   :  { %v3107_v15 = vmul.f32 %v7446_v57, %v7442_v47  ;;  %v3109_v60 = vpop.permute.xlu2 %3108  ;;  %v3218_v62 = vpop.xlane.xlu0 %3217 }
0x2630   :  { %7447 = vpow2.f32 %v3305_v58  ;;  %3129 = vmatpush.msra.mxu0 %v3109_v60 }
0x2631   :  { %7033 = vmatmul.msk.f32.vlgmr.msra.gmra.mxu0 %vm992_vm4, %v3107_v15  ;;  %7449 = vrcp.f32 %v3218_v62 }
0x2636   :  { %v7448_v29 = vpop.eup %7447 }
0x2637   :  { %v3307_v59 = vsel %vm992_vm4, %v7448_v29, 0.0  ;;  %v7450_v0 = vpop.eup %7449 }
0x2638   :  { %3308 = vadd.xlane.f32.xlu1 %v3307_v59  ;;  %v3220_v1 = vmul.f32 %v7450_v0, %v7444_v52  ;;  %v7346_v52 = vld [vmem:[#allocation19] ss:$0 sm:$0xff] }
0x2642   :  { %v3222_v2 = vpop.permute.xlu0 %3221 }
0x2643   :  { %3242 = vmatpush.msrb.mxu0 %v3222_v2 }
0x2644   :  { %7038 = vmatmul.msk.f32.vlgmr.msrb.gmra.mxu0 %vm992_vm4, %v3220_v1 }
0x2651   :  { %3312 = vrot.lane.b32.xlu1 %v9638_v63, %s10567_s7  ;;  %v840_v63 = vld [vmem:[%s10557_s17 + $0x18] sm:$0xff] }
0x2652   :  { %3356 = vmatpush.msra.mxu0 %v840_v63 }
0x26ab   :  { %v3309_v8 = vpop.xlane.xlu1 %3308 }
0x26ac   :  { %7451 = vrcp.f32 %v3309_v8 }
0x26ae   :  { %v3131_v7 = vpop.f32.mrf.mxu0 }
0x26af   :  { %7034 = vmatmul.msk.f32.vlgmr.msra.gmra.mxu1 %vm992_vm4, %v3131_v7 }
0x26b0   :  { %3415 = vmatpush.msra.mxu1 %v814_v40 }
0x26b2   :  { %v7452_v9 = vpop.eup %7451 }
0x26b3   :  { %v3311_v14 = vmul.f32 %v7452_v9, %v7448_v29 }
0x26c1   :  { %v3244_v4 = vpop.f32.mrf.mxu0 }
0x26c2   :  { %7039 = vmatmul.msk.f32.vlgmr.msrb.gmra.mxu1 %vm992_vm4, %v3244_v4 }
0x26c3   :  { %v3313_v16 = vpop.permute.xlu1 %3312 }
0x26c4   :  { %3333 = vmatpush.msra.mxu3 %v3313_v16 }
0x26c5   :  { %7042 = vmatmul.msk.f32.vlgmr.msra.gmra.mxu3 %vm992_vm4, %v3311_v14 }
0x26c6   :  { %7046 = vmatpush.xpose.msk.msrb.mxu3 %vm992_vm4, %v9700_v17 }
0x272c   :  { %v3154_v20 = vpop.f32.mrf.mxu1 }
0x272d   :  { %v3178_v23 = vadd.f32 %v9681_v45, %v3154_v20 }
0x273f   :  { %v3267_v22 = vpop.f32.mrf.mxu1 }
0x2740   :  { %v3270_v25 = vadd.f32 %v3267_v22, %v3178_v23 }
0x2748   :  { %v3335_v19 = vpop.f32.mrf.mxu3 }
0x2749   :  { %7043 = vmatmul.msk.f32.vlgmr.msra.gmra.mxu0 %vm992_vm4, %v3335_v19 }
0x27c6   :  { %v3358_v28 = vpop.f32.mrf.mxu0 }
0x27c7   :  { %v3361_v41 = vadd.f32 %v3358_v28, %v3270_v25 }
0x27c9   :  { %v3365_v30 = vadd.f32 %v7344_v27, %v3361_v41 }
0x27cb   :  { %v3366_v33 = vadd.f32 %v3365_v30, %v9634_v61  ;;  %v813_v61 = vld [vmem:[%s10568_s30 + $0x10] sm:$0xff]  ;;  %s10569_s30 = sld [smem:[#allocation94_spill]] }
0x27cc   :  { %3416 = vmatpush.msra.mxu1 %v813_v61 }
0x27cd   :  { %v3367_v34 = vsel %vm965_vm3, %v3366_v33, 0.0 }
0x27ce   :  { %3368 = vadd.xlane.f32.xlu0 %v3367_v34  ;;  %3417 = vmatpush.msra.mxu1 %v812_v42 }
0x27d0   :  { %3418 = vmatpush.msra.mxu1 %v811_v37 }
0x27d1   :  { %v807_v7 = vld [vmem:[%s10569_s30] sm:$0xff] }
0x2841   :  { %v3369_v35 = vpop.xlane.xlu0 %3368 }
0x2842   :  { %v3370_v36 = vmul.f32 %v3369_v35, %v9327_v51 }
0x2844   :  { %v3371_v24 = vsub.f32 %v3366_v33, %v3370_v36 }
0x2846   :  { %v3372_v38 = vmul.f32 %v3371_v24, %v3371_v24 }
0x2848   :  { %v3373_v39 = vsel %vm965_vm3, %v3372_v38, 0.0 }
0x2849   :  { %3374 = vadd.xlane.f32.xlu2 %v3373_v39 }
0x2861   :  { %3485 = vrot.lane.b32.xlu2 %v9700_v17, %s10558_s15 }
0x2869   :  { %3626 = vrot.lane.b32.xlu2 %v9700_v17, %s10560_s14 }
0x28bc   :  { %v3375_v43 = vpop.xlane.xlu2 %3374 }
0x28bd   :  { %v3376_v44 = vmul.f32 %v3375_v43, %v9327_v51 }
0x28bf   :  { %v3377_v31 = vadd.f32 1e-05, %v3376_v44 }
0x28c1   :  { %7453 = vrsqrt.f32 %v3377_v31  ;;  %vm3384_vm7 = vweird.f32 %v3377_v31 }
0x28c4   :  { %v3486_v45 = vpop.permute.xlu2 %3485 }
0x28c5   :  { %3506 = vmatpush.msrb.mxu0 %v3486_v45 }
0x28c7   :  { %v7454_v56 = vpop.eup %7453  ;;  %3619 = vmatpush.msra.mxu0 %v807_v7  ;;  %v7598_v7 = vld [vmem:[%s10524_s26] sm:$0xff] }
0x28c8   :  { %v3379_v46 = vmul.f32 %v7454_v56, %v3377_v31  ;;  %vm3385_vm6 = vweird.f32 %v7454_v56 }
0x28c9   :  { %vm3386_vm8 = vmor %vm3384_vm7, %vm3385_vm6 }
0x28ca   :  { %v3380_v47 = vmul.f32 %v7454_v56, %v3379_v46 }
0x28cc   :  { %v3381_v48 = vmul.f32 0.5, %v3380_v47  ;;  %v3627_v6 = vpop.permute.xlu2 %3626 }
0x28ce   :  { %v3382_v32 = vsub.f32 1.5, %v3381_v48 }
0x28d0   :  { %v3383_v49 = vmul.f32 %v7454_v56, %v3382_v32 }
0x28d2   :  { %v3387_v3 = vsel %vm3386_vm8, %v7454_v56, %v3383_v49 }
0x28d3   :  { %v3388_v26 = vmul.f32 %v3387_v3, %v3371_v24 }
0x28d5   :  { %v3392_v53 = vmul.f32 %v7345_v50, %v3388_v26 }
0x28d7   :  { %v9721_v21 = vadd.f32 %v7346_v52, %v3392_v53 }
0x28d9   :  { %7044 = vmatmul.msk.f32.vlgmr.msra.gmra.mxu1 %vm965_vm3, %v9721_v21 }
0x2956   :  { %v3420_v55 = vpop.f32.mrf.mxu1 }
0x2957   :  { %v3421_v57 = vadd.f32 %v7347_v54, %v3420_v55  ;;  %v7067_v54 = vld [vmem:[%s9097_s4 + $0x8] sm:$0xff]  ;;  %s10570_s4 = sld [smem:[#allocation97_spill]] }
0x2958   :  { %v808_v55 = vld [vmem:[%s10569_s30 + $0x8] sm:$0xff] }
0x2959   :  { %3715 = vrot.lane.b32.xlu2 %v3421_v57, %s10564_s29  ;;  %7047 = vmatmul.msk.f32.vlgmr.msrb.gmra.mxu3 %vm992_vm4, %v3421_v57 }
0x295a   :  { %3596 = vmatpush.msra.mxu3 %v808_v55  ;;  %v7350_v55 = vld [vmem:[#allocation22] ss:$0 sm:$0xff] }
0x29b3   :  { %v3716_v63 = vpop.permute.xlu2 %3715 }
0x29dc   :  { %v3469_v58 = vpop.f32.mrf.mxu3 }
0x29dd   :  { %v3472_v15 = vmul.f32 0.35355338, %v3469_v58  ;;  %v809_v58 = vld [vmem:[%s10569_s30 + $0x10] sm:$0xff] }
0x29de   :  { %3709 = vmatpush.msrb.mxu3 %v809_v58 }
0x29df   :  { %v3473_v60 = vadd.f32 %v9553_v18, %v3472_v15  ;;  %v810_v15 = vld [vmem:[%s10569_s30 + $0x18] sm:$0xff] }
0x29e1   :  { %v3474_v29 = vsel %vm992_vm4, %v3473_v60, -inf }
0x29e2   :  { %3475 = vmax.xlane.f32.xlu1 %v3474_v29 }
0x29fb   :  { %3513 = vrot.lane.b32.xlu1 %v9700_v17, %s10559_s12 }
0x2a03   :  { %3717 = vrot.lane.b32.xlu1 %v9700_v17, %s10564_s29 }
0x2a55   :  { %v3476_v62 = vpop.xlane.xlu1 %3475 }
0x2a56   :  { %v3477_v59 = vsub.f32 %v3473_v60, %v3476_v62  ;;  %v7593_v60 = vld [vmem:[%s10524_s26 + $0x28] sm:$0xff]  ;;  %v7594_v62 = vld [vmem:[%s10524_s26 + $0x20] sm:$0xff] }
0x2a58   :  { %v3478_v0 = vmul.f32 1.442695, %v3477_v59 }
0x2a5a   :  { %7455 = vpow2.f32 %v3478_v0  ;;  %v7595_v0 = vld [vmem:[%s10524_s26 + $0x18] sm:$0xff] }
0x2a60   :  { %v7456_v1 = vpop.eup %7455 }
0x2a61   :  { %v3480_v2 = vsel %vm992_vm4, %v7456_v1, 0.0 }
0x2a62   :  { %3481 = vadd.xlane.f32.xlu0 %v3480_v2 }
0x2a6d   :  { %v3514_v5 = vpop.permute.xlu1 %3513 }
0x2a6e   :  { %7049 = vmatpush.xpose.msk.msrb.mxu1 %vm992_vm4, %v3514_v5  ;;  %v7596_v5 = vld [vmem:[%s10524_s26 + $0x10] sm:$0xff] }
0x2a72   :  { %7054 = vmatpush.xpose.msk.msra.mxu1 %vm992_vm4, %v3627_v6  ;;  %v7597_v6 = vld [vmem:[%s10524_s26 + $0x8] sm:$0xff] }
0x2a75   :  { %v3718_v12 = vpop.permute.xlu1 %3717 }
0x2a76   :  { %3511 = vrot.lane.b32.xlu0 %v3421_v57, %s10559_s12 }
0x2a7e   :  { %3624 = vrot.lane.b32.xlu0 %v3421_v57, %s10560_s14 }
0x2ad5   :  { %v3482_v8 = vpop.xlane.xlu0 %3481 }
0x2ad6   :  { %7457 = vrcp.f32 %v3482_v8 }
0x2adc   :  { %v7458_v9 = vpop.eup %7457 }
0x2add   :  { %v3484_v10 = vmul.f32 %v7458_v9, %v7456_v1 }
0x2adf   :  { %7048 = vmatmul.msk.f32.vlgmr.msrb.gmra.mxu0 %vm992_vm4, %v3484_v10 }
0x2ae0   :  { %7058 = vmatpush.xpose.msk.msrb.mxu0 %vm992_vm4, %v3718_v12  ;;  %v7599_v12 = vld [vmem:[%s10528_s16 + $0x8] sm:$0xff] }
0x2ae8   :  { %v3512_v4 = vpop.permute.xlu0 %3511 }
0x2ae9   :  { %7050 = vmatmul.msk.f32.vlgmr.msrb.gmra.mxu1 %vm992_vm4, %v3512_v4 }
0x2af0   :  { %v3625_v14 = vpop.permute.xlu0 %3624 }
0x2af1   :  { %7055 = vmatmul.msk.f32.vlgmr.msra.gmra.mxu1 %vm992_vm4, %v3625_v14  ;;  %v7600_v14 = vld [vmem:[%s10528_s16 + $0x10] sm:$0xff] }
0x2b5c   :  { %v3508_v16 = vpop.f32.mrf.mxu0 }
0x2b5d   :  { %7053 = vmatmul.msk.f32.vlgmr.msra.gmra.mxu0 %vm992_vm4, %v3508_v16 }
0x2b65   :  { %7059 = vmatmul.msk.f32.vlgmr.msrb.gmra.mxu0 %vm992_vm4, %v3716_v63 }
0x2b66   :  { %v3536_v19 = vpop.f32.mrf.mxu1 }
0x2b67   :  { %v3539_v20 = vmul.f32 0.35355338, %v3536_v19 }
0x2b69   :  { %v3540_v22 = vadd.f32 %v9553_v18, %v3539_v20 }
0x2b6b   :  { %v3541_v23 = vsel %vm992_vm4, %v3540_v22, -inf }
0x2b6c   :  { %3542 = vmax.xlane.f32.xlu0 %v3541_v23 }
0x2b6e   :  { %v3649_v25 = vpop.f32.mrf.mxu1 }
0x2b6f   :  { %v3652_v27 = vmul.f32 0.35355338, %v3649_v25 }
0x2b71   :  { %v3653_v28 = vadd.f32 %v9553_v18, %v3652_v27 }
0x2b73   :  { %v3654_v41 = vsel %vm992_vm4, %v3653_v28, -inf }
0x2b74   :  { %3655 = vmax.xlane.f32.xlu1 %v3654_v41 }
0x2bda   :  { %v9749_v30 = vpop.f32.mrf.mxu0 }
0x2bdf   :  { %v3543_v33 = vpop.xlane.xlu0 %3542 }
0x2be0   :  { %v3544_v34 = vsub.f32 %v3540_v22, %v3543_v33  ;;  %v7348_v22 = vld [vmem:[#allocation13] ss:$0 sm:$0xff] }
0x2be2   :  { %v3545_v35 = vmul.f32 1.442695, %v3544_v34  ;;  %v3740_v36 = vpop.f32.mrf.mxu0 }
0x2be3   :  { %v3743_v24 = vmul.f32 0.35355338, %v3740_v36 }
0x2be4   :  { %7459 = vpow2.f32 %v3545_v35 }
0x2be5   :  { %v3744_v38 = vadd.f32 %v9553_v18, %v3743_v24  ;;  %v820_v24 = vld [vmem:[%s10570_s4 + $0x18] sm:$0xff] }
0x2be7   :  { %v3656_v39 = vpop.xlane.xlu1 %3655  ;;  %v3745_v40 = vsel %vm992_vm4, %v3744_v38, -inf }
0x2be8   :  { %v3657_v61 = vsub.f32 %v3653_v28, %v3656_v39  ;;  %3746 = vmax.xlane.f32.xlu2 %v3745_v40  ;;  %v817_v39 = vld [vmem:[%s10570_s4] sm:$0xff]  ;;  %v7601_v40 = vld [vmem:[%s10525_s20 + $0x18] sm:$0xff] }
0x2bea   :  { %v7460_v42 = vpop.eup %7459  ;;  %v3658_v37 = vmul.f32 1.442695, %v3657_v61 }
0x2beb   :  { %v3547_v43 = vsel %vm992_vm4, %v7460_v42, 0.0 }
0x2bec   :  { %7461 = vpow2.f32 %v3658_v37  ;;  %3548 = vadd.xlane.f32.xlu0 %v3547_v43  ;;  %v7603_v43 = vld [vmem:[%s10525_s20 + $0x8] sm:$0xff] }
0x2bf2   :  { %v7462_v44 = vpop.eup %7461 }
0x2bf3   :  { %v3660_v31 = vsel %vm992_vm4, %v7462_v44, 0.0 }
0x2bf4   :  { %3661 = vadd.xlane.f32.xlu1 %v3660_v31  ;;  %v7604_v31 = vld [vmem:[%s10525_s20] sm:$0xff] }
0x2c00   :  { %3552 = vrot.lane.b32.xlu2 %v9700_v17, %s10563_s27 }
0x2c0d   :  { %3665 = vrot.lane.b32.xlu1 %v9700_v17, %s10547_s10 }
0x2c5b   :  { %v3747_v18 = vpop.xlane.xlu2 %3746 }
0x2c5c   :  { %v3748_v45 = vsub.f32 %v3744_v38, %v3747_v18  ;;  %v819_v38 = vld [vmem:[%s10570_s4 + $0x10] sm:$0xff] }
0x2c5e   :  { %v3749_v56 = vmul.f32 1.442695, %v3748_v45 }
0x2c5f   :  { %v3549_v46 = vpop.xlane.xlu0 %3548 }
0x2c60   :  { %7463 = vpow2.f32 %v3749_v56 }
0x2c61   :  { %7465 = vrcp.f32 %v3549_v46 }
0x2c63   :  { %v3553_v47 = vpop.permute.xlu2 %3552 }
0x2c64   :  { %3573 = vmatpush.msrb.mxu2 %v3553_v47 }
0x2c66   :  { %v7464_v48 = vpop.eup %7463 }
0x2c67   :  { %v7466_v32 = vpop.eup %7465  ;;  %v3751_v49 = vsel %vm992_vm4, %v7464_v48, 0.0  ;;  %v3662_v3 = vpop.xlane.xlu1 %3661 }
0x2c68   :  { %v3551_v50 = vmul.f32 %v7466_v32, %v7460_v42  ;;  %3752 = vadd.xlane.f32.xlu0 %v3751_v49  ;;  %7467 = vrcp.f32 %v3662_v3  ;;  %v7602_v42 = vld [vmem:[%s10525_s20 + $0x10] sm:$0xff]  ;;  %s10574_s20 = sld [smem:[#allocation77_spill]] }
0x2c6a   :  { %7051 = vmatmul.msk.f32.vlgmr.msrb.gmra.mxu2 %vm992_vm4, %v3551_v50 }
0x2c6e   :  { %v7468_v26 = vpop.eup %7467 }
0x2c6f   :  { %v3664_v52 = vmul.f32 %v7468_v26, %v7462_v44 }
0x2c7c   :  { %3756 = vrot.lane.b32.xlu0 %v9700_v17, %s10548_s6  ;;  %v7592_v17 = vld [vmem:[%s10524_s26 + $0x30] sm:$0x3]  ;;  %s10571_s26 = sld [smem:[#allocation98_spill]] }
0x2c7f   :  { %v3666_v53 = vpop.permute.xlu1 %3665 }
0x2c80   :  { %3686 = vmatpush.msra.mxu2 %v3666_v53 }
0x2c81   :  { %7056 = vmatmul.msk.f32.vlgmr.msra.gmra.mxu2 %vm992_vm4, %v3664_v52  ;;  %v7349_v52 = vld [vmem:[#allocation23] ss:$0 sm:$0xff] }
0x2c82   :  { %3800 = vmatpush.msrb.mxu2 %v810_v15  ;;  %v828_v18 = vld [vmem:[%s10571_s26 + $0x38] sm:$0xff]  ;;  %v827_v45 = vld [vmem:[%s10571_s26 + $0x30] sm:$0xff]  ;;  %v826_v56 = vld [vmem:[%s10571_s26 + $0x28] sm:$0xff] }
0x2c83   :  { %3882 = vmatpush.msra.mxu0 %v828_v18  ;;  %v825_v46 = vld [vmem:[%s10571_s26 + $0x20] sm:$0xff] }
0x2c84   :  { %3959 = vperm.xlu0 %7311, %v7067_v54   ;;  %7069 = vmatpush.msk.msra.mxu2 %vm936_vm0, %v7592_v17 }
0x2c85   :  { %3883 = vmatpush.msra.mxu0 %v827_v45 }
0x2c86   :  { %3977 = vmatpush.msra.mxu2 %v7593_v60  ;;  %v9806_v60 = vld [vmem:[%s10526_s1] sm:$0xff]  ;;  %s10575_s1 = sld [smem:[#allocation79_spill]] }
0x2c87   :  { %3884 = vmatpush.msra.mxu0 %v826_v56  ;;  %v7355_v56 = vld [vmem:[#allocation50] ss:$0 sm:$0xff] }
0x2c88   :  { %3978 = vmatpush.msra.mxu2 %v7594_v62  ;;  %v823_v62 = vld [vmem:[%s10571_s26 + $0x10] sm:$0xff] }
0x2c89   :  { %3885 = vmatpush.msra.mxu0 %v825_v46 }
0x2c8a   :  { %3979 = vmatpush.msra.mxu2 %v7595_v0  ;;  %v821_v0 = vld [vmem:[%s10571_s26] sm:$0xff] }
0x2c8c   :  { %3980 = vmatpush.msra.mxu2 %v7596_v5  ;;  %v7351_v5 = vld [vmem:[#allocation16] ss:$0 sm:$0xff] }
0x2c8e   :  { %3981 = vmatpush.msra.mxu2 %v7597_v6  ;;  %v903_v6 = vld [vmem:[#allocation52 + $0x8] sm:$0xff] }
0x2c90   :  { %3982 = vmatpush.msra.mxu2 %v7598_v7  ;;  %v902_v7 = vld [vmem:[#allocation52] sm:$0xff] }
0x2cdb   :  { %v3753_v57 = vpop.xlane.xlu0 %3752 }
0x2cdc   :  { %7469 = vrcp.f32 %v3753_v57 }
0x2ce2   :  { %v7470_v29 = vpop.eup %7469 }
0x2ce3   :  { %v3755_v1 = vmul.f32 %v7470_v29, %v7464_v48  ;;  %v824_v48 = vld [vmem:[%s10571_s26 + $0x18] sm:$0xff] }
0x2ce4   :  { %3886 = vmatpush.msra.mxu0 %v824_v48  ;;  %v9841_v48 = vld [vmem:[%s10527_s5 + $0x1] ss:$0 sm:$0xff] }
0x2ce6   :  { %3887 = vmatpush.msra.mxu0 %v823_v62 }
0x2ced   :  { %v3575_v59 = vpop.f32.mrf.mxu2 }
0x2cee   :  { %7052 = vmatmul.msk.f32.vlgmr.msra.gmra.mxu3 %vm992_vm4, %v3575_v59  ;;  %v3757_v2 = vpop.permute.xlu0 %3756  ;;  %v822_v59 = vld [vmem:[%s10571_s26 + $0x8] sm:$0xff] }
0x2cef   :  { %3777 = vmatpush.msrb.mxu1 %v3757_v2  ;;  %3859 = vmatpush.msra.mxu3 %v820_v24  ;;  %v904_v2 = vld [vmem:[#allocation52 + $0x10] sm:$0xff] }
0x2cf0   :  { %7060 = vmatmul.msk.f32.vlgmr.msrb.gmra.mxu1 %vm992_vm4, %v3755_v1  ;;  %3888 = vmatpush.msra.mxu0 %v822_v59  ;;  %v905_v1 = vld [vmem:[#allocation52 + $0x18] sm:$0xff] }
0x2cf1   :  { %3860 = vmatpush.msra.mxu3 %v819_v38  ;;  %3943 = vmatpush.msra.mxu1 %v905_v1 }
0x2cf2   :  { %3889 = vmatpush.msra.mxu0 %v821_v0 }
0x2cf3   :  { %3944 = vmatpush.msra.mxu1 %v904_v2 }
0x2cf5   :  { %3945 = vmatpush.msra.mxu1 %v903_v6 }
0x2cf6   :  { %v3960_v10 = vpop.permute.xlu0 %3959 }
0x2cf7   :  { %vm3961_vm10 = vcmp.eq.s32.totalorder %v9249_v11, %v3960_v10  ;;  %3946 = vmatpush.msra.mxu1 %v902_v7 }
0x2cf8   :  { %v7068_v4 = vsel %vm3961_vm10, 1.0, %v8720_v13 }
0x2d04   :  { %v3688_v8 = vpop.f32.mrf.mxu2 }
0x2d05   :  { %7057 = vmatmul.msk.f32.vlgmr.msrb.gmra.mxu3 %vm992_vm4, %v3688_v8 }
0x2d6d   :  { %v3779_v9 = vpop.f32.mrf.mxu1 }
0x2d6e   :  { %7061 = vmatmul.msk.f32.vlgmr.msrb.gmra.mxu2 %vm992_vm4, %v3779_v9 }
0x2d6f   :  { %4166 = vmatpush.msrb.mxu2 %v7599_v12 }
0x2d71   :  { %v3598_v16 = vpop.f32.mrf.mxu3 }
0x2d72   :  { %v3622_v19 = vadd.f32 %v9749_v30, %v3598_v16 }
0x2d76   :  { %7070 = vmatmul.msk.f32.vlgmr.msra.gmra.mxu2 %vm932_vm1, %v7068_v4  ;;  %v7606_v4 = vld [vmem:[#allocation32] ss:$0 sm:$0xff] }
0x2d77   :  { %4279 = vmatpush.msra.mxu2 %v7600_v14 }
0x2d88   :  { %v3711_v63 = vpop.f32.mrf.mxu3 }
0x2d89   :  { %v3714_v20 = vadd.f32 %v3711_v63, %v3622_v19  ;;  %v7352_v63 = vld [vmem:[#allocation17] ss:$0 sm:$0xff] }
0x2df1   :  { %v3802_v23 = vpop.f32.mrf.mxu2 }
0x2df2   :  { %v3805_v25 = vadd.f32 %v3802_v23, %v3714_v20 }
0x2df4   :  { %v3809_v27 = vadd.f32 %v7348_v22, %v3805_v25 }
0x2df6   :  { %v3810_v28 = vadd.f32 %v3809_v27, %v9721_v21  ;;  %v818_v21 = vld [vmem:[%s10570_s4 + $0x8] sm:$0xff] }
0x2df7   :  { %3861 = vmatpush.msra.mxu3 %v818_v21 }
0x2df8   :  { %v3811_v41 = vsel %vm965_vm3, %v3810_v28, 0.0 }
0x2df9   :  { %3812 = vadd.xlane.f32.xlu2 %v3811_v41  ;;  %3862 = vmatpush.msra.mxu3 %v817_v39  ;;  %v3984_v15 = vpop.f32.mrf.mxu2 }
0x2dfa   :  { %v3987_v17 = vmul.f32 5.656854, %v3984_v15 }
0x2dfb   :  { %4004 = vmatpush.msrb.mxu3 %v7601_v40 }
0x2dfc   :  { %v9809_v29 = vadd.f32 %v9806_v60, %v3987_v17 }
0x2dfd   :  { %4005 = vmatpush.msrb.mxu3 %v7602_v42 }
0x2dff   :  { %4006 = vmatpush.msrb.mxu3 %v7603_v43 }
0x2e01   :  { %4007 = vmatpush.msrb.mxu3 %v7604_v31  ;;  %v7354_v31 = vld [vmem:[#allocation25] ss:$0 sm:$0xff] }
0x2e6c   :  { %v3813_v33 = vpop.xlane.xlu2 %3812 }
0x2e6d   :  { %v3814_v34 = vmul.f32 %v3813_v33, %v9327_v51 }
0x2e6f   :  { %v3815_v35 = vsub.f32 %v3810_v28, %v3814_v34 }
0x2e71   :  { %v3816_v30 = vmul.f32 %v3815_v35, %v3815_v35 }
0x2e73   :  { %v3817_v36 = vsel %vm965_vm3, %v3816_v30, 0.0 }
0x2e74   :  { %3818 = vadd.xlane.f32.xlu1 %v3817_v36 }
0x2ee7   :  { %v3819_v61 = vpop.xlane.xlu1 %3818 }
0x2ee8   :  { %v3820_v37 = vmul.f32 %v3819_v61, %v9327_v51 }
0x2eea   :  { %v3821_v44 = vadd.f32 1e-05, %v3820_v37  ;;  %v7353_v37 = vld [vmem:[#allocation26] ss:$0 sm:$0xff] }
0x2eec   :  { %7471 = vrsqrt.f32 %v3821_v44  ;;  %vm3828_vm12 = vweird.f32 %v3821_v44 }
0x2ef2   :  { %v7472_v47 = vpop.eup %7471 }
0x2ef3   :  { %v3823_v32 = vmul.f32 %v7472_v47, %v3821_v44  ;;  %vm3829_vm11 = vweird.f32 %v7472_v47 }
0x2ef4   :  { %vm3830_vm13 = vmor %vm3828_vm12, %vm3829_vm11 }
0x2ef5   :  { %v3824_v49 = vmul.f32 %v7472_v47, %v3823_v32 }
0x2ef7   :  { %v3825_v50 = vmul.f32 0.5, %v3824_v49 }
0x2ef9   :  { %v3826_v3 = vsub.f32 1.5, %v3825_v50 }
0x2efb   :  { %v3827_v26 = vmul.f32 %v7472_v47, %v3826_v3 }
0x2efd   :  { %v3831_v53 = vsel %vm3830_vm13, %v7472_v47, %v3827_v26 }
0x2efe   :  { %v3832_v54 = vmul.f32 %v3831_v53, %v3815_v35  ;;  %v7607_v35 = vld [vmem:[%s10528_s16] sm:$0xff] }
0x2f00   :  { %v3836_v57 = vmul.f32 %v7349_v52, %v3832_v54 }
0x2f02   :  { %v3840_v58 = vadd.f32 %v7350_v55, %v3836_v57 }
0x2f04   :  { %7062 = vmatmul.msk.f32.vlgmr.msra.gmra.mxu3 %vm965_vm3, %v3840_v58 }
0x2f0c   :  { %7071 = vmatmul.msk.f32.vlgmr.msrb.gmra.mxu3 %vm965_vm3, %v9809_v29 }
0x2f87   :  { %v3864_v8 = vpop.f32.mrf.mxu3 }
0x2f88   :  { %v3865_v9 = vadd.f32 %v7351_v5, %v3864_v8 }
0x2f8a   :  { %v3867_v10 = vmax.f32 %v3865_v9, 0.0  ;;  %v7608_v9 = vld [vmem:[%s10529_s18 + $0x38] sm:$0xff] }
0x2f8c   :  { %7063 = vmatmul.msk.f32.vlgmr.msra.gmra.mxu0 %vm1426_vm9, %v3867_v10 }
0x2f8f   :  { %v4009_v12 = vpop.f32.mrf.mxu3 }
0x2f90   :  { %v9817_v14 = vadd.f32 %v7606_v4, %v4009_v12  ;;  %v7609_v12 = vld [vmem:[%s10529_s18 + $0x30] sm:$0xff] }
0x2f92   :  { %4013 = vrot.lane.b32.xlu1 %v9817_v14, %s10558_s15 }
0x2f9a   :  { %4081 = vrot.lane.b32.xlu1 %v9817_v14, %s10559_s12 }
0x2fa2   :  { %4287 = vrot.lane.b32.xlu1 %v9817_v14, %s10548_s6 }
0x3004   :  { %v4014_v16 = vpop.permute.xlu1 %4013 }
0x3005   :  { %7072 = vmatpush.xpose.msk.msrb.mxu1 %vm992_vm4, %v4014_v16  ;;  %v7610_v16 = vld [vmem:[%s10529_s18 + $0x28] sm:$0xff] }
0x3009   :  { %v3891_v19 = vpop.f32.mrf.mxu0 }
0x300a   :  { %v3892_v20 = vadd.f32 %v7352_v63, %v3891_v19 }
0x300c   :  { %v3894_v22 = vadd.f32 %v3892_v20, %v3840_v58  ;;  %v4082_v57 = vpop.permute.xlu1 %4081  ;;  %v7611_v20 = vld [vmem:[%s10529_s18 + $0x20] sm:$0xff] }
0x300e   :  { %v3895_v23 = vsel %vm965_vm3, %v3894_v22, 0.0 }
0x300f   :  { %3896 = vadd.xlane.f32.xlu0 %v3895_v23  ;;  %v7612_v23 = vld [vmem:[%s10529_s18 + $0x18] sm:$0xff] }
0x3014   :  { %v4288_v0 = vpop.permute.xlu1 %4287 }
0x3023   :  { %4055 = vrot.lane.b32.xlu0 %v9817_v14, %s10561_s13 }
0x302b   :  { %4196 = vrot.lane.b32.xlu0 %v9817_v14, %s10547_s10 }
0x3033   :  { %4194 = vrot.lane.b32.xlu0 %v9817_v14, %s10560_s14 }
0x3082   :  { %v3897_v25 = vpop.xlane.xlu0 %3896 }
0x3083   :  { %v3898_v27 = vmul.f32 %v3897_v25, %v9327_v51  ;;  %v7613_v25 = vld [vmem:[%s10529_s18 + $0x10] sm:$0xff] }
0x3085   :  { %v3899_v28 = vsub.f32 %v3894_v22, %v3898_v27  ;;  %v7614_v27 = vld [vmem:[%s10529_s18 + $0x8] sm:$0xff] }
0x3087   :  { %v3900_v41 = vmul.f32 %v3899_v28, %v3899_v28 }
0x3089   :  { %v3901_v33 = vsel %vm965_vm3, %v3900_v41, 0.0  ;;  %v7616_v41 = vld [vmem:[#allocation38] sm:$0xff] }
0x308a   :  { %3902 = vadd.xlane.f32.xlu2 %v3901_v33 }
0x3095   :  { %v4056_v34 = vpop.permute.xlu0 %4055 }
0x3096   :  { %4076 = vmatpush.msra.mxu3 %v4056_v34 }
0x3098   :  { %4189 = vmatpush.msrb.mxu3 %v7607_v35 }
0x309d   :  { %v4197_v59 = vpop.permute.xlu0 %4196 }
0x30a5   :  { %v4195_v1 = vpop.permute.xlu0 %4194 }
0x30fd   :  { %v3903_v30 = vpop.xlane.xlu2 %3902 }
0x30fe   :  { %v3904_v36 = vmul.f32 %v3903_v30, %v9327_v51 }
0x3100   :  { %v3905_v24 = vadd.f32 1e-05, %v3904_v36 }
0x3102   :  { %7473 = vrsqrt.f32 %v3905_v24  ;;  %vm3912_vm15 = vweird.f32 %v3905_v24 }
0x3108   :  { %v7474_v38 = vpop.eup %7473 }
0x3109   :  { %v3907_v21 = vmul.f32 %v7474_v38, %v3905_v24  ;;  %vm3913_vm14 = vweird.f32 %v7474_v38 }
0x310a   :  { %vm3914_vm2 = vmor %vm3912_vm15, %vm3913_vm14 }
0x310b   :  { %v3908_v39 = vmul.f32 %v7474_v38, %v3907_v21 }
0x310d   :  { %v3909_v40 = vmul.f32 0.5, %v3908_v39 }
0x310f   :  { %v3910_v61 = vsub.f32 1.5, %v3909_v40 }
0x3111   :  { %v3911_v42 = vmul.f32 %v7474_v38, %v3910_v61 }
0x3113   :  { %v3915_v43 = vsel %vm3914_vm2, %v7474_v38, %v3911_v42 }
0x3114   :  { %v3916_v44 = vmul.f32 %v3915_v43, %v3899_v28  ;;  %v7615_v28 = vld [vmem:[%s10529_s18] sm:$0xff]  ;;  %s10578_s18 = sld [smem:[#allocation85_spill]] }
0x3116   :  { %v3920_v18 = vmul.f32 %v7353_v37, %v3916_v44 }
0x3118   :  { %v3924_v45 = vadd.f32 %v7354_v31, %v3920_v18 }
0x311a   :  { %7064 = vmatmul.msk.f32.vlgmr.msra.gmra.mxu1 %vm965_vm3, %v3924_v45 }
0x3122   :  { %7073 = vmatmul.msk.f32.vlgmr.msrb.gmra.mxu1 %vm992_vm4, %v9817_v14 }
0x3197   :  { %v3948_v46 = vpop.f32.mrf.mxu1 }
0x3198   :  { %v3949_v47 = vadd.f32 %v7355_v56, %v3948_v46 }
0x319a   :  { %3951 = vst [vmem:[#allocation53] sm:$0xff] %v3949_v47 }
0x319f   :  { %v4036_v32 = vpop.f32.mrf.mxu1 }
0x31a0   :  { %v4039_v49 = vmul.f32 0.35355338, %v4036_v32 }
0x31a2   :  { %v4043_v50 = vadd.f32 %v9841_v48, %v4039_v49 }
0x31a4   :  { %v4044_v3 = vsel %vm992_vm4, %v4043_v50, -inf }
0x31a5   :  { %4045 = vmax.xlane.f32.xlu2 %v4044_v3 }
0x3218   :  { %v4046_v26 = vpop.xlane.xlu2 %4045 }
0x3219   :  { %v4047_v52 = vsub.f32 %v4043_v50, %v4046_v26 }
0x321b   :  { %v4048_v53 = vmul.f32 1.442695, %v4047_v52 }
0x321d   :  { %7475 = vpow2.f32 %v4048_v53  ;;  %v7617_v53 = vld [vmem:[%s10528_s16 + $0x18] sm:$0xff]  ;;  %s10577_s16 = sld [smem:[#allocation78_spill]] }
0x3223   :  { %v7476_v54 = vpop.eup %7475 }
0x3224   :  { %v4050_v55 = vsel %vm992_vm4, %v7476_v54, 0.0 }
0x3225   :  { %4051 = vadd.xlane.f32.xlu2 %v4050_v55 }
0x323d   :  { %4083 = vrot.lane.b32.xlu2 %v9817_v14, %s10563_s27 }
0x3245   :  { %4285 = vrot.lane.b32.xlu2 %v9817_v14, %s10564_s29 }
0x3298   :  { %v4052_v58 = vpop.xlane.xlu2 %4051 }
0x3299   :  { %7477 = vrcp.f32 %v4052_v58  ;;  %v7619_v58 = vld [vmem:[#allocation37 + $0x10] sm:$0xff] }
0x329f   :  { %v7478_v15 = vpop.eup %7477 }
0x32a0   :  { %v4054_v17 = vmul.f32 %v7478_v15, %v7476_v54  ;;  %v4084_v62 = vpop.permute.xlu2 %4083 }
0x32a1   :  { %7075 = vmatpush.xpose.msk.msrb.mxu0 %vm992_vm4, %v4084_v62 }
0x32a2   :  { %7074 = vmatmul.msk.f32.vlgmr.msra.gmra.mxu3 %vm992_vm4, %v4054_v17  ;;  %v7620_v17 = vld [vmem:[#allocation37 + $0x8] sm:$0xff] }
0x32a3   :  { %7084 = vmatpush.xpose.msk.msra.mxu3 %vm992_vm4, %v4288_v0 }
0x32a4   :  { %7076 = vmatmul.msk.f32.vlgmr.msrb.gmra.mxu0 %vm992_vm4, %v4082_v57  ;;  %v7618_v57 = vld [vmem:[#allocation37 + $0x18] sm:$0xff] }
0x32a5   :  { %7080 = vmatpush.xpose.msk.msra.mxu0 %vm992_vm4, %v4197_v59  ;;  %v7621_v59 = vld [vmem:[#allocation37] sm:$0xff] }
0x32a8   :  { %v4286_v19 = vpop.permute.xlu2 %4285 }
0x32ac   :  { %7081 = vmatmul.msk.f32.vlgmr.msra.gmra.mxu0 %vm992_vm4, %v4195_v1 }
0x3321   :  { %v4106_v2 = vpop.f32.mrf.mxu0 }
0x3322   :  { %v4109_v5 = vmul.f32 0.35355338, %v4106_v2 }
0x3324   :  { %v4110_v6 = vadd.f32 %v9841_v48, %v4109_v5  ;;  %v7623_v5 = vld [vmem:[#allocation40 + $0x10] sm:$0xff] }
0x3325   :  { %v4078_v7 = vpop.f32.mrf.mxu3 }
0x3326   :  { %7079 = vmatmul.msk.f32.vlgmr.msrb.gmra.mxu3 %vm992_vm4, %v4078_v7  ;;  %v4111_v8 = vsel %vm992_vm4, %v4110_v6, -inf  ;;  %v7625_v7 = vld [vmem:[#allocation40] sm:$0xff] }
0x3327   :  { %4112 = vmax.xlane.f32.xlu1 %v4111_v8  ;;  %4437 = vmatpush.msrb.mxu3 %v7608_v9 }
0x3329   :  { %v4219_v10 = vpop.f32.mrf.mxu0  ;;  %4438 = vmatpush.msrb.mxu3 %v7609_v12 }
0x332a   :  { %v4222_v4 = vmul.f32 0.35355338, %v4219_v10 }
0x332b   :  { %4439 = vmatpush.msrb.mxu3 %v7610_v16 }
0x332c   :  { %v4223_v63 = vadd.f32 %v9841_v48, %v4222_v4 }
0x332d   :  { %4440 = vmatpush.msrb.mxu3 %v7611_v20 }
0x332e   :  { %7085 = vmatmul.msk.f32.vlgmr.msra.gmra.mxu3 %vm992_vm4, %v4286_v19  ;;  %v4224_v22 = vsel %vm992_vm4, %v4223_v63, -inf  ;;  %v7626_v19 = vld [vmem:[#allocation31] ss:$0 sm:$0xff] }
0x332f   :  { %4225 = vmax.xlane.f32.xlu0 %v4224_v22  ;;  %4441 = vmatpush.msrb.mxu3 %v7612_v23 }
0x3331   :  { %4442 = vmatpush.msrb.mxu3 %v7613_v25 }
0x3333   :  { %4443 = vmatpush.msrb.mxu3 %v7614_v27 }
0x3335   :  { %4444 = vmatpush.msrb.mxu3 %v7615_v28 }
0x3337   :  { %4671 = vmatpush.msra.mxu3 %v7616_v41 }
0x339a   :  { %v4113_v33 = vpop.xlane.xlu1 %4112 }
0x339b   :  { %v4114_v34 = vsub.f32 %v4110_v6, %v4113_v33  ;;  %v7624_v6 = vld [vmem:[#allocation40 + $0x8] sm:$0xff] }
0x339d   :  { %v4115_v35 = vmul.f32 1.442695, %v4114_v34 }
0x339f   :  { %7479 = vpow2.f32 %v4115_v35 }
0x33a2   :  { %v4226_v30 = vpop.xlane.xlu0 %4225 }
0x33a3   :  { %v4227_v36 = vsub.f32 %v4223_v63, %v4226_v30 }
0x33a5   :  { %v7480_v24 = vpop.eup %7479  ;;  %v4228_v38 = vmul.f32 1.442695, %v4227_v36 }
0x33a6   :  { %v4117_v21 = vsel %vm992_vm4, %v7480_v24, 0.0 }
0x33a7   :  { %7481 = vpow2.f32 %v4228_v38  ;;  %4118 = vadd.xlane.f32.xlu1 %v4117_v21 }
0x33a9   :  { %v9871_v39 = vpop.f32.mrf.mxu3 }
0x33ad   :  { %v7482_v40 = vpop.eup %7481 }
0x33ae   :  { %v4230_v61 = vsel %vm992_vm4, %v7482_v40, 0.0 }
0x33af   :  { %4231 = vadd.xlane.f32.xlu0 %v4230_v61 }
0x33b1   :  { %v4310_v42 = vpop.f32.mrf.mxu3 }
0x33b2   :  { %v4313_v37 = vmul.f32 0.35355338, %v4310_v42  ;;  %v7627_v42 = vld [vmem:[%s10530_s9] ss:$0 sm:$0xff]  ;;  %s10579_s9 = sld [smem:[#allocation84_spill]] }
0x33b4   :  { %v4314_v43 = vadd.f32 %v9841_v48, %v4313_v37 }
0x33b6   :  { %v4315_v44 = vsel %vm992_vm4, %v4314_v43, -inf }
0x33b7   :  { %4316 = vmax.xlane.f32.xlu2 %v4315_v44 }
0x33c3   :  { %4235 = vrot.lane.b32.xlu0 %v9817_v14, %s10566_s11 }
0x33cf   :  { %4122 = vrot.lane.b32.xlu2 %v9817_v14, %s10565_s0 }
0x341a   :  { %v4119_v31 = vpop.xlane.xlu1 %4118 }
0x341b   :  { %7483 = vrcp.f32 %v4119_v31 }
0x3421   :  { %v7484_v47 = vpop.eup %7483 }
0x3422   :  { %v4232_v56 = vpop.xlane.xlu0 %4231  ;;  %v4121_v32 = vmul.f32 %v7484_v47, %v7480_v24  ;;  %v7630_v47 = vld [vmem:[#allocation35] ss:$0 sm:$0xff] }
0x342a   :  { %v4317_v18 = vpop.xlane.xlu2 %4316 }
0x342b   :  { %v4318_v45 = vsub.f32 %v4314_v43, %v4317_v18  ;;  %v7628_v43 = vld [vmem:[%s10531_s22] ss:$0 sm:$0xff]  ;;  %v7629_v18 = vld [vmem:[#allocation34] ss:$0 sm:$0xff]  ;;  %s10581_s22 = sld [smem:[#allocation82_spill]] }
0x342d   :  { %v4319_v46 = vmul.f32 1.442695, %v4318_v45 }
0x342f   :  { %7485 = vpow2.f32 %v4319_v46 }
0x3430   :  { %7487 = vrcp.f32 %v4232_v56 }
0x3432   :  { %v4123_v49 = vpop.permute.xlu2 %4122 }
0x3433   :  { %4143 = vmatpush.msra.mxu1 %v4123_v49 }
0x3434   :  { %7077 = vmatmul.msk.f32.vlgmr.msra.gmra.mxu1 %vm992_vm4, %v4121_v32 }
0x3435   :  { %v7486_v50 = vpop.eup %7485  ;;  %v4236_v3 = vpop.permute.xlu0 %4235 }
0x3436   :  { %4256 = vmatpush.msrb.mxu1 %v4236_v3  ;;  %v4321_v26 = vsel %vm992_vm4, %v7486_v50, 0.0  ;;  %v7488_v52 = vpop.eup %7487 }
0x3437   :  { %4322 = vadd.xlane.f32.xlu1 %v4321_v26  ;;  %v4234_v54 = vmul.f32 %v7488_v52, %v7482_v40 }
0x3438   :  { %4370 = vmatpush.msra.mxu1 %v7617_v53 }
0x343c   :  { %7082 = vmatmul.msk.f32.vlgmr.msrb.gmra.mxu1 %vm992_vm4, %v4234_v54 }
0x3450   :  { %4326 = vrot.lane.b32.xlu1 %v9817_v14, %s10567_s7  ;;  %v7622_v14 = vld [vmem:[#allocation40 + $0x18] sm:$0xff] }
0x34aa   :  { %v4323_v15 = vpop.xlane.xlu1 %4322 }
0x34ab   :  { %7489 = vrcp.f32 %v4323_v15 }
0x34b1   :  { %v4145_v55 = vpop.f32.mrf.mxu1  ;;  %v7490_v0 = vpop.eup %7489 }
0x34b2   :  { %7078 = vmatmul.msk.f32.vlgmr.msrb.gmra.mxu2 %vm992_vm4, %v4145_v55  ;;  %v4325_v1 = vmul.f32 %v7490_v0, %v7486_v50 }
0x34b3   :  { %4417 = vmatpush.msrb.mxu2 %v7618_v57 }
0x34b5   :  { %4418 = vmatpush.msrb.mxu2 %v7619_v58 }
0x34b7   :  { %4419 = vmatpush.msrb.mxu2 %v7620_v17 }
0x34b9   :  { %v4258_v62 = vpop.f32.mrf.mxu1  ;;  %4420 = vmatpush.msrb.mxu2 %v7621_v59 }
0x34ba   :  { %7083 = vmatmul.msk.f32.vlgmr.msra.gmra.mxu2 %vm992_vm4, %v4258_v62 }
0x34c2   :  { %v4327_v2 = vpop.permute.xlu1 %4326 }
0x34c3   :  { %4347 = vmatpush.msrb.mxu0 %v4327_v2 }
0x34c4   :  { %7086 = vmatmul.msk.f32.vlgmr.msrb.gmra.mxu0 %vm992_vm4, %v4325_v1 }
0x34c5   :  { %4489 = vmatpush.msra.mxu0 %v7622_v14 }
0x34c7   :  { %4490 = vmatpush.msra.mxu0 %v7623_v5  ;;  %v7631_v5 = vld [vmem:[%s10532_s19] ss:$0 sm:$0xff]  ;;  %s10582_s19 = sld [smem:[#allocation104_spill]] }
0x34c9   :  { %4491 = vmatpush.msra.mxu0 %v7624_v6 }
0x34cb   :  { %4492 = vmatpush.msra.mxu0 %v7625_v7  ;;  %v7632_v7 = vld [vmem:[%s10533_s23] ss:$0 sm:$0xff]  ;;  %s10583_s23 = sld [smem:[#allocation75_spill]] }
0x3535   :  { %v4168_v9 = vpop.f32.mrf.mxu2 }
0x3536   :  { %v4192_v12 = vadd.f32 %v9871_v39, %v4168_v9 }
0x353d   :  { %v4281_v10 = vpop.f32.mrf.mxu2 }
0x353e   :  { %v4284_v4 = vadd.f32 %v4281_v10, %v4192_v12  ;;  %v7633_v10 = vld [vmem:[%s10534_s28] ss:$0 sm:$0xff]  ;;  %s10584_s28 = sld [smem:[#allocation86_spill]] }
0x3541   :  { %v4349_v8 = vpop.f32.mrf.mxu0 }
0x3542   :  { %7087 = vmatmul.msk.f32.vlgmr.msra.gmra.mxu1 %vm992_vm4, %v4349_v8 }
0x35bf   :  { %v4372_v16 = vpop.f32.mrf.mxu1 }
0x35c0   :  { %v4375_v63 = vadd.f32 %v4372_v16, %v4284_v4 }
0x35c2   :  { %v4376_v20 = vadd.f32 %v7626_v19, %v4375_v63 }
0x35c4   :  { %v4377_v22 = vadd.f32 %v4376_v20, %v9809_v29 }
0x35c6   :  { %v4378_v23 = vsel %vm965_vm3, %v4377_v22, 0.0 }
0x35c7   :  { %4379 = vadd.xlane.f32.xlu2 %v4378_v23 }
0x363a   :  { %v4380_v25 = vpop.xlane.xlu2 %4379 }
0x363b   :  { %v4381_v27 = vmul.f32 %v4380_v25, %v9327_v51 }
0x363d   :  { %v4382_v28 = vsub.f32 %v4377_v22, %v4381_v27 }
0x363f   :  { %v4383_v41 = vmul.f32 %v4382_v28, %v4382_v28 }
0x3641   :  { %v4384_v33 = vsel %vm965_vm3, %v4383_v41, 0.0 }
0x3642   :  { %4385 = vadd.xlane.f32.xlu0 %v4384_v33 }
0x36b5   :  { %v4386_v34 = vpop.xlane.xlu0 %4385 }
0x36b6   :  { %v4387_v35 = vmul.f32 %v4386_v34, %v9327_v51  ;;  %v7634_v34 = vld [vmem:[#allocation38 + $0x8] sm:$0xff] }
0x36b8   :  { %v4388_v30 = vadd.f32 1e-05, %v4387_v35 }
0x36ba   :  { %7491 = vrsqrt.f32 %v4388_v30  ;;  %vm4395_vm6 = vweird.f32 %v4388_v30 }
0x36c0   :  { %v7492_v36 = vpop.eup %7491 }
0x36c1   :  { %v4390_v29 = vmul.f32 %v7492_v36, %v4388_v30  ;;  %vm4396_vm5 = vweird.f32 %v7492_v36 }
0x36c2   :  { %vm4397_vm7 = vmor %vm4395_vm6, %vm4396_vm5 }
0x36c3   :  { %v4391_v24 = vmul.f32 %v7492_v36, %v4390_v29 }
0x36c5   :  { %v4392_v38 = vmul.f32 0.5, %v4391_v24 }
0x36c7   :  { %v4393_v21 = vsub.f32 1.5, %v4392_v38  ;;  %v7635_v38 = vld [vmem:[#allocation38 + $0x10] sm:$0xff] }
0x36c9   :  { %v4394_v39 = vmul.f32 %v7492_v36, %v4393_v21 }
0x36cb   :  { %v4398_v40 = vsel %vm4397_vm7, %v7492_v36, %v4394_v39 }
0x36cc   :  { %v4399_v61 = vmul.f32 %v4398_v40, %v4382_v28 }
0x36ce   :  { %v4400_v37 = vmul.f32 %v7627_v42, %v4399_v61  ;;  %v7636_v61 = vld [vmem:[%s10537_s3 + $0x38] sm:$0xff]  ;;  %v7637_v42 = vld [vmem:[%s10537_s3 + $0x30] sm:$0xff] }
0x36d0   :  { %v4401_v44 = vadd.f32 %v7628_v43, %v4400_v37  ;;  %v7638_v37 = vld [vmem:[%s10537_s3 + $0x28] sm:$0xff] }
0x36d2   :  { %7088 = vmatmul.msk.f32.vlgmr.msrb.gmra.mxu2 %vm965_vm3, %v4401_v44 }
0x3755   :  { %v4422_v31 = vpop.f32.mrf.mxu2 }
0x3756   :  { %v4423_v45 = vadd.f32 %v7629_v18, %v4422_v31  ;;  %v7640_v31 = vld [vmem:[%s10537_s3 + $0x18] sm:$0xff] }
0x3758   :  { %v4425_v56 = vmax.f32 %v4423_v45, 0.0  ;;  %v7641_v45 = vld [vmem:[%s10537_s3 + $0x10] sm:$0xff] }
0x375a   :  { %7089 = vmatmul.msk.f32.vlgmr.msrb.gmra.mxu3 %vm1426_vm9, %v4425_v56 }
0x37dd   :  { %v4446_v46 = vpop.f32.mrf.mxu3 }
0x37de   :  { %v4447_v32 = vadd.f32 %v7630_v47, %v4446_v46  ;;  %v7642_v46 = vld [vmem:[%s10537_s3 + $0x8] sm:$0xff] }
0x37e0   :  { %v4449_v49 = vadd.f32 %v4447_v32, %v4401_v44  ;;  %v7639_v44 = vld [vmem:[%s10537_s3 + $0x20] sm:$0xff] }
0x37e1   :  { %v7643_v32 = vld [vmem:[%s10537_s3] sm:$0xff]  ;;  %s10587_s3 = sld [smem:[#allocation87_spill]] }
0x37e2   :  { %v4450_v50 = vsel %vm965_vm3, %v4449_v49, 0.0 }
0x37e3   :  { %4451 = vadd.xlane.f32.xlu1 %v4450_v50 }
0x3856   :  { %v4452_v3 = vpop.xlane.xlu1 %4451 }
0x3857   :  { %v4453_v26 = vmul.f32 %v4452_v3, %v9327_v51 }
0x3859   :  { %v4454_v52 = vsub.f32 %v4449_v49, %v4453_v26 }
0x385b   :  { %v4455_v53 = vmul.f32 %v4454_v52, %v4454_v52 }
0x385d   :  { %v4456_v54 = vsel %vm965_vm3, %v4455_v53, 0.0 }
0x385e   :  { %4457 = vadd.xlane.f32.xlu2 %v4456_v54 }
0x38d1   :  { %v4458_v55 = vpop.xlane.xlu2 %4457 }
0x38d2   :  { %v4459_v57 = vmul.f32 %v4458_v55, %v9327_v51 }
0x38d4   :  { %v4460_v58 = vadd.f32 1e-05, %v4459_v57 }
0x38d6   :  { %7493 = vrsqrt.f32 %v4460_v58  ;;  %vm4467_vm10 = vweird.f32 %v4460_v58 }
0x38dc   :  { %v7494_v15 = vpop.eup %7493 }
0x38dd   :  { %v4462_v17 = vmul.f32 %v7494_v15, %v4460_v58  ;;  %vm4468_vm8 = vweird.f32 %v7494_v15 }
0x38de   :  { %vm4469_vm11 = vmor %vm4467_vm10, %vm4468_vm8 }
0x38df   :  { %v4463_v62 = vmul.f32 %v7494_v15, %v4462_v17 }
0x38e1   :  { %v4464_v59 = vmul.f32 0.5, %v4463_v62 }
0x38e3   :  { %v4465_v0 = vsub.f32 1.5, %v4464_v59 }
0x38e5   :  { %v4466_v1 = vmul.f32 %v7494_v15, %v4465_v0 }
0x38e7   :  { %v4470_v2 = vsel %vm4469_vm11, %v7494_v15, %v4466_v1 }
0x38e8   :  { %v4471_v14 = vmul.f32 %v4470_v2, %v4454_v52 }
0x38ea   :  { %v4472_v6 = vmul.f32 %v7631_v5, %v4471_v14 }
0x38ec   :  { %v9906_v8 = vadd.f32 %v7632_v7, %v4472_v6 }
0x38ee   :  { %7090 = vmatmul.msk.f32.vlgmr.msra.gmra.mxu0 %vm965_vm3, %v9906_v8 }
0x396b   :  { %v4494_v9 = vpop.f32.mrf.mxu0 }
0x396c   :  { %v9911_v12 = vadd.f32 %v7633_v10, %v4494_v9 }
0x396e   :  { %4498 = vrot.lane.b32.xlu0 %v9911_v12, %s10558_s15 }
0x3976   :  { %4563 = vrot.lane.b32.xlu0 %v9911_v12, %s10559_s12 }
0x397e   :  { %4678 = vrot.lane.b32.xlu0 %v9911_v12, %s10547_s10 }
0x3986   :  { %4769 = vrot.lane.b32.xlu0 %v9911_v12, %s10548_s6 }
0x39e0   :  { %v4499_v4 = vpop.permute.xlu0 %4498 }
0x39e1   :  { %7091 = vmatpush.xpose.msk.msrb.mxu1 %vm992_vm4, %v4499_v4 }
0x39e4   :  { %7092 = vmatmul.msk.f32.vlgmr.msrb.gmra.mxu1 %vm992_vm4, %v9911_v12 }
0x39e8   :  { %v4564_v16 = vpop.permute.xlu0 %4563 }
0x39f0   :  { %v4679_v63 = vpop.permute.xlu0 %4678 }
0x39f8   :  { %v4770_v19 = vpop.permute.xlu0 %4769 }
0x39f9   :  { %7103 = vmatpush.xpose.msk.msrb.mxu3 %vm992_vm4, %v4770_v19 }
0x3a61   :  { %v4521_v20 = vpop.f32.mrf.mxu1 }
0x3a62   :  { %v4524_v22 = vmul.f32 0.35355338, %v4521_v20 }
0x3a64   :  { %v4525_v23 = vadd.f32 %v9841_v48, %v4524_v22 }
0x3a66   :  { %v4526_v25 = vsel %vm992_vm4, %v4525_v23, -inf }
0x3a67   :  { %4527 = vmax.xlane.f32.xlu2 %v4526_v25 }
0x3a7f   :  { %4537 = vrot.lane.b32.xlu2 %v9911_v12, %s10561_s13 }
0x3a87   :  { %4676 = vrot.lane.b32.xlu2 %v9911_v12, %s10560_s14 }
0x3ada   :  { %v4528_v27 = vpop.xlane.xlu2 %4527 }
0x3adb   :  { %v4529_v28 = vsub.f32 %v4525_v23, %v4528_v27 }
0x3add   :  { %v4530_v41 = vmul.f32 1.442695, %v4529_v28  ;;  %v7644_v28 = vld [vmem:[#allocation38 + $0x18] sm:$0xff] }
0x3adf   :  { %7495 = vpow2.f32 %v4530_v41 }
0x3ae2   :  { %v4538_v33 = vpop.permute.xlu2 %4537 }
0x3ae3   :  { %4558 = vmatpush.msra.mxu2 %v4538_v33  ;;  %v7645_v33 = vld [vmem:[%s10535_s25 + $0x18] sm:$0xff] }
0x3ae5   :  { %4648 = vmatpush.msrb.mxu2 %v7634_v34  ;;  %v7496_v35 = vpop.eup %7495  ;;  %v7646_v34 = vld [vmem:[%s10535_s25 + $0x10] sm:$0xff] }
0x3ae6   :  { %v4532_v30 = vsel %vm992_vm4, %v7496_v35, 0.0 }
0x3ae7   :  { %4533 = vadd.xlane.f32.xlu1 %v4532_v30  ;;  %v7648_v30 = vld [vmem:[%s10535_s25] sm:$0xff] }
0x3aea   :  { %v4677_v39 = vpop.permute.xlu2 %4676 }
0x3b00   :  { %4565 = vrot.lane.b32.xlu1 %v9911_v12, %s10563_s27 }
0x3b08   :  { %4767 = vrot.lane.b32.xlu1 %v9911_v12, %s10564_s29 }
0x3b5a   :  { %v4534_v36 = vpop.xlane.xlu1 %4533 }
0x3b5b   :  { %7497 = vrcp.f32 %v4534_v36 }
0x3b61   :  { %v7498_v29 = vpop.eup %7497 }
0x3b62   :  { %v4536_v24 = vmul.f32 %v7498_v29, %v7496_v35  ;;  %v7647_v35 = vld [vmem:[%s10535_s25 + $0x8] sm:$0xff]  ;;  %s10585_s25 = sld [smem:[#allocation80_spill]] }
0x3b64   :  { %7093 = vmatmul.msk.f32.vlgmr.msra.gmra.mxu2 %vm992_vm4, %v4536_v24 }
0x3b65   :  { %4761 = vmatpush.msra.mxu2 %v7635_v38 }
0x3b72   :  { %v4566_v21 = vpop.permute.xlu1 %4565 }
0x3b73   :  { %7094 = vmatpush.xpose.msk.msrb.mxu0 %vm992_vm4, %v4566_v21  ;;  %v7650_v21 = vld [vmem:[%s9092_s21 + $0x28] sm:$0xff] }
0x3b76   :  { %7095 = vmatmul.msk.f32.vlgmr.msrb.gmra.mxu0 %vm992_vm4, %v4564_v16 }
0x3b77   :  { %7099 = vmatpush.xpose.msk.msra.mxu0 %vm992_vm4, %v4679_v63 }
0x3b7a   :  { %v4768_v43 = vpop.permute.xlu1 %4767 }
0x3b7e   :  { %7100 = vmatmul.msk.f32.vlgmr.msra.gmra.mxu0 %vm992_vm4, %v4677_v39  ;;  %v7651_v39 = vld [vmem:[%s9092_s21 + $0x20] sm:$0xff] }
0x3be7   :  { %v4560_v40 = vpop.f32.mrf.mxu2 }
0x3be8   :  { %7098 = vmatmul.msk.f32.vlgmr.msra.gmra.mxu3 %vm992_vm4, %v4560_v40 }
0x3be9   :  { %4919 = vmatpush.msra.mxu3 %v7636_v61  ;;  %v7652_v61 = vld [vmem:[%s9092_s21 + $0x18] sm:$0xff] }
0x3beb   :  { %4920 = vmatpush.msra.mxu3 %v7637_v42  ;;  %v7653_v42 = vld [vmem:[%s9092_s21 + $0x10] sm:$0xff] }
0x3bed   :  { %4921 = vmatpush.msra.mxu3 %v7638_v37  ;;  %v7654_v37 = vld [vmem:[%s9092_s21 + $0x8] sm:$0xff] }
0x3bef   :  { %4922 = vmatpush.msra.mxu3 %v7639_v44  ;;  %v7655_v44 = vld [vmem:[%s9092_s21] sm:$0xff] }
0x3bf0   :  { %7104 = vmatmul.msk.f32.vlgmr.msrb.gmra.mxu3 %vm992_vm4, %v4768_v43 }
0x3bf1   :  { %4923 = vmatpush.msra.mxu3 %v7640_v31 }
0x3bf3   :  { %v4588_v18 = vpop.f32.mrf.mxu0  ;;  %4924 = vmatpush.msra.mxu3 %v7641_v45  ;;  %v7657_v45 = vld [vmem:[%s10540_s2 + $0x8] sm:$0xff] }
0x3bf4   :  { %v4591_v56 = vmul.f32 0.35355338, %v4588_v18  ;;  %v7656_v18 = vld [vmem:[#allocation43 + $0x18] sm:$0xff] }
0x3bf5   :  { %4925 = vmatpush.msra.mxu3 %v7642_v46  ;;  %v7659_v46 = vld [vmem:[#allocation43 + $0x10] sm:$0xff] }
0x3bf6   :  { %v4592_v47 = vadd.f32 %v9841_v48, %v4591_v56  ;;  %v7658_v56 = vld [vmem:[%s10540_s2 + $0x10] sm:$0xff] }
0x3bf7   :  { %4926 = vmatpush.msra.mxu3 %v7643_v32 }
0x3bf8   :  { %v4593_v49 = vsel %vm992_vm4, %v4592_v47, -inf }
0x3bf9   :  { %4594 = vmax.xlane.f32.xlu0 %v4593_v49 }
0x3bfb   :  { %v4701_v50 = vpop.f32.mrf.mxu0 }
0x3bfc   :  { %v4704_v3 = vmul.f32 0.35355338, %v4701_v50 }
0x3bfe   :  { %v4705_v26 = vadd.f32 %v9841_v48, %v4704_v3 }
0x3c00   :  { %v4706_v52 = vsel %vm992_vm4, %v4705_v26, -inf }
0x3c01   :  { %4707 = vmax.xlane.f32.xlu2 %v4706_v52 }
0x3c6b   :  { %v9955_v53 = vpop.f32.mrf.mxu3 }
0x3c6c   :  { %v4595_v54 = vpop.xlane.xlu0 %4594 }
0x3c6d   :  { %v4596_v55 = vsub.f32 %v4592_v47, %v4595_v54 }
0x3c6f   :  { %v4597_v57 = vmul.f32 1.442695, %v4596_v55 }
0x3c71   :  { %7499 = vpow2.f32 %v4597_v57 }
0x3c73   :  { %v4792_v58 = vpop.f32.mrf.mxu3 }
0x3c74   :  { %v4795_v15 = vmul.f32 0.35355338, %v4792_v58  ;;  %v4708_v17 = vpop.xlane.xlu2 %4707 }
0x3c75   :  { %v4709_v62 = vsub.f32 %v4705_v26, %v4708_v17 }
0x3c76   :  { %v4796_v59 = vadd.f32 %v9841_v48, %v4795_v15  ;;  %v7109_v48 = vld [vmem:[%s9102_s8 + $0x8] sm:$0xff]  ;;  %v7662_v15 = vld [vmem:[%s10536_s24] ss:$0 sm:$0xff]  ;;  %s10573_s8 = sld [smem:[#allocation72_spill]] }
0x3c77   :  { %v7500_v0 = vpop.eup %7499  ;;  %v4710_v1 = vmul.f32 1.442695, %v4709_v62  ;;  %s10586_s24 = sld [smem:[#allocation81_spill]] }
0x3c78   :  { %v4797_v2 = vsel %vm992_vm4, %v4796_v59, -inf  ;;  %v4599_v14 = vsel %vm992_vm4, %v7500_v0, 0.0 }
0x3c79   :  { %7501 = vpow2.f32 %v4710_v1  ;;  %4798 = vmax.xlane.f32.xlu1 %v4797_v2  ;;  %4600 = vadd.xlane.f32.xlu2 %v4599_v14 }
0x3c7f   :  { %v7502_v5 = vpop.eup %7501 }
0x3c80   :  { %v4712_v6 = vsel %vm992_vm4, %v7502_v5, 0.0 }
0x3c81   :  { %4713 = vadd.xlane.f32.xlu0 %v4712_v6 }
0x3c92   :  { %4604 = vrot.lane.b32.xlu1 %v9911_v12, %s10565_s0 }
0x3c95   :  { %4717 = vrot.lane.b32.xlu0 %v9911_v12, %s10566_s11 }
0x3c9d   :  { %4959 = vperm.xlu0 %7311, %v7109_v48  }
0x3cec   :  { %v4799_v7 = vpop.xlane.xlu1 %4798  ;;  %v4601_v16 = vpop.xlane.xlu2 %4600 }
0x3ced   :  { %v4800_v9 = vsub.f32 %v4796_v59, %v4799_v7 }
0x3cef   :  { %v4801_v10 = vmul.f32 1.442695, %v4800_v9 }
0x3cf1   :  { %7503 = vpow2.f32 %v4801_v10 }
0x3cf2   :  { %7505 = vrcp.f32 %v4601_v16 }
0x3cf4   :  { %v4714_v19 = vpop.xlane.xlu0 %4713 }
0x3cf5   :  { %7507 = vrcp.f32 %v4714_v19 }
0x3cf7   :  { %v7504_v4 = vpop.eup %7503 }
0x3cf8   :  { %v4803_v63 = vsel %vm992_vm4, %v7504_v4, 0.0  ;;  %v7506_v20 = vpop.eup %7505 }
0x3cf9   :  { %4804 = vadd.xlane.f32.xlu2 %v4803_v63  ;;  %v4603_v22 = vmul.f32 %v7506_v20, %v7500_v0 }
0x3cfb   :  { %v7508_v27 = vpop.eup %7507 }
0x3cfc   :  { %v4716_v41 = vmul.f32 %v7508_v27, %v7502_v5 }
0x3d04   :  { %v4605_v23 = vpop.permute.xlu1 %4604 }
0x3d05   :  { %4625 = vmatpush.msra.mxu1 %v4605_v23  ;;  %v7664_v23 = vld [vmem:[%s10540_s2] sm:$0xff] }
0x3d06   :  { %7096 = vmatmul.msk.f32.vlgmr.msra.gmra.mxu1 %vm992_vm4, %v4603_v22 }
0x3d07   :  { %v4718_v25 = vpop.permute.xlu0 %4717 }
0x3d08   :  { %4738 = vmatpush.msrb.mxu1 %v4718_v25 }
0x3d0a   :  { %4852 = vmatpush.msra.mxu1 %v7644_v28  ;;  %v7665_v28 = vld [vmem:[#allocation46] ss:$0 sm:$0xff] }
0x3d0e   :  { %7101 = vmatmul.msk.f32.vlgmr.msrb.gmra.mxu1 %vm992_vm4, %v4716_v41 }
0x3d0f   :  { %5004 = vmatpush.msrb.mxu1 %v7645_v33  ;;  %v4960_v40 = vpop.permute.xlu0 %4959  ;;  %v7666_v33 = vld [vmem:[#allocation44] ss:$0 sm:$0xff] }
0x3d10   :  { %vm4961_vm12 = vcmp.eq.s32.totalorder %v9249_v11, %v4960_v40  ;;  %v7660_v11 = vld [vmem:[#allocation43 + $0x8] sm:$0xff] }
0x3d11   :  { %4808 = vrot.lane.b32.xlu2 %v9911_v12, %s10567_s7  ;;  %5005 = vmatpush.msrb.mxu1 %v7646_v34  ;;  %v7649_v12 = vld [vmem:[%s9092_s21 + $0x30] sm:$0x3]  ;;  %v7110_v43 = vsel %vm4961_vm12, 1.0, %v8720_v13  ;;  %s10572_s21 = sld [smem:[#allocation118_spill]] }
0x3d12   :  { %v7661_v13 = vld [vmem:[#allocation43] sm:$0xff] }
0x3d13   :  { %5006 = vmatpush.msrb.mxu1 %v7647_v35 }
0x3d15   :  { %5007 = vmatpush.msrb.mxu1 %v7648_v30 }
0x3d17   :  { %v7667_v30 = vld [vmem:[%s10572_s21] ss:$0 sm:$0xff] }
0x3d6c   :  { %v4805_v36 = vpop.xlane.xlu2 %4804 }
0x3d6d   :  { %7509 = vrcp.f32 %v4805_v36 }
0x3d73   :  { %v7510_v29 = vpop.eup %7509 }
0x3d74   :  { %v4807_v24 = vmul.f32 %v7510_v29, %v7504_v4  ;;  %v4809_v38 = vpop.permute.xlu2 %4808 }
0x3d75   :  { %4829 = vmatpush.msrb.mxu0 %v4809_v38 }
0x3d76   :  { %7105 = vmatmul.msk.f32.vlgmr.msrb.gmra.mxu0 %vm992_vm4, %v4807_v24  ;;  %v10025_v24 = vld [vmem:[%s10573_s8 + $0x8] sm:$0xff] }
0x3d77   :  { %7111 = vmatpush.msk.msra.mxu0 %vm936_vm0, %v7649_v12 }
0x3d79   :  { %4977 = vmatpush.msra.mxu0 %v7650_v21 }
0x3d7b   :  { %4978 = vmatpush.msra.mxu0 %v7651_v39 }
0x3d7d   :  { %4979 = vmatpush.msra.mxu0 %v7652_v61 }
0x3d7f   :  { %4980 = vmatpush.msra.mxu0 %v7653_v42 }
0x3d81   :  { %4981 = vmatpush.msra.mxu0 %v7654_v37 }
0x3d83   :  { %4982 = vmatpush.msra.mxu0 %v7655_v44  ;;  %v4627_v31 = vpop.f32.mrf.mxu1 }
0x3d84   :  { %7112 = vmatmul.msk.f32.vlgmr.msra.gmra.mxu0 %vm932_vm1, %v7110_v43  ;;  %7097 = vmatmul.msk.f32.vlgmr.msrb.gmra.mxu2 %vm992_vm4, %v4627_v31 }
0x3d85   :  { %4899 = vmatpush.msrb.mxu2 %v7656_v18  ;;  %5163 = vmatpush.msrb.mxu0 %v7657_v45 }
0x3d87   :  { %5276 = vmatpush.msra.mxu0 %v7658_v56  ;;  %4900 = vmatpush.msrb.mxu2 %v7659_v46 }
0x3d89   :  { %4901 = vmatpush.msrb.mxu2 %v7660_v11 }
0x3d8b   :  { %v4740_v47 = vpop.f32.mrf.mxu1  ;;  %4902 = vmatpush.msrb.mxu2 %v7661_v13 }
0x3d8c   :  { %7102 = vmatmul.msk.f32.vlgmr.msra.gmra.mxu2 %vm992_vm4, %v4740_v47 }
0x3df3   :  { %v4831_v32 = vpop.f32.mrf.mxu0 }
0x3df4   :  { %7106 = vmatmul.msk.f32.vlgmr.msra.gmra.mxu1 %vm992_vm4, %v4831_v32  ;;  %v7668_v32 = vld [vmem:[%s10574_s20 + $0x18] sm:$0xff] }
0x3e01   :  { %v4984_v49 = vpop.f32.mrf.mxu0 }
0x3e02   :  { %v4987_v50 = vmul.f32 5.656854, %v4984_v49  ;;  %v7669_v49 = vld [vmem:[%s10574_s20 + $0x10] sm:$0xff] }
0x3e04   :  { %v9993_v3 = vadd.f32 %v9806_v60, %v4987_v50  ;;  %v7663_v60 = vld [vmem:[#allocation10] ss:$0 sm:$0xff] }
0x3e05   :  { %v7670_v50 = vld [vmem:[%s10574_s20 + $0x8] sm:$0xff] }
0x3e06   :  { %7113 = vmatmul.msk.f32.vlgmr.msrb.gmra.mxu1 %vm965_vm3, %v9993_v3 }
0x3e07   :  { %v4650_v26 = vpop.f32.mrf.mxu2 }
0x3e08   :  { %v4674_v54 = vadd.f32 %v9955_v53, %v4650_v26 }
0x3e0f   :  { %v4763_v52 = vpop.f32.mrf.mxu2 }
0x3e10   :  { %v4766_v55 = vadd.f32 %v4763_v52, %v4674_v54  ;;  %v7671_v52 = vld [vmem:[%s10574_s20] sm:$0xff] }
0x3e71   :  { %v4854_v57 = vpop.f32.mrf.mxu1 }
0x3e72   :  { %v4857_v58 = vadd.f32 %v4854_v57, %v4766_v55 }
0x3e74   :  { %v4858_v17 = vadd.f32 %v7662_v15, %v4857_v58 }
0x3e76   :  { %v4859_v62 = vadd.f32 %v4858_v17, %v9906_v8 }
0x3e78   :  { %v4860_v59 = vsel %vm965_vm3, %v4859_v62, 0.0 }
0x3e79   :  { %4861 = vadd.xlane.f32.xlu1 %v4860_v59 }
0x3e83   :  { %v5009_v0 = vpop.f32.mrf.mxu1 }
0x3e84   :  { %v10001_v1 = vadd.f32 %v7663_v60, %v5009_v0 }
0x3e86   :  { %5013 = vrot.lane.b32.xlu2 %v10001_v1, %s10558_s15 }
0x3ee0   :  { %v5014_v2 = vpop.permute.xlu2 %5013 }
0x3ee1   :  { %7114 = vmatpush.xpose.msk.msra.mxu2 %vm992_vm4, %v5014_v2 }
0x3eec   :  { %v4862_v53 = vpop.xlane.xlu1 %4861 }
0x3eed   :  { %v4863_v14 = vmul.f32 %v4862_v53, %v9327_v51 }
0x3eef   :  { %v4864_v5 = vsub.f32 %v4859_v62, %v4863_v14 }
0x3ef1   :  { %v4865_v6 = vmul.f32 %v4864_v5, %v4864_v5 }
0x3ef3   :  { %v4866_v8 = vsel %vm965_vm3, %v4865_v6, 0.0 }
0x3ef4   :  { %4867 = vadd.xlane.f32.xlu0 %v4866_v8 }
0x3f08   :  { %5052 = vrot.lane.b32.xlu0 %v10001_v1, %s10561_s13 }
0x3f10   :  { %5193 = vrot.lane.b32.xlu0 %v10001_v1, %s10547_s10 }
0x3f18   :  { %5191 = vrot.lane.b32.xlu0 %v10001_v1, %s10560_s14 }
0x3f67   :  { %v4868_v48 = vpop.xlane.xlu0 %4867 }
0x3f68   :  { %v4869_v7 = vmul.f32 %v4868_v48, %v9327_v51 }
0x3f6a   :  { %v4870_v9 = vadd.f32 1e-05, %v4869_v7 }
0x3f6c   :  { %7511 = vrsqrt.f32 %v4870_v9  ;;  %vm4877_vm1 = vweird.f32 %v4870_v9 }
0x3f72   :  { %v7512_v10 = vpop.eup %7511 }
0x3f73   :  { %v4872_v4 = vmul.f32 %v7512_v10, %v4870_v9  ;;  %vm4878_vm0 = vweird.f32 %v7512_v10 }
0x3f74   :  { %vm4879_vm13 = vmor %vm4877_vm1, %vm4878_vm0 }
0x3f75   :  { %v4873_v16 = vmul.f32 %v7512_v10, %v4872_v4 }
0x3f77   :  { %v4874_v63 = vmul.f32 0.5, %v4873_v16 }
0x3f79   :  { %v4875_v19 = vsub.f32 1.5, %v4874_v63 }
0x3f7a   :  { %v5053_v20 = vpop.permute.xlu0 %5052 }
0x3f7b   :  { %v4876_v22 = vmul.f32 %v7512_v10, %v4875_v19  ;;  %5073 = vmatpush.msra.mxu1 %v5053_v20 }
0x3f7d   :  { %5186 = vmatpush.msrb.mxu1 %v7664_v23  ;;  %v4880_v25 = vsel %vm4879_vm13, %v7512_v10, %v4876_v22 }
0x3f7e   :  { %v4881_v27 = vmul.f32 %v4880_v25, %v4864_v5 }
0x3f80   :  { %v4882_v41 = vmul.f32 %v7665_v28, %v4881_v27 }
0x3f82   :  { %v10016_v34 = vadd.f32 %v7666_v33, %v4882_v41  ;;  %v5194_v56 = vpop.permute.xlu0 %5193 }
0x3f84   :  { %7107 = vmatmul.msk.f32.vlgmr.msrb.gmra.mxu2 %vm965_vm3, %v10016_v34 }
0x3f8a   :  { %v5192_v47 = vpop.permute.xlu0 %5191 }
0x3f8c   :  { %7115 = vmatmul.msk.f32.vlgmr.msra.gmra.mxu2 %vm992_vm4, %v10001_v1 }
0x4007   :  { %v4904_v35 = vpop.f32.mrf.mxu2 }
0x4008   :  { %v4905_v36 = vadd.f32 %v7667_v30, %v4904_v35 }
0x400a   :  { %v4907_v29 = vmax.f32 %v4905_v36, 0.0  ;;  %v7672_v36 = vld [vmem:[%s10540_s2 + $0x18] sm:$0xff]  ;;  %s10576_s2 = sld [smem:[#allocation74_spill]] }
0x400c   :  { %7108 = vmatmul.msk.f32.vlgmr.msra.gmra.mxu3 %vm1426_vm9, %v4907_v29 }
0x400f   :  { %v5036_v38 = vpop.f32.mrf.mxu2 }
0x4010   :  { %v5039_v12 = vmul.f32 0.35355338, %v5036_v38 }
0x4012   :  { %v5040_v21 = vadd.f32 %v10025_v24, %v5039_v12 }
0x4014   :  { %v5041_v39 = vsel %vm992_vm4, %v5040_v21, -inf }
0x4015   :  { %5042 = vmax.xlane.f32.xlu2 %v5041_v39 }
0x402d   :  { %5078 = vrot.lane.b32.xlu2 %v10001_v1, %s10559_s12 }
0x4035   :  { %5282 = vrot.lane.b32.xlu2 %v10001_v1, %s10564_s29 }
0x4088   :  { %v5043_v40 = vpop.xlane.xlu2 %5042 }
0x4089   :  { %v5044_v61 = vsub.f32 %v5040_v21, %v5043_v40  ;;  %v7673_v21 = vld [vmem:[#allocation41] ss:$0 sm:$0xff] }
0x408b   :  { %v5045_v42 = vmul.f32 1.442695, %v5044_v61 }
0x408d   :  { %7513 = vpow2.f32 %v5045_v42 }
0x408f   :  { %v4928_v12 = vpop.f32.mrf.mxu3 }
0x4090   :  { %v5079_v46 = vpop.permute.xlu2 %5078 }
0x4093   :  { %v7514_v37 = vpop.eup %7513 }
0x4094   :  { %v5047_v43 = vsel %vm992_vm4, %v7514_v37, 0.0 }
0x4095   :  { %5048 = vadd.xlane.f32.xlu1 %v5047_v43 }
0x4098   :  { %v5283_v26 = vpop.permute.xlu2 %5282 }
0x40ae   :  { %5080 = vrot.lane.b32.xlu1 %v10001_v1, %s10563_s27 }
0x40b6   :  { %5284 = vrot.lane.b32.xlu1 %v10001_v1, %s10548_s6 }
0x4108   :  { %v5049_v44 = vpop.xlane.xlu1 %5048 }
0x4109   :  { %7515 = vrcp.f32 %v5049_v44 }
0x410f   :  { %v7516_v31 = vpop.eup %7515 }
0x4110   :  { %v5051_v18 = vmul.f32 %v7516_v31, %v7514_v37  ;;  %v7674_v31 = vld [vmem:[%s10575_s1 + $0x18] sm:$0xff] }
0x4112   :  { %7116 = vmatmul.msk.f32.vlgmr.msra.gmra.mxu1 %vm992_vm4, %v5051_v18  ;;  %v7675_v18 = vld [vmem:[%s10575_s1 + $0x10] sm:$0xff] }
0x4120   :  { %v5081_v45 = vpop.permute.xlu1 %5080 }
0x4121   :  { %7117 = vmatpush.xpose.msk.msrb.mxu2 %vm992_vm4, %v5081_v45 }
0x4124   :  { %7118 = vmatmul.msk.f32.vlgmr.msrb.gmra.mxu2 %vm992_vm4, %v5079_v46 }
0x4125   :  { %7122 = vmatpush.xpose.msk.msra.mxu2 %vm992_vm4, %v5194_v56  ;;  %v7677_v56 = vld [vmem:[%s10575_s1] sm:$0xff] }
0x4128   :  { %v5285_v11 = vpop.permute.xlu1 %5284 }
0x4129   :  { %7126 = vmatpush.xpose.msk.msra.mxu1 %vm992_vm4, %v5285_v11 }
0x412c   :  { %7123 = vmatmul.msk.f32.vlgmr.msra.gmra.mxu2 %vm992_vm4, %v5192_v47 }
0x418f   :  { %v5075_v13 = vpop.f32.mrf.mxu1 }
0x4190   :  { %7121 = vmatmul.msk.f32.vlgmr.msrb.gmra.mxu1 %vm992_vm4, %v5075_v13 }
0x4191   :  { %5437 = vmatpush.msrb.mxu1 %v7668_v32 }
0x4193   :  { %5438 = vmatpush.msrb.mxu1 %v7669_v49 }
0x4195   :  { %5439 = vmatpush.msrb.mxu1 %v7670_v50 }
0x4197   :  { %5440 = vmatpush.msrb.mxu1 %v7671_v52 }
0x4198   :  { %7127 = vmatmul.msk.f32.vlgmr.msra.gmra.mxu1 %vm992_vm4, %v5283_v26 }
0x41a7   :  { %v5103_v54 = vpop.f32.mrf.mxu2 }
0x41a8   :  { %v5106_v55 = vmul.f32 0.35355338, %v5103_v54 }
0x41aa   :  { %v5107_v57 = vadd.f32 %v10025_v24, %v5106_v55 }
0x41ac   :  { %v5108_v58 = vsel %vm992_vm4, %v5107_v57, -inf }
0x41ad   :  { %5109 = vmax.xlane.f32.xlu1 %v5108_v58 }
0x41af   :  { %v5216_v15 = vpop.f32.mrf.mxu2 }
0x41b0   :  { %v5219_v17 = vmul.f32 0.35355338, %v5216_v15 }
0x41b2   :  { %v5220_v62 = vadd.f32 %v10025_v24, %v5219_v17 }
0x41b4   :  { %v5221_v59 = vsel %vm992_vm4, %v5220_v62, -inf }
0x41b5   :  { %5222 = vmax.xlane.f32.xlu2 %v5221_v59 }
0x420d   :  { %v10054_v0 = vpop.f32.mrf.mxu1 }
0x4215   :  { %v5307_v60 = vpop.f32.mrf.mxu1 }
0x4216   :  { %v5310_v2 = vmul.f32 0.35355338, %v5307_v60  ;;  %v7678_v60 = vld [vmem:[#allocation49] ss:$0 sm:$0xff] }
0x4218   :  { %v5311_v53 = vadd.f32 %v10025_v24, %v5310_v2 }
0x421a   :  { %v5312_v14 = vsel %vm992_vm4, %v5311_v53, -inf }
0x421b   :  { %5313 = vmax.xlane.f32.xlu0 %v5312_v14 }
0x4220   :  { %v5110_v5 = vpop.xlane.xlu1 %5109 }
0x4221   :  { %v5111_v6 = vsub.f32 %v5107_v57, %v5110_v5 }
0x4223   :  { %v5112_v8 = vmul.f32 1.442695, %v5111_v6 }
0x4225   :  { %7517 = vpow2.f32 %v5112_v8 }
0x4228   :  { %v5223_v48 = vpop.xlane.xlu2 %5222 }
0x4229   :  { %v5224_v7 = vsub.f32 %v5220_v62, %v5223_v48 }
0x422b   :  { %v7518_v9 = vpop.eup %7517  ;;  %v5225_v10 = vmul.f32 1.442695, %v5224_v7 }
0x422c   :  { %v5114_v4 = vsel %vm992_vm4, %v7518_v9, 0.0 }
0x422d   :  { %7519 = vpow2.f32 %v5225_v10  ;;  %5115 = vadd.xlane.f32.xlu1 %v5114_v4  ;;  %v7680_v10 = vld [vmem:[#allocation8] ss:$0 sm:$0xff] }
0x4233   :  { %v7520_v16 = vpop.eup %7519 }
0x4234   :  { %v5227_v63 = vsel %vm992_vm4, %v7520_v16, 0.0 }
0x4235   :  { %5228 = vadd.xlane.f32.xlu2 %v5227_v63 }
0x4246   :  { %5119 = vrot.lane.b32.xlu1 %v10001_v1, %s10565_s0 }
0x424d   :  { %5232 = vrot.lane.b32.xlu2 %v10001_v1, %s10566_s11 }
0x428e   :  { %v5314_v19 = vpop.xlane.xlu0 %5313 }
0x428f   :  { %v5315_v20 = vsub.f32 %v5311_v53, %v5314_v19  ;;  %v7679_v53 = vld [vmem:[#allocation47] ss:$0 sm:$0xff] }
0x4291   :  { %v5316_v22 = vmul.f32 1.442695, %v5315_v20  ;;  %v7681_v20 = vld [vmem:[%s10576_s2] ss:$0 sm:$0xff] }
0x4293   :  { %7521 = vpow2.f32 %v5316_v22 }
0x4299   :  { %v7522_v23 = vpop.eup %7521 }
0x429a   :  { %v5318_v25 = vsel %vm992_vm4, %v7522_v23, 0.0 }
0x429b   :  { %5319 = vadd.xlane.f32.xlu0 %v5318_v25 }
0x42a0   :  { %v5116_v27 = vpop.xlane.xlu1 %5115 }
0x42a1   :  { %7523 = vrcp.f32 %v5116_v27 }
0x42a7   :  { %v7524_v41 = vpop.eup %7523 }
0x42a8   :  { %v5229_v28 = vpop.xlane.xlu2 %5228  ;;  %v5118_v33 = vmul.f32 %v7524_v41, %v7518_v9 }
0x42a9   :  { %7525 = vrcp.f32 %v5229_v28 }
0x42af   :  { %5323 = vrot.lane.b32.xlu0 %v10001_v1, %s10567_s7  ;;  %v7526_v29 = vpop.eup %7525  ;;  %v4929_v1 = vadd.f32 %v7673_v21, %v4928_v12 }
0x42b0   :  { %v5233_v30 = vpop.permute.xlu2 %5232  ;;  %v5231_v38 = vmul.f32 %v7526_v29, %v7520_v16 }
0x42b1   :  { %v4931_v39 = vadd.f32 %v4929_v1, %v10016_v34  ;;  %v7676_v34 = vld [vmem:[%s10575_s1 + $0x8] sm:$0xff] }
0x42b3   :  { %v4932_v40 = vsel %vm965_vm3, %v4931_v39, 0.0 }
0x42b8   :  { %v5120_v35 = vpop.permute.xlu1 %5119 }
0x42b9   :  { %5140 = vmatpush.msrb.mxu3 %v5120_v35 }
0x42ba   :  { %7119 = vmatmul.msk.f32.vlgmr.msrb.gmra.mxu3 %vm992_vm4, %v5118_v33  ;;  %v7683_v33 = vld [vmem:[%s10577_s16] sm:$0xff] }
0x42bb   :  { %5253 = vmatpush.msra.mxu3 %v5233_v30 }
0x42bd   :  { %5367 = vmatpush.msrb.mxu3 %v7672_v36 }
0x42c2   :  { %7124 = vmatmul.msk.f32.vlgmr.msra.gmra.mxu3 %vm992_vm4, %v5231_v38 }
0x42d9   :  { %4933 = vadd.xlane.f32.xlu0 %v4932_v40 }
0x430e   :  { %v5320_v61 = vpop.xlane.xlu0 %5319 }
0x430f   :  { %7527 = vrcp.f32 %v5320_v61 }
0x4315   :  { %v7528_v42 = vpop.eup %7527 }
0x4316   :  { %v5322_v37 = vmul.f32 %v7528_v42, %v7522_v23  ;;  %v7684_v42 = vld [vmem:[%s10578_s18] ss:$0 sm:$0xff] }
0x4321   :  { %v5324_v43 = vpop.permute.xlu0 %5323 }
0x4322   :  { %5344 = vmatpush.msrb.mxu2 %v5324_v43  ;;  %v7685_v43 = vld [vmem:[%s10579_s9] ss:$0 sm:$0xff] }
0x4323   :  { %7128 = vmatmul.msk.f32.vlgmr.msrb.gmra.mxu2 %vm992_vm4, %v5322_v37 }
0x433d   :  { %v5142_v44 = vpop.f32.mrf.mxu3 }
0x433e   :  { %7120 = vmatmul.msk.f32.vlgmr.msrb.gmra.mxu0 %vm992_vm4, %v5142_v44 }
0x433f   :  { %5414 = vmatpush.msrb.mxu0 %v7674_v31 }
0x4341   :  { %5415 = vmatpush.msrb.mxu0 %v7675_v18  ;;  %v7686_v18 = vld [vmem:[#allocation2] ss:$0 sm:$0xff] }
0x4343   :  { %5416 = vmatpush.msrb.mxu0 %v7676_v34 }
0x4345   :  { %v5255_v45 = vpop.f32.mrf.mxu3  ;;  %5417 = vmatpush.msrb.mxu0 %v7677_v56 }
0x4346   :  { %7125 = vmatmul.msk.f32.vlgmr.msra.gmra.mxu0 %vm992_vm4, %v5255_v45  ;;  %v7687_v45 = vld [vmem:[%s10577_s16 + $0x10] sm:$0xff] }
0x434c   :  { %v4934_v46 = vpop.xlane.xlu0 %4933 }
0x434d   :  { %v4935_v11 = vmul.f32 %v4934_v46, %v9327_v51 }
0x434f   :  { %v4936_v47 = vsub.f32 %v4931_v39, %v4935_v11  ;;  %v10114_v11 = vld [vmem:[%s10527_s5 + $0x1] ss:$0 sm:$0xff]  ;;  %s10580_s5 = sld [smem:[#allocation83_spill]] }
0x4351   :  { %v4937_v13 = vmul.f32 %v4936_v47, %v4936_v47 }
0x4353   :  { %v4938_v32 = vsel %vm965_vm3, %v4937_v13, 0.0 }
0x4354   :  { %4939 = vadd.xlane.f32.xlu2 %v4938_v32 }
0x43a6   :  { %v5346_v49 = vpop.f32.mrf.mxu2 }
0x43a7   :  { %7129 = vmatmul.msk.f32.vlgmr.msrb.gmra.mxu3 %vm992_vm4, %v5346_v49 }
0x43bb   :  { %v5165_v5 = vpop.f32.mrf.mxu0 }
0x43bc   :  { %v5189_v8 = vadd.f32 %v10054_v0, %v5165_v5  ;;  %v7682_v0 = vld [vmem:[%s10577_s16 + $0x8] sm:$0xff]  ;;  %v7690_v5 = vld [vmem:[%s10580_s5 + $0x30] sm:$0xff] }
0x43c3   :  { %v5278_v6 = vpop.f32.mrf.mxu0 }
0x43c4   :  { %v5281_v48 = vadd.f32 %v5278_v6, %v5189_v8  ;;  %v7691_v8 = vld [vmem:[%s10580_s5 + $0x28] sm:$0xff] }
0x43c7   :  { %v4940_v50 = vpop.xlane.xlu2 %4939 }
0x43c8   :  { %v4941_v26 = vmul.f32 %v4940_v50, %v9327_v51 }
0x43ca   :  { %v4942_v52 = vadd.f32 1e-05, %v4941_v26 }
0x43cc   :  { %7529 = vrsqrt.f32 %v4942_v52  ;;  %vm4949_vm15 = vweird.f32 %v4942_v52 }
0x43d2   :  { %v7530_v54 = vpop.eup %7529 }
0x43d3   :  { %v4944_v55 = vmul.f32 %v7530_v54, %v4942_v52  ;;  %vm4950_vm14 = vweird.f32 %v7530_v54 }
0x43d4   :  { %vm4951_vm2 = vmor %vm4949_vm15, %vm4950_vm14 }
0x43d5   :  { %v4945_v57 = vmul.f32 %v7530_v54, %v4944_v55 }
0x43d7   :  { %v4946_v58 = vmul.f32 0.5, %v4945_v57 }
0x43d9   :  { %v4947_v15 = vsub.f32 1.5, %v4946_v58 }
0x43db   :  { %v4948_v17 = vmul.f32 %v7530_v54, %v4947_v15 }
0x43dd   :  { %v4952_v62 = vsel %vm4951_vm2, %v7530_v54, %v4948_v17 }
0x43de   :  { %v4953_v59 = vmul.f32 %v4952_v62, %v4936_v47 }
0x43e0   :  { %v4954_v2 = vmul.f32 %v7678_v60, %v4953_v59 }
0x43e2   :  { %v10083_v14 = vadd.f32 %v7679_v53, %v4954_v2  ;;  %v7689_v2 = vld [vmem:[%s10580_s5 + $0x38] sm:$0xff] }
0x43e4   :  { %7131 = vmatmul.msk.f32.vlgmr.msrb.gmra.mxu1 %vm965_vm3, %v10083_v14 }
0x442a   :  { %v5369_v7 = vpop.f32.mrf.mxu3 }
0x442b   :  { %v5372_v9 = vadd.f32 %v5369_v7, %v5281_v48 }
0x442d   :  { %v5373_v4 = vadd.f32 %v7680_v10, %v5372_v9  ;;  %v7692_v9 = vld [vmem:[%s10580_s5 + $0x20] sm:$0xff] }
0x442f   :  { %v5374_v16 = vadd.f32 %v5373_v4, %v9993_v3  ;;  %v7693_v4 = vld [vmem:[%s10580_s5 + $0x18] sm:$0xff] }
0x4431   :  { %v5375_v63 = vsel %vm965_vm3, %v5374_v16, 0.0 }
0x4432   :  { %5376 = vadd.xlane.f32.xlu1 %v5375_v63  ;;  %v7694_v63 = vld [vmem:[%s10580_s5 + $0x10] sm:$0xff] }
0x4461   :  { %v5442_v19 = vpop.f32.mrf.mxu1 }
0x4462   :  { %v10091_v22 = vadd.f32 %v7681_v20, %v5442_v19  ;;  %v7695_v20 = vld [vmem:[%s10580_s5 + $0x8] sm:$0xff] }
0x4464   :  { %5484 = vrot.lane.b32.xlu2 %v10091_v22, %s10558_s15  ;;  %7132 = vmatpush.xpose.msk.msra.mxu2 %vm992_vm4, %v10091_v22 }
0x4468   :  { %5595 = vmatpush.msrb.mxu2 %v7682_v0 }
0x446c   :  { %5625 = vrot.lane.b32.xlu2 %v10091_v22, %s10560_s14 }
0x44a5   :  { %v5377_v3 = vpop.xlane.xlu1 %5376 }
0x44a6   :  { %v5378_v23 = vmul.f32 %v5377_v3, %v9327_v51  ;;  %v7696_v3 = vld [vmem:[%s10580_s5] sm:$0xff] }
0x44a8   :  { %v5379_v25 = vsub.f32 %v5374_v16, %v5378_v23 }
0x44aa   :  { %v5380_v27 = vmul.f32 %v5379_v25, %v5379_v25 }
0x44ac   :  { %v5381_v28 = vsel %vm965_vm3, %v5380_v27, 0.0 }
0x44ad   :  { %5382 = vadd.xlane.f32.xlu0 %v5381_v28 }
0x44be   :  { %v5485_v41 = vpop.permute.xlu2 %5484 }
0x44bf   :  { %5505 = vmatpush.msra.mxu3 %v5485_v41 }
0x44c1   :  { %5618 = vmatpush.msrb.mxu3 %v7683_v33 }
0x44c6   :  { %v5626_v55 = vpop.permute.xlu2 %5625 }
0x4520   :  { %v5383_v35 = vpop.xlane.xlu0 %5382 }
0x4521   :  { %v5384_v30 = vmul.f32 %v5383_v35, %v9327_v51 }
0x4523   :  { %v5385_v36 = vadd.f32 1e-05, %v5384_v30 }
0x4525   :  { %7531 = vrsqrt.f32 %v5385_v36  ;;  %vm5392_vm6 = vweird.f32 %v5385_v36 }
0x452b   :  { %v7532_v29 = vpop.eup %7531 }
0x452c   :  { %v5387_v38 = vmul.f32 %v7532_v29, %v5385_v36  ;;  %vm5393_vm5 = vweird.f32 %v7532_v29 }
0x452d   :  { %vm5394_vm7 = vmor %vm5392_vm6, %vm5393_vm5 }
0x452e   :  { %v5388_v12 = vmul.f32 %v7532_v29, %v5387_v38 }
0x4530   :  { %v5389_v21 = vmul.f32 0.5, %v5388_v12 }
0x4532   :  { %v5390_v1 = vsub.f32 1.5, %v5389_v21 }
0x4534   :  { %v5391_v39 = vmul.f32 %v7532_v29, %v5390_v1 }
0x4536   :  { %v5395_v40 = vsel %vm5394_vm7, %v7532_v29, %v5391_v39 }
0x4537   :  { %v5396_v61 = vmul.f32 %v5395_v40, %v5379_v25  ;;  %v7697_v25 = vld [vmem:[%s10557_s17] sm:$0xff] }
0x4539   :  { %v5397_v37 = vmul.f32 %v7684_v42, %v5396_v61 }
0x453b   :  { %v10106_v44 = vadd.f32 %v7685_v43, %v5397_v37 }
0x453d   :  { %7130 = vmatmul.msk.f32.vlgmr.msrb.gmra.mxu0 %vm965_vm3, %v10106_v44 }
0x45ba   :  { %v5419_v31 = vpop.f32.mrf.mxu0 }
0x45bb   :  { %v5420_v34 = vadd.f32 %v7686_v18, %v5419_v31 }
0x45bd   :  { %5714 = vrot.lane.b32.xlu2 %v5420_v34, %s10564_s29  ;;  %7133 = vmatmul.msk.f32.vlgmr.msra.gmra.mxu2 %vm992_vm4, %v5420_v34 }
0x45be   :  { %5708 = vmatpush.msra.mxu2 %v7687_v45 }
0x4617   :  { %v5715_v7 = vpop.permute.xlu2 %5714 }
0x4640   :  { %v5468_v56 = vpop.f32.mrf.mxu2 }
0x4641   :  { %v5471_v46 = vmul.f32 0.35355338, %v5468_v56 }
0x4643   :  { %v5472_v47 = vadd.f32 %v10114_v11, %v5471_v46 }
0x4645   :  { %v5473_v13 = vsel %vm992_vm4, %v5472_v47, -inf }
0x4646   :  { %5474 = vmax.xlane.f32.xlu1 %v5473_v13 }
0x465f   :  { %5512 = vrot.lane.b32.xlu1 %v10091_v22, %s10559_s12 }
0x4667   :  { %5623 = vrot.lane.b32.xlu1 %v5420_v34, %s10560_s14 }
0x46b9   :  { %v5475_v32 = vpop.xlane.xlu1 %5474 }
0x46ba   :  { %v5476_v49 = vsub.f32 %v5472_v47, %v5475_v32 }
0x46bc   :  { %v5477_v50 = vmul.f32 1.442695, %v5476_v49 }
0x46be   :  { %7533 = vpow2.f32 %v5477_v50  ;;  %v7698_v50 = vld [vmem:[%s10577_s16 + $0x18] sm:$0xff] }
0x46c4   :  { %v7534_v26 = vpop.eup %7533 }
0x46c5   :  { %v5479_v52 = vsel %vm992_vm4, %v7534_v26, 0.0 }
0x46c6   :  { %5480 = vadd.xlane.f32.xlu0 %v5479_v52 }
0x46d1   :  { %v5513_v54 = vpop.permute.xlu1 %5512 }
0x46d2   :  { %7135 = vmatpush.xpose.msk.msra.mxu0 %vm992_vm4, %v5513_v54  ;;  %v7699_v54 = vld [vmem:[%s10581_s22 + $0x18] sm:$0xff] }
0x46d6   :  { %7140 = vmatpush.xpose.msk.msrb.mxu0 %vm992_vm4, %v5626_v55  ;;  %v7700_v55 = vld [vmem:[%s10581_s22 + $0x10] sm:$0xff] }
0x46d9   :  { %v5624_v62 = vpop.permute.xlu1 %5623 }
0x46da   :  { %5510 = vrot.lane.b32.xlu0 %v5420_v34, %s10559_s12 }
0x46e2   :  { %5716 = vrot.lane.b32.xlu0 %v10091_v22, %s10564_s29 }
0x4739   :  { %v5481_v57 = vpop.xlane.xlu0 %5480 }
0x473a   :  { %7535 = vrcp.f32 %v5481_v57  ;;  %v7701_v57 = vld [vmem:[%s10581_s22 + $0x8] sm:$0xff] }
0x4740   :  { %v7536_v58 = vpop.eup %7535 }
0x4741   :  { %v5483_v15 = vmul.f32 %v7536_v58, %v7534_v26  ;;  %v7702_v58 = vld [vmem:[%s10581_s22] sm:$0xff] }
0x4743   :  { %7134 = vmatmul.msk.f32.vlgmr.msra.gmra.mxu3 %vm992_vm4, %v5483_v15 }
0x474c   :  { %v5511_v17 = vpop.permute.xlu0 %5510 }
0x474d   :  { %7136 = vmatmul.msk.f32.vlgmr.msra.gmra.mxu0 %vm992_vm4, %v5511_v17 }
0x4754   :  { %v5717_v59 = vpop.permute.xlu0 %5716 }
0x4755   :  { %7141 = vmatmul.msk.f32.vlgmr.msrb.gmra.mxu0 %vm992_vm4, %v5624_v62  ;;  %7144 = vmatpush.xpose.msk.msra.mxu3 %vm992_vm4, %v5717_v59  ;;  %v7703_v62 = vld [vmem:[%s10582_s19 + $0x18] sm:$0xff] }
0x47c6   :  { %v5507_v60 = vpop.f32.mrf.mxu3 }
0x47c7   :  { %7139 = vmatmul.msk.f32.vlgmr.msrb.gmra.mxu3 %vm992_vm4, %v5507_v60  ;;  %v7704_v60 = vld [vmem:[%s10582_s19 + $0x10] sm:$0xff] }
0x47c8   :  { %5866 = vmatpush.msrb.mxu3 %v7689_v2  ;;  %v7705_v2 = vld [vmem:[%s10582_s19 + $0x8] sm:$0xff] }
0x47ca   :  { %v5535_v53 = vpop.f32.mrf.mxu0  ;;  %5867 = vmatpush.msrb.mxu3 %v7690_v5 }
0x47cb   :  { %v5538_v6 = vmul.f32 0.35355338, %v5535_v53  ;;  %v7706_v53 = vld [vmem:[%s10582_s19] sm:$0xff] }
0x47cc   :  { %5868 = vmatpush.msrb.mxu3 %v7691_v8 }
0x47cd   :  { %v5539_v48 = vadd.f32 %v10114_v11, %v5538_v6 }
0x47ce   :  { %5869 = vmatpush.msrb.mxu3 %v7692_v9 }
0x47cf   :  { %7145 = vmatmul.msk.f32.vlgmr.msra.gmra.mxu3 %vm992_vm4, %v5715_v7  ;;  %v5540_v10 = vsel %vm992_vm4, %v5539_v48, -inf }
0x47d0   :  { %5541 = vmax.xlane.f32.xlu0 %v5540_v10  ;;  %5870 = vmatpush.msrb.mxu3 %v7693_v4  ;;  %v7707_v4 = vld [vmem:[%s10583_s23] ss:$0 sm:$0xff] }
0x47d2   :  { %v5648_v16 = vpop.f32.mrf.mxu0  ;;  %5871 = vmatpush.msrb.mxu3 %v7694_v63 }
0x47d3   :  { %v5651_v19 = vmul.f32 0.35355338, %v5648_v16 }
0x47d4   :  { %5872 = vmatpush.msrb.mxu3 %v7695_v20 }
0x47d5   :  { %v5652_v0 = vadd.f32 %v10114_v11, %v5651_v19 }
0x47d6   :  { %5873 = vmatpush.msrb.mxu3 %v7696_v3 }
0x47d7   :  { %v5653_v23 = vsel %vm992_vm4, %v5652_v0, -inf }
0x47d8   :  { %6100 = vmatpush.msra.mxu3 %v7697_v25  ;;  %5654 = vmax.xlane.f32.xlu1 %v5653_v23 }
0x4843   :  { %v5542_v27 = vpop.xlane.xlu0 %5541 }
0x4844   :  { %v5543_v28 = vsub.f32 %v5539_v48, %v5542_v27 }
0x4846   :  { %v5544_v41 = vmul.f32 1.442695, %v5543_v28 }
0x4848   :  { %7537 = vpow2.f32 %v5544_v41 }
0x484a   :  { %v10146_v33 = vpop.f32.mrf.mxu3 }
0x484b   :  { %v5655_v35 = vpop.xlane.xlu1 %5654 }
0x484c   :  { %v5656_v30 = vsub.f32 %v5652_v0, %v5655_v35 }
0x484e   :  { %v7538_v36 = vpop.eup %7537  ;;  %v5657_v29 = vmul.f32 1.442695, %v5656_v30 }
0x484f   :  { %v5546_v38 = vsel %vm992_vm4, %v7538_v36, 0.0 }
0x4850   :  { %7539 = vpow2.f32 %v5657_v29  ;;  %5547 = vadd.xlane.f32.xlu0 %v5546_v38 }
0x4852   :  { %v5739_v12 = vpop.f32.mrf.mxu3 }
0x4853   :  { %v5742_v21 = vmul.f32 0.35355338, %v5739_v12 }
0x4855   :  { %v5743_v1 = vadd.f32 %v10114_v11, %v5742_v21  ;;  %v7708_v21 = vld [vmem:[%s10584_s28] ss:$0 sm:$0xff] }
0x4856   :  { %v7540_v39 = vpop.eup %7539 }
0x4857   :  { %v5744_v40 = vsel %vm992_vm4, %v5743_v1, -inf  ;;  %v5659_v61 = vsel %vm992_vm4, %v7540_v39, 0.0 }
0x4858   :  { %5745 = vmax.xlane.f32.xlu2 %v5744_v40  ;;  %5660 = vadd.xlane.f32.xlu1 %v5659_v61 }
0x4870   :  { %5551 = vrot.lane.b32.xlu2 %v10091_v22, %s10563_s27 }
0x4871   :  { %5664 = vrot.lane.b32.xlu1 %v10091_v22, %s10547_s10 }
0x48c3   :  { %v5548_v42 = vpop.xlane.xlu0 %5547 }
0x48c4   :  { %7541 = vrcp.f32 %v5548_v42  ;;  %v7710_v42 = vld [vmem:[%s10585_s25] ss:$0 sm:$0xff] }
0x48ca   :  { %v7542_v18 = vpop.eup %7541 }
0x48cb   :  { %v5746_v37 = vpop.xlane.xlu2 %5745  ;;  %v5550_v34 = vmul.f32 %v7542_v18, %v7538_v36  ;;  %v5661_v46 = vpop.xlane.xlu1 %5660  ;;  %v7711_v18 = vld [vmem:[%s10586_s24] ss:$0 sm:$0xff] }
0x48cc   :  { %v5747_v43 = vsub.f32 %v5743_v1, %v5746_v37 }
0x48ce   :  { %v5748_v31 = vmul.f32 1.442695, %v5747_v43 }
0x48d0   :  { %7543 = vpow2.f32 %v5748_v31 }
0x48d1   :  { %7545 = vrcp.f32 %v5661_v46 }
0x48d3   :  { %v5552_v45 = vpop.permute.xlu2 %5551 }
0x48d4   :  { %5572 = vmatpush.msra.mxu1 %v5552_v45 }
0x48d5   :  { %7137 = vmatmul.msk.f32.vlgmr.msra.gmra.mxu1 %vm992_vm4, %v5550_v34 }
0x48d6   :  { %v7544_v56 = vpop.eup %7543 }
0x48d7   :  { %v5750_v47 = vsel %vm992_vm4, %v7544_v56, 0.0  ;;  %v7546_v13 = vpop.eup %7545 }
0x48d8   :  { %5751 = vadd.xlane.f32.xlu0 %v5750_v47  ;;  %v5663_v32 = vmul.f32 %v7546_v13, %v7540_v39  ;;  %v7709_v39 = vld [vmem:[#allocation5] ss:$0 sm:$0xff] }
0x48e3   :  { %v5665_v49 = vpop.permute.xlu1 %5664 }
0x48e4   :  { %5685 = vmatpush.msrb.mxu1 %v5665_v49 }
0x48e5   :  { %7142 = vmatmul.msk.f32.vlgmr.msrb.gmra.mxu1 %vm992_vm4, %v5663_v32 }
0x48e6   :  { %5799 = vmatpush.msra.mxu1 %v7698_v50 }
0x48ec   :  { %5755 = vrot.lane.b32.xlu0 %v10091_v22, %s10548_s6 }
0x494b   :  { %v5752_v26 = vpop.xlane.xlu0 %5751 }
0x494c   :  { %7547 = vrcp.f32 %v5752_v26 }
0x4952   :  { %v5574_v52 = vpop.f32.mrf.mxu1  ;;  %v7548_v15 = vpop.eup %7547 }
0x4953   :  { %7138 = vmatmul.msk.f32.vlgmr.msrb.gmra.mxu2 %vm992_vm4, %v5574_v52  ;;  %v5754_v17 = vmul.f32 %v7548_v15, %v7544_v56 }
0x4954   :  { %5846 = vmatpush.msrb.mxu2 %v7699_v54 }
0x4956   :  { %5847 = vmatpush.msrb.mxu2 %v7700_v55 }
0x4958   :  { %5848 = vmatpush.msrb.mxu2 %v7701_v57 }
0x495a   :  { %5849 = vmatpush.msrb.mxu2 %v7702_v58 }
0x495e   :  { %v5756_v22 = vpop.permute.xlu0 %5755 }
0x495f   :  { %5776 = vmatpush.msra.mxu0 %v5756_v22 }
0x4960   :  { %7146 = vmatmul.msk.f32.vlgmr.msra.gmra.mxu0 %vm992_vm4, %v5754_v17 }
0x4961   :  { %5918 = vmatpush.msrb.mxu0 %v7703_v62 }
0x4962   :  { %v5687_v59 = vpop.f32.mrf.mxu1 }
0x4963   :  { %7143 = vmatmul.msk.f32.vlgmr.msra.gmra.mxu2 %vm992_vm4, %v5687_v59  ;;  %5919 = vmatpush.msrb.mxu0 %v7704_v60  ;;  %v7712_v59 = vld [vmem:[#allocation7] ss:$0 sm:$0xff] }
0x4965   :  { %5920 = vmatpush.msrb.mxu0 %v7705_v2  ;;  %v7713_v2 = vld [vmem:[%s10587_s3] ss:$0 sm:$0xff] }
0x4967   :  { %5921 = vmatpush.msrb.mxu0 %v7706_v53 }
0x49d6   :  { %v5597_v6 = vpop.f32.mrf.mxu2 }
0x49d7   :  { %v5621_v48 = vadd.f32 %v10146_v33, %v5597_v6  ;;  %v7714_v6 = vld [vmem:[#allocation29] ss:$0 sm:$0xff] }
0x49dd   :  { %v5778_v5 = vpop.f32.mrf.mxu0 }
0x49de   :  { %7147 = vmatmul.msk.f32.vlgmr.msra.gmra.mxu1 %vm992_vm4, %v5778_v5 }
0x49e6   :  { %v5710_v8 = vpop.f32.mrf.mxu2 }
0x49e7   :  { %v5713_v7 = vadd.f32 %v5710_v8, %v5621_v48 }
0x4a5b   :  { %v5801_v9 = vpop.f32.mrf.mxu1 }
0x4a5c   :  { %v5804_v10 = vadd.f32 %v5801_v9, %v5713_v7 }
0x4a5e   :  { %v5805_v16 = vadd.f32 %v7707_v4, %v5804_v10 }
0x4a60   :  { %v5806_v63 = vadd.f32 %v5805_v16, %v10106_v44 }
0x4a62   :  { %v5807_v19 = vsel %vm965_vm3, %v5806_v63, 0.0 }
0x4a63   :  { %5808 = vadd.xlane.f32.xlu2 %v5807_v19 }
0x4ad6   :  { %v5809_v20 = vpop.xlane.xlu2 %5808 }
0x4ad7   :  { %v5810_v0 = vmul.f32 %v5809_v20, %v9327_v51 }
0x4ad9   :  { %v5811_v3 = vsub.f32 %v5806_v63, %v5810_v0  ;;  %v7715_v0 = vld [vmem:[%s10557_s17 + $0x8] sm:$0xff] }
0x4adb   :  { %v5812_v23 = vmul.f32 %v5811_v3, %v5811_v3 }
0x4add   :  { %v5813_v25 = vsel %vm965_vm3, %v5812_v23, 0.0 }
0x4ade   :  { %5814 = vadd.xlane.f32.xlu1 %v5813_v25 }
0x4b51   :  { %v5815_v27 = vpop.xlane.xlu1 %5814 }
0x4b52   :  { %v5816_v28 = vmul.f32 %v5815_v27, %v9327_v51 }
0x4b54   :  { %v5817_v41 = vadd.f32 1e-05, %v5816_v28 }
0x4b56   :  { %7549 = vrsqrt.f32 %v5817_v41  ;;  %vm5824_vm10 = vweird.f32 %v5817_v41 }
0x4b5c   :  { %v7550_v33 = vpop.eup %7549 }
0x4b5d   :  { %v5819_v35 = vmul.f32 %v7550_v33, %v5817_v41  ;;  %vm5825_vm8 = vweird.f32 %v7550_v33 }
0x4b5e   :  { %vm5826_vm11 = vmor %vm5824_vm10, %vm5825_vm8 }
0x4b5f   :  { %v5820_v44 = vmul.f32 %v7550_v33, %v5819_v35 }
0x4b61   :  { %v5821_v30 = vmul.f32 0.5, %v5820_v44 }
0x4b63   :  { %v5822_v36 = vsub.f32 1.5, %v5821_v30 }
0x4b65   :  { %v5823_v29 = vmul.f32 %v7550_v33, %v5822_v36 }
0x4b67   :  { %v5827_v38 = vsel %vm5826_vm11, %v7550_v33, %v5823_v29  ;;  %v7716_v33 = vld [vmem:[%s10557_s17 + $0x10] sm:$0xff] }
0x4b68   :  { %v5828_v12 = vmul.f32 %v5827_v38, %v5811_v3 }
0x4b6a   :  { %v5829_v1 = vmul.f32 %v7708_v21, %v5828_v12 }
0x4b6c   :  { %v5830_v40 = vadd.f32 %v7709_v39, %v5829_v1 }
0x4b6e   :  { %7148 = vmatmul.msk.f32.vlgmr.msrb.gmra.mxu2 %vm965_vm3, %v5830_v40 }
0x4bf1   :  { %v5851_v61 = vpop.f32.mrf.mxu2 }
0x4bf2   :  { %v5852_v37 = vadd.f32 %v7710_v42, %v5851_v61 }
0x4bf4   :  { %v5854_v43 = vmax.f32 %v5852_v37, 0.0 }
0x4bf6   :  { %7149 = vmatmul.msk.f32.vlgmr.msrb.gmra.mxu3 %vm1426_vm9, %v5854_v43 }
0x4c79   :  { %v5875_v31 = vpop.f32.mrf.mxu3 }
0x4c7a   :  { %v5876_v34 = vadd.f32 %v7711_v18, %v5875_v31 }
0x4c7c   :  { %v5878_v45 = vadd.f32 %v5876_v34, %v5830_v40 }
0x4c7e   :  { %v5879_v56 = vsel %vm965_vm3, %v5878_v45, 0.0 }
0x4c7f   :  { %5880 = vadd.xlane.f32.xlu0 %v5879_v56 }
0x4cf2   :  { %v5881_v46 = vpop.xlane.xlu0 %5880 }
0x4cf3   :  { %v5882_v47 = vmul.f32 %v5881_v46, %v9327_v51 }
0x4cf5   :  { %v5883_v13 = vsub.f32 %v5878_v45, %v5882_v47 }
0x4cf7   :  { %v5884_v32 = vmul.f32 %v5883_v13, %v5883_v13 }
0x4cf9   :  { %v5885_v49 = vsel %vm965_vm3, %v5884_v32, 0.0 }
0x4cfa   :  { %5886 = vadd.xlane.f32.xlu2 %v5885_v49 }
0x4d6d   :  { %v5887_v50 = vpop.xlane.xlu2 %5886 }
0x4d6e   :  { %v5888_v26 = vmul.f32 %v5887_v50, %v9327_v51 }
0x4d70   :  { %v5889_v52 = vadd.f32 1e-05, %v5888_v26 }
0x4d72   :  { %7551 = vrsqrt.f32 %v5889_v52  ;;  %vm5896_vm0 = vweird.f32 %v5889_v52 }
0x4d78   :  { %v7552_v54 = vpop.eup %7551 }
0x4d79   :  { %v5891_v55 = vmul.f32 %v7552_v54, %v5889_v52  ;;  %vm5897_vm12 = vweird.f32 %v7552_v54 }
0x4d7a   :  { %vm5898_vm1 = vmor %vm5896_vm0, %vm5897_vm12 }
0x4d7b   :  { %v5892_v57 = vmul.f32 %v7552_v54, %v5891_v55 }
0x4d7d   :  { %v5893_v58 = vmul.f32 0.5, %v5892_v57 }
0x4d7f   :  { %v5894_v15 = vsub.f32 1.5, %v5893_v58 }
0x4d81   :  { %v5895_v17 = vmul.f32 %v7552_v54, %v5894_v15 }
0x4d83   :  { %v5899_v22 = vsel %vm5898_vm1, %v7552_v54, %v5895_v17 }
0x4d84   :  { %v5900_v62 = vmul.f32 %v5899_v22, %v5883_v13 }
0x4d86   :  { %v5901_v60 = vmul.f32 %v7712_v59, %v5900_v62 }
0x4d88   :  { %v10191_v53 = vadd.f32 %v7713_v2, %v5901_v60 }
0x4d8a   :  { %7150 = vmatmul.msk.f32.vlgmr.msrb.gmra.mxu0 %vm965_vm3, %v10191_v53 }
0x4e07   :  { %v5923_v5 = vpop.f32.mrf.mxu0 }
0x4e08   :  { %v10195_v8 = vadd.f32 %v7714_v6, %v5923_v5 }
0x4e0a   :  { %5927 = vrot.lane.b32.xlu1 %v10195_v8, %s10558_s15 }
0x4e12   :  { %5992 = vrot.lane.b32.xlu1 %v10195_v8, %s10559_s12 }
0x4e1a   :  { %6105 = vrot.lane.b32.xlu1 %v10195_v8, %s10560_s14 }
0x4e7c   :  { %v5928_v48 = vpop.permute.xlu1 %5927 }
0x4e7d   :  { %7151 = vmatpush.xpose.msk.msrb.mxu1 %vm992_vm4, %v5928_v48 }
0x4e80   :  { %7152 = vmatmul.msk.f32.vlgmr.msrb.gmra.mxu1 %vm992_vm4, %v10195_v8 }
0x4e84   :  { %v5993_v44 = vpop.permute.xlu1 %5992 }
0x4e8c   :  { %v6106_v36 = vpop.permute.xlu1 %6105 }
0x4efd   :  { %v5950_v7 = vpop.f32.mrf.mxu1 }
0x4efe   :  { %v5953_v9 = vmul.f32 0.35355338, %v5950_v7 }
0x4f00   :  { %v5954_v10 = vadd.f32 %v10025_v24, %v5953_v9 }
0x4f02   :  { %v5955_v4 = vsel %vm992_vm4, %v5954_v10, -inf }
0x4f03   :  { %5956 = vmax.xlane.f32.xlu2 %v5955_v4 }
0x4f1b   :  { %5966 = vrot.lane.b32.xlu2 %v10195_v8, %s10561_s13  ;;  %s10588_s13 = sld [smem:[#allocation93_spill]] }
0x4f21   :  { %v7717_v38 = vld [vmem:[%s10588_s13 + $0x18] sm:$0xff]  ;;  %v7718_v12 = vld [vmem:[%s10588_s13 + $0x10] sm:$0xff]  ;;  %v7719_v21 = vld [vmem:[%s10588_s13 + $0x8] sm:$0xff] }
0x4f22   :  { %v7720_v61 = vld [vmem:[%s10588_s13] sm:$0xff] }
0x4f23   :  { %6198 = vrot.lane.b32.xlu2 %v10195_v8, %s10548_s6 }
0x4f76   :  { %v5957_v16 = vpop.xlane.xlu2 %5956 }
0x4f77   :  { %v5958_v63 = vsub.f32 %v5954_v10, %v5957_v16  ;;  %v7721_v10 = vld [vmem:[%s10557_s17 + $0x18] sm:$0xff] }
0x4f79   :  { %v5959_v19 = vmul.f32 1.442695, %v5958_v63 }
0x4f7b   :  { %7553 = vpow2.f32 %v5959_v19 }
0x4f7e   :  { %v5967_v20 = vpop.permute.xlu2 %5966 }
0x4f7f   :  { %5987 = vmatpush.msra.mxu2 %v5967_v20 }
0x4f81   :  { %6077 = vmatpush.msrb.mxu2 %v7715_v0  ;;  %v7554_v3 = vpop.eup %7553  ;;  %v7722_v0 = vld [vmem:[#allocation11] ss:$0 sm:$0xff] }
0x4f82   :  { %v5961_v23 = vsel %vm992_vm4, %v7554_v3, 0.0 }
0x4f83   :  { %5962 = vadd.xlane.f32.xlu0 %v5961_v23 }
0x4f86   :  { %v6199_v25 = vpop.permute.xlu2 %6198 }
0x4f87   :  { %7163 = vmatpush.xpose.msk.msrb.mxu3 %vm992_vm4, %v6199_v25 }
0x4f97   :  { %5994 = vrot.lane.b32.xlu0 %v10195_v8, %s10563_s27 }
0x4f9f   :  { %6107 = vrot.lane.b32.xlu0 %v10195_v8, %s10547_s10 }
0x4fa7   :  { %6196 = vrot.lane.b32.xlu0 %v10195_v8, %s10564_s29 }
0x4ff6   :  { %v5963_v27 = vpop.xlane.xlu0 %5962 }
0x4ff7   :  { %7555 = vrcp.f32 %v5963_v27 }
0x4ffd   :  { %v7556_v28 = vpop.eup %7555 }
0x4ffe   :  { %v5965_v41 = vmul.f32 %v7556_v28, %v7554_v3 }
0x5000   :  { %7153 = vmatmul.msk.f32.vlgmr.msra.gmra.mxu2 %vm992_vm4, %v5965_v41 }
0x5001   :  { %6190 = vmatpush.msra.mxu2 %v7716_v33 }
0x5009   :  { %v5995_v35 = vpop.permute.xlu0 %5994 }
0x500a   :  { %7154 = vmatpush.xpose.msk.msra.mxu0 %vm992_vm4, %v5995_v35 }
0x500d   :  { %7155 = vmatmul.msk.f32.vlgmr.msra.gmra.mxu0 %vm992_vm4, %v5993_v44 }
0x5011   :  { %v6108_v30 = vpop.permute.xlu0 %6107 }
0x5012   :  { %7159 = vmatpush.xpose.msk.msrb.mxu0 %vm992_vm4, %v6108_v30 }
0x5015   :  { %7160 = vmatmul.msk.f32.vlgmr.msrb.gmra.mxu0 %vm992_vm4, %v6106_v36 }
0x5019   :  { %v6197_v39 = vpop.permute.xlu0 %6196 }
0x5083   :  { %v5989_v29 = vpop.f32.mrf.mxu2 }
0x5084   :  { %7158 = vmatmul.msk.f32.vlgmr.msra.gmra.mxu3 %vm992_vm4, %v5989_v29 }
0x5085   :  { %6348 = vmatpush.msra.mxu3 %v7717_v38 }
0x5087   :  { %6349 = vmatpush.msra.mxu3 %v7718_v12 }
0x5089   :  { %6350 = vmatpush.msra.mxu3 %v7719_v21  ;;  %v7728_v21 = vld [vmem:[#allocation28] ss:$0 sm:$0xff] }
0x508a   :  { %v6017_v1 = vpop.f32.mrf.mxu0 }
0x508b   :  { %v6020_v40 = vmul.f32 0.35355338, %v6017_v1  ;;  %6351 = vmatpush.msra.mxu3 %v7720_v61 }
0x508c   :  { %7164 = vmatmul.msk.f32.vlgmr.msrb.gmra.mxu3 %vm992_vm4, %v6197_v39 }
0x508d   :  { %v6021_v42 = vadd.f32 %v10025_v24, %v6020_v40 }
0x508f   :  { %v6022_v37 = vsel %vm992_vm4, %v6021_v42, -inf }
0x5090   :  { %6023 = vmax.xlane.f32.xlu2 %v6022_v37 }
0x5092   :  { %v6130_v43 = vpop.f32.mrf.mxu0 }
0x5093   :  { %v6133_v31 = vmul.f32 0.35355338, %v6130_v43 }
0x5094   :  { %7168 = vmatmul.msk.f32.vlgmr.msra.gmra.mxu3 %vm965_vm3, %v10083_v14 }
0x5095   :  { %v6134_v18 = vadd.f32 %v10025_v24, %v6133_v31 }
0x5097   :  { %v6135_v34 = vsel %vm992_vm4, %v6134_v18, -inf }
0x5098   :  { %6136 = vmax.xlane.f32.xlu1 %v6135_v34 }
0x5103   :  { %v6024_v45 = vpop.xlane.xlu2 %6023 }
0x5104   :  { %v6025_v56 = vsub.f32 %v6021_v42, %v6024_v45 }
0x5106   :  { %v6026_v46 = vmul.f32 1.442695, %v6025_v56 }
0x5107   :  { %v10239_v47 = vpop.f32.mrf.mxu3 }
0x5108   :  { %7557 = vpow2.f32 %v6026_v46 }
0x510b   :  { %v6137_v13 = vpop.xlane.xlu1 %6136 }
0x510c   :  { %v6138_v32 = vsub.f32 %v6134_v18, %v6137_v13 }
0x510e   :  { %v7558_v49 = vpop.eup %7557  ;;  %v6139_v50 = vmul.f32 1.442695, %v6138_v32 }
0x510f   :  { %v6221_v26 = vpop.f32.mrf.mxu3  ;;  %v6028_v52 = vsel %vm992_vm4, %v7558_v49, 0.0 }
0x5110   :  { %7559 = vpow2.f32 %v6139_v50  ;;  %v6224_v14 = vmul.f32 0.35355338, %v6221_v26  ;;  %6029 = vadd.xlane.f32.xlu2 %v6028_v52  ;;  %v7729_v52 = vld [vmem:[#allocation20] ss:$0 sm:$0xff] }
0x5112   :  { %v6225_v54 = vadd.f32 %v10025_v24, %v6224_v14 }
0x5114   :  { %v6226_v55 = vsel %vm992_vm4, %v6225_v54, -inf }
0x5115   :  { %6227 = vmax.xlane.f32.xlu0 %v6226_v55 }
0x5116   :  { %v7560_v57 = vpop.eup %7559 }
0x5117   :  { %v6141_v58 = vsel %vm992_vm4, %v7560_v57, 0.0  ;;  %v6353_v16 = vpop.f32.mrf.mxu3 }
0x5118   :  { %6142 = vadd.xlane.f32.xlu1 %v6141_v58  ;;  %v10255_v3 = vadd.f32 %v7722_v0, %v6353_v16  ;;  %v7731_v58 = vld [vmem:[#allocation14] ss:$0 sm:$0xff] }
0x5129   :  { %6033 = vrot.lane.b32.xlu0 %v10195_v8, %s10565_s0  ;;  %s10589_s0 = sld [smem:[#allocation95_spill]] }
0x512f   :  { %v7724_v25 = vld [vmem:[%s10589_s0 + $0x18] sm:$0xff]  ;;  %v7725_v27 = vld [vmem:[%s10589_s0 + $0x10] sm:$0xff]  ;;  %v7726_v28 = vld [vmem:[%s10589_s0 + $0x8] sm:$0xff] }
0x5130   :  { %v7727_v33 = vld [vmem:[%s10589_s0] sm:$0xff] }
0x5131   :  { %6146 = vrot.lane.b32.xlu1 %v10195_v8, %s10566_s11 }
0x5183   :  { %v6030_v62 = vpop.xlane.xlu2 %6029 }
0x5188   :  { %v6228_v15 = vpop.xlane.xlu0 %6227 }
0x5189   :  { %v6229_v17 = vsub.f32 %v6225_v54, %v6228_v15  ;;  %v7730_v54 = vld [vmem:[#allocation19] ss:$0 sm:$0xff] }
0x518b   :  { %v6230_v22 = vmul.f32 1.442695, %v6229_v17  ;;  %v6143_v60 = vpop.xlane.xlu1 %6142  ;;  %v7732_v17 = vld [vmem:[%s10569_s30 + $0x10] sm:$0xff] }
0x518d   :  { %7561 = vpow2.f32 %v6230_v22 }
0x518e   :  { %7563 = vrcp.f32 %v6030_v62 }
0x518f   :  { %7565 = vrcp.f32 %v6143_v60 }
0x5193   :  { %v7562_v24 = vpop.eup %7561 }
0x5194   :  { %v6232_v59 = vsel %vm992_vm4, %v7562_v24, 0.0  ;;  %v7564_v2 = vpop.eup %7563 }
0x5195   :  { %6233 = vadd.xlane.f32.xlu2 %v6232_v59  ;;  %v6032_v5 = vmul.f32 %v7564_v2, %v7558_v49  ;;  %v7566_v48 = vpop.eup %7565 }
0x5196   :  { %v6145_v7 = vmul.f32 %v7566_v48, %v7560_v57 }
0x519b   :  { %v6034_v6 = vpop.permute.xlu0 %6033 }
0x519c   :  { %6054 = vmatpush.msra.mxu1 %v6034_v6 }
0x519d   :  { %7156 = vmatmul.msk.f32.vlgmr.msra.gmra.mxu1 %vm992_vm4, %v6032_v5 }
0x51a3   :  { %v6147_v9 = vpop.permute.xlu1 %6146 }
0x51a4   :  { %6167 = vmatpush.msrb.mxu1 %v6147_v9 }
0x51a5   :  { %7161 = vmatmul.msk.f32.vlgmr.msrb.gmra.mxu1 %vm992_vm4, %v6145_v7 }
0x51a6   :  { %6281 = vmatpush.msra.mxu1 %v7721_v10 }
0x51ad   :  { %6237 = vrot.lane.b32.xlu2 %v10195_v8, %s10567_s7  ;;  %v7723_v8 = vld [vmem:[%s10569_s30 + $0x8] sm:$0xff]  ;;  %s8733_s7 = smov [#allocation53]  }
0x5208   :  { %v6234_v4 = vpop.xlane.xlu2 %6233 }
0x5209   :  { %7567 = vrcp.f32 %v6234_v4 }
0x520f   :  { %v7568_v63 = vpop.eup %7567 }
0x5210   :  { %v6236_v19 = vmul.f32 %v7568_v63, %v7562_v24  ;;  %v6238_v20 = vpop.permute.xlu2 %6237 }
0x5211   :  { %6258 = vmatpush.msra.mxu0 %v6238_v20 }
0x5212   :  { %7165 = vmatmul.msk.f32.vlgmr.msra.gmra.mxu0 %vm992_vm4, %v6236_v19 }
0x5213   :  { %7169 = vmatpush.xpose.msk.msrb.mxu0 %vm992_vm4, %v10255_v3 }
0x5217   :  { %6506 = vmatpush.msra.mxu0 %v7723_v8 }
0x521a   :  { %v6056_v23 = vpop.f32.mrf.mxu1 }
0x521b   :  { %7157 = vmatmul.msk.f32.vlgmr.msrb.gmra.mxu2 %vm992_vm4, %v6056_v23  ;;  %v7733_v23 = vld [vmem:[%s10569_s30] sm:$0xff] }
0x521c   :  { %6328 = vmatpush.msrb.mxu2 %v7724_v25 }
0x521e   :  { %6329 = vmatpush.msrb.mxu2 %v7725_v27 }
0x5220   :  { %6330 = vmatpush.msrb.mxu2 %v7726_v28 }
0x5222   :  { %v6169_v41 = vpop.f32.mrf.mxu1  ;;  %6331 = vmatpush.msrb.mxu2 %v7727_v33 }
0x5223   :  { %7162 = vmatmul.msk.f32.vlgmr.msra.gmra.mxu2 %vm992_vm4, %v6169_v41 }
0x528f   :  { %v6260_v35 = vpop.f32.mrf.mxu0 }
0x5290   :  { %7166 = vmatmul.msk.f32.vlgmr.msra.gmra.mxu1 %vm992_vm4, %v6260_v35 }
0x529e   :  { %v6079_v44 = vpop.f32.mrf.mxu2 }
0x529f   :  { %v6103_v36 = vadd.f32 %v10239_v47, %v6079_v44 }
0x52a6   :  { %v6192_v30 = vpop.f32.mrf.mxu2 }
0x52a7   :  { %v6195_v29 = vadd.f32 %v6192_v30, %v6103_v36  ;;  %v7734_v36 = vld [vmem:[%s10571_s26 + $0x38] sm:$0xff] }
0x530d   :  { %v6283_v38 = vpop.f32.mrf.mxu1 }
0x530e   :  { %v6286_v12 = vadd.f32 %v6283_v38, %v6195_v29  ;;  %v7735_v29 = vld [vmem:[%s10571_s26 + $0x30] sm:$0xff]  ;;  %v7736_v38 = vld [vmem:[%s10571_s26 + $0x28] sm:$0xff] }
0x5310   :  { %v6287_v1 = vadd.f32 %v7728_v21, %v6286_v12  ;;  %v7737_v21 = vld [vmem:[%s10571_s26 + $0x20] sm:$0xff] }
0x5312   :  { %v6288_v39 = vadd.f32 %v6287_v1, %v10191_v53  ;;  %v7738_v1 = vld [vmem:[%s10571_s26 + $0x18] sm:$0xff] }
0x5314   :  { %v6289_v40 = vsel %vm965_vm3, %v6288_v39, 0.0 }
0x5315   :  { %6290 = vadd.xlane.f32.xlu0 %v6289_v40  ;;  %v7740_v40 = vld [vmem:[%s10571_s26 + $0x8] sm:$0xff] }
0x5388   :  { %v6291_v61 = vpop.xlane.xlu0 %6290 }
0x5389   :  { %v6292_v42 = vmul.f32 %v6291_v61, %v9327_v51  ;;  %v7741_v61 = vld [vmem:[%s10571_s26] sm:$0xff] }
0x538b   :  { %v6293_v37 = vsub.f32 %v6288_v39, %v6292_v42  ;;  %v7739_v39 = vld [vmem:[%s10571_s26 + $0x10] sm:$0xff] }
0x538d   :  { %v6294_v43 = vmul.f32 %v6293_v37, %v6293_v37 }
0x538f   :  { %v6295_v31 = vsel %vm965_vm3, %v6294_v43, 0.0 }
0x5390   :  { %6296 = vadd.xlane.f32.xlu1 %v6295_v31 }
0x53a9   :  { %6423 = vrot.lane.b32.xlu1 %v10255_v3, %s10559_s12 }
0x53b1   :  { %6627 = vrot.lane.b32.xlu1 %v10255_v3, %s10564_s29 }
0x5403   :  { %v6297_v18 = vpop.xlane.xlu1 %6296 }
0x5404   :  { %v6298_v53 = vmul.f32 %v6297_v18, %v9327_v51 }
0x5406   :  { %v6299_v34 = vadd.f32 1e-05, %v6298_v53 }
0x5408   :  { %7569 = vrsqrt.f32 %v6299_v34  ;;  %vm6306_vm14 = vweird.f32 %v6299_v34 }
0x540e   :  { %v7570_v45 = vpop.eup %7569 }
0x540f   :  { %v6301_v56 = vmul.f32 %v7570_v45, %v6299_v34  ;;  %vm6307_vm13 = vweird.f32 %v7570_v45 }
0x5410   :  { %vm6308_vm15 = vmor %vm6306_vm14, %vm6307_vm13 }
0x5411   :  { %v6302_v46 = vmul.f32 %v7570_v45, %v6301_v56 }
0x5413   :  { %v6303_v47 = vmul.f32 0.5, %v6302_v46 }
0x5415   :  { %v6304_v13 = vsub.f32 1.5, %v6303_v47 }
0x5417   :  { %v6305_v32 = vmul.f32 %v7570_v45, %v6304_v13 }
0x5419   :  { %v6309_v49 = vsel %vm6308_vm15, %v7570_v45, %v6305_v32 }
0x541a   :  { %v6310_v50 = vmul.f32 %v6309_v49, %v6293_v37 }
0x541b   :  { %v6424_v26 = vpop.permute.xlu1 %6423 }
0x541c   :  { %v6311_v14 = vmul.f32 %v7729_v52, %v6310_v50  ;;  %7172 = vmatpush.xpose.msk.msra.mxu2 %vm992_vm4, %v6424_v26 }
0x541e   :  { %v10279_v55 = vadd.f32 %v7730_v54, %v6311_v14 }
0x5420   :  { %7167 = vmatmul.msk.f32.vlgmr.msrb.gmra.mxu2 %vm965_vm3, %v10279_v55 }
0x5423   :  { %v6628_v8 = vpop.permute.xlu1 %6627 }
0x54a3   :  { %v6333_v57 = vpop.f32.mrf.mxu2 }
0x54a4   :  { %v6334_v15 = vadd.f32 %v7731_v58, %v6333_v57 }
0x54a6   :  { %7170 = vmatmul.msk.f32.vlgmr.msrb.gmra.mxu0 %vm992_vm4, %v6334_v15 }
0x54a7   :  { %6619 = vmatpush.msrb.mxu0 %v7732_v17 }
0x5523   :  { %v6379_v22 = vpop.f32.mrf.mxu0 }
0x5524   :  { %v6382_v62 = vmul.f32 0.35355338, %v6379_v22  ;;  %v7742_v22 = vld [vmem:[%s10570_s4 + $0x18] sm:$0xff] }
0x5526   :  { %v6383_v24 = vadd.f32 %v10114_v11, %v6382_v62  ;;  %v7743_v62 = vld [vmem:[%s10570_s4 + $0x10] sm:$0xff] }
0x5528   :  { %v6384_v59 = vsel %vm992_vm4, %v6383_v24, -inf }
0x5529   :  { %6385 = vmax.xlane.f32.xlu2 %v6384_v59  ;;  %v7744_v59 = vld [vmem:[%s10570_s4 + $0x8] sm:$0xff] }
0x5541   :  { %6421 = vrot.lane.b32.xlu2 %v6334_v15, %s10559_s12 }
0x5549   :  { %6625 = vrot.lane.b32.xlu2 %v6334_v15, %s10564_s29 }
0x559c   :  { %v6386_v60 = vpop.xlane.xlu2 %6385 }
0x559d   :  { %v6387_v2 = vsub.f32 %v6383_v24, %v6386_v60  ;;  %v7745_v60 = vld [vmem:[%s10570_s4] sm:$0xff] }
0x559f   :  { %v6388_v5 = vmul.f32 1.442695, %v6387_v2 }
0x55a1   :  { %7571 = vpow2.f32 %v6388_v5 }
0x55a4   :  { %v6422_v6 = vpop.permute.xlu2 %6421 }
0x55a5   :  { %7173 = vmatmul.msk.f32.vlgmr.msra.gmra.mxu2 %vm992_vm4, %v6422_v6 }
0x55a7   :  { %v7572_v48 = vpop.eup %7571 }
0x55a8   :  { %v6390_v7 = vsel %vm992_vm4, %v7572_v48, 0.0 }
0x55a9   :  { %6391 = vadd.xlane.f32.xlu0 %v6390_v7 }
0x55ac   :  { %v6626_v12 = vpop.permute.xlu2 %6625 }
0x55bd   :  { %6395 = vrot.lane.b32.xlu0 %v10255_v3, %s10558_s15 }
0x55c5   :  { %6536 = vrot.lane.b32.xlu0 %v10255_v3, %s10560_s14 }
0x55cd   :  { %6534 = vrot.lane.b32.xlu0 %v6334_v15, %s10560_s14 }
0x561c   :  { %v6392_v9 = vpop.xlane.xlu0 %6391 }
0x561d   :  { %7573 = vrcp.f32 %v6392_v9 }
0x5623   :  { %v7574_v63 = vpop.eup %7573 }
0x5624   :  { %v6394_v20 = vmul.f32 %v7574_v63, %v7572_v48  ;;  %v7746_v48 = vld [vmem:[%s10569_s30 + $0x18] sm:$0xff]  ;;  %v7748_v63 = vld [vmem:[#allocation52 + $0x10] sm:$0xff]  ;;  %s10590_s30 = sld [smem:[#allocation128_spill]] }
0x5628   :  { %v6446_v10 = vpop.f32.mrf.mxu2 }
0x5629   :  { %v6449_v4 = vmul.f32 0.35355338, %v6446_v10 }
0x562a   :  { %s6844_s17 = sshll.u32 %s10590_s30, 4  ;;  %s6845_s17 = int_to_ptr.hbm [resolvable:$true] %s6844_s17 }
0x562b   :  { %v6450_v16 = vadd.f32 %v10114_v11, %v6449_v4  ;;  %s8563_s12 = sshra.s32 %s6845_s17, 4  ;;  %s8564_s12 = int_to_ptr.hbm [resolvable:$true] %s8563_s12 }
0x562c   :  { %p8568_p12 = scmp.lt.s32.totalorder %s8564_s12, %s10590_s30 }
0x562d   :  { %v6451_v19 = vsel %vm992_vm4, %v6450_v16, -inf }
0x562e   :  { %6452 = vmax.xlane.f32.xlu1 %v6451_v19  ;;  %v7749_v19 = vld [vmem:[#allocation52 + $0x8] sm:$0xff] }
0x562f   :  { %v6396_v0 = vpop.permute.xlu0 %6395 }
0x5630   :  { %6416 = vmatpush.msrb.mxu1 %v6396_v0 }
0x5631   :  { %7171 = vmatmul.msk.f32.vlgmr.msrb.gmra.mxu1 %vm992_vm4, %v6394_v20  ;;  %v7750_v20 = vld [vmem:[#allocation52] sm:$0xff] }
0x5632   :  { %6529 = vmatpush.msra.mxu1 %v7733_v23 }
0x5634   :  { %7181 = vmatpush.xpose.msk.msrb.mxu1 %vm992_vm4, %v6628_v8 }
0x5637   :  { %v6537_v25 = vpop.permute.xlu0 %6536 }
0x5638   :  { %7177 = vmatpush.xpose.msk.msrb.mxu2 %vm992_vm4, %v6537_v25 }
0x563f   :  { %v6535_v27 = vpop.permute.xlu0 %6534 }
0x5640   :  { %7178 = vmatmul.msk.f32.vlgmr.msrb.gmra.mxu2 %vm992_vm4, %v6535_v27 }
0x56a1   :  { %v6453_v28 = vpop.xlane.xlu1 %6452 }
0x56a2   :  { %v6454_v41 = vsub.f32 %v6450_v16, %v6453_v28  ;;  %v7747_v16 = vld [vmem:[#allocation52 + $0x18] sm:$0xff] }
0x56a4   :  { %v6455_v33 = vmul.f32 1.442695, %v6454_v41 }
0x56a6   :  { %7575 = vpow2.f32 %v6455_v33  ;;  %v7751_v33 = vld [vmem:[#allocation13] ss:$0 sm:$0xff] }
0x56ac   :  { %v7576_v35 = vpop.eup %7575 }
0x56ad   :  { %v6457_v44 = vsel %vm992_vm4, %v7576_v35, 0.0 }
0x56ae   :  { %v6418_v30 = vpop.f32.mrf.mxu1  ;;  %6458 = vadd.xlane.f32.xlu1 %v6457_v44 }
0x56af   :  { %7176 = vmatmul.msk.f32.vlgmr.msra.gmra.mxu1 %vm992_vm4, %v6418_v30 }
0x56b0   :  { %6777 = vmatpush.msra.mxu1 %v7734_v36 }
0x56b2   :  { %6778 = vmatpush.msra.mxu1 %v7735_v29 }
0x56b4   :  { %6779 = vmatpush.msra.mxu1 %v7736_v38 }
0x56b6   :  { %6780 = vmatpush.msra.mxu1 %v7737_v21 }
0x56b7   :  { %7182 = vmatmul.msk.f32.vlgmr.msrb.gmra.mxu1 %vm992_vm4, %v6626_v12 }
0x56b8   :  { %6781 = vmatpush.msra.mxu1 %v7738_v1 }
0x56ba   :  { %6782 = vmatpush.msra.mxu1 %v7739_v39 }
0x56bc   :  { %6783 = vmatpush.msra.mxu1 %v7740_v40 }
0x56be   :  { %6784 = vmatpush.msra.mxu1 %v7741_v61 }
0x56c3   :  { %v6559_v42 = vpop.f32.mrf.mxu2 }
0x56c4   :  { %v6562_v37 = vmul.f32 0.35355338, %v6559_v42 }
0x56c6   :  { %v6563_v43 = vadd.f32 %v10114_v11, %v6562_v37 }
0x56c7   :  { %6462 = vrot.lane.b32.xlu1 %v10255_v3, %s10563_s27  ;;  %s8567_s27 = scalar_lea.hbm %s10590_s30, 16 }
0x56c8   :  { %v6564_v31 = vsel %vm992_vm4, %v6563_v43, -inf }
0x56c9   :  { %6565 = vmax.xlane.f32.xlu2 %v6564_v31 }
0x5721   :  { %v6459_v53 = vpop.xlane.xlu1 %6458 }
0x5722   :  { %7577 = vrcp.f32 %v6459_v53 }
0x5728   :  { %v7578_v56 = vpop.eup %7577 }
0x5729   :  { %v6461_v47 = vmul.f32 %v7578_v56, %v7576_v35  ;;  %v7753_v56 = vld [vmem:[#allocation22] ss:$0 sm:$0xff] }
0x572c   :  { %v10318_v18 = vpop.f32.mrf.mxu1 }
0x5734   :  { %v6650_v34 = vpop.f32.mrf.mxu1 }
0x5735   :  { %v6653_v45 = vmul.f32 0.35355338, %v6650_v34  ;;  %v7752_v34 = vld [vmem:[#allocation23] ss:$0 sm:$0xff] }
0x5737   :  { %v6654_v46 = vadd.f32 %v10114_v11, %v6653_v45 }
0x5739   :  { %v6463_v13 = vpop.permute.xlu1 %6462  ;;  %v6655_v32 = vsel %vm992_vm4, %v6654_v46, -inf }
0x573a   :  { %6656 = vmax.xlane.f32.xlu0 %v6655_v32  ;;  %6483 = vmatpush.msrb.mxu3 %v6463_v13  ;;  %v7754_v13 = vld [vmem:[#allocation16] ss:$0 sm:$0xff] }
0x573b   :  { %7174 = vmatmul.msk.f32.vlgmr.msrb.gmra.mxu3 %vm992_vm4, %v6461_v47 }
0x573c   :  { %v6566_v49 = vpop.xlane.xlu2 %6565 }
0x573d   :  { %v6567_v50 = vsub.f32 %v6563_v43, %v6566_v49 }
0x573f   :  { %v6568_v26 = vmul.f32 1.442695, %v6567_v50 }
0x5741   :  { %7579 = vpow2.f32 %v6568_v26  ;;  %v7755_v26 = vld [vmem:[#allocation17] ss:$0 sm:$0xff] }
0x5747   :  { %v7580_v52 = vpop.eup %7579 }
0x5748   :  { %v6570_v14 = vsel %vm992_vm4, %v7580_v52, 0.0 }
0x5749   :  { %6571 = vadd.xlane.f32.xlu0 %v6570_v14 }
0x575d   :  { %6575 = vrot.lane.b32.xlu0 %v10255_v3, %s10547_s10  ;;  %s8565_s10 = scalar_lea.hbm %s8564_s12, 16 }
0x575e   :  { %p8566_p11 = scmp.ne.s32.totalorder %s8564_s12, %s8565_s10  ;;  %p8569_p13 = scmp.lt.s32.totalorder %s8567_s27, %s8565_s10 }
0x5760   :  { %p8570_p0 = por %p8569_p13, %p8568_p12 }
0x5762   :  { %p8571_p1 = pnand %p8570_p0, %p8566_p11 }
0x57ad   :  { %v6657_v11 = vpop.xlane.xlu0 %6656 }
0x57ae   :  { %v6658_v54 = vsub.f32 %v6654_v46, %v6657_v11 }
0x57b0   :  { %v6659_v57 = vmul.f32 1.442695, %v6658_v54 }
0x57b2   :  { %7581 = vpow2.f32 %v6659_v57 }
0x57b8   :  { %v7582_v58 = vpop.eup %7581 }
0x57b9   :  { %v6661_v15 = vsel %vm992_vm4, %v7582_v58, 0.0 }
0x57ba   :  { %6662 = vadd.xlane.f32.xlu2 %v6661_v15 }
0x57bc   :  { %v6572_v24 = vpop.xlane.xlu0 %6571 }
0x57bd   :  { %7583 = vrcp.f32 %v6572_v24 }
0x57be   :  { %v6485_v17 = vpop.f32.mrf.mxu3 }
0x57bf   :  { %7175 = vmatmul.msk.f32.vlgmr.msra.gmra.mxu0 %vm992_vm4, %v6485_v17 }
0x57c0   :  { %6757 = vmatpush.msra.mxu0 %v7742_v22 }
0x57c2   :  { %6758 = vmatpush.msra.mxu0 %v7743_v62 }
0x57c3   :  { %v7584_v2 = vpop.eup %7583 }
0x57c4   :  { %6759 = vmatpush.msra.mxu0 %v7744_v59  ;;  %v6574_v5 = vmul.f32 %v7584_v2, %v7580_v52 }
0x57c6   :  { %6760 = vmatpush.msra.mxu0 %v7745_v60 }
0x57cf   :  { %v6576_v6 = vpop.permute.xlu0 %6575 }
0x57d0   :  { %6596 = vmatpush.msra.mxu3 %v6576_v6 }
0x57d1   :  { %7179 = vmatmul.msk.f32.vlgmr.msra.gmra.mxu3 %vm992_vm4, %v6574_v5 }
0x57d2   :  { %6666 = vrot.lane.b32.xlu2 %v10255_v3, %s10548_s6  ;;  %6710 = vmatpush.msrb.mxu3 %v7746_v48  ;;  %s6842_s6 = sshll.u32 %s8733_s7, 4  ;;  %s6843_s6 = int_to_ptr.vmem [resolvable:$true] %s6842_s6 }
0x582d   :  { %v6663_v7 = vpop.xlane.xlu2 %6662 }
0x582e   :  { %7585 = vrcp.f32 %v6663_v7 }
0x5834   :  { %v7586_v9 = vpop.eup %7585 }
0x5835   :  { %v6665_v10 = vmul.f32 %v7586_v9, %v7582_v58  ;;  %v6667_v4 = vpop.permute.xlu2 %6666 }
0x5836   :  { %6687 = vmatpush.msra.mxu2 %v6667_v4 }
0x5837   :  { %7183 = vmatmul.msk.f32.vlgmr.msra.gmra.mxu2 %vm992_vm4, %v6665_v10  ;;  %v7756_v10 = vld [vmem:[#allocation26] ss:$0 sm:$0xff] }
0x5838   :  { %6829 = vmatpush.msrb.mxu2 %v7747_v16  ;;  %v7757_v16 = vld [vmem:[#allocation25] ss:$0 sm:$0xff] }
0x583a   :  { %6830 = vmatpush.msrb.mxu2 %v7748_v63 }
0x583c   :  { %6831 = vmatpush.msrb.mxu2 %v7749_v19  ;;  %v6508_v8 = vpop.f32.mrf.mxu0  ;;  %v7758_v19 = vld [vmem:[#allocation50] ss:$0 sm:$0xff] }
0x583d   :  { %v6532_v25 = vadd.f32 %v10318_v18, %v6508_v8 }
0x583e   :  { %6832 = vmatpush.msrb.mxu2 %v7750_v20 }
0x5854   :  { %v6598_v0 = vpop.f32.mrf.mxu3 }
0x5855   :  { %7180 = vmatmul.msk.f32.vlgmr.msrb.gmra.mxu0 %vm992_vm4, %v6598_v0 }
0x58ba   :  { %v6689_v3 = vpop.f32.mrf.mxu2 }
0x58bb   :  { %7184 = vmatmul.msk.f32.vlgmr.msrb.gmra.mxu3 %vm992_vm4, %v6689_v3 }
0x58d2   :  { %v6621_v23 = vpop.f32.mrf.mxu0 }
0x58d3   :  { %v6624_v27 = vadd.f32 %v6621_v23, %v6532_v25 }
0x593e   :  { %v6712_v28 = vpop.f32.mrf.mxu3 }
0x593f   :  { %v6715_v41 = vadd.f32 %v6712_v28, %v6624_v27 }
0x5941   :  { %v6716_v35 = vadd.f32 %v7751_v33, %v6715_v41 }
0x5943   :  { %v6717_v44 = vadd.f32 %v6716_v35, %v10279_v55 }
0x5945   :  { %v6718_v30 = vsel %vm965_vm3, %v6717_v44, 0.0 }
0x5946   :  { %6719 = vadd.xlane.f32.xlu0 %v6718_v30 }
0x59b9   :  { %v6720_v36 = vpop.xlane.xlu0 %6719 }
0x59ba   :  { %v6721_v29 = vmul.f32 %v6720_v36, %v9327_v51 }
0x59bc   :  { %v6722_v38 = vsub.f32 %v6717_v44, %v6721_v29 }
0x59be   :  { %v6723_v12 = vmul.f32 %v6722_v38, %v6722_v38 }
0x59c0   :  { %v6724_v21 = vsel %vm965_vm3, %v6723_v12, 0.0 }
0x59c1   :  { %6725 = vadd.xlane.f32.xlu1 %v6724_v21 }
0x5a34   :  { %v6726_v1 = vpop.xlane.xlu1 %6725 }
0x5a35   :  { %v6727_v39 = vmul.f32 %v6726_v1, %v9327_v51 }
0x5a37   :  { %v6728_v40 = vadd.f32 1e-05, %v6727_v39 }
0x5a39   :  { %7587 = vrsqrt.f32 %v6728_v40  ;;  %vm6735_vm2 = vweird.f32 %v6728_v40 }
0x5a3f   :  { %v7588_v61 = vpop.eup %7587 }
0x5a40   :  { %v6730_v42 = vmul.f32 %v7588_v61, %v6728_v40  ;;  %vm6736_vm4 = vweird.f32 %v7588_v61 }
0x5a41   :  { %vm6737_vm5 = vmor %vm6735_vm2, %vm6736_vm4 }
0x5a42   :  { %v6731_v37 = vmul.f32 %v7588_v61, %v6730_v42 }
0x5a44   :  { %v6732_v55 = vmul.f32 0.5, %v6731_v37 }
0x5a46   :  { %v6733_v43 = vsub.f32 1.5, %v6732_v55 }
0x5a48   :  { %v6734_v31 = vmul.f32 %v7588_v61, %v6733_v43 }
0x5a4a   :  { %v6738_v18 = vsel %vm6737_vm5, %v7588_v61, %v6734_v31 }
0x5a4b   :  { %v6739_v53 = vmul.f32 %v6738_v18, %v6722_v38 }
0x5a4d   :  { %v6740_v45 = vmul.f32 %v7752_v34, %v6739_v53 }
0x5a4f   :  { %v6741_v46 = vadd.f32 %v7753_v56, %v6740_v45 }
0x5a51   :  { %7185 = vmatmul.msk.f32.vlgmr.msra.gmra.mxu0 %vm965_vm3, %v6741_v46 }
0x5ace   :  { %v6762_v47 = vpop.f32.mrf.mxu0 }
0x5acf   :  { %v6763_v32 = vadd.f32 %v7754_v13, %v6762_v47 }
0x5ad1   :  { %v6765_v49 = vmax.f32 %v6763_v32, 0.0 }
0x5ad3   :  { %7186 = vmatmul.msk.f32.vlgmr.msra.gmra.mxu1 %vm1426_vm9, %v6765_v49 }
0x5b50   :  { %v6786_v50 = vpop.f32.mrf.mxu1 }
0x5b51   :  { %v6787_v52 = vadd.f32 %v7755_v26, %v6786_v50 }
0x5b53   :  { %v6789_v14 = vadd.f32 %v6787_v52, %v6741_v46 }
0x5b55   :  { %v6790_v11 = vsel %vm965_vm3, %v6789_v14, 0.0 }
0x5b56   :  { %6791 = vadd.xlane.f32.xlu2 %v6790_v11 }
0x5bc9   :  { %v6792_v54 = vpop.xlane.xlu2 %6791 }
0x5bca   :  { %v6793_v57 = vmul.f32 %v6792_v54, %v9327_v51 }
0x5bcc   :  { %v6794_v58 = vsub.f32 %v6789_v14, %v6793_v57 }
0x5bce   :  { %v6795_v15 = vmul.f32 %v6794_v58, %v6794_v58 }
0x5bd0   :  { %v6796_v17 = vsel %vm965_vm3, %v6795_v15, 0.0 }
0x5bd1   :  { %6797 = vadd.xlane.f32.xlu0 %v6796_v17 }
0x5c44   :  { %v6798_v22 = vpop.xlane.xlu0 %6797 }
0x5c45   :  { %v6799_v62 = vmul.f32 %v6798_v22, %v9327_v51 }
0x5c47   :  { %v6800_v24 = vadd.f32 1e-05, %v6799_v62 }
0x5c49   :  { %7589 = vrsqrt.f32 %v6800_v24  ;;  %vm6807_vm6 = vweird.f32 %v6800_v24 }
0x5c4f   :  { %v7590_v59 = vpop.eup %7589 }
0x5c50   :  { %v6802_v60 = vmul.f32 %v7590_v59, %v6800_v24  ;;  %vm6808_vm9 = vweird.f32 %v7590_v59 }
0x5c51   :  { %vm6809_vm7 = vmor %vm6807_vm6, %vm6808_vm9 }
0x5c52   :  { %v6803_v2 = vmul.f32 %v7590_v59, %v6802_v60 }
0x5c54   :  { %v6804_v5 = vmul.f32 0.5, %v6803_v2 }
0x5c56   :  { %v6805_v6 = vsub.f32 1.5, %v6804_v5 }
0x5c58   :  { %v6806_v48 = vmul.f32 %v7590_v59, %v6805_v6 }
0x5c5a   :  { %v6810_v7 = vsel %vm6809_vm7, %v7590_v59, %v6806_v48 }
0x5c5b   :  { %v6811_v9 = vmul.f32 %v6810_v7, %v6794_v58 }
0x5c5d   :  { %v6812_v4 = vmul.f32 %v7756_v10, %v6811_v9 }
0x5c5f   :  { %v6813_v63 = vadd.f32 %v7757_v16, %v6812_v4 }
0x5c61   :  { %7187 = vmatmul.msk.f32.vlgmr.msrb.gmra.mxu2 %vm965_vm3, %v6813_v63 }
0x5ce4   :  { %v6834_v51 = vpop.f32.mrf.mxu2 }
0x5ce5   :  { %v6835_v20 = vadd.f32 %v7758_v19, %v6834_v51 }
0x5ce7   :  { %6837 = vst [vmem:[#allocation53 + $0x8] sm:$0xff] %v6835_v20 }
0x5ce8   :  { %8574 = shalt.err (!%p8571_p1)
}
0x5ce9   :  { %s10591_s15 = smov 8   ;;  %s10592_s14 = smov 128  }
0x5cea   :  { %6850 = dma.vmem_to_hbm [thread:$0]  %s6843_s6, 256, %s6845_s17, [#allocation4], %s10592_s14, %s10592_s14, %s10591_s15  }
0x5ceb   :  { %8609 = dma.done.wait [#allocation4], 256  }
0x5cec   :  { %8610 = vsyncadd [#allocation4], 4294967040 }
0x5ced   :  { %6855 = vsyncpa [#allocation3], 1 }
0x5cee   :  { %6856 = vsyncpa [#allocation6], 1 }
0x5cef   :  { %6857 = vsyncpa [#allocation9], 1 }
0x5cf0   :  { %6858 = vsyncpa [#allocation12], 1 }
0x5cf1   :  { %6859 = vsyncpa [#allocation15], 1 }
0x5cf2   :  { %6860 = vsyncpa [#allocation18], 1 }
0x5cf3   :  { %6861 = vsyncpa [#allocation21], 1 }
0x5cf4   :  { %6862 = vsyncpa [#allocation24], 1 }
0x5cf5   :  { %6863 = vsyncpa [#allocation27], 1 }
0x5cf6   :  { %6864 = vsyncpa [#allocation30], 1 }
0x5cf7   :  { %6865 = vsyncpa [#allocation33], 1 }
0x5cf8   :  { %6866 = vsyncpa [#allocation36], 1 }
0x5cf9   :  { %6867 = vsyncpa [#allocation39], 1 }
0x5cfa   :  { %6868 = vsyncpa [#allocation42], 1 }
0x5cfb   :  { %6869 = vsyncpa [#allocation45], 1 }
0x5cfc   :  { %6870 = vsyncpa [#allocation48], 1 }
0x5cfd   :  { %6871 = vsyncpa [#allocation51], 1 }
0x5cfe   :  { %6872 = vsyncpa [#allocation4], 1 }

</bundles_post_ra>
